<compile_context>
chip_gen: v6e
topology: v6e:2x2x1
jax: 0.10.0
libtpu: 0.0.40
codegen_flags: <defaults>
</compile_context>

<pallas_src>
import jax
import jax.numpy as jnp
from jax import lax
from jax.experimental import pallas as pl
from jax.experimental.pallas import tpu as pltpu


def basic_block_kernel(x_ref, w1_ref, b1_ref, w2_ref, b2_ref, out_ref, mid_ref):
    """One batch tile: conv3x3 -> BN1 -> ReLU -> conv3x3 -> BN2 -> +res -> ReLU.

    x_ref  : (B, H+2, W+2, Cin)   f32 halo-padded input tile
    w1_ref : (9, Cin, Cout)       bf16 conv1 weights (per-tap, BN1 scale folded)
    b1_ref : (1, Cout)            f32 folded BN1 bias
    w2_ref : (9, Cout, Cout)      bf16 conv2 weights (BN2 scale folded)
    b2_ref : (1, Cout)            f32 folded BN2 bias
    out_ref: (B, H, W, Cout)      f32 output tile
    mid_ref: VMEM (B, H+2, W+2, Cout) bf16 scratch (padded conv2 input)
    """
    B, Hp, Wp, Cin = x_ref.shape
    H, W = Hp - 2, Wp - 2
    Cout = w1_ref.shape[-1]
    M = B * H * W

    def conv3x3(tap_lhs, w_ref):
        # 9 shifted-view accumulating matmuls (no im2col buffer), f32 acc.
        acc = None
        for t in range(9):
            dh, dw = divmod(t, 3)
            d = jnp.dot(tap_lhs(dh, dw), w_ref[t],
                        preferred_element_type=jnp.float32)
            acc = d if acc is None else acc + d
        return acc

    # ---- conv1 (BN1 scale pre-folded into w1) + bias + ReLU ----
    def x_tap(dh, dw):
        return (x_ref[:, dh:dh + H, dw:dw + W, :]
                .astype(jnp.bfloat16).reshape(M, Cin))

    acc1 = conv3x3(x_tap, w1_ref)
    act1 = jnp.maximum(acc1 + b1_ref[...], 0.0)               # (M, Cout) f32

    # ---- write act1 ONCE into the zero-bordered padded scratch ----
    # Only the 1-wide halo frame is cleared (interior is fully overwritten
    # below).  Done every step so it is safe when the batch axis is sharded
    # across TensorCores (scratch persists per core, steps may not start at 0).
    zrow = jnp.zeros((B, 1, Wp, Cout), mid_ref.dtype)
    zcol = jnp.zeros((B, Hp, 1, Cout), mid_ref.dtype)
    mid_ref[:, 0:1, :, :] = zrow
    mid_ref[:, Hp - 1:Hp, :, :] = zrow
    mid_ref[:, :, 0:1, :] = zcol
    mid_ref[:, :, Wp - 1:Wp, :] = zcol
    mid_ref[:, 1:H + 1, 1:W + 1, :] = (
        act1.astype(jnp.bfloat16).reshape(B, H, W, Cout))

    # ---- conv2 (BN2 scale pre-folded into w2) ----
    def m_tap(dh, dw):
        return mid_ref[:, dh:dh + H, dw:dw + W, :].reshape(M, Cout)

    acc2 = conv3x3(m_tap, w2_ref)

    # ---- bias + residual add (f32) + ReLU ----
    res = x_ref[:, 1:H + 1, 1:W + 1, :].reshape(M, Cin)       # Cin == Cout
    out = jnp.maximum(acc2 + b2_ref[...] + res, 0.0)
    out_ref[...] = out.reshape(B, H, W, Cout).astype(out_ref.dtype)


def fold_bn(gamma, beta, running_mean, running_var, eps=1e-5):
    scale = gamma / jnp.sqrt(running_var + eps)
    bias = beta - running_mean * scale
    return scale.reshape(1, -1), bias.reshape(1, -1)


def _vmem_capacity_bytes():
    """Generation-aware VMEM capacity (v5e/v6e: 128 MiB, v7x: 64 MiB/TC)."""
    try:
        info = pltpu.get_tpu_info()
        cap = getattr(info, "vmem_capacity_bytes", None)
        if cap:
            return int(cap)
    except Exception:
        pass
    return 64 * 1024 * 1024  # conservative default (v7x per-TC)


def _choose_block_batch(n, per_image_bytes, vmem_budget):
    """Largest divisor of n that fits the budget while keeping >=4 (else >=2)
    grid steps so double-buffering / megacore sharding can engage."""
    divisors = [b for b in range(1, n + 1) if n % b == 0]
    fitting = [b for b in divisors if b * per_image_bytes <= vmem_budget] or [1]
    for min_steps in (4, 2, 1):
        cand = [b for b in fitting if n // b >= min_steps]
        if cand:
            return max(cand)
    return 1


def basic_block_pallas(x_nchw, w1_oihw, bn1, w2_oihw, bn2, eps=1e-5,
                       block_batch=None):
    """x_nchw: (N, C, H, W). Returns (N, C, H, W). stride=1, downsample=None."""
    N, C, H, W = x_nchw.shape
    Cout = w1_oihw.shape[0]
    # Residual adds the input directly to conv2's output; only valid when
    # inplanes == planes (the no-downsample BasicBlock).
    assert Cout == C, "BasicBlock without downsample requires inplanes == planes"
    assert w1_oihw.shape == (Cout, C, 3, 3) and w2_oihw.shape == (Cout, Cout, 3, 3)

    # NCHW -> NHWC and halo pad at the wrapper (XLA fuses pad with transpose).
    x = jnp.transpose(x_nchw, (0, 2, 3, 1)).astype(jnp.float32)
    xp = jnp.pad(x, ((0, 0), (1, 1), (1, 1), (0, 0)))

    s1, b1 = fold_bn(*bn1, eps=eps)
    s2, b2 = fold_bn(*bn2, eps=eps)

    # OIHW -> HWIO -> (9, Cin, Cout) per-tap layout (each tap at lane offset 0),
    # BN scale folded in, bf16 for the MXU.
    w1 = jnp.transpose(w1_oihw, (2, 3, 1, 0)).astype(jnp.float32)
    w2 = jnp.transpose(w2_oihw, (2, 3, 1, 0)).astype(jnp.float32)
    w1f = (w1 * s1.reshape(1, 1, 1, Cout)).reshape(9, C, Cout).astype(jnp.bfloat16)
    w2f = (w2 * s2.reshape(1, 1, 1, Cout)).reshape(9, Cout, Cout).astype(jnp.bfloat16)
    b1 = b1.reshape(1, Cout).astype(jnp.float32)
    b2 = b2.reshape(1, Cout).astype(jnp.float32)

    # Generation-dependent batch block & VMEM limit.
    vmem_cap = _vmem_capacity_bytes()
    bytes_in = (H + 2) * (W + 2) * C * 4          # f32 padded input block
    bytes_out = H * W * Cout * 4                  # f32 output block
    bytes_mid = (H + 2) * (W + 2) * Cout * 2      # bf16 padded scratch
    per_image = 2 * bytes_in + 2 * bytes_out + bytes_mid   # double-buffered I/O
    if block_batch is None:
        block_batch = _choose_block_batch(N, per_image, vmem_cap // 2)
    assert N % block_batch == 0
    vmem_limit = int(vmem_cap * 3 // 4)

    out_nhwc = pl.pallas_call(
        basic_block_kernel,
        out_shape=jax.ShapeDtypeStruct((N, H, W, Cout), jnp.float32),
        grid=(N // block_batch,),
        in_specs=[
            pl.BlockSpec((block_batch, H + 2, W + 2, C), lambda n: (n, 0, 0, 0)),
            pl.BlockSpec((9, C, Cout), lambda n: (0, 0, 0)),
            pl.BlockSpec((1, Cout), lambda n: (0, 0)),
            pl.BlockSpec((9, Cout, Cout), lambda n: (0, 0, 0)),
            pl.BlockSpec((1, Cout), lambda n: (0, 0)),
        ],
        out_specs=pl.BlockSpec((block_batch, H, W, Cout), lambda n: (n, 0, 0, 0)),
        scratch_shapes=[
            pltpu.VMEM((block_batch, H + 2, W + 2, Cout), jnp.bfloat16),
        ],
        compiler_params=pltpu.CompilerParams(
            dimension_semantics=("parallel",),
            vmem_limit_bytes=vmem_limit,
        ),
    )(xp, w1f, b1, w2f, b2)

    return jnp.transpose(out_nhwc, (0, 3, 1, 2))


def basic_block_ref(x_nchw, w1_oihw, bn1, w2_oihw, bn2, eps=1e-5):
    """Pure-JAX f32 reference (NCHW conv) for verification."""
    def conv(x, w):
        return lax.conv_general_dilated(
            x, w, window_strides=(1, 1), padding=((1, 1), (1, 1)),
            dimension_numbers=("NCHW", "OIHW", "NCHW"))

    def bn(x, params):
        gamma, beta, mean, var = params
        g = gamma.reshape(1, -1, 1, 1)
        b = beta.reshape(1, -1, 1, 1)
        m = mean.reshape(1, -1, 1, 1)
        v = var.reshape(1, -1, 1, 1)
        return (x - m) / jnp.sqrt(v + eps) * g + b

    out = jax.nn.relu(bn(conv(x_nchw, w1_oihw), bn1))
    out = bn(conv(out, w2_oihw), bn2)
    return jax.nn.relu(out + x_nchw)


if __name__ == "__main__":
    key = jax.random.PRNGKey(0)
    k = jax.random.split(key, 10)

    N, C, H, W = 2, 4, 16, 16   # inplanes = planes = 4, stride = 1, no downsample
    planes = C

    x = jax.random.normal(k[0], (N, C, H, W), jnp.float32)

    w1 = jax.random.normal(k[1], (planes, C, 3, 3), jnp.float32) * 0.1
    w2 = jax.random.normal(k[2], (planes, planes, 3, 3), jnp.float32) * 0.1

    bn1 = (1.0 + 0.1 * jax.random.normal(k[3], (planes,), jnp.float32),     # gamma
           0.1 * jax.random.normal(k[4], (planes,), jnp.float32),           # beta
           0.1 * jax.random.normal(k[5], (planes,), jnp.float32),           # running_mean
           0.5 + jnp.abs(jax.random.normal(k[6], (planes,), jnp.float32)))  # running_var
    bn2 = (1.0 + 0.1 * jax.random.normal(k[7], (planes,), jnp.float32),
           0.1 * jax.random.normal(k[8], (planes,), jnp.float32),
           0.1 * jax.random.normal(k[9], (planes,), jnp.float32),
           0.5 + jnp.abs(jax.random.normal(k[0], (planes,), jnp.float32)))

    out = basic_block_pallas(x, w1, bn1, w2, bn2)
    out = jax.block_until_ready(out)

    ref = jax.block_until_ready(basic_block_ref(x, w1, bn1, w2, bn2))
    assert out.shape == (N, C, H, W)
    # bf16 conv inputs (f32 accumulation / f32 residual) vs the pure-f32
    # reference -> relaxed tolerance (deliberate precision trade, documented).
    max_err = float(jnp.max(jnp.abs(out - ref)))
    assert jnp.allclose(out, ref, atol=5e-2, rtol=5e-2), max_err

    print("KERNEL_OK")
</pallas_src>

<mosaic_0001>
module attributes {stable_mosaic.version = 11 : i64} {
  func.func @basic_block_kernel(%arg0: i32, %arg1: memref<1x18x18x4xf32, #tpu.memory_space<vmem>>, %arg2: memref<9x4x4xbf16, #tpu.memory_space<vmem>>, %arg3: memref<1x4xf32, #tpu.memory_space<vmem>>, %arg4: memref<9x4x4xbf16, #tpu.memory_space<vmem>>, %arg5: memref<1x4xf32, #tpu.memory_space<vmem>>, %arg6: memref<1x16x16x4xf32, #tpu.memory_space<vmem>>, %arg7: memref<1x18x18x4xbf16, #tpu.memory_space<vmem>>) attributes {dimension_semantics = [#tpu.dimension_semantics<parallel>], iteration_bounds = array<i64: 2>, scalar_prefetch = 0 : i64, scratch_operands = 1 : i64, tpu.core_type = #tpu.core_type<tc>, window_params = [{transform_indices = @transform_0, window_bounds = array<i64: 1, 18, 18, 4>}, {pipeline_mode = #tpu.pipeline_mode<synchronous>, transform_indices = @transform_1, window_bounds = array<i64: 9, 4, 4>}, {pipeline_mode = #tpu.pipeline_mode<synchronous>, transform_indices = @transform_2, window_bounds = array<i64: 1, 4>}, {pipeline_mode = #tpu.pipeline_mode<synchronous>, transform_indices = @transform_3, window_bounds = array<i64: 9, 4, 4>}, {pipeline_mode = #tpu.pipeline_mode<synchronous>, transform_indices = @transform_4, window_bounds = array<i64: 1, 4>}, {transform_indices = @transform_5, window_bounds = array<i64: 1, 16, 16, 4>}]} {
    %c0 = arith.constant 0 : index
    %c0_0 = arith.constant 0 : index
    %c0_1 = arith.constant 0 : index
    %c0_2 = arith.constant 0 : index
    %0 = vector.load %arg1[%c0, %c0_0, %c0_1, %c0_2] : memref<1x18x18x4xf32, #tpu.memory_space<vmem>>, vector<1x16x16x4xf32>
    %1 = arith.truncf %0 : vector<1x16x16x4xf32> to vector<1x16x16x4xbf16>
    %2 = vector.shape_cast %1 : vector<1x16x16x4xbf16> to vector<256x4xbf16>
    %c0_3 = arith.constant 0 : index
    %c0_4 = arith.constant 0 : index
    %c0_5 = arith.constant 0 : index
    %3 = vector.load %arg2[%c0_3, %c0_4, %c0_5] : memref<9x4x4xbf16, #tpu.memory_space<vmem>>, vector<1x4x4xbf16>
    %4 = vector.shape_cast %3 : vector<1x4x4xbf16> to vector<4x4xbf16>
    %cst = arith.constant dense<0.000000e+00> : vector<256x4xf32>
    %5 = tpu.matmul %2, %4, %cst {dimension_numbers = #tpu.dot_dimension_numbers<[1], [0], [0], [1], [0, 0, 1, 1], [], []>} : vector<256x4xbf16>, vector<4x4xbf16>, vector<256x4xf32> -> vector<256x4xf32>
    %c0_6 = arith.constant 0 : index
    %c0_7 = arith.constant 0 : index
    %c1 = arith.constant 1 : index
    %c0_8 = arith.constant 0 : index
    %6 = vector.load %arg1[%c0_6, %c0_7, %c1, %c0_8] : memref<1x18x18x4xf32, #tpu.memory_space<vmem>>, vector<1x16x16x4xf32>
    %7 = arith.truncf %6 : vector<1x16x16x4xf32> to vector<1x16x16x4xbf16>
    %8 = vector.shape_cast %7 : vector<1x16x16x4xbf16> to vector<256x4xbf16>
    %c1_9 = arith.constant 1 : index
    %c0_10 = arith.constant 0 : index
    %c0_11 = arith.constant 0 : index
    %9 = vector.load %arg2[%c1_9, %c0_10, %c0_11] : memref<9x4x4xbf16, #tpu.memory_space<vmem>>, vector<1x4x4xbf16>
    %10 = vector.shape_cast %9 : vector<1x4x4xbf16> to vector<4x4xbf16>
    %cst_12 = arith.constant dense<0.000000e+00> : vector<256x4xf32>
    %11 = tpu.matmul %8, %10, %cst_12 {dimension_numbers = #tpu.dot_dimension_numbers<[1], [0], [0], [1], [0, 0, 1, 1], [], []>} : vector<256x4xbf16>, vector<4x4xbf16>, vector<256x4xf32> -> vector<256x4xf32>
    %12 = arith.addf %5, %11 : vector<256x4xf32>
    %c0_13 = arith.constant 0 : index
    %c0_14 = arith.constant 0 : index
    %c2 = arith.constant 2 : index
    %c0_15 = arith.constant 0 : index
    %13 = vector.load %arg1[%c0_13, %c0_14, %c2, %c0_15] : memref<1x18x18x4xf32, #tpu.memory_space<vmem>>, vector<1x16x16x4xf32>
    %14 = arith.truncf %13 : vector<1x16x16x4xf32> to vector<1x16x16x4xbf16>
    %15 = vector.shape_cast %14 : vector<1x16x16x4xbf16> to vector<256x4xbf16>
    %c2_16 = arith.constant 2 : index
    %c0_17 = arith.constant 0 : index
    %c0_18 = arith.constant 0 : index
    %16 = vector.load %arg2[%c2_16, %c0_17, %c0_18] : memref<9x4x4xbf16, #tpu.memory_space<vmem>>, vector<1x4x4xbf16>
    %17 = vector.shape_cast %16 : vector<1x4x4xbf16> to vector<4x4xbf16>
    %cst_19 = arith.constant dense<0.000000e+00> : vector<256x4xf32>
    %18 = tpu.matmul %15, %17, %cst_19 {dimension_numbers = #tpu.dot_dimension_numbers<[1], [0], [0], [1], [0, 0, 1, 1], [], []>} : vector<256x4xbf16>, vector<4x4xbf16>, vector<256x4xf32> -> vector<256x4xf32>
    %19 = arith.addf %12, %18 : vector<256x4xf32>
    %c0_20 = arith.constant 0 : index
    %c1_21 = arith.constant 1 : index
    %c0_22 = arith.constant 0 : index
    %c0_23 = arith.constant 0 : index
    %20 = vector.load %arg1[%c0_20, %c1_21, %c0_22, %c0_23] : memref<1x18x18x4xf32, #tpu.memory_space<vmem>>, vector<1x16x16x4xf32>
    %21 = arith.truncf %20 : vector<1x16x16x4xf32> to vector<1x16x16x4xbf16>
    %22 = vector.shape_cast %21 : vector<1x16x16x4xbf16> to vector<256x4xbf16>
    %c3 = arith.constant 3 : index
    %c0_24 = arith.constant 0 : index
    %c0_25 = arith.constant 0 : index
    %23 = vector.load %arg2[%c3, %c0_24, %c0_25] : memref<9x4x4xbf16, #tpu.memory_space<vmem>>, vector<1x4x4xbf16>
    %24 = vector.shape_cast %23 : vector<1x4x4xbf16> to vector<4x4xbf16>
    %cst_26 = arith.constant dense<0.000000e+00> : vector<256x4xf32>
    %25 = tpu.matmul %22, %24, %cst_26 {dimension_numbers = #tpu.dot_dimension_numbers<[1], [0], [0], [1], [0, 0, 1, 1], [], []>} : vector<256x4xbf16>, vector<4x4xbf16>, vector<256x4xf32> -> vector<256x4xf32>
    %26 = arith.addf %19, %25 : vector<256x4xf32>
    %c0_27 = arith.constant 0 : index
    %c1_28 = arith.constant 1 : index
    %c1_29 = arith.constant 1 : index
    %c0_30 = arith.constant 0 : index
    %27 = vector.load %arg1[%c0_27, %c1_28, %c1_29, %c0_30] : memref<1x18x18x4xf32, #tpu.memory_space<vmem>>, vector<1x16x16x4xf32>
    %28 = arith.truncf %27 : vector<1x16x16x4xf32> to vector<1x16x16x4xbf16>
    %29 = vector.shape_cast %28 : vector<1x16x16x4xbf16> to vector<256x4xbf16>
    %c4 = arith.constant 4 : index
    %c0_31 = arith.constant 0 : index
    %c0_32 = arith.constant 0 : index
    %30 = vector.load %arg2[%c4, %c0_31, %c0_32] : memref<9x4x4xbf16, #tpu.memory_space<vmem>>, vector<1x4x4xbf16>
    %31 = vector.shape_cast %30 : vector<1x4x4xbf16> to vector<4x4xbf16>
    %cst_33 = arith.constant dense<0.000000e+00> : vector<256x4xf32>
    %32 = tpu.matmul %29, %31, %cst_33 {dimension_numbers = #tpu.dot_dimension_numbers<[1], [0], [0], [1], [0, 0, 1, 1], [], []>} : vector<256x4xbf16>, vector<4x4xbf16>, vector<256x4xf32> -> vector<256x4xf32>
    %33 = arith.addf %26, %32 : vector<256x4xf32>
    %c0_34 = arith.constant 0 : index
    %c1_35 = arith.constant 1 : index
    %c2_36 = arith.constant 2 : index
    %c0_37 = arith.constant 0 : index
    %34 = vector.load %arg1[%c0_34, %c1_35, %c2_36, %c0_37] : memref<1x18x18x4xf32, #tpu.memory_space<vmem>>, vector<1x16x16x4xf32>
    %35 = arith.truncf %34 : vector<1x16x16x4xf32> to vector<1x16x16x4xbf16>
    %36 = vector.shape_cast %35 : vector<1x16x16x4xbf16> to vector<256x4xbf16>
    %c5 = arith.constant 5 : index
    %c0_38 = arith.constant 0 : index
    %c0_39 = arith.constant 0 : index
    %37 = vector.load %arg2[%c5, %c0_38, %c0_39] : memref<9x4x4xbf16, #tpu.memory_space<vmem>>, vector<1x4x4xbf16>
    %38 = vector.shape_cast %37 : vector<1x4x4xbf16> to vector<4x4xbf16>
    %cst_40 = arith.constant dense<0.000000e+00> : vector<256x4xf32>
    %39 = tpu.matmul %36, %38, %cst_40 {dimension_numbers = #tpu.dot_dimension_numbers<[1], [0], [0], [1], [0, 0, 1, 1], [], []>} : vector<256x4xbf16>, vector<4x4xbf16>, vector<256x4xf32> -> vector<256x4xf32>
    %40 = arith.addf %33, %39 : vector<256x4xf32>
    %c0_41 = arith.constant 0 : index
    %c2_42 = arith.constant 2 : index
    %c0_43 = arith.constant 0 : index
    %c0_44 = arith.constant 0 : index
    %41 = vector.load %arg1[%c0_41, %c2_42, %c0_43, %c0_44] : memref<1x18x18x4xf32, #tpu.memory_space<vmem>>, vector<1x16x16x4xf32>
    %42 = arith.truncf %41 : vector<1x16x16x4xf32> to vector<1x16x16x4xbf16>
    %43 = vector.shape_cast %42 : vector<1x16x16x4xbf16> to vector<256x4xbf16>
    %c6 = arith.constant 6 : index
    %c0_45 = arith.constant 0 : index
    %c0_46 = arith.constant 0 : index
    %44 = vector.load %arg2[%c6, %c0_45, %c0_46] : memref<9x4x4xbf16, #tpu.memory_space<vmem>>, vector<1x4x4xbf16>
    %45 = vector.shape_cast %44 : vector<1x4x4xbf16> to vector<4x4xbf16>
    %cst_47 = arith.constant dense<0.000000e+00> : vector<256x4xf32>
    %46 = tpu.matmul %43, %45, %cst_47 {dimension_numbers = #tpu.dot_dimension_numbers<[1], [0], [0], [1], [0, 0, 1, 1], [], []>} : vector<256x4xbf16>, vector<4x4xbf16>, vector<256x4xf32> -> vector<256x4xf32>
    %47 = arith.addf %40, %46 : vector<256x4xf32>
    %c0_48 = arith.constant 0 : index
    %c2_49 = arith.constant 2 : index
    %c1_50 = arith.constant 1 : index
    %c0_51 = arith.constant 0 : index
    %48 = vector.load %arg1[%c0_48, %c2_49, %c1_50, %c0_51] : memref<1x18x18x4xf32, #tpu.memory_space<vmem>>, vector<1x16x16x4xf32>
    %49 = arith.truncf %48 : vector<1x16x16x4xf32> to vector<1x16x16x4xbf16>
    %50 = vector.shape_cast %49 : vector<1x16x16x4xbf16> to vector<256x4xbf16>
    %c7 = arith.constant 7 : index
    %c0_52 = arith.constant 0 : index
    %c0_53 = arith.constant 0 : index
    %51 = vector.load %arg2[%c7, %c0_52, %c0_53] : memref<9x4x4xbf16, #tpu.memory_space<vmem>>, vector<1x4x4xbf16>
    %52 = vector.shape_cast %51 : vector<1x4x4xbf16> to vector<4x4xbf16>
    %cst_54 = arith.constant dense<0.000000e+00> : vector<256x4xf32>
    %53 = tpu.matmul %50, %52, %cst_54 {dimension_numbers = #tpu.dot_dimension_numbers<[1], [0], [0], [1], [0, 0, 1, 1], [], []>} : vector<256x4xbf16>, vector<4x4xbf16>, vector<256x4xf32> -> vector<256x4xf32>
    %54 = arith.addf %47, %53 : vector<256x4xf32>
    %c0_55 = arith.constant 0 : index
    %c2_56 = arith.constant 2 : index
    %c2_57 = arith.constant 2 : index
    %c0_58 = arith.constant 0 : index
    %55 = vector.load %arg1[%c0_55, %c2_56, %c2_57, %c0_58] : memref<1x18x18x4xf32, #tpu.memory_space<vmem>>, vector<1x16x16x4xf32>
    %56 = arith.truncf %55 : vector<1x16x16x4xf32> to vector<1x16x16x4xbf16>
    %57 = vector.shape_cast %56 : vector<1x16x16x4xbf16> to vector<256x4xbf16>
    %c8 = arith.constant 8 : index
    %c0_59 = arith.constant 0 : index
    %c0_60 = arith.constant 0 : index
    %58 = vector.load %arg2[%c8, %c0_59, %c0_60] : memref<9x4x4xbf16, #tpu.memory_space<vmem>>, vector<1x4x4xbf16>
    %59 = vector.shape_cast %58 : vector<1x4x4xbf16> to vector<4x4xbf16>
    %cst_61 = arith.constant dense<0.000000e+00> : vector<256x4xf32>
    %60 = tpu.matmul %57, %59, %cst_61 {dimension_numbers = #tpu.dot_dimension_numbers<[1], [0], [0], [1], [0, 0, 1, 1], [], []>} : vector<256x4xbf16>, vector<4x4xbf16>, vector<256x4xf32> -> vector<256x4xf32>
    %61 = arith.addf %54, %60 : vector<256x4xf32>
    %c0_62 = arith.constant 0 : index
    %c0_63 = arith.constant 0 : index
    %62 = vector.load %arg3[%c0_62, %c0_63] : memref<1x4xf32, #tpu.memory_space<vmem>>, vector<1x4xf32>
    %63 = vector.broadcast %62 : vector<1x4xf32> to vector<256x4xf32>
    %64 = arith.addf %61, %63 : vector<256x4xf32>
    %cst_64 = arith.constant 0.000000e+00 : f32
    %65 = vector.broadcast %cst_64 : f32 to vector<256x4xf32>
    %66 = arith.maximumf %64, %65 : vector<256x4xf32>
    %cst_65 = arith.constant 0.000000e+00 : bf16
    %67 = vector.broadcast %cst_65 : bf16 to vector<1x1x18x4xbf16>
    %cst_66 = arith.constant 0.000000e+00 : bf16
    %68 = vector.broadcast %cst_66 : bf16 to vector<1x18x1x4xbf16>
    %c0_67 = arith.constant 0 : index
    %c0_68 = arith.constant 0 : index
    %c0_69 = arith.constant 0 : index
    %c0_70 = arith.constant 0 : index
    %69 = vector.load %arg7[%c0_67, %c0_68, %c0_69, %c0_70] : memref<1x18x18x4xbf16, #tpu.memory_space<vmem>>, vector<1x1x18x4xbf16>
    tpu.vector_store %arg7[%c0_67, %c0_68, %c0_69, %c0_70], %67 {strides = array<i32>} : memref<1x18x18x4xbf16, #tpu.memory_space<vmem>>, vector<1x1x18x4xbf16>,
    %c0_71 = arith.constant 0 : index
    %c17 = arith.constant 17 : index
    %c0_72 = arith.constant 0 : index
    %c0_73 = arith.constant 0 : index
    %70 = vector.load %arg7[%c0_71, %c17, %c0_72, %c0_73] : memref<1x18x18x4xbf16, #tpu.memory_space<vmem>>, vector<1x1x18x4xbf16>
    tpu.vector_store %arg7[%c0_71, %c17, %c0_72, %c0_73], %67 {strides = array<i32>} : memref<1x18x18x4xbf16, #tpu.memory_space<vmem>>, vector<1x1x18x4xbf16>,
    %c0_74 = arith.constant 0 : index
    %c0_75 = arith.constant 0 : index
    %c0_76 = arith.constant 0 : index
    %c0_77 = arith.constant 0 : index
    %71 = vector.load %arg7[%c0_74, %c0_75, %c0_76, %c0_77] : memref<1x18x18x4xbf16, #tpu.memory_space<vmem>>, vector<1x18x1x4xbf16>
    tpu.vector_store %arg7[%c0_74, %c0_75, %c0_76, %c0_77], %68 {strides = array<i32>} : memref<1x18x18x4xbf16, #tpu.memory_space<vmem>>, vector<1x18x1x4xbf16>,
    %c0_78 = arith.constant 0 : index
    %c0_79 = arith.constant 0 : index
    %c17_80 = arith.constant 17 : index
    %c0_81 = arith.constant 0 : index
    %72 = vector.load %arg7[%c0_78, %c0_79, %c17_80, %c0_81] : memref<1x18x18x4xbf16, #tpu.memory_space<vmem>>, vector<1x18x1x4xbf16>
    tpu.vector_store %arg7[%c0_78, %c0_79, %c17_80, %c0_81], %68 {strides = array<i32>} : memref<1x18x18x4xbf16, #tpu.memory_space<vmem>>, vector<1x18x1x4xbf16>,
    %73 = arith.truncf %66 : vector<256x4xf32> to vector<256x4xbf16>
    %74 = vector.shape_cast %73 : vector<256x4xbf16> to vector<1x16x16x4xbf16>
    %c0_82 = arith.constant 0 : index
    %c1_83 = arith.constant 1 : index
    %c1_84 = arith.constant 1 : index
    %c0_85 = arith.constant 0 : index
    %75 = vector.load %arg7[%c0_82, %c1_83, %c1_84, %c0_85] : memref<1x18x18x4xbf16, #tpu.memory_space<vmem>>, vector<1x16x16x4xbf16>
    tpu.vector_store %arg7[%c0_82, %c1_83, %c1_84, %c0_85], %74 {strides = array<i32>} : memref<1x18x18x4xbf16, #tpu.memory_space<vmem>>, vector<1x16x16x4xbf16>,
    %c0_86 = arith.constant 0 : index
    %c0_87 = arith.constant 0 : index
    %c0_88 = arith.constant 0 : index
    %c0_89 = arith.constant 0 : index
    %76 = vector.load %arg7[%c0_86, %c0_87, %c0_88, %c0_89] : memref<1x18x18x4xbf16, #tpu.memory_space<vmem>>, vector<1x16x16x4xbf16>
    %77 = vector.shape_cast %76 : vector<1x16x16x4xbf16> to vector<256x4xbf16>
    %c0_90 = arith.constant 0 : index
    %c0_91 = arith.constant 0 : index
    %c0_92 = arith.constant 0 : index
    %78 = vector.load %arg4[%c0_90, %c0_91, %c0_92] : memref<9x4x4xbf16, #tpu.memory_space<vmem>>, vector<1x4x4xbf16>
    %79 = vector.shape_cast %78 : vector<1x4x4xbf16> to vector<4x4xbf16>
    %cst_93 = arith.constant dense<0.000000e+00> : vector<256x4xf32>
    %80 = tpu.matmul %77, %79, %cst_93 {dimension_numbers = #tpu.dot_dimension_numbers<[1], [0], [0], [1], [0, 0, 1, 1], [], []>} : vector<256x4xbf16>, vector<4x4xbf16>, vector<256x4xf32> -> vector<256x4xf32>
    %c0_94 = arith.constant 0 : index
    %c0_95 = arith.constant 0 : index
    %c1_96 = arith.constant 1 : index
    %c0_97 = arith.constant 0 : index
    %81 = vector.load %arg7[%c0_94, %c0_95, %c1_96, %c0_97] : memref<1x18x18x4xbf16, #tpu.memory_space<vmem>>, vector<1x16x16x4xbf16>
    %82 = vector.shape_cast %81 : vector<1x16x16x4xbf16> to vector<256x4xbf16>
    %c1_98 = arith.constant 1 : index
    %c0_99 = arith.constant 0 : index
    %c0_100 = arith.constant 0 : index
    %83 = vector.load %arg4[%c1_98, %c0_99, %c0_100] : memref<9x4x4xbf16, #tpu.memory_space<vmem>>, vector<1x4x4xbf16>
    %84 = vector.shape_cast %83 : vector<1x4x4xbf16> to vector<4x4xbf16>
    %cst_101 = arith.constant dense<0.000000e+00> : vector<256x4xf32>
    %85 = tpu.matmul %82, %84, %cst_101 {dimension_numbers = #tpu.dot_dimension_numbers<[1], [0], [0], [1], [0, 0, 1, 1], [], []>} : vector<256x4xbf16>, vector<4x4xbf16>, vector<256x4xf32> -> vector<256x4xf32>
    %86 = arith.addf %80, %85 : vector<256x4xf32>
    %c0_102 = arith.constant 0 : index
    %c0_103 = arith.constant 0 : index
    %c2_104 = arith.constant 2 : index
    %c0_105 = arith.constant 0 : index
    %87 = vector.load %arg7[%c0_102, %c0_103, %c2_104, %c0_105] : memref<1x18x18x4xbf16, #tpu.memory_space<vmem>>, vector<1x16x16x4xbf16>
    %88 = vector.shape_cast %87 : vector<1x16x16x4xbf16> to vector<256x4xbf16>
    %c2_106 = arith.constant 2 : index
    %c0_107 = arith.constant 0 : index
    %c0_108 = arith.constant 0 : index
    %89 = vector.load %arg4[%c2_106, %c0_107, %c0_108] : memref<9x4x4xbf16, #tpu.memory_space<vmem>>, vector<1x4x4xbf16>
    %90 = vector.shape_cast %89 : vector<1x4x4xbf16> to vector<4x4xbf16>
    %cst_109 = arith.constant dense<0.000000e+00> : vector<256x4xf32>
    %91 = tpu.matmul %88, %90, %cst_109 {dimension_numbers = #tpu.dot_dimension_numbers<[1], [0], [0], [1], [0, 0, 1, 1], [], []>} : vector<256x4xbf16>, vector<4x4xbf16>, vector<256x4xf32> -> vector<256x4xf32>
    %92 = arith.addf %86, %91 : vector<256x4xf32>
    %c0_110 = arith.constant 0 : index
    %c1_111 = arith.constant 1 : index
    %c0_112 = arith.constant 0 : index
    %c0_113 = arith.constant 0 : index
    %93 = vector.load %arg7[%c0_110, %c1_111, %c0_112, %c0_113] : memref<1x18x18x4xbf16, #tpu.memory_space<vmem>>, vector<1x16x16x4xbf16>
    %94 = vector.shape_cast %93 : vector<1x16x16x4xbf16> to vector<256x4xbf16>
    %c3_114 = arith.constant 3 : index
    %c0_115 = arith.constant 0 : index
    %c0_116 = arith.constant 0 : index
    %95 = vector.load %arg4[%c3_114, %c0_115, %c0_116] : memref<9x4x4xbf16, #tpu.memory_space<vmem>>, vector<1x4x4xbf16>
    %96 = vector.shape_cast %95 : vector<1x4x4xbf16> to vector<4x4xbf16>
    %cst_117 = arith.constant dense<0.000000e+00> : vector<256x4xf32>
    %97 = tpu.matmul %94, %96, %cst_117 {dimension_numbers = #tpu.dot_dimension_numbers<[1], [0], [0], [1], [0, 0, 1, 1], [], []>} : vector<256x4xbf16>, vector<4x4xbf16>, vector<256x4xf32> -> vector<256x4xf32>
    %98 = arith.addf %92, %97 : vector<256x4xf32>
    %c0_118 = arith.constant 0 : index
    %c1_119 = arith.constant 1 : index
    %c1_120 = arith.constant 1 : index
    %c0_121 = arith.constant 0 : index
    %99 = vector.load %arg7[%c0_118, %c1_119, %c1_120, %c0_121] : memref<1x18x18x4xbf16, #tpu.memory_space<vmem>>, vector<1x16x16x4xbf16>
    %100 = vector.shape_cast %99 : vector<1x16x16x4xbf16> to vector<256x4xbf16>
    %c4_122 = arith.constant 4 : index
    %c0_123 = arith.constant 0 : index
    %c0_124 = arith.constant 0 : index
    %101 = vector.load %arg4[%c4_122, %c0_123, %c0_124] : memref<9x4x4xbf16, #tpu.memory_space<vmem>>, vector<1x4x4xbf16>
    %102 = vector.shape_cast %101 : vector<1x4x4xbf16> to vector<4x4xbf16>
    %cst_125 = arith.constant dense<0.000000e+00> : vector<256x4xf32>
    %103 = tpu.matmul %100, %102, %cst_125 {dimension_numbers = #tpu.dot_dimension_numbers<[1], [0], [0], [1], [0, 0, 1, 1], [], []>} : vector<256x4xbf16>, vector<4x4xbf16>, vector<256x4xf32> -> vector<256x4xf32>
    %104 = arith.addf %98, %103 : vector<256x4xf32>
    %c0_126 = arith.constant 0 : index
    %c1_127 = arith.constant 1 : index
    %c2_128 = arith.constant 2 : index
    %c0_129 = arith.constant 0 : index
    %105 = vector.load %arg7[%c0_126, %c1_127, %c2_128, %c0_129] : memref<1x18x18x4xbf16, #tpu.memory_space<vmem>>, vector<1x16x16x4xbf16>
    %106 = vector.shape_cast %105 : vector<1x16x16x4xbf16> to vector<256x4xbf16>
    %c5_130 = arith.constant 5 : index
    %c0_131 = arith.constant 0 : index
    %c0_132 = arith.constant 0 : index
    %107 = vector.load %arg4[%c5_130, %c0_131, %c0_132] : memref<9x4x4xbf16, #tpu.memory_space<vmem>>, vector<1x4x4xbf16>
    %108 = vector.shape_cast %107 : vector<1x4x4xbf16> to vector<4x4xbf16>
    %cst_133 = arith.constant dense<0.000000e+00> : vector<256x4xf32>
    %109 = tpu.matmul %106, %108, %cst_133 {dimension_numbers = #tpu.dot_dimension_numbers<[1], [0], [0], [1], [0, 0, 1, 1], [], []>} : vector<256x4xbf16>, vector<4x4xbf16>, vector<256x4xf32> -> vector<256x4xf32>
    %110 = arith.addf %104, %109 : vector<256x4xf32>
    %c0_134 = arith.constant 0 : index
    %c2_135 = arith.constant 2 : index
    %c0_136 = arith.constant 0 : index
    %c0_137 = arith.constant 0 : index
    %111 = vector.load %arg7[%c0_134, %c2_135, %c0_136, %c0_137] : memref<1x18x18x4xbf16, #tpu.memory_space<vmem>>, vector<1x16x16x4xbf16>
    %112 = vector.shape_cast %111 : vector<1x16x16x4xbf16> to vector<256x4xbf16>
    %c6_138 = arith.constant 6 : index
    %c0_139 = arith.constant 0 : index
    %c0_140 = arith.constant 0 : index
    %113 = vector.load %arg4[%c6_138, %c0_139, %c0_140] : memref<9x4x4xbf16, #tpu.memory_space<vmem>>, vector<1x4x4xbf16>
    %114 = vector.shape_cast %113 : vector<1x4x4xbf16> to vector<4x4xbf16>
    %cst_141 = arith.constant dense<0.000000e+00> : vector<256x4xf32>
    %115 = tpu.matmul %112, %114, %cst_141 {dimension_numbers = #tpu.dot_dimension_numbers<[1], [0], [0], [1], [0, 0, 1, 1], [], []>} : vector<256x4xbf16>, vector<4x4xbf16>, vector<256x4xf32> -> vector<256x4xf32>
    %116 = arith.addf %110, %115 : vector<256x4xf32>
    %c0_142 = arith.constant 0 : index
    %c2_143 = arith.constant 2 : index
    %c1_144 = arith.constant 1 : index
    %c0_145 = arith.constant 0 : index
    %117 = vector.load %arg7[%c0_142, %c2_143, %c1_144, %c0_145] : memref<1x18x18x4xbf16, #tpu.memory_space<vmem>>, vector<1x16x16x4xbf16>
    %118 = vector.shape_cast %117 : vector<1x16x16x4xbf16> to vector<256x4xbf16>
    %c7_146 = arith.constant 7 : index
    %c0_147 = arith.constant 0 : index
    %c0_148 = arith.constant 0 : index
    %119 = vector.load %arg4[%c7_146, %c0_147, %c0_148] : memref<9x4x4xbf16, #tpu.memory_space<vmem>>, vector<1x4x4xbf16>
    %120 = vector.shape_cast %119 : vector<1x4x4xbf16> to vector<4x4xbf16>
    %cst_149 = arith.constant dense<0.000000e+00> : vector<256x4xf32>
    %121 = tpu.matmul %118, %120, %cst_149 {dimension_numbers = #tpu.dot_dimension_numbers<[1], [0], [0], [1], [0, 0, 1, 1], [], []>} : vector<256x4xbf16>, vector<4x4xbf16>, vector<256x4xf32> -> vector<256x4xf32>
    %122 = arith.addf %116, %121 : vector<256x4xf32>
    %c0_150 = arith.constant 0 : index
    %c2_151 = arith.constant 2 : index
    %c2_152 = arith.constant 2 : index
    %c0_153 = arith.constant 0 : index
    %123 = vector.load %arg7[%c0_150, %c2_151, %c2_152, %c0_153] : memref<1x18x18x4xbf16, #tpu.memory_space<vmem>>, vector<1x16x16x4xbf16>
    %124 = vector.shape_cast %123 : vector<1x16x16x4xbf16> to vector<256x4xbf16>
    %c8_154 = arith.constant 8 : index
    %c0_155 = arith.constant 0 : index
    %c0_156 = arith.constant 0 : index
    %125 = vector.load %arg4[%c8_154, %c0_155, %c0_156] : memref<9x4x4xbf16, #tpu.memory_space<vmem>>, vector<1x4x4xbf16>
    %126 = vector.shape_cast %125 : vector<1x4x4xbf16> to vector<4x4xbf16>
    %cst_157 = arith.constant dense<0.000000e+00> : vector<256x4xf32>
    %127 = tpu.matmul %124, %126, %cst_157 {dimension_numbers = #tpu.dot_dimension_numbers<[1], [0], [0], [1], [0, 0, 1, 1], [], []>} : vector<256x4xbf16>, vector<4x4xbf16>, vector<256x4xf32> -> vector<256x4xf32>
    %128 = arith.addf %122, %127 : vector<256x4xf32>
    %c0_158 = arith.constant 0 : index
    %c1_159 = arith.constant 1 : index
    %c1_160 = arith.constant 1 : index
    %c0_161 = arith.constant 0 : index
    %129 = vector.load %arg1[%c0_158, %c1_159, %c1_160, %c0_161] : memref<1x18x18x4xf32, #tpu.memory_space<vmem>>, vector<1x16x16x4xf32>
    %130 = vector.shape_cast %129 : vector<1x16x16x4xf32> to vector<256x4xf32>
    %c0_162 = arith.constant 0 : index
    %c0_163 = arith.constant 0 : index
    %131 = vector.load %arg5[%c0_162, %c0_163] : memref<1x4xf32, #tpu.memory_space<vmem>>, vector<1x4xf32>
    %132 = vector.broadcast %131 : vector<1x4xf32> to vector<256x4xf32>
    %133 = arith.addf %128, %132 : vector<256x4xf32>
    %134 = arith.addf %133, %130 : vector<256x4xf32>
    %cst_164 = arith.constant 0.000000e+00 : f32
    %135 = vector.broadcast %cst_164 : f32 to vector<256x4xf32>
    %136 = arith.maximumf %134, %135 : vector<256x4xf32>
    %137 = vector.shape_cast %136 : vector<256x4xf32> to vector<1x16x16x4xf32>
    %c0_165 = arith.constant 0 : index
    %c0_166 = arith.constant 0 : index
    %c0_167 = arith.constant 0 : index
    %c0_168 = arith.constant 0 : index
    %138 = vector.load %arg6[%c0_165, %c0_166, %c0_167, %c0_168] : memref<1x16x16x4xf32, #tpu.memory_space<vmem>>, vector<1x16x16x4xf32>
    tpu.vector_store %arg6[%c0_165, %c0_166, %c0_167, %c0_168], %137 {strides = array<i32>} : memref<1x16x16x4xf32, #tpu.memory_space<vmem>>, vector<1x16x16x4xf32>,
    return
  }
  func.func @transform_0(%arg0: i32) -> (i32, i32, i32, i32) {
    %c0_i32 = arith.constant 0 : i32
    %c0_i32_0 = arith.constant 0 : i32
    %c0_i32_1 = arith.constant 0 : i32
    %c0_i32_2 = arith.constant 0 : i32
    return %arg0, %c0_i32, %c0_i32_0, %c0_i32_1 : i32, i32, i32, i32
  }
  func.func @transform_1(%arg0: i32) -> (i32, i32, i32) {
    %c0_i32 = arith.constant 0 : i32
    %c0_i32_0 = arith.constant 0 : i32
    %c0_i32_1 = arith.constant 0 : i32
    %c0_i32_2 = arith.constant 0 : i32
    return %c0_i32, %c0_i32_0, %c0_i32_1 : i32, i32, i32
  }
  func.func @transform_2(%arg0: i32) -> (i32, i32) {
    %c0_i32 = arith.constant 0 : i32
    %c0_i32_0 = arith.constant 0 : i32
    %c0_i32_1 = arith.constant 0 : i32
    return %c0_i32, %c0_i32_0 : i32, i32
  }
  func.func @transform_3(%arg0: i32) -> (i32, i32, i32) {
    %c0_i32 = arith.constant 0 : i32
    %c0_i32_0 = arith.constant 0 : i32
    %c0_i32_1 = arith.constant 0 : i32
    %c0_i32_2 = arith.constant 0 : i32
    return %c0_i32, %c0_i32_0, %c0_i32_1 : i32, i32, i32
  }
  func.func @transform_4(%arg0: i32) -> (i32, i32) {
    %c0_i32 = arith.constant 0 : i32
    %c0_i32_0 = arith.constant 0 : i32
    %c0_i32_1 = arith.constant 0 : i32
    return %c0_i32, %c0_i32_0 : i32, i32
  }
  func.func @transform_5(%arg0: i32) -> (i32, i32, i32, i32) {
    %c0_i32 = arith.constant 0 : i32
    %c0_i32_0 = arith.constant 0 : i32
    %c0_i32_1 = arith.constant 0 : i32
    %c0_i32_2 = arith.constant 0 : i32
    return %arg0, %c0_i32, %c0_i32_0, %c0_i32_1 : i32, i32, i32, i32
  }
}

</mosaic_0001>

<bundles_post_ra>
// kernel: tpu_custom_call.1
= control target key start
LH: loop header
LB: loop body
LE: loop exit
PB: predicated region body
PF: predicated region fallthrough
CT: control target
= control target key end

     0   :  { %s10157_s18 = smov 0   ;;  %s13985_s0 = inlined_call_operand.vmem [shape: f32[2,18,18,4], index: 0, kind: input, shape index: {}]   ;;  %s13986_s1 = inlined_call_operand.vmem [shape: bf16[9,4,4], index: 1, kind: input, shape index: {}]   ;;  %s13987_s2 = inlined_call_operand.vmem [shape: f32[1,4], index: 2, kind: input, shape index: {}]   ;;  %s13988_s3 = inlined_call_operand.vmem [shape: bf16[9,4,4], index: 3, kind: input, shape index: {}]   ;;  %s13989_s4 = inlined_call_operand.vmem [shape: f32[1,4], index: 4, kind: input, shape index: {}]   ;;  %s13990_s5 = inlined_call_operand.vmem [shape: f32[2,16,16,4], index: 5, kind: output, shape index: {}]  }
   0x1 LB: > { %s8315_s19 = sadd.s32 4294967295, %s10124_s18   ;;  %p8319_p0 = scmp.ge.s32.totalorder %s10124_s18, 1  ;;  %s10124_s18 = sphi %s10157_s18, %s15_s18  }
   0x2   : > { %p187_p1 = scmp.lt.s32.totalorder %s10124_s18, 3 }
   0x4   : > { %p188_p2 = pnand %p8319_p0, %p187_p1 }
   0x6   : > { %191 = sbr.rel (%p188_p2) target bundleno = 1104 (0x450), region = 40 }
   0xb   : > { %v8323_v0 = vld [vmem:[%s13986_s1 + $0x2] sm:$0x3]  ;;  %vm374_vm0 = vcmask 1041408   ;;  %v274_v1 = vld [vmem:[%s13986_s1] sm:$0x3]  ;;  %p215_p3 = scmp.lt.s32.totalorder %s8315_s19, 1 }
   0xc   : > { %10030 = vmatprep.subr.msk.bf16.mxu0 %vm374_vm0, %v8323_v0  ;;  %v376_v2 = vsel %vm374_vm0, %v8323_v0, 0  ;;  %10031 = vmatprep.subr.msk.bf16.mxu1 %vm374_vm0, %v274_v1  ;;  %v588_v3 = vsel %vm374_vm0, %v274_v1, 0  ;;  %v8356_v4 = vld [vmem:[%s13986_s1 + $0x4] sm:$0x3]  ;;  %v8405_v5 = vld [vmem:[%s13986_s1 + $0x6] sm:$0x3] }
   0xd   : > { %9419 = vmatpush3.bf16.msra.mxu0 %v376_v2  ;;  %9453 = vmatpush3.bf16.msra.mxu1 %v588_v3  ;;  %s14323_s19 = smov (!%p215_p3, %s8315_s19), 1  ;;  %vm325_vm1 = vcmask 31744   ;;  %v850_v17 = vsel %vm374_vm0, %v8356_v4, 0  ;;  %v1145_v25 = vsel %vm374_vm0, %v8405_v5, 0  ;;  %v10220_v26 = vld [vmem:[%s13986_s1 + $0x8] sm:$0x3] }
   0xe   : > { %10032 = vmatprep.subr.msk.bf16.mxu0 %vm374_vm0, %v8356_v4  ;;  %10033 = vmatprep.subr.msk.bf16.mxu1 %vm374_vm0, %v8405_v5  ;;  %s10048_s28 = smul.u32 432, %s14323_s19  ;;  %v10225_v27 = vld [vmem:[%s13986_s1 + $0xa] sm:$0x3]  ;;  %vm2885_vm2 = vcmask 24576   ;;  %vm2892_vm3 = vsmask.f32 256 }
   0xf   : > { %vm2948_vm4 = vsmask.f32 7938  ;;  %vm10911_vm5 = vmand %vm2885_vm2, %vm2892_vm3  ;;  %vm2882_vm7 = vcmask 27648   ;;  %vm3586_vm8 = vsmask.f32 3328  ;;  %vm4575_vm14 = vcmask 1042432  }
  0x10   : > { %s10189_s6 = scalar_lea.vmem %s13985_s0, %s10048_s28  ;;  %vm10919_vm6 = vmand %vm2885_vm2, %vm2948_vm4  ;;  %vm3587_vm9 = vsmask.f32 7440  ;;  %vm3100_vm11 = vsmask.f32 4368  ;;  %vm4576_vm15 = vcmask 1046532   ;;  %s9079_s25 = sshll.u32 %s14323_s19, 8 }
  0x11   : > { %v275_v6 = vld [vmem:[%s10189_s6 + $0x1] sm:$0xff]  ;;  %v276_v7 = vld [vmem:[%s10189_s6 + $0x9] sm:$0xff]  ;;  %v277_v11 = vld [vmem:[%s10189_s6 + $0x19] sm:$0xff]  ;;  %s13740_s27 = scalar_lea.vmem %s13990_s5, %s9079_s25 }
  0x12   : > { %v226_v8 = vld [vmem:[%s10189_s6] sm:$0xff]  ;;  %v307_v9 = vpack.c.bf16 %v276_v7, %v275_v6  ;;  %v227_v10 = vld [vmem:[%s10189_s6 + $0x8] sm:$0xff]  ;;  %v228_v15 = vld [vmem:[%s10189_s6 + $0x18] sm:$0xff] }
  0x13   : > { %v278_v12 = vld [vmem:[%s10189_s6 + $0x21] sm:$0xff]  ;;  %v258_v13 = vpack.c.bf16 %v227_v10, %v226_v8  ;;  %v279_v18 = vld [vmem:[%s10189_s6 + $0x31] sm:$0xff]  ;;  %v280_v20 = vld [vmem:[%s10189_s6 + $0x39] sm:$0xff] }
  0x14   : > { %v10197_v14 = vpack.c.bf16 %v278_v12, %v277_v11  ;;  %v229_v16 = vld [vmem:[%s10189_s6 + $0x20] sm:$0xff]  ;;  %9420 = vmatprep.mubr.msk.bf16.mxu0 %vm325_vm1, %v307_v9  ;;  %v230_v21 = vld [vmem:[%s10189_s6 + $0x30] sm:$0xff]  ;;  %v231_v22 = vld [vmem:[%s10189_s6 + $0x38] sm:$0xff]  ;;  %v10212_v23 = vpack.c.bf16 %v280_v20, %v279_v18 }
  0x15   : > { %v10204_v19 = vpack.c.bf16 %v229_v16, %v228_v15  ;;  %9454 = vmatprep.mubr.msk.bf16.mxu1 %vm325_vm1, %v258_v13  ;;  %v10214_v24 = vpack.c.bf16 %v231_v22, %v230_v21  ;;  %v281_v28 = vld [vmem:[%s10189_s6 + $0x49] sm:$0xff]  ;;  %v282_v29 = vld [vmem:[%s10189_s6 + $0x51] sm:$0xff]  ;;  %v283_v32 = vld [vmem:[%s10189_s6 + $0x61] sm:$0xff] }
  0x16   : > { %9421 = vmatmul.mubr.msk.bf16.vlgmr.msra.gmra.mxu0 %vm325_vm1, %v10197_v14  ;;  %v232_v30 = vld [vmem:[%s10189_s6 + $0x48] sm:$0xff]  ;;  %v233_v31 = vld [vmem:[%s10189_s6 + $0x50] sm:$0xff]  ;;  %v234_v34 = vld [vmem:[%s10189_s6 + $0x60] sm:$0xff]  ;;  %v10243_v36 = vpack.c.bf16 %v282_v29, %v281_v28 }
  0x17   : > { %9455 = vmatmul.mubr.msk.bf16.vlgmr.msra.gmra.mxu1 %vm325_vm1, %v10204_v19  ;;  %9487 = vmatpush3.bf16.msra.mxu0 %v850_v17  ;;  %v284_v33 = vld [vmem:[%s10189_s6 + $0x69] sm:$0xff]  ;;  %v10247_v37 = vpack.c.bf16 %v233_v31, %v232_v30  ;;  %v285_v40 = vld [vmem:[%s10189_s6 + $0x79] sm:$0xff]  ;;  %v286_v41 = vld [vmem:[%s10189_s6 + $0x81] sm:$0xff] }
  0x18   : > { %9424 = vmatprep.mubr.msk.bf16.mxu0 %vm325_vm1, %v10212_v23  ;;  %9458 = vmatprep.mubr.msk.bf16.mxu1 %vm325_vm1, %v10214_v24  ;;  %v235_v35 = vld [vmem:[%s10189_s6 + $0x68] sm:$0xff]  ;;  %v10249_v38 = vpack.c.bf16 %v284_v33, %v283_v32  ;;  %v236_v42 = vld [vmem:[%s10189_s6 + $0x78] sm:$0xff]  ;;  %v237_v43 = vld [vmem:[%s10189_s6 + $0x80] sm:$0xff]  ;;  %v10269_v48 = vpack.c.bf16 %v286_v41, %v285_v40 }
  0x19   : > { %9521 = vmatpush3.bf16.msra.mxu1 %v1145_v25  ;;  %10034 = vmatprep.subr.msk.bf16.mxu0 %vm374_vm0, %v10220_v26  ;;  %v10251_v39 = vpack.c.bf16 %v235_v35, %v234_v34  ;;  %v287_v44 = vld [vmem:[%s10189_s6 + $0x91] sm:$0xff]  ;;  %v288_v45 = vld [vmem:[%s10189_s6 + $0x99] sm:$0xff]  ;;  %v10271_v49 = vpack.c.bf16 %v237_v43, %v236_v42  ;;  %v289_v52 = vld [vmem:[%s10189_s6 + $0xa9] sm:$0xff] }
  0x1a   : > { %10035 = vmatprep.subr.msk.bf16.mxu1 %vm374_vm0, %v10225_v27  ;;  %v238_v46 = vld [vmem:[%s10189_s6 + $0x90] sm:$0xff]  ;;  %v239_v47 = vld [vmem:[%s10189_s6 + $0x98] sm:$0xff]  ;;  %v10273_v50 = vpack.c.bf16 %v288_v45, %v287_v44  ;;  %v240_v54 = vld [vmem:[%s10189_s6 + $0xa8] sm:$0xff] }
  0x1b   : > { %v10275_v51 = vpack.c.bf16 %v239_v47, %v238_v46  ;;  %v290_v53 = vld [vmem:[%s10189_s6 + $0xb1] sm:$0xff]  ;;  %v291_v56 = vld [vmem:[%s10189_s6 + $0xc1] sm:$0xff]  ;;  %v292_v57 = vld [vmem:[%s10189_s6 + $0xc9] sm:$0xff] }
  0x1c   : > { %v241_v55 = vld [vmem:[%s10189_s6 + $0xb0] sm:$0xff]  ;;  %v242_v58 = vld [vmem:[%s10189_s6 + $0xc0] sm:$0xff]  ;;  %v243_v59 = vld [vmem:[%s10189_s6 + $0xc8] sm:$0xff]  ;;  %v10293_v60 = vpack.c.bf16 %v290_v53, %v289_v52  ;;  %v10297_v62 = vpack.c.bf16 %v292_v57, %v291_v56 }
  0x1d   : > { %v10295_v61 = vpack.c.bf16 %v241_v55, %v240_v54  ;;  %v10299_v63 = vpack.c.bf16 %v243_v59, %v242_v58  ;;  %v293_v0 = vld [vmem:[%s10189_s6 + $0xd9] sm:$0xff]  ;;  %v294_v1 = vld [vmem:[%s10189_s6 + $0xe1] sm:$0xff]  ;;  %v295_v4 = vld [vmem:[%s10189_s6 + $0xf1] sm:$0xff] }
  0x1e   : > { %9425 = vmatmul.mubr.msk.bf16.gmra.mxu0 %vm325_vm1, %v10243_v36  ;;  %v244_v2 = vld [vmem:[%s10189_s6 + $0xd8] sm:$0xff]  ;;  %v245_v3 = vld [vmem:[%s10189_s6 + $0xe0] sm:$0xff]  ;;  %v246_v6 = vld [vmem:[%s10189_s6 + $0xf0] sm:$0xff]  ;;  %v10317_v8 = vpack.c.bf16 %v294_v1, %v293_v0 }
  0x1f   : > { %9459 = vmatmul.mubr.msk.bf16.gmra.mxu1 %vm325_vm1, %v10247_v37  ;;  %9428 = vmatprep.mubr.msk.bf16.mxu0 %vm325_vm1, %v10249_v38  ;;  %v296_v5 = vld [vmem:[%s10189_s6 + $0xf9] sm:$0xff]  ;;  %v10319_v9 = vpack.c.bf16 %v245_v3, %v244_v2  ;;  %v297_v12 = vld [vmem:[%s10189_s6 + $0x109] sm:$0xff]  ;;  %v298_v13 = vld [vmem:[%s10189_s6 + $0x111] sm:$0xff] }
  0x20   : > { %9462 = vmatprep.mubr.msk.bf16.mxu1 %vm325_vm1, %v10251_v39  ;;  %v247_v7 = vld [vmem:[%s10189_s6 + $0xf8] sm:$0xff]  ;;  %v10321_v10 = vpack.c.bf16 %v296_v5, %v295_v4  ;;  %v248_v15 = vld [vmem:[%s10189_s6 + $0x108] sm:$0xff]  ;;  %v249_v16 = vld [vmem:[%s10189_s6 + $0x110] sm:$0xff]  ;;  %v10341_v22 = vpack.c.bf16 %v298_v13, %v297_v12  ;;  %v1439_v4 = vsel %vm374_vm0, %v10220_v26, 0 }
  0x21   : > { %v10323_v11 = vpack.c.bf16 %v247_v7, %v246_v6  ;;  %v299_v17 = vld [vmem:[%s10189_s6 + $0x121] sm:$0xff]  ;;  %v300_v18 = vld [vmem:[%s10189_s6 + $0x129] sm:$0xff]  ;;  %v10343_v25 = vpack.c.bf16 %v249_v16, %v248_v15  ;;  %v301_v30 = vld [vmem:[%s10189_s6 + $0x139] sm:$0xff]  ;;  %v1733_v6 = vsel %vm374_vm0, %v10225_v27, 0 }
  0x22   : > { %v250_v20 = vld [vmem:[%s10189_s6 + $0x120] sm:$0xff]  ;;  %v251_v21 = vld [vmem:[%s10189_s6 + $0x128] sm:$0xff]  ;;  %v10345_v28 = vpack.c.bf16 %v300_v18, %v299_v17  ;;  %v252_v32 = vld [vmem:[%s10189_s6 + $0x138] sm:$0xff] }
  0x23   : > { %v10347_v29 = vpack.c.bf16 %v251_v21, %v250_v20  ;;  %v302_v31 = vld [vmem:[%s10189_s6 + $0x141] sm:$0xff]  ;;  %v303_v34 = vld [vmem:[%s10189_s6 + $0x151] sm:$0xff]  ;;  %v304_v35 = vld [vmem:[%s10189_s6 + $0x159] sm:$0xff] }
  0x24   : > { %v253_v33 = vld [vmem:[%s10189_s6 + $0x140] sm:$0xff]  ;;  %v254_v40 = vld [vmem:[%s10189_s6 + $0x150] sm:$0xff]  ;;  %v255_v41 = vld [vmem:[%s10189_s6 + $0x158] sm:$0xff]  ;;  %v10365_v42 = vpack.c.bf16 %v302_v31, %v301_v30  ;;  %v10369_v44 = vpack.c.bf16 %v304_v35, %v303_v34 }
  0x25   : > { %v10367_v43 = vpack.c.bf16 %v253_v33, %v252_v32  ;;  %v10371_v45 = vpack.c.bf16 %v255_v41, %v254_v40  ;;  %v305_v46 = vld [vmem:[%s10189_s6 + $0x169] sm:$0xff]  ;;  %v306_v47 = vld [vmem:[%s10189_s6 + $0x171] sm:$0xff]  ;;  %v753_v59 = vld [vmem:[%s10189_s6 + $0x1a] sm:$0xff] }
  0x26   : > { %9429 = vmatmul.mubr.msk.bf16.gmra.mxu0 %vm325_vm1, %v10269_v48  ;;  %v256_v52 = vld [vmem:[%s10189_s6 + $0x168] sm:$0xff]  ;;  %v257_v53 = vld [vmem:[%s10189_s6 + $0x170] sm:$0xff]  ;;  %v10387_v56 = vpack.c.bf16 %v306_v47, %v305_v46  ;;  %v756_v2 = vld [vmem:[%s10189_s6 + $0x3a] sm:$0xff] }
  0x27   : > { %9463 = vmatmul.mubr.msk.bf16.gmra.mxu1 %vm325_vm1, %v10271_v49  ;;  %9432 = vmatprep.mubr.msk.bf16.mxu0 %vm325_vm1, %v10273_v50  ;;  %v751_v54 = vld [vmem:[%s10189_s6 + $0x2] sm:$0xff]  ;;  %v752_v55 = vld [vmem:[%s10189_s6 + $0xa] sm:$0xff]  ;;  %v10389_v57 = vpack.c.bf16 %v257_v53, %v256_v52  ;;  %v755_v1 = vld [vmem:[%s10189_s6 + $0x32] sm:$0xff] }
  0x28   : > { %9466 = vmatprep.mubr.msk.bf16.mxu1 %vm325_vm1, %v10275_v51  ;;  %v783_v58 = vpack.c.bf16 %v752_v55, %v751_v54  ;;  %v754_v0 = vld [vmem:[%s10189_s6 + $0x22] sm:$0xff]  ;;  %v10406_v5 = vpack.c.bf16 %v756_v2, %v755_v1  ;;  %v757_v7 = vld [vmem:[%s10189_s6 + $0x4a] sm:$0xff]  ;;  %v758_v26 = vld [vmem:[%s10189_s6 + $0x52] sm:$0xff] }
  0x29   : > { %v10402_v3 = vpack.c.bf16 %v754_v0, %v753_v59  ;;  %v10424_v12 = vld [vmem:[%s13986_s1 + $0xe] sm:$0x3]  ;;  %v759_v27 = vld [vmem:[%s10189_s6 + $0x62] sm:$0xff]  ;;  %v10434_v15 = vpack.c.bf16 %v758_v26, %v757_v7  ;;  %v761_v17 = vld [vmem:[%s10189_s6 + $0x7a] sm:$0xff] }
  0x2a   : > { %v760_v13 = vld [vmem:[%s10189_s6 + $0x6a] sm:$0xff]  ;;  %v762_v18 = vld [vmem:[%s10189_s6 + $0x82] sm:$0xff]  ;;  %v763_v20 = vld [vmem:[%s10189_s6 + $0x92] sm:$0xff] }
  0x2b   : > { %v10438_v16 = vpack.c.bf16 %v760_v13, %v759_v27  ;;  %v764_v21 = vld [vmem:[%s10189_s6 + $0x9a] sm:$0xff]  ;;  %v10452_v30 = vpack.c.bf16 %v762_v18, %v761_v17  ;;  %v765_v32 = vld [vmem:[%s10189_s6 + $0xaa] sm:$0xff]  ;;  %v766_v33 = vld [vmem:[%s10189_s6 + $0xb2] sm:$0xff] }
  0x2c   : > { %v10454_v31 = vpack.c.bf16 %v764_v21, %v763_v20  ;;  %v767_v34 = vld [vmem:[%s10189_s6 + $0xc2] sm:$0xff]  ;;  %v768_v35 = vld [vmem:[%s10189_s6 + $0xca] sm:$0xff]  ;;  %v10468_v40 = vpack.c.bf16 %v766_v33, %v765_v32  ;;  %v769_v46 = vld [vmem:[%s10189_s6 + $0xda] sm:$0xff] }
  0x2d   : > { %v10470_v41 = vpack.c.bf16 %v768_v35, %v767_v34  ;;  %v770_v47 = vld [vmem:[%s10189_s6 + $0xe2] sm:$0xff]  ;;  %v771_v52 = vld [vmem:[%s10189_s6 + $0xf2] sm:$0xff]  ;;  %v772_v53 = vld [vmem:[%s10189_s6 + $0xfa] sm:$0xff] }
  0x2e   : > { %9433 = vmatmul.mubr.msk.bf16.gmra.mxu0 %vm325_vm1, %v10293_v60  ;;  %v10484_v54 = vpack.c.bf16 %v770_v47, %v769_v46  ;;  %v10486_v55 = vpack.c.bf16 %v772_v53, %v771_v52  ;;  %v774_v59 = vld [vmem:[%s10189_s6 + $0x112] sm:$0xff]  ;;  %v775_v0 = vld [vmem:[%s10189_s6 + $0x122] sm:$0xff]  ;;  %v776_v1 = vld [vmem:[%s10189_s6 + $0x12a] sm:$0xff]  ;;  %v2322_v46 = vsel %vm374_vm0, %v10424_v12, 0 }
  0x2f   : > { %9467 = vmatmul.mubr.msk.bf16.gmra.mxu1 %vm325_vm1, %v10295_v61  ;;  %9436 = vmatprep.mubr.msk.bf16.mxu0 %vm325_vm1, %v10297_v62  ;;  %v778_v7 = vld [vmem:[%s10189_s6 + $0x142] sm:$0xff]  ;;  %v779_v26 = vld [vmem:[%s10189_s6 + $0x152] sm:$0xff]  ;;  %v780_v27 = vld [vmem:[%s10189_s6 + $0x15a] sm:$0xff] }
  0x30   : > { %9470 = vmatprep.mubr.msk.bf16.mxu1 %vm325_vm1, %v10299_v63  ;;  %v797_v17 = vpack.c.bf16 %v780_v27, %v779_v26  ;;  %v781_v18 = vld [vmem:[%s10189_s6 + $0x16a] sm:$0xff]  ;;  %v782_v20 = vld [vmem:[%s10189_s6 + $0x172] sm:$0xff]  ;;  %v8403_v21 = vld [vmem:[%s10189_s6 + $0x180] sm:$0xff] }
  0x31   : > { %v8404_v32 = vld [vmem:[%s10189_s6 + $0x188] sm:$0xff]  ;;  %v798_v33 = vpack.c.bf16 %v782_v20, %v781_v18  ;;  %v8650_v47 = vld [vmem:[%s13986_s1 + $0x10] sm:$0x3]  ;;  %vm11074_vm10 = vmor %vm3586_vm8, %vm3587_vm9 }
  0x32   : > { %v10520_v34 = vpack.c.bf16 %v8404_v32, %v8403_v21  ;;  %vm11436_vm12 = vmand %vm2882_vm7, %vm2948_vm4 }
  0x33   : > { %vm11447_vm13 = vmor %vm2892_vm3, %vm3100_vm11 }
  0x36   : > { %9437 = vmatmul.mubr.msk.bf16.gmra.mxu0 %vm325_vm1, %v10317_v8 }
  0x37   : > { %9471 = vmatmul.mubr.msk.bf16.gmra.mxu1 %vm325_vm1, %v10319_v9  ;;  %9440 = vmatprep.mubr.msk.bf16.mxu0 %vm325_vm1, %v10321_v10 }
  0x38   : > { %9474 = vmatprep.mubr.msk.bf16.mxu1 %vm325_vm1, %v10323_v11 }
  0x3e   : > { %9441 = vmatmul.mubr.msk.bf16.gmra.mxu0 %vm325_vm1, %v10341_v22 }
  0x3f   : > { %9475 = vmatmul.mubr.msk.bf16.gmra.mxu1 %vm325_vm1, %v10343_v25  ;;  %9444 = vmatprep.mubr.msk.bf16.mxu0 %vm325_vm1, %v10345_v28 }
  0x40   : > { %9478 = vmatprep.mubr.msk.bf16.mxu1 %vm325_vm1, %v10347_v29 }
  0x46   : > { %9445 = vmatmul.mubr.msk.bf16.gmra.mxu0 %vm325_vm1, %v10365_v42 }
  0x47   : > { %9479 = vmatmul.mubr.msk.bf16.gmra.mxu1 %vm325_vm1, %v10367_v43  ;;  %9448 = vmatprep.mubr.msk.bf16.mxu0 %vm325_vm1, %v10369_v44 }
  0x48   : > { %9482 = vmatprep.mubr.msk.bf16.mxu1 %vm325_vm1, %v10371_v45 }
  0x4e   : > { %9449 = vmatmul.mubr.msk.bf16.gmra.mxu0 %vm325_vm1, %v10387_v56 }
  0x4f   : > { %9483 = vmatmul.mubr.msk.bf16.gmra.mxu1 %vm325_vm1, %v10389_v57  ;;  %9488 = vmatprep.mubr.msk.bf16.mxu0 %vm325_vm1, %v783_v58  ;;  %v773_v58 = vld [vmem:[%s10189_s6 + $0x10a] sm:$0xff] }
  0x50   : > { %9522 = vmatprep.mubr.msk.bf16.mxu1 %vm325_vm1, %v10204_v19  ;;  %v10415_v19 = vld [vmem:[%s13986_s1 + $0xc] sm:$0x3]  ;;  %v794_v2 = vpack.c.bf16 %v774_v59, %v773_v58  ;;  %v2616_v58 = vsel %vm374_vm0, %v8650_v47, 0 }
  0x51   : > { %v2028_v35 = vsel %vm374_vm0, %v10415_v19, 0 }
  0x56   : > { %9489 = vmatmul.mubr.msk.bf16.vlgmr.msra.gmra.mxu0 %vm325_vm1, %v10402_v3 }
  0x57   : > { %9555 = vmatpush3.bf16.msra.mxu0 %v1439_v4  ;;  %9523 = vmatmul.mubr.msk.bf16.vlgmr.msra.gmra.mxu1 %vm325_vm1, %v10214_v24  ;;  %v795_v4 = vpack.c.bf16 %v776_v1, %v775_v0 }
  0x58   : > { %9492 = vmatprep.mubr.msk.bf16.mxu0 %vm325_vm1, %v10406_v5  ;;  %9526 = vmatprep.mubr.msk.bf16.mxu1 %vm325_vm1, %v10247_v37 }
  0x59   : > { %9589 = vmatpush3.bf16.msra.mxu1 %v1733_v6  ;;  %10036 = vmatprep.subr.msk.bf16.mxu0 %vm374_vm0, %v10415_v19  ;;  %v777_v6 = vld [vmem:[%s10189_s6 + $0x13a] sm:$0xff]  ;;  %v8501_v19 = vld [vmem:[%s10189_s6 + $0x182] sm:$0xff] }
  0x5a   : > { %10037 = vmatprep.subr.msk.bf16.mxu1 %vm374_vm0, %v10424_v12  ;;  %v796_v13 = vpack.c.bf16 %v778_v7, %v777_v6  ;;  %v8502_v12 = vld [vmem:[%s10189_s6 + $0x18a] sm:$0xff] }
  0x5b   : > { %v10594_v53 = vpack.c.bf16 %v8502_v12, %v8501_v19 }
  0x5e   : > { %9493 = vmatmul.mubr.msk.bf16.gmra.mxu0 %vm325_vm1, %v10434_v15 }
  0x5f   : > { %9527 = vmatmul.mubr.msk.bf16.gmra.mxu1 %vm325_vm1, %v10251_v39  ;;  %9496 = vmatprep.mubr.msk.bf16.mxu0 %vm325_vm1, %v10438_v16 }
  0x60   : > { %9530 = vmatprep.mubr.msk.bf16.mxu1 %vm325_vm1, %v10271_v49 }
  0x66   : > { %9497 = vmatmul.mubr.msk.bf16.gmra.mxu0 %vm325_vm1, %v10452_v30 }
  0x67   : > { %9531 = vmatmul.mubr.msk.bf16.gmra.mxu1 %vm325_vm1, %v10275_v51  ;;  %9500 = vmatprep.mubr.msk.bf16.mxu0 %vm325_vm1, %v10454_v31 }
  0x68   : > { %9534 = vmatprep.mubr.msk.bf16.mxu1 %vm325_vm1, %v10295_v61 }
  0x6e   : > { %9501 = vmatmul.mubr.msk.bf16.gmra.mxu0 %vm325_vm1, %v10468_v40 }
  0x6f   : > { %9535 = vmatmul.mubr.msk.bf16.gmra.mxu1 %vm325_vm1, %v10299_v63  ;;  %9504 = vmatprep.mubr.msk.bf16.mxu0 %vm325_vm1, %v10470_v41 }
  0x70   : > { %9538 = vmatprep.mubr.msk.bf16.mxu1 %vm325_vm1, %v10319_v9 }
  0x76   : > { %9505 = vmatmul.mubr.msk.bf16.gmra.mxu0 %vm325_vm1, %v10484_v54 }
  0x77   : > { %9539 = vmatmul.mubr.msk.bf16.gmra.mxu1 %vm325_vm1, %v10323_v11  ;;  %9508 = vmatprep.mubr.msk.bf16.mxu0 %vm325_vm1, %v10486_v55 }
  0x78   : > { %9542 = vmatprep.mubr.msk.bf16.mxu1 %vm325_vm1, %v10343_v25 }
  0x7e   : > { %9509 = vmatmul.mubr.msk.bf16.gmra.mxu0 %vm325_vm1, %v794_v2 }
  0x7f   : > { %9543 = vmatmul.mubr.msk.bf16.gmra.mxu1 %vm325_vm1, %v10347_v29  ;;  %9512 = vmatprep.mubr.msk.bf16.mxu0 %vm325_vm1, %v795_v4 }
  0x80   : > { %9546 = vmatprep.mubr.msk.bf16.mxu1 %vm325_vm1, %v10367_v43 }
  0x86   : > { %9513 = vmatmul.mubr.msk.bf16.gmra.mxu0 %vm325_vm1, %v796_v13 }
  0x87   : > { %9547 = vmatmul.mubr.msk.bf16.gmra.mxu1 %vm325_vm1, %v10371_v45  ;;  %9516 = vmatprep.mubr.msk.bf16.mxu0 %vm325_vm1, %v797_v17 }
  0x88   : > { %9550 = vmatprep.mubr.msk.bf16.mxu1 %vm325_vm1, %v10389_v57 }
  0x8e   : > { %9517 = vmatmul.mubr.msk.bf16.gmra.mxu0 %vm325_vm1, %v798_v33 }
  0x8f   : > { %9551 = vmatmul.mubr.msk.bf16.gmra.mxu1 %vm325_vm1, %v10520_v34  ;;  %9556 = vmatprep.mubr.msk.bf16.mxu0 %vm325_vm1, %v10197_v14  ;;  %v8452_v14 = vld [vmem:[%s10189_s6 + $0x181] sm:$0xff] }
  0x90   : > { %9590 = vmatprep.mubr.msk.bf16.mxu1 %vm325_vm1, %v10402_v3  ;;  %v8453_v3 = vld [vmem:[%s10189_s6 + $0x189] sm:$0xff] }
  0x91   : > { %v10592_v52 = vpack.c.bf16 %v8453_v3, %v8452_v14 }
  0x96   : > { %9557 = vmatmul.mubr.msk.bf16.vlgmr.msra.gmra.mxu0 %vm325_vm1, %v10212_v23 }
  0x97   : > { %9623 = vmatpush3.bf16.msra.mxu0 %v2028_v35  ;;  %9591 = vmatmul.mubr.msk.bf16.vlgmr.msra.gmra.mxu1 %vm325_vm1, %v10406_v5 }
  0x98   : > { %9560 = vmatprep.mubr.msk.bf16.mxu0 %vm325_vm1, %v10243_v36  ;;  %9594 = vmatprep.mubr.msk.bf16.mxu1 %vm325_vm1, %v10434_v15 }
  0x99   : > { %9657 = vmatpush3.bf16.msra.mxu1 %v2322_v46  ;;  %10038 = vmatprep.subr.msk.bf16.mxu0 %vm374_vm0, %v8650_v47 }
  0x9e   : > { %9561 = vmatmul.mubr.msk.bf16.gmra.mxu0 %vm325_vm1, %v10249_v38 }
  0x9f   : > { %9595 = vmatmul.mubr.msk.bf16.gmra.mxu1 %vm325_vm1, %v10438_v16  ;;  %9564 = vmatprep.mubr.msk.bf16.mxu0 %vm325_vm1, %v10269_v48 }
  0xa0   : > { %9598 = vmatprep.mubr.msk.bf16.mxu1 %vm325_vm1, %v10452_v30 }
  0xa6   : > { %9565 = vmatmul.mubr.msk.bf16.gmra.mxu0 %vm325_vm1, %v10273_v50 }
  0xa7   : > { %9599 = vmatmul.mubr.msk.bf16.gmra.mxu1 %vm325_vm1, %v10454_v31  ;;  %9568 = vmatprep.mubr.msk.bf16.mxu0 %vm325_vm1, %v10293_v60 }
  0xa8   : > { %9602 = vmatprep.mubr.msk.bf16.mxu1 %vm325_vm1, %v10468_v40 }
  0xae   : > { %9569 = vmatmul.mubr.msk.bf16.gmra.mxu0 %vm325_vm1, %v10297_v62 }
  0xaf   : > { %9603 = vmatmul.mubr.msk.bf16.gmra.mxu1 %vm325_vm1, %v10470_v41  ;;  %9572 = vmatprep.mubr.msk.bf16.mxu0 %vm325_vm1, %v10317_v8 }
  0xb0   : > { %9606 = vmatprep.mubr.msk.bf16.mxu1 %vm325_vm1, %v10484_v54 }
  0xb6   : > { %9573 = vmatmul.mubr.msk.bf16.gmra.mxu0 %vm325_vm1, %v10321_v10 }
  0xb7   : > { %9607 = vmatmul.mubr.msk.bf16.gmra.mxu1 %vm325_vm1, %v10486_v55  ;;  %9576 = vmatprep.mubr.msk.bf16.mxu0 %vm325_vm1, %v10341_v22 }
  0xb8   : > { %9610 = vmatprep.mubr.msk.bf16.mxu1 %vm325_vm1, %v794_v2 }
  0xbe   : > { %9577 = vmatmul.mubr.msk.bf16.gmra.mxu0 %vm325_vm1, %v10345_v28 }
  0xbf   : > { %9611 = vmatmul.mubr.msk.bf16.gmra.mxu1 %vm325_vm1, %v795_v4  ;;  %9580 = vmatprep.mubr.msk.bf16.mxu0 %vm325_vm1, %v10365_v42 }
  0xc0   : > { %9614 = vmatprep.mubr.msk.bf16.mxu1 %vm325_vm1, %v796_v13 }
  0xc6   : > { %9581 = vmatmul.mubr.msk.bf16.gmra.mxu0 %vm325_vm1, %v10369_v44 }
  0xc7   : > { %9615 = vmatmul.mubr.msk.bf16.gmra.mxu1 %vm325_vm1, %v797_v17  ;;  %9584 = vmatprep.mubr.msk.bf16.mxu0 %vm325_vm1, %v10387_v56 }
  0xc8   : > { %9618 = vmatprep.mubr.msk.bf16.mxu1 %vm325_vm1, %v798_v33 }
  0xce   : > { %9585 = vmatmul.mubr.msk.bf16.gmra.mxu0 %vm325_vm1, %v10592_v52 }
  0xcf   : > { %9619 = vmatmul.mubr.msk.bf16.gmra.mxu1 %vm325_vm1, %v10594_v53  ;;  %9624 = vmatprep.mubr.msk.bf16.mxu0 %vm325_vm1, %v10214_v24 }
  0xd0   : > { %9658 = vmatprep.mubr.msk.bf16.mxu1 %vm325_vm1, %v10212_v23 }
  0xd6   : > { %v9422_v59 = vpop.f32.mrf.mxu0  ;;  %9625 = vmatmul.mubr.msk.bf16.vlgmr.msra.gmra.mxu0 %vm325_vm1, %v10247_v37 }
  0xd7   : > { %v9456_v0 = vpop.f32.mrf.mxu1  ;;  %9691 = vmatpush3.bf16.msra.mxu0 %v2616_v58  ;;  %9659 = vmatmul.mubr.msk.bf16.vlgmr.msra.gmra.mxu1 %vm325_vm1, %v10243_v36 }
  0xd8   : > { %v10609_v1 = vadd.f32 %v9456_v0, %v9422_v59  ;;  %v412_v2 = vpop.f32.mrf.mxu0  ;;  %9628 = vmatprep.mubr.msk.bf16.mxu0 %vm325_vm1, %v10251_v39  ;;  %9662 = vmatprep.mubr.msk.bf16.mxu1 %vm325_vm1, %v10249_v38 }
  0xd9   : > { %v624_v23 = vpop.f32.mrf.mxu1 }
  0xda   : > { %v10615_v24 = vadd.f32 %v624_v23, %v412_v2  ;;  %v9423_v4 = vpop.f32.mrf.mxu0 }
  0xdb   : > { %v9457_v6 = vpop.f32.mrf.mxu1 }
  0xdc   : > { %v10617_v37 = vadd.f32 %v9457_v6, %v9423_v4  ;;  %v415_v7 = vpop.f32.mrf.mxu0 }
  0xdd   : > { %v627_v26 = vpop.f32.mrf.mxu1 }
  0xde   : > { %v10619_v27 = vadd.f32 %v627_v26, %v415_v7  ;;  %v9426_v36 = vpop.f32.mrf.mxu0  ;;  %9629 = vmatmul.mubr.msk.bf16.gmra.mxu0 %vm325_vm1, %v10271_v49 }
  0xdf   : > { %v9460_v13 = vpop.f32.mrf.mxu1  ;;  %9663 = vmatmul.mubr.msk.bf16.gmra.mxu1 %vm325_vm1, %v10269_v48  ;;  %9632 = vmatprep.mubr.msk.bf16.mxu0 %vm325_vm1, %v10275_v51 }
  0xe0   : > { %v10627_v38 = vadd.f32 %v9460_v13, %v9426_v36  ;;  %v428_v39 = vpop.f32.mrf.mxu0  ;;  %9666 = vmatprep.mubr.msk.bf16.mxu1 %vm325_vm1, %v10273_v50 }
  0xe1   : > { %v640_v17 = vpop.f32.mrf.mxu1 }
  0xe2   : > { %v10631_v18 = vadd.f32 %v640_v17, %v428_v39  ;;  %v9427_v20 = vpop.f32.mrf.mxu0 }
  0xe3   : > { %v9461_v21 = vpop.f32.mrf.mxu1 }
  0xe4   : > { %v10633_v32 = vadd.f32 %v9461_v21, %v9427_v20  ;;  %v431_v49 = vpop.f32.mrf.mxu0 }
  0xe5   : > { %v643_v33 = vpop.f32.mrf.mxu1 }
  0xe6   : > { %v10635_v35 = vadd.f32 %v643_v33, %v431_v49  ;;  %v9430_v48 = vpop.f32.mrf.mxu0  ;;  %9633 = vmatmul.mubr.msk.bf16.gmra.mxu0 %vm325_vm1, %v10295_v61 }
  0xe7   : > { %v9464_v51 = vpop.f32.mrf.mxu1  ;;  %9667 = vmatmul.mubr.msk.bf16.gmra.mxu1 %vm325_vm1, %v10293_v60  ;;  %9636 = vmatprep.mubr.msk.bf16.mxu0 %vm325_vm1, %v10299_v63 }
  0xe8   : > { %v10643_v50 = vadd.f32 %v9464_v51, %v9430_v48  ;;  %v444_v46 = vpop.f32.mrf.mxu0  ;;  %9670 = vmatprep.mubr.msk.bf16.mxu1 %vm325_vm1, %v10297_v62 }
  0xe9   : > { %v656_v47 = vpop.f32.mrf.mxu1 }
  0xea   : > { %v10647_v14 = vadd.f32 %v656_v47, %v444_v46  ;;  %v9431_v3 = vpop.f32.mrf.mxu0 }
  0xeb   : > { %v9465_v19 = vpop.f32.mrf.mxu1 }
  0xec   : > { %v10649_v12 = vadd.f32 %v9465_v19, %v9431_v3  ;;  %v447_v61 = vpop.f32.mrf.mxu0 }
  0xed   : > { %v659_v58 = vpop.f32.mrf.mxu1 }
  0xee   : > { %v10651_v59 = vadd.f32 %v659_v58, %v447_v61  ;;  %v9434_v60 = vpop.f32.mrf.mxu0  ;;  %9637 = vmatmul.mubr.msk.bf16.gmra.mxu0 %vm325_vm1, %v10319_v9  ;;  %v8551_v58 = vld [vmem:[%s10189_s6 + $0x1a0] sm:$0xff] }
  0xef   : > { %v9468_v63 = vpop.f32.mrf.mxu1  ;;  %9671 = vmatmul.mubr.msk.bf16.gmra.mxu1 %vm325_vm1, %v10317_v8  ;;  %9640 = vmatprep.mubr.msk.bf16.mxu0 %vm325_vm1, %v10323_v11 }
  0xf0   : > { %v10659_v62 = vadd.f32 %v9468_v63, %v9434_v60  ;;  %v460_v0 = vpop.f32.mrf.mxu0  ;;  %9674 = vmatprep.mubr.msk.bf16.mxu1 %vm325_vm1, %v10321_v10 }
  0xf1   : > { %v672_v2 = vpop.f32.mrf.mxu1 }
  0xf2   : > { %v10663_v23 = vadd.f32 %v672_v2, %v460_v0  ;;  %v9435_v4 = vpop.f32.mrf.mxu0  ;;  %v8599_v0 = vld [vmem:[%s10189_s6 + $0x199] sm:$0xff]  ;;  %v8600_v2 = vld [vmem:[%s10189_s6 + $0x1a1] sm:$0xff] }
  0xf3   : > { %v9469_v6 = vpop.f32.mrf.mxu1 }
  0xf4   : > { %v10665_v7 = vadd.f32 %v9469_v6, %v9435_v4  ;;  %v463_v9 = vpop.f32.mrf.mxu0 }
  0xf5   : > { %v675_v26 = vpop.f32.mrf.mxu1 }
  0xf6   : > { %v10667_v36 = vadd.f32 %v675_v26, %v463_v9  ;;  %v9438_v8 = vpop.f32.mrf.mxu0  ;;  %9641 = vmatmul.mubr.msk.bf16.gmra.mxu0 %vm325_vm1, %v10343_v25 }
  0xf7   : > { %v9472_v11 = vpop.f32.mrf.mxu1  ;;  %9675 = vmatmul.mubr.msk.bf16.gmra.mxu1 %vm325_vm1, %v10341_v22  ;;  %9644 = vmatprep.mubr.msk.bf16.mxu0 %vm325_vm1, %v10347_v29 }
  0xf8   : > { %v10675_v10 = vadd.f32 %v9472_v11, %v9438_v8  ;;  %v476_v13 = vpop.f32.mrf.mxu0  ;;  %9678 = vmatprep.mubr.msk.bf16.mxu1 %vm325_vm1, %v10345_v28 }
  0xf9   : > { %v688_v39 = vpop.f32.mrf.mxu1 }
  0xfa   : > { %v10679_v17 = vadd.f32 %v688_v39, %v476_v13  ;;  %v9439_v20 = vpop.f32.mrf.mxu0 }
  0xfb   : > { %v9473_v21 = vpop.f32.mrf.mxu1 }
  0xfc   : > { %v10681_v49 = vadd.f32 %v9473_v21, %v9439_v20  ;;  %v10683_v25 = vpop.f32.mrf.mxu0 }
  0xfd   : > { %v10685_v33 = vpop.f32.mrf.mxu1 }
  0xfe   : > { %v9442_v22 = vpop.f32.mrf.mxu0  ;;  %9645 = vmatmul.mubr.msk.bf16.gmra.mxu0 %vm325_vm1, %v10367_v43 }
  0xff   : > { %v9476_v29 = vpop.f32.mrf.mxu1  ;;  %9679 = vmatmul.mubr.msk.bf16.gmra.mxu1 %vm325_vm1, %v10365_v42  ;;  %9648 = vmatprep.mubr.msk.bf16.mxu0 %vm325_vm1, %v10371_v45 }
 0x100   : > { %v10693_v28 = vadd.f32 %v9476_v29, %v9442_v22  ;;  %v492_v48 = vpop.f32.mrf.mxu0  ;;  %9682 = vmatprep.mubr.msk.bf16.mxu1 %vm325_vm1, %v10369_v44  ;;  %v8550_v44 = vld [vmem:[%s10189_s6 + $0x198] sm:$0xff] }
 0x101   : > { %v704_v51 = vpop.f32.mrf.mxu1  ;;  %v1976_v9 = vpack.c.bf16 %v8551_v58, %v8550_v44 }
 0x102   : > { %v10697_v46 = vadd.f32 %v704_v51, %v492_v48  ;;  %v9443_v43 = vpop.f32.mrf.mxu0 }
 0x103   : > { %v9477_v47 = vpop.f32.mrf.mxu1 }
 0x104   : > { %v10699_v3 = vadd.f32 %v9477_v47, %v9443_v43  ;;  %v10701_v42 = vpop.f32.mrf.mxu0 }
 0x105   : > { %v10703_v45 = vpop.f32.mrf.mxu1 }
 0x106   : > { %v9446_v19 = vpop.f32.mrf.mxu0  ;;  %9649 = vmatmul.mubr.msk.bf16.gmra.mxu0 %vm325_vm1, %v10389_v57 }
 0x107   : > { %v9480_v61 = vpop.f32.mrf.mxu1  ;;  %9683 = vmatmul.mubr.msk.bf16.gmra.mxu1 %vm325_vm1, %v10387_v56  ;;  %9652 = vmatprep.mubr.msk.bf16.mxu0 %vm325_vm1, %v10520_v34  ;;  %v2270_v56 = vpack.c.bf16 %v8600_v2, %v8599_v0 }
 0x108   : > { %v10713_v60 = vadd.f32 %v9480_v61, %v9446_v19  ;;  %v508_v63 = vpop.f32.mrf.mxu0  ;;  %9686 = vmatprep.mubr.msk.bf16.mxu1 %vm325_vm1, %v10592_v52 }
 0x109   : > { %v720_v4 = vpop.f32.mrf.mxu1 }
 0x10a   : > { %v10719_v6 = vadd.f32 %v720_v4, %v508_v63  ;;  %v9447_v57 = vpop.f32.mrf.mxu0 }
 0x10b   : > { %v9481_v26 = vpop.f32.mrf.mxu1 }
 0x10c   : > { %v10721_v8 = vadd.f32 %v9481_v26, %v9447_v57  ;;  %v10723_v34 = vpop.f32.mrf.mxu0 }
 0x10d   : > { %v10725_v11 = vpop.f32.mrf.mxu1 }
 0x10e   : > { %v9450_v13 = vpop.f32.mrf.mxu0  ;;  %9653 = vmatmul.mubr.msk.bf16.gmra.mxu0 %vm325_vm1, %v1976_v9 }
 0x10f   : > { %v9484_v39 = vpop.f32.mrf.mxu1  ;;  %9687 = vmatmul.mubr.msk.bf16.gmra.mxu1 %vm325_vm1, %v2270_v56  ;;  %9692 = vmatprep.mubr.msk.bf16.mxu0 %vm325_vm1, %v10406_v5 }
 0x110   : > { %v10731_v52 = vadd.f32 %v9484_v39, %v9450_v13  ;;  %v524_v20 = vpop.f32.mrf.mxu0 }
 0x111   : > { %v736_v21 = vpop.f32.mrf.mxu1 }
 0x112   : > { %v10733_v22 = vadd.f32 %v736_v21, %v524_v20  ;;  %v9451_v29 = vpop.f32.mrf.mxu0 }
 0x113   : > { %v9485_v48 = vpop.f32.mrf.mxu1 }
 0x114   : > { %v10735_v51 = vadd.f32 %v9485_v48, %v9451_v29  ;;  %v10737_v43 = vpop.f32.mrf.mxu0 }
 0x115   : > { %v10739_v47 = vpop.f32.mrf.mxu1 }
 0x116   : > { %v9490_v19 = vpop.f32.mrf.mxu0  ;;  %9693 = vmatmul.mubr.msk.bf16.vlgmr.msra.gmra.mxu0 %vm325_vm1, %v10434_v15 }
 0x117   : > { %v1015_v5 = vadd.f32 %v9490_v19, %v10609_v1  ;;  %v9524_v61 = vpop.f32.mrf.mxu1  ;;  %9696 = vmatprep.mubr.msk.bf16.mxu0 %vm325_vm1, %v10438_v16 }
 0x118   : > { %v886_v44 = vpop.f32.mrf.mxu0 }
 0x119   : > { %v1013_v58 = vadd.f32 %v886_v44, %v10615_v24  ;;  %v10747_v63 = vadd.f32 %v9524_v61, %v1015_v5  ;;  %v1181_v0 = vpop.f32.mrf.mxu1 }
 0x11a   : > { %v9491_v2 = vpop.f32.mrf.mxu0 }
 0x11b   : > { %v1016_v4 = vadd.f32 %v9491_v2, %v10617_v37  ;;  %v10750_v57 = vadd.f32 %v1181_v0, %v1013_v58  ;;  %v9525_v9 = vpop.f32.mrf.mxu1 }
 0x11c   : > { %v889_v26 = vpop.f32.mrf.mxu0 }
 0x11d   : > { %v10753_v15 = vadd.f32 %v889_v26, %v10619_v27  ;;  %v10755_v1 = vadd.f32 %v9525_v9, %v1016_v4  ;;  %v10757_v56 = vpop.f32.mrf.mxu1 }
 0x11e   : > { %v9494_v16 = vpop.f32.mrf.mxu0  ;;  %9697 = vmatmul.mubr.msk.bf16.gmra.mxu0 %vm325_vm1, %v10452_v30 }
 0x11f   : > { %v1019_v24 = vadd.f32 %v9494_v16, %v10627_v38  ;;  %v9528_v13 = vpop.f32.mrf.mxu1  ;;  %9700 = vmatprep.mubr.msk.bf16.mxu0 %vm325_vm1, %v10454_v31 }
 0x120   : > { %v902_v37 = vpop.f32.mrf.mxu0 }
 0x121   : > { %v1017_v39 = vadd.f32 %v902_v37, %v10631_v18  ;;  %v10765_v20 = vadd.f32 %v9528_v13, %v1019_v24  ;;  %v1197_v27 = vpop.f32.mrf.mxu1  ;;  %v8637_v37 = vld [vmem:[%s10189_s6 + $0x112] sm:$0xff] }
 0x122   : > { %v9495_v21 = vpop.f32.mrf.mxu0 }
 0x123   : > { %v1020_v29 = vadd.f32 %v9495_v21, %v10633_v32  ;;  %v10768_v48 = vadd.f32 %v1197_v27, %v1017_v39  ;;  %v9529_v19 = vpop.f32.mrf.mxu1  ;;  %v8638_v27 = vld [vmem:[%s10189_s6 + $0x122] sm:$0xff] }
 0x124   : > { %v905_v5 = vpop.f32.mrf.mxu0 }
 0x125   : > { %v10771_v30 = vadd.f32 %v905_v5, %v10635_v35  ;;  %v10773_v38 = vadd.f32 %v9529_v19, %v1020_v29  ;;  %v10775_v61 = vpop.f32.mrf.mxu1 }
 0x126   : > { %v9498_v31 = vpop.f32.mrf.mxu0  ;;  %9701 = vmatmul.mubr.msk.bf16.gmra.mxu0 %vm325_vm1, %v10468_v40 }
 0x127   : > { %v1023_v18 = vadd.f32 %v9498_v31, %v10643_v50  ;;  %v9532_v44 = vpop.f32.mrf.mxu1  ;;  %9704 = vmatprep.mubr.msk.bf16.mxu0 %vm325_vm1, %v10470_v41 }
 0x128   : > { %v918_v32 = vpop.f32.mrf.mxu0 }
 0x129   : > { %v1021_v58 = vadd.f32 %v918_v32, %v10647_v14  ;;  %v10783_v35 = vadd.f32 %v9532_v44, %v1023_v18  ;;  %v1213_v0 = vpop.f32.mrf.mxu1 }
 0x12a   : > { %v9499_v2 = vpop.f32.mrf.mxu0 }
 0x12b   : > { %v1024_v4 = vadd.f32 %v9499_v2, %v10649_v12  ;;  %v10786_v40 = vadd.f32 %v1213_v0, %v1021_v58  ;;  %v9533_v50 = vpop.f32.mrf.mxu1  ;;  %v8636_v12 = vld [vmem:[%s10189_s6 + $0x10a] sm:$0xff] }
 0x12c   : > { %v921_v9 = vpop.f32.mrf.mxu0 }
 0x12d   : > { %v10789_v26 = vadd.f32 %v921_v9, %v10651_v59  ;;  %v10791_v41 = vadd.f32 %v9533_v50, %v1024_v4  ;;  %v10793_v14 = vpop.f32.mrf.mxu1  ;;  %v8639_v59 = vld [vmem:[%s10189_s6 + $0x12a] sm:$0xff]  ;;  %v8640_v4 = vld [vmem:[%s10189_s6 + $0x13a] sm:$0xff]  ;;  %v8641_v50 = vld [vmem:[%s10189_s6 + $0x142] sm:$0xff] }
 0x12e   : > { %v9502_v16 = vpop.f32.mrf.mxu0  ;;  %9705 = vmatmul.mubr.msk.bf16.gmra.mxu0 %vm325_vm1, %v10484_v54  ;;  %v2558_v54 = vpack.c.bf16 %v8637_v37, %v8636_v12  ;;  %v2559_v18 = vpack.c.bf16 %v8639_v59, %v8638_v27 }
 0x12f   : > { %v1027_v24 = vadd.f32 %v9502_v16, %v10659_v62  ;;  %v9536_v13 = vpop.f32.mrf.mxu1  ;;  %9708 = vmatprep.mubr.msk.bf16.mxu0 %vm325_vm1, %v10486_v55  ;;  %v8642_v16 = vld [vmem:[%s10189_s6 + $0x152] sm:$0xff] }
 0x130   : > { %v934_v39 = vpop.f32.mrf.mxu0 }
 0x131   : > { %v1025_v21 = vadd.f32 %v934_v39, %v10663_v23  ;;  %v10805_v29 = vadd.f32 %v9536_v13, %v1027_v24  ;;  %v1229_v19 = vpop.f32.mrf.mxu1  ;;  %v8643_v24 = vld [vmem:[%s10189_s6 + $0x15a] sm:$0xff]  ;;  %v2560_v39 = vpack.c.bf16 %v8641_v50, %v8640_v4 }
 0x132   : > { %v9503_v5 = vpop.f32.mrf.mxu0 }
 0x133   : > { %v1028_v62 = vadd.f32 %v9503_v5, %v10665_v7  ;;  %v10808_v31 = vadd.f32 %v1229_v19, %v1025_v21  ;;  %v9537_v55 = vpop.f32.mrf.mxu1  ;;  %v2561_v21 = vpack.c.bf16 %v8643_v24, %v8642_v16 }
 0x134   : > { %v937_v44 = vpop.f32.mrf.mxu0 }
 0x135   : > { %v10811_v32 = vadd.f32 %v937_v44, %v10667_v36  ;;  %v10813_v23 = vadd.f32 %v9537_v55, %v1028_v62  ;;  %v10815_v58 = vpop.f32.mrf.mxu1  ;;  %v8700_v44 = vld [vmem:[%s13988_s3 + $0x2] sm:$0x3] }
 0x136   : > { %v9506_v0 = vpop.f32.mrf.mxu0  ;;  %9709 = vmatmul.mubr.msk.bf16.gmra.mxu0 %vm325_vm1, %v2558_v54  ;;  %10039 = vmatprep.subr.msk.bf16.mxu1 %vm374_vm0, %v8700_v44 }
 0x137   : > { %v1031_v2 = vadd.f32 %v9506_v0, %v10675_v10  ;;  %v9540_v7 = vpop.f32.mrf.mxu1  ;;  %9712 = vmatprep.mubr.msk.bf16.mxu0 %vm325_vm1, %v2559_v18  ;;  %v8644_v18 = vld [vmem:[%s10189_s6 + $0x16a] sm:$0xff] }
 0x138   : > { %v950_v9 = vpop.f32.mrf.mxu0 }
 0x139   : > { %v1029_v36 = vadd.f32 %v950_v9, %v10679_v17  ;;  %v10825_v13 = vadd.f32 %v9540_v7, %v1031_v2  ;;  %v1245_v12 = vpop.f32.mrf.mxu1  ;;  %v4072_v2 = vsel %vm374_vm0, %v8700_v44, 0 }
 0x13a   : > { %v9507_v37 = vpop.f32.mrf.mxu0  ;;  %9725 = vmatpush3.bf16.msra.mxu1 %v4072_v2 }
 0x13b   : > { %v1032_v27 = vadd.f32 %v9507_v37, %v10681_v49  ;;  %v10828_v10 = vadd.f32 %v1245_v12, %v1029_v36  ;;  %v9541_v59 = vpop.f32.mrf.mxu1  ;;  %v8645_v49 = vld [vmem:[%s10189_s6 + $0x172] sm:$0xff] }
 0x13c   : > { %v10830_v19 = vpop.f32.mrf.mxu0  ;;  %v2562_v9 = vpack.c.bf16 %v8645_v49, %v8644_v18 }
 0x13d   : > { %v10832_v5 = vadd.f32 %v9541_v59, %v1032_v27  ;;  %v10834_v54 = vpop.f32.mrf.mxu1 }
 0x13e   : > { %v9510_v17 = vpop.f32.mrf.mxu0  ;;  %9713 = vmatmul.mubr.msk.bf16.gmra.mxu0 %vm325_vm1, %v2560_v39 }
 0x13f   : > { %v1035_v62 = vadd.f32 %v9510_v17, %v10693_v28  ;;  %v9544_v55 = vpop.f32.mrf.mxu1  ;;  %9716 = vmatprep.mubr.msk.bf16.mxu0 %vm325_vm1, %v2561_v21  ;;  %v8648_v21 = vld [vmem:[%s10189_s6 + $0x19a] sm:$0xff] }
 0x140   : > { %v966_v0 = vpop.f32.mrf.mxu0 }
 0x141   : > { %v1033_v7 = vadd.f32 %v966_v0, %v10697_v46  ;;  %v10847_v4 = vadd.f32 %v9544_v55, %v1035_v62  ;;  %v1261_v28 = vpop.f32.mrf.mxu1 }
 0x142   : > { %v9511_v50 = vpop.f32.mrf.mxu0 }
 0x143   : > { %v1036_v16 = vadd.f32 %v9511_v50, %v10699_v3  ;;  %v10850_v24 = vadd.f32 %v1261_v28, %v1033_v7  ;;  %v9545_v36 = vpop.f32.mrf.mxu1  ;;  %v8649_v3 = vld [vmem:[%s10189_s6 + $0x1a2] sm:$0xff] }
 0x144   : > { %v10852_v12 = vpop.f32.mrf.mxu0  ;;  %v2564_v44 = vpack.c.bf16 %v8649_v3, %v8648_v21 }
 0x145   : > { %v10854_v37 = vadd.f32 %v9545_v36, %v1036_v16  ;;  %v10856_v39 = vpop.f32.mrf.mxu1 }
 0x146   : > { %v9514_v46 = vpop.f32.mrf.mxu0  ;;  %9717 = vmatmul.mubr.msk.bf16.gmra.mxu0 %vm325_vm1, %v2562_v9 }
 0x147   : > { %v1039_v27 = vadd.f32 %v9514_v46, %v10713_v60  ;;  %v9548_v59 = vpop.f32.mrf.mxu1  ;;  %9720 = vmatprep.mubr.msk.bf16.mxu0 %vm325_vm1, %v10594_v53 }
 0x148   : > { %v982_v17 = vpop.f32.mrf.mxu0 }
 0x149   : > { %v1037_v62 = vadd.f32 %v982_v17, %v10719_v6  ;;  %v10865_v55 = vadd.f32 %v9548_v59, %v1039_v27  ;;  %v1277_v18 = vpop.f32.mrf.mxu1 }
 0x14a   : > { %v9515_v49 = vpop.f32.mrf.mxu0 }
 0x14b   : > { %v1040_v0 = vadd.f32 %v9515_v49, %v10721_v8  ;;  %v10868_v2 = vadd.f32 %v1277_v18, %v1037_v62  ;;  %v9549_v7 = vpop.f32.mrf.mxu1 }
 0x14c   : > { %v10870_v60 = vpop.f32.mrf.mxu0 }
 0x14d   : > { %v10872_v28 = vadd.f32 %v9549_v7, %v1040_v0  ;;  %v10874_v53 = vpop.f32.mrf.mxu1 }
 0x14e   : > { %v9518_v50 = vpop.f32.mrf.mxu0  ;;  %9721 = vmatmul.mubr.msk.bf16.gmra.mxu0 %vm325_vm1, %v2564_v44 }
 0x14f   : > { %v1043_v6 = vadd.f32 %v9518_v50, %v10731_v52  ;;  %v9552_v9 = vpop.f32.mrf.mxu1 }
 0x150   : > { %v998_v16 = vpop.f32.mrf.mxu0 }
 0x151   : > { %v1041_v36 = vadd.f32 %v998_v16, %v10733_v22  ;;  %v10879_v46 = vadd.f32 %v9552_v9, %v1043_v6  ;;  %v1293_v8 = vpop.f32.mrf.mxu1  ;;  %v2900_v9 = vld [vmem:[#allocation2 + $0x18] sm:$0x1] }
 0x152   : > { %v9519_v27 = vpop.f32.mrf.mxu0 }
 0x153   : > { %v1044_v59 = vadd.f32 %v9519_v27, %v10735_v51  ;;  %v10882_v21 = vadd.f32 %v1293_v8, %v1041_v36  ;;  %v9553_v3 = vpop.f32.mrf.mxu1  ;;  %v2897_v27 = vld [vmem:[#allocation2 + $0xc] sm:$0x1] }
 0x154   : > { %v10884_v17 = vpop.f32.mrf.mxu0 }
 0x155   : > { %v10886_v62 = vadd.f32 %v9553_v3, %v1044_v59  ;;  %v10888_v18 = vpop.f32.mrf.mxu1 }
 0x156   : > { %14010 = vst [vmem:[#allocation3_spill] sm:$0xff] %v10888_v18  ;;  %v9558_v52 = vpop.f32.mrf.mxu0 }
 0x157   : > { %v10891_v49 = vadd.f32 %v9558_v52, %v10747_v63  ;;  %v10893_v22 = vpop.f32.mrf.mxu1  ;;  %v2898_v52 = vsel %vm10911_vm5, 0, %v2897_v27 }
 0x158   : > { %14012 = vst [vmem:[#allocation5_spill] sm:$0xff] %v10893_v22  ;;  %v1475_v44 = vpop.f32.mrf.mxu0  ;;  %2899 = vst [vmem:[#allocation2 + $0xc] sm:$0x1] %v2898_v52  ;;  %v2906_v52 = vld [vmem:[#allocation2 + $0x30] sm:$0x1] }
 0x159   : > { %14011 = vst [vmem:[#allocation4_spill] sm:$0xff] %v10891_v49  ;;  %v10896_v0 = vadd.f32 %v1475_v44, %v10750_v57  ;;  %v10898_v51 = vpop.f32.mrf.mxu1  ;;  %v14018_v57 = vmov 0  ;;  %v2971_v49 = vld [vmem:[#allocation2 + $0x5c] sm:$0x1] }
 0x15a   : > { %14014 = vst [vmem:[#allocation7_spill] sm:$0xff] %v10898_v51  ;;  %v9559_v7 = vpop.f32.mrf.mxu0  ;;  %v14019_v57 = vsel %vm10911_vm5, 4294967295, %v14018_v57  ;;  %v2962_v51 = vld [vmem:[#allocation2 + $0x38] sm:$0x1] }
 0x15b   : > { %14013 = vst [vmem:[#allocation6_spill] sm:$0xff] %v10896_v0  ;;  %v10901_v50 = vadd.f32 %v9559_v7, %v10755_v1  ;;  %v10903_v6 = vpop.f32.mrf.mxu1  ;;  %14020 = vst [vmem:[#allocation11_spill] sm:$0xff] %v14019_v57  ;;  %v2901_v1 = vsel %vm10911_vm5, 0, %v2900_v9  ;;  %v2956_v7 = vld [vmem:[#allocation2 + $0x20] sm:$0x1] }
 0x15c   : > { %14016 = vst [vmem:[#allocation9_spill] sm:$0xff] %v10903_v6  ;;  %v10905_v16 = vpop.f32.mrf.mxu0  ;;  %2902 = vst [vmem:[#allocation2 + $0x18] sm:$0x1] %v2901_v1  ;;  %v2957_v6 = vsel %vm10919_vm6, 0, %v2956_v7  ;;  %v2907_v7 = vsel %vm10911_vm5, 0, %v2906_v52 }
 0x15d   : > { %14015 = vst [vmem:[#allocation8_spill] sm:$0xff] %v10901_v50  ;;  %v10907_v63 = vpop.f32.mrf.mxu1  ;;  %2958 = vst [vmem:[#allocation2 + $0x20] sm:$0x1] %v2957_v6  ;;  %v2903_v6 = vld [vmem:[#allocation2 + $0x24] sm:$0x1] }
 0x15e   : > { %14017 = vst [vmem:[#allocation10_spill] sm:$0xff] %v10907_v63  ;;  %v9562_v36 = vpop.f32.mrf.mxu0  ;;  %2908 = vst [vmem:[#allocation2 + $0x30] sm:$0x1] %v2907_v7 }
 0x15f   : > { %v10924_v59 = vadd.f32 %v9562_v36, %v10765_v20  ;;  %v10926_v3 = vpop.f32.mrf.mxu1  ;;  %v2953_v20 = vld [vmem:[#allocation2 + $0x14] sm:$0x1] }
 0x160   : > { %14024 = vst [vmem:[#allocation13_spill] sm:$0xff] %v10926_v3  ;;  %v1491_v44 = vpop.f32.mrf.mxu0  ;;  %v2954_v27 = vsel %vm10919_vm6, 0, %v2953_v20  ;;  %v2904_v20 = vsel %vm10911_vm5, 0, %v2903_v6  ;;  %v10126_v6 = vmov 0  }
 0x161   : > { %14023 = vst [vmem:[#allocation12_spill] sm:$0xff] %v10924_v59  ;;  %v10931_v9 = vadd.f32 %v1491_v44, %v10768_v48  ;;  %v10933_v63 = vpop.f32.mrf.mxu1  ;;  %2955 = vst [vmem:[#allocation2 + $0x14] sm:$0x1] %v2954_v27 }
 0x162   : > { %14026 = vst [vmem:[#allocation15_spill] sm:$0xff] %v10933_v63  ;;  %v9563_v50 = vpop.f32.mrf.mxu0  ;;  %2905 = vst [vmem:[#allocation2 + $0x24] sm:$0x1] %v2904_v20 }
 0x163   : > { %14025 = vst [vmem:[#allocation14_spill] sm:$0xff] %v10931_v9  ;;  %v1609_v36 = vadd.f32 %v9563_v50, %v10773_v38  ;;  %v9597_v1 = vpop.f32.mrf.mxu1  ;;  %2883 = vst.msk [vmem:[#allocation2] sm:$0xf] %vm2882_vm7, %v10126_v6 }
 0x164   : > { %v10940_v3 = vpop.f32.mrf.mxu0  ;;  %2884 = vst.msk [vmem:[#allocation2 + $0x4] sm:$0xf] %vm2882_vm7, %v10126_v6  ;;  %2888 = vst.msk [vmem:[#allocation2 + $0xcc] sm:$0xf] %vm2882_vm7, %v10126_v6 }
 0x165   : > { %14027 = vst [vmem:[#allocation16_spill] sm:$0xff] %v10940_v3  ;;  %v10942_v48 = vadd.f32 %v9597_v1, %v1609_v36  ;;  %v10944_v44 = vpop.f32.mrf.mxu1  ;;  %2886 = vst.msk [vmem:[#allocation2 + $0x8] sm:$0x1] %vm2885_vm2, %v10126_v6 }
 0x166   : > { %14028 = vst [vmem:[#allocation17_spill] sm:$0xff] %v10944_v44  ;;  %v9566_v63 = vpop.f32.mrf.mxu0  ;;  %2889 = vst.msk [vmem:[#allocation2 + $0xd0] sm:$0xf] %vm2882_vm7, %v10126_v6 }
 0x167   : > { %v1612_v38 = vadd.f32 %v9566_v63, %v10783_v35  ;;  %v9600_v50 = vpop.f32.mrf.mxu1  ;;  %v2963_v63 = vsel %vm10919_vm6, 0, %v2962_v51  ;;  %2890 = vst.msk [vmem:[#allocation2 + $0xd4] sm:$0x1] %vm2885_vm2, %v10126_v6  ;;  %v2909_v6 = vld [vmem:[#allocation2 + $0x3c] sm:$0x1]  ;;  %vm11945_vm2 = vmor %vm4575_vm14, %vm4576_vm15 }
 0x168   : > { %v1507_v9 = vpop.f32.mrf.mxu0  ;;  %2964 = vst [vmem:[#allocation2 + $0x38] sm:$0x1] %v2963_v63 }
 0x169   : > { %v1610_v27 = vadd.f32 %v1507_v9, %v10786_v40  ;;  %v10952_v36 = vadd.f32 %v9600_v50, %v1612_v38  ;;  %v1801_v1 = vpop.f32.mrf.mxu1  ;;  %v2959_v9 = vld [vmem:[#allocation2 + $0x2c] sm:$0x1] }
 0x16a   : > { %v9567_v44 = vpop.f32.mrf.mxu0  ;;  %v14085_v57 = vld [vmem:[#allocation14_spill] sm:$0xff] }
 0x16b   : > { %v1613_v52 = vadd.f32 %v9567_v44, %v10791_v41  ;;  %v10955_v59 = vadd.f32 %v1801_v1, %v1610_v27  ;;  %v9601_v7 = vpop.f32.mrf.mxu1  ;;  %v2960_v44 = vsel %vm10919_vm6, 0, %v2959_v9  ;;  %v2912_v27 = vld [vmem:[#allocation2 + $0x48] sm:$0x1] }
 0x16c   : > { %v10957_v35 = vpop.f32.mrf.mxu0  ;;  %2961 = vst [vmem:[#allocation2 + $0x2c] sm:$0x1] %v2960_v44  ;;  %v2894_v44 = vld [vmem:[#allocation2] sm:$0x1] }
 0x16d   : > { %14029 = vst [vmem:[#allocation18_spill] sm:$0xff] %v10957_v35  ;;  %v10967_v40 = vadd.f32 %v9601_v7, %v1613_v52  ;;  %v10969_v41 = vpop.f32.mrf.mxu1  ;;  %v2913_v7 = vsel %vm10911_vm5, 0, %v2912_v27 }
 0x16e   : > { %14030 = vst [vmem:[#allocation19_spill] sm:$0xff] %v10969_v41  ;;  %v9570_v51 = vpop.f32.mrf.mxu0  ;;  %2914 = vst [vmem:[#allocation2 + $0x48] sm:$0x1] %v2913_v7  ;;  %v2965_v7 = vld [vmem:[#allocation2 + $0x44] sm:$0x1] }
 0x16f   : > { %v1616_v38 = vadd.f32 %v9570_v51, %v10805_v29  ;;  %v9604_v50 = vpop.f32.mrf.mxu1  ;;  %v2910_v51 = vsel %vm10911_vm5, 0, %v2909_v6  ;;  %v2966_v6 = vsel %vm10919_vm6, 0, %v2965_v7 }
 0x170   : > { %v1523_v20 = vpop.f32.mrf.mxu0  ;;  %2911 = vst [vmem:[#allocation2 + $0x3c] sm:$0x1] %v2910_v51  ;;  %2967 = vst [vmem:[#allocation2 + $0x44] sm:$0x1] %v2966_v6 }
 0x171   : > { %v1614_v1 = vadd.f32 %v1523_v20, %v10808_v31  ;;  %v10975_v0 = vadd.f32 %v9604_v50, %v1616_v38  ;;  %v1817_v52 = vpop.f32.mrf.mxu1  ;;  %v2895_v31 = vsel %vm10911_vm5, 0, %v2894_v44  ;;  %v2968_v20 = vld [vmem:[#allocation2 + $0x50] sm:$0x1] }
 0x172   : > { %v9571_v63 = vpop.f32.mrf.mxu0  ;;  %2896 = vst [vmem:[#allocation2] sm:$0x1] %v2895_v31  ;;  %v2969_v27 = vsel %vm10919_vm6, 0, %v2968_v20  ;;  %v3569_v31 = vld [vmem:[%s13988_s3] sm:$0x3] }
 0x173   : > { %v1617_v41 = vadd.f32 %v9571_v63, %v10813_v23  ;;  %v10980_v9 = vadd.f32 %v1817_v52, %v1614_v1  ;;  %v9605_v29 = vpop.f32.mrf.mxu1  ;;  %2970 = vst [vmem:[#allocation2 + $0x50] sm:$0x1] %v2969_v27  ;;  %10040 = vmatprep.subr.msk.bf16.mxu0 %vm374_vm0, %v3569_v31  ;;  %v4364_v27 = vsel %vm374_vm0, %v3569_v31, 0 }
 0x174   : > { %v10984_v22 = vpop.f32.mrf.mxu0  ;;  %9759 = vmatpush3.bf16.msra.mxu0 %v4364_v27 }
 0x175   : > { %14031 = vst [vmem:[#allocation20_spill] sm:$0xff] %v10984_v22  ;;  %v10988_v38 = vadd.f32 %v9605_v29, %v1617_v41  ;;  %v10990_v50 = vpop.f32.mrf.mxu1 }
 0x176   : > { %14032 = vst [vmem:[#allocation21_spill] sm:$0xff] %v10990_v50  ;;  %v9574_v23 = vpop.f32.mrf.mxu0 }
 0x177   : > { %v1620_v1 = vadd.f32 %v9574_v23, %v10825_v13  ;;  %v9608_v52 = vpop.f32.mrf.mxu1 }
 0x178   : > { %v1539_v63 = vpop.f32.mrf.mxu0 }
 0x179   : > { %v1618_v41 = vadd.f32 %v1539_v63, %v10828_v10  ;;  %v10998_v29 = vadd.f32 %v9608_v52, %v1620_v1  ;;  %v1833_v51 = vpop.f32.mrf.mxu1  ;;  %v2918_v10 = vld [vmem:[#allocation2 + $0x60] sm:$0x1]  ;;  %v11010_v52 = vld [vmem:[#allocation2 + $0x4] sm:$0xf] }
 0x17a   : > { %v9575_v44 = vpop.f32.mrf.mxu0  ;;  %v3537_v1 = vld [vmem:[#allocation2] sm:$0xf]  ;;  %v3599_v3 = vshll.u32 %v11010_v52, 16 }
 0x17b   : > { %v1621_v13 = vadd.f32 %v9575_v44, %v10832_v5  ;;  %v11004_v20 = vadd.f32 %v1833_v51, %v1618_v41  ;;  %v9609_v23 = vpop.f32.mrf.mxu1  ;;  %v2919_v5 = vsel %vm10911_vm5, 0, %v2918_v10  ;;  %v2915_v51 = vld [vmem:[#allocation2 + $0x54] sm:$0x1]  ;;  %v8733_v44 = vcombine.low %v3537_v1, %v11010_v52 }
 0x17c   : > { %v11008_v7 = vpop.f32.mrf.mxu0  ;;  %2920 = vst [vmem:[#allocation2 + $0x60] sm:$0x1] %v2919_v5  ;;  %v2916_v27 = vsel %vm10911_vm5, 0, %v2915_v51 }
 0x17d   : > { %14033 = vst [vmem:[#allocation22_spill] sm:$0xff] %v11008_v7  ;;  %v11012_v63 = vadd.f32 %v9609_v23, %v1621_v13  ;;  %v11014_v6 = vpop.f32.mrf.mxu1  ;;  %2917 = vst [vmem:[#allocation2 + $0x54] sm:$0x1] %v2916_v27  ;;  %v2974_v13 = vld [vmem:[#allocation2 + $0x68] sm:$0x1]  ;;  %9760 = vmatprep.mubr.msk.bf16.mxu0 %vm325_vm1, %v8733_v44  ;;  %v2972_v44 = vsel %vm10919_vm6, 0, %v2971_v49 }
 0x17e   : > { %14034 = vst [vmem:[#allocation23_spill] sm:$0xff] %v11014_v6  ;;  %v9578_v41 = vpop.f32.mrf.mxu0  ;;  %v2975_v5 = vsel %vm10919_vm6, 0, %v2974_v13  ;;  %2973 = vst [vmem:[#allocation2 + $0x5c] sm:$0x1] %v2972_v44  ;;  %v3590_v44 = vshrl.u32 %v3537_v1, 16 }
 0x17f   : > { %v1624_v31 = vadd.f32 %v9578_v41, %v10847_v4  ;;  %v9612_v50 = vpop.f32.mrf.mxu1  ;;  %2976 = vst [vmem:[#allocation2 + $0x68] sm:$0x1] %v2975_v5 }
 0x180   : > { %v1555_v7 = vpop.f32.mrf.mxu0 }
 0x181   : > { %v1622_v23 = vadd.f32 %v1555_v7, %v10850_v24  ;;  %v11024_v6 = vadd.f32 %v9612_v50, %v1624_v31  ;;  %v1849_v10 = vpop.f32.mrf.mxu1  ;;  %v2924_v7 = vld [vmem:[#allocation2 + $0x78] sm:$0x1] }
 0x182   : > { %v9579_v22 = vpop.f32.mrf.mxu0  ;;  %v2925_v13 = vsel %vm10911_vm5, 0, %v2924_v7 }
 0x183   : > { %v1625_v4 = vadd.f32 %v9579_v22, %v10854_v37  ;;  %v11029_v41 = vadd.f32 %v1849_v10, %v1622_v23  ;;  %v9613_v51 = vpop.f32.mrf.mxu1  ;;  %2926 = vst [vmem:[#allocation2 + $0x78] sm:$0x1] %v2925_v13  ;;  %v2950_v10 = vld [vmem:[#allocation2 + $0x8] sm:$0x1]  ;;  %v3603_v13 = vshrl.u32 %v11010_v52, 16 }
 0x184   : > { %v11031_v27 = vpop.f32.mrf.mxu0 }
 0x185   : > { %14035 = vst [vmem:[#allocation24_spill] sm:$0xff] %v11031_v27  ;;  %v11035_v24 = vadd.f32 %v9613_v51, %v1625_v4  ;;  %v11037_v50 = vpop.f32.mrf.mxu1  ;;  %v2951_v4 = vsel %vm10919_vm6, 0, %v2950_v10 }
 0x186   : > { %14036 = vst [vmem:[#allocation25_spill] sm:$0xff] %v11037_v50  ;;  %v9582_v31 = vpop.f32.mrf.mxu0  ;;  %v3593_v50 = vshll.u32 %v3537_v1, 16  ;;  %2952 = vst [vmem:[#allocation2 + $0x8] sm:$0x1] %v2951_v4 }
 0x187   : > { %v1628_v37 = vadd.f32 %v9582_v31, %v10865_v55  ;;  %v9616_v22 = vpop.f32.mrf.mxu1 }
 0x188   : > { %v1571_v23 = vpop.f32.mrf.mxu0  ;;  %v3595_v10 = vrot.slane %v3593_v50, 5 }
 0x189   : > { %v1626_v5 = vadd.f32 %v1571_v23, %v10868_v2  ;;  %v11043_v27 = vadd.f32 %v9616_v22, %v1628_v37  ;;  %v1865_v49 = vpop.f32.mrf.mxu1  ;;  %v3592_v23 = vrot.slane %v3590_v44, 4 }
 0x18a   : > { %v9583_v51 = vpop.f32.mrf.mxu0 }
 0x18b   : > { %v1629_v7 = vadd.f32 %v9583_v51, %v10872_v28  ;;  %v11048_v35 = vadd.f32 %v1865_v49, %v1626_v5  ;;  %v9617_v55 = vpop.f32.mrf.mxu1  ;;  %v2921_v28 = vld [vmem:[#allocation2 + $0x6c] sm:$0x1]  ;;  %v3601_v51 = vrot.slane %v3599_v3, 5  ;;  %v3596_v52 = vor.u32 %v3595_v10, %v3592_v23 }
 0x18c   : > { %v11050_v31 = vpop.f32.mrf.mxu0  ;;  %v2922_v49 = vsel %vm10911_vm5, 0, %v2921_v28 }
 0x18d   : > { %14037 = vst [vmem:[#allocation26_spill] sm:$0xff] %v11050_v31  ;;  %v11053_v2 = vadd.f32 %v9617_v55, %v1629_v7  ;;  %v11055_v37 = vpop.f32.mrf.mxu1  ;;  %v3605_v31 = vrot.slane %v3603_v13, 4  ;;  %2923 = vst [vmem:[#allocation2 + $0x6c] sm:$0x1] %v2922_v49  ;;  %v3570_v44 = vld [vmem:[#allocation2 + $0x8] sm:$0x1] }
 0x18e   : > { %14039 = vst [vmem:[#allocation28_spill] sm:$0xff] %v11055_v37  ;;  %v9586_v22 = vpop.f32.mrf.mxu0  ;;  %v3597_v13 = vrot.slane %v3596_v52, 4  ;;  %v14041_v49 = vmov 0 }
 0x18f   : > { %14038 = vst [vmem:[#allocation27_spill] sm:$0xff] %v11053_v2  ;;  %v1632_v1 = vadd.f32 %v9586_v22, %v10879_v46  ;;  %v9620_v4 = vpop.f32.mrf.mxu1  ;;  %v3606_v46 = vor.u32 %v3605_v31, %v3601_v51  ;;  %v3609_v22 = vshll.u32 %v3570_v44, 16  ;;  %v14042_v49 = vsel %vm11074_vm10, 4294967295, %v14041_v49  ;;  %v2980_v44 = vld [vmem:[#allocation2 + $0x80] sm:$0x1] }
 0x190   : > { %v1587_v5 = vpop.f32.mrf.mxu0  ;;  %14043 = vst [vmem:[#allocation30_spill] sm:$0xff] %v14042_v49  ;;  %v2981_v52 = vsel %vm10919_vm6, 0, %v2980_v44 }
 0x191   : > { %v1630_v7 = vadd.f32 %v1587_v5, %v10882_v21  ;;  %v11062_v55 = vadd.f32 %v9620_v4, %v1632_v1  ;;  %v1881_v37 = vpop.f32.mrf.mxu1  ;;  %v3607_v21 = vrot.slane %v3606_v46, 4  ;;  %v3611_v1 = vrot.slane %v3609_v22, 5  ;;  %v2977_v46 = vld [vmem:[#allocation2 + $0x74] sm:$0x1]  ;;  %2982 = vst [vmem:[#allocation2 + $0x80] sm:$0x1] %v2981_v52 }
 0x192   : > { %v9587_v50 = vpop.f32.mrf.mxu0  ;;  %v2978_v22 = vsel %vm10919_vm6, 0, %v2977_v46  ;;  %v2927_v52 = vld [vmem:[#allocation2 + $0x84] sm:$0x1] }
 0x193   : > { %v1633_v2 = vadd.f32 %v9587_v50, %v10886_v62  ;;  %v11065_v18 = vadd.f32 %v1881_v37, %v1630_v7  ;;  %v9621_v28 = vpop.f32.mrf.mxu1  ;;  %v3602_v62 = vsel %vm11074_vm10, %v3597_v13, %v3601_v51  ;;  %v3612_v37 = vsel %vm11074_vm10, %v3607_v21, %v3611_v1  ;;  %2979 = vst [vmem:[#allocation2 + $0x74] sm:$0x1] %v2978_v22  ;;  %v11106_v1 = vld [vmem:[%s13988_s3 + $0x4] sm:$0x3] }
 0x194   : > { %v11067_v3 = vpop.f32.mrf.mxu0  ;;  %v8701_v10 = vcombine.low %v3602_v62, %v3612_v37  ;;  %14045 = vst [vmem:[#allocation32_spill] sm:$0xff] %v11106_v1  ;;  %10041 = vmatprep.subr.msk.bf16.mxu1 %vm374_vm0, %v11106_v1  ;;  %v2928_v22 = vsel %vm10911_vm5, 0, %v2927_v52 }
 0x195   : > { %v11069_v4 = vadd.f32 %v9621_v28, %v1633_v2  ;;  %v11071_v5 = vpop.f32.mrf.mxu1  ;;  %v2930_v28 = vld [vmem:[#allocation2 + $0x90] sm:$0x1]  ;;  %2929 = vst [vmem:[#allocation2 + $0x84] sm:$0x1] %v2928_v22 }
 0x196   : > { %v11078_v31 = vpop.f32.mrf.mxu0  ;;  %9726 = vmatprep.mubr.msk.bf16.mxu1 %vm325_vm1, %v8701_v10  ;;  %v2931_v21 = vsel %vm10911_vm5, 0, %v2930_v28 }
 0x197   : > { %14040 = vst [vmem:[#allocation29_spill] sm:$0xff] %v11069_v4  ;;  %v11084_v23 = vpop.f32.mrf.mxu1  ;;  %2932 = vst [vmem:[#allocation2 + $0x90] sm:$0x1] %v2931_v21 }
 0x198   : > { %v11086_v2 = vpop.f32.mrf.mxu0 }
 0x199   : > { %v11088_v7 = vpop.f32.mrf.mxu1 }
 0x19a   : > { %v11091_v50 = vpop.f32.mrf.mxu0 }
 0x19b   : > { %v11095_v51 = vpop.f32.mrf.mxu1 }
 0x19c   : > { %14044 = vst [vmem:[#allocation31_spill] sm:$0xff] %v11095_v51  ;;  %v11099_v13 = vpop.f32.mrf.mxu0 }
 0x19d   : > { %v11108_v62 = vpop.f32.mrf.mxu1 }
 0x19e   : > { %14046 = vst [vmem:[#allocation33_spill] sm:$0xff] %v11108_v62  ;;  %v11112_v37 = vpop.f32.mrf.mxu0 }
 0x19f   : > { %v11114_v10 = vpop.f32.mrf.mxu1 }
 0x1a0   : > { %14047 = vst [vmem:[#allocation34_spill] sm:$0xff] %v11114_v10  ;;  %v11116_v44 = vpop.f32.mrf.mxu0 }
 0x1a1   : > { %v11118_v46 = vpop.f32.mrf.mxu1 }
 0x1a2   : > { %14048 = vst [vmem:[#allocation35_spill] sm:$0xff] %v11118_v46  ;;  %v9631_v28 = vpop.f32.mrf.mxu0 }
 0x1a3   : > { %v11123_v49 = vadd.f32 %v9631_v28, %v10942_v48  ;;  %v11125_v21 = vpop.f32.mrf.mxu1 }
 0x1a4   : > { %14050 = vst [vmem:[#allocation37_spill] sm:$0xff] %v11125_v21  ;;  %v11127_v1 = vpop.f32.mrf.mxu0 }
 0x1a5   : > { %14049 = vst [vmem:[#allocation36_spill] sm:$0xff] %v11123_v49  ;;  %v11129_v62 = vpop.f32.mrf.mxu1  ;;  %v2986_v49 = vld [vmem:[#allocation2 + $0x98] sm:$0x1] }
 0x1a6   : > { %14051 = vst [vmem:[#allocation38_spill] sm:$0xff] %v11129_v62  ;;  %v9634_v10 = vpop.f32.mrf.mxu0 }
 0x1a7   : > { %v11132_v51 = vadd.f32 %v9634_v10, %v10952_v36  ;;  %v11134_v4 = vpop.f32.mrf.mxu1  ;;  %v2987_v36 = vsel %vm10919_vm6, 0, %v2986_v49 }
 0x1a8   : > { %14052 = vst [vmem:[#allocation39_spill] sm:$0xff] %v11134_v4  ;;  %v2096_v46 = vpop.f32.mrf.mxu0  ;;  %2988 = vst [vmem:[#allocation2 + $0x98] sm:$0x1] %v2987_v36 }
 0x1a9   : > { %v11137_v52 = vadd.f32 %v2096_v46, %v10955_v59  ;;  %v11139_v22 = vpop.f32.mrf.mxu1  ;;  %v2983_v59 = vld [vmem:[#allocation2 + $0x8c] sm:$0x1]  ;;  %v2936_v46 = vld [vmem:[#allocation2 + $0xa8] sm:$0x1] }
 0x1aa   : > { %14054 = vst [vmem:[#allocation41_spill] sm:$0xff] %v11139_v22  ;;  %v9635_v48 = vpop.f32.mrf.mxu0 }
 0x1ab   : > { %14053 = vst [vmem:[#allocation40_spill] sm:$0xff] %v11137_v52  ;;  %v11142_v28 = vadd.f32 %v9635_v48, %v10967_v40  ;;  %v11144_v21 = vpop.f32.mrf.mxu1  ;;  %v2984_v40 = vsel %vm10919_vm6, 0, %v2983_v59  ;;  %v2937_v48 = vsel %vm10911_vm5, 0, %v2936_v46 }
 0x1ac   : > { %14055 = vst [vmem:[#allocation42_spill] sm:$0xff] %v11144_v21  ;;  %v11146_v62 = vpop.f32.mrf.mxu0  ;;  %2985 = vst [vmem:[#allocation2 + $0x8c] sm:$0x1] %v2984_v40 }
 0x1ad   : > { %v11150_v10 = vpop.f32.mrf.mxu1  ;;  %2938 = vst [vmem:[#allocation2 + $0xa8] sm:$0x1] %v2937_v48 }
 0x1ae   : > { %14056 = vst [vmem:[#allocation43_spill] sm:$0xff] %v11150_v10  ;;  %v9638_v4 = vpop.f32.mrf.mxu0 }
 0x1af   : > { %v11153_v22 = vadd.f32 %v9638_v4, %v10975_v0  ;;  %v11155_v52 = vpop.f32.mrf.mxu1 }
 0x1b0   : > { %14058 = vst [vmem:[#allocation45_spill] sm:$0xff] %v11155_v52  ;;  %v2112_v21 = vpop.f32.mrf.mxu0  ;;  %v2933_v52 = vld [vmem:[#allocation2 + $0x9c] sm:$0x1] }
 0x1b1   : > { %14057 = vst [vmem:[#allocation44_spill] sm:$0xff] %v11153_v22  ;;  %v11162_v49 = vadd.f32 %v2112_v21, %v10980_v9  ;;  %v11164_v36 = vpop.f32.mrf.mxu1  ;;  %v2934_v59 = vsel %vm10911_vm5, 0, %v2933_v52 }
 0x1b2   : > { %v9639_v10 = vpop.f32.mrf.mxu0  ;;  %2935 = vst [vmem:[#allocation2 + $0x9c] sm:$0x1] %v2934_v59 }
 0x1b3   : > { %v11167_v0 = vadd.f32 %v9639_v10, %v10988_v38  ;;  %v11169_v4 = vpop.f32.mrf.mxu1 }
 0x1b4   : > { %14060 = vst [vmem:[#allocation47_spill] sm:$0xff] %v11169_v4  ;;  %v11171_v22 = vpop.f32.mrf.mxu0 }
 0x1b5   : > { %14059 = vst [vmem:[#allocation46_spill] sm:$0xff] %v11167_v0  ;;  %v11175_v46 = vpop.f32.mrf.mxu1 }
 0x1b6   : > { %14061 = vst [vmem:[#allocation48_spill] sm:$0xff] %v11175_v46  ;;  %v9642_v40 = vpop.f32.mrf.mxu0 }
 0x1b7   : > { %v11178_v9 = vadd.f32 %v9642_v40, %v10998_v29  ;;  %v11180_v21 = vpop.f32.mrf.mxu1  ;;  %v2992_v40 = vld [vmem:[#allocation2 + $0xb0] sm:$0x1] }
 0x1b8   : > { %14063 = vst [vmem:[#allocation50_spill] sm:$0xff] %v11180_v21  ;;  %v2128_v48 = vpop.f32.mrf.mxu0 }
 0x1b9   : > { %14062 = vst [vmem:[#allocation49_spill] sm:$0xff] %v11178_v9  ;;  %v11183_v38 = vadd.f32 %v2128_v48, %v11004_v20  ;;  %v11185_v10 = vpop.f32.mrf.mxu1  ;;  %v2993_v20 = vsel %vm10919_vm6, 0, %v2992_v40 }
 0x1ba   : > { %14064 = vst [vmem:[#allocation51_spill] sm:$0xff] %v11185_v10  ;;  %v9643_v4 = vpop.f32.mrf.mxu0  ;;  %2994 = vst [vmem:[#allocation2 + $0xb0] sm:$0x1] %v2993_v20  ;;  %v2942_v10 = vld [vmem:[#allocation2 + $0xc0] sm:$0x1]  ;;  %v708_v20 = vadd.f32 %v10703_v45, %v10701_v42  ;;  %v1309_v42 = vadd.f32 %v10757_v56, %v10753_v15 }
 0x1bb   : > { %v11188_v0 = vadd.f32 %v9643_v4, %v11012_v63  ;;  %v11190_v52 = vpop.f32.mrf.mxu1  ;;  %v2943_v40 = vsel %vm10911_vm5, 0, %v2942_v10 }
 0x1bc   : > { %14066 = vst [vmem:[#allocation53_spill] sm:$0xff] %v11190_v52  ;;  %v11192_v46 = vpop.f32.mrf.mxu0  ;;  %v2989_v52 = vld [vmem:[#allocation2 + $0xa4] sm:$0x1]  ;;  %2944 = vst [vmem:[#allocation2 + $0xc0] sm:$0x1] %v2943_v40  ;;  %v1034_v10 = vadd.f32 %v10852_v12, %v708_v20  ;;  %v1313_v12 = vadd.f32 %v10775_v61, %v10771_v30  ;;  %v1603_v15 = vadd.f32 %v10905_v16, %v1309_v42  ;;  %v14068_v20 = vld [vmem:[#allocation3_spill] sm:$0xff] }
 0x1bd   : > { %14065 = vst [vmem:[#allocation52_spill] sm:$0xff] %v11188_v0  ;;  %v11194_v59 = vpop.f32.mrf.mxu1 }
 0x1be   : > { %14067 = vst [vmem:[#allocation54_spill] sm:$0xff] %v11194_v59  ;;  %v9646_v29 = vpop.f32.mrf.mxu0  ;;  %v2990_v59 = vsel %vm10919_vm6, 0, %v2989_v52 }
 0x1bf   : > { %v11197_v21 = vadd.f32 %v9646_v29, %v11024_v6  ;;  %v11199_v9 = vpop.f32.mrf.mxu1  ;;  %2991 = vst [vmem:[#allocation2 + $0xa4] sm:$0x1] %v2990_v59 }
 0x1c0   : > { %v2144_v48 = vpop.f32.mrf.mxu0 }
 0x1c1   : > { %v11204_v63 = vadd.f32 %v2144_v48, %v11029_v41  ;;  %v11206_v4 = vpop.f32.mrf.mxu1  ;;  %v692_v41 = vadd.f32 %v10685_v33, %v10683_v25  ;;  %v724_v48 = vadd.f32 %v10725_v11, %v10723_v34 }
 0x1c2   : > { %v9647_v0 = vpop.f32.mrf.mxu0 }
 0x1c3   : > { %v11211_v6 = vadd.f32 %v9647_v0, %v11035_v24  ;;  %v11213_v29 = vpop.f32.mrf.mxu1  ;;  %v740_v24 = vadd.f32 %v10739_v47, %v10737_v43  ;;  %v1030_v59 = vadd.f32 %v10830_v19, %v692_v41  ;;  %v1038_v25 = vadd.f32 %v10870_v60, %v724_v48  ;;  %v2939_v43 = vld [vmem:[#allocation2 + $0xb4] sm:$0x1] }
 0x1c4   : > { %v11223_v52 = vpop.f32.mrf.mxu0  ;;  %v2940_v19 = vsel %vm10911_vm5, 0, %v2939_v43  ;;  %v1317_v60 = vadd.f32 %v10793_v14, %v10789_v26  ;;  %v1329_v41 = vadd.f32 %v10856_v39, %v1034_v10  ;;  %v14069_v14 = vld [vmem:[#allocation16_spill] sm:$0xff]  ;;  %v14070_v48 = vld [vmem:[#allocation18_spill] sm:$0xff] }
 0x1c5   : > { %v11227_v0 = vpop.f32.mrf.mxu1  ;;  %v1042_v45 = vadd.f32 %v10884_v17, %v740_v24  ;;  %2941 = vst [vmem:[#allocation2 + $0xb4] sm:$0x1] %v2940_v19  ;;  %v1325_v40 = vadd.f32 %v10834_v54, %v1030_v59  ;;  %v1333_v30 = vadd.f32 %v10874_v53, %v1038_v25  ;;  %v1607_v16 = vadd.f32 %v14069_v14, %v1313_v12  ;;  %v14071_v24 = vld [vmem:[#allocation27_spill] sm:$0xff]  ;;  %v14074_v43 = vld [vmem:[#allocation4_spill] sm:$0xff]  ;;  %v14076_v54 = vld [vmem:[#allocation6_spill] sm:$0xff] }
 0x1c6   : > { %v9650_v33 = vpop.f32.mrf.mxu0  ;;  %v14077_v59 = vld [vmem:[#allocation7_spill] sm:$0xff]  ;;  %v14078_v10 = vld [vmem:[#allocation20_spill] sm:$0xff]  ;;  %v14079_v25 = vld [vmem:[#allocation22_spill] sm:$0xff] }
 0x1c7   : > { %v11236_v34 = vadd.f32 %v9650_v33, %v11043_v27  ;;  %v11238_v11 = vpop.f32.mrf.mxu1  ;;  %v1321_v27 = vadd.f32 %v10815_v58, %v10811_v32  ;;  %v1337_v26 = vadd.f32 %v14068_v20, %v1042_v45  ;;  %v14075_v32 = vld [vmem:[#allocation5_spill] sm:$0xff]  ;;  %v1896_v39 = vadd.f32 %v14077_v59, %v14076_v54  ;;  %v14080_v19 = vld [vmem:[#allocation8_spill] sm:$0xff]  ;;  %v14082_v20 = vld [vmem:[#allocation10_spill] sm:$0xff] }
 0x1c8   : > { %v2160_v47 = vpop.f32.mrf.mxu0  ;;  %v1898_v58 = vadd.f32 %v14075_v32, %v14074_v43  ;;  %v14081_v12 = vld [vmem:[#allocation9_spill] sm:$0xff]  ;;  %v14083_v14 = vld [vmem:[#allocation12_spill] sm:$0xff] }
 0x1c9   : > { %v11248_v56 = vadd.f32 %v2160_v47, %v11048_v35  ;;  %v11250_v17 = vpop.f32.mrf.mxu1  ;;  %v1611_v35 = vadd.f32 %v14070_v48, %v1317_v60  ;;  %v1615_v53 = vadd.f32 %v14078_v10, %v1321_v27  ;;  %v1619_v47 = vadd.f32 %v14079_v25, %v1325_v40  ;;  %v14084_v48 = vld [vmem:[#allocation13_spill] sm:$0xff]  ;;  %v14088_v54 = vld [vmem:[#allocation24_spill] sm:$0xff]  ;;  %v14089_v27 = vld [vmem:[#allocation26_spill] sm:$0xff] }
 0x1ca   : > { %v9651_v61 = vpop.f32.mrf.mxu0  ;;  %v1899_v60 = vadd.f32 %v14081_v12, %v14080_v19  ;;  %v1623_v59 = vadd.f32 %v14088_v54, %v1329_v41  ;;  %v1627_v10 = vadd.f32 %v14089_v27, %v1333_v30  ;;  %v1631_v40 = vadd.f32 %v11067_v3, %v1337_v26  ;;  %v14090_v19 = vld [vmem:[#allocation17_spill] sm:$0xff] }
 0x1cb   : > { %v11261_v33 = vadd.f32 %v9651_v61, %v14071_v24  ;;  %v11263_v42 = vpop.f32.mrf.mxu1  ;;  %v1897_v61 = vadd.f32 %v14082_v20, %v1603_v15  ;;  %v1902_v24 = vadd.f32 %v14084_v48, %v14083_v14  ;;  %v2193_v25 = vadd.f32 %v11078_v31, %v1898_v58  ;;  %v14091_v15 = vld [vmem:[#allocation19_spill] sm:$0xff] }
 0x1cc   : > { %14073 = vst [vmem:[#allocation16_spill] sm:$0xff] %v11263_v42  ;;  %v11271_v45 = vpop.f32.mrf.mxu0  ;;  %v14086_v42 = vld [vmem:[#allocation15_spill] sm:$0xff]  ;;  %v1901_v12 = vadd.f32 %v14090_v19, %v1607_v16  ;;  %v1905_v20 = vadd.f32 %v14091_v15, %v1611_v35  ;;  %v2191_v14 = vadd.f32 %v11086_v2, %v1896_v39  ;;  %v2194_v30 = vadd.f32 %v11091_v50, %v1899_v60  ;;  %v14095_v39 = vld [vmem:[#allocation28_spill] sm:$0xff]  ;;  %v2998_v60 = vld [vmem:[#allocation2 + $0xc8] sm:$0x1] }
 0x1cd   : > { %14072 = vst [vmem:[#allocation3_spill] sm:$0xff] %v11261_v33  ;;  %v1900_v43 = vadd.f32 %v14086_v42, %v14085_v57  ;;  %v11280_v32 = vpop.f32.mrf.mxu1  ;;  %v14092_v57 = vld [vmem:[#allocation21_spill] sm:$0xff]  ;;  %v2192_v3 = vadd.f32 %v11099_v13, %v1897_v61  ;;  %v2197_v31 = vadd.f32 %v11112_v37, %v1902_v24  ;;  %v1925_v50 = vadd.f32 %v11071_v5, %v1631_v40  ;;  %v14097_v24 = vld [vmem:[#allocation31_spill] sm:$0xff]  ;;  %v14104_v15 = vld [vmem:[#allocation38_spill] sm:$0xff] }
 0x1ce   : > { %14087 = vst [vmem:[#allocation18_spill] sm:$0xff] %v11280_v32  ;;  %v9654_v33 = vpop.f32.mrf.mxu0  ;;  %v1909_v42 = vadd.f32 %v14092_v57, %v1615_v53  ;;  %v14093_v32 = vld [vmem:[#allocation23_spill] sm:$0xff]  ;;  %v2196_v35 = vadd.f32 %v11127_v1, %v1901_v12  ;;  %v1921_v53 = vadd.f32 %v14095_v39, %v1627_v10  ;;  %v2487_v13 = vadd.f32 %v11084_v23, %v2193_v25  ;;  %v14096_v1 = vld [vmem:[#allocation29_spill] sm:$0xff]  ;;  %v14099_v23 = vld [vmem:[#allocation32_spill] sm:$0xff] }
 0x1cf   : > { %v11290_v48 = vadd.f32 %v9654_v33, %v11062_v55  ;;  %v1913_v41 = vadd.f32 %v14093_v32, %v1619_v47  ;;  %v2195_v16 = vadd.f32 %v11116_v44, %v1900_v43  ;;  %v11302_v55 = vpop.f32.mrf.mxu1  ;;  %v14094_v33 = vld [vmem:[#allocation25_spill] sm:$0xff]  ;;  %v2485_v37 = vadd.f32 %v11088_v7, %v2191_v14  ;;  %v14100_v7 = vld [vmem:[#allocation34_spill] sm:$0xff]  ;;  %v14101_v10 = vld [vmem:[#allocation35_spill] sm:$0xff] }
 0x1d0   : > { %v2176_v26 = vpop.f32.mrf.mxu0  ;;  %v1917_v58 = vadd.f32 %v14094_v33, %v1623_v59  ;;  %v2200_v44 = vadd.f32 %v11146_v62, %v1905_v20  ;;  %v2488_v43 = vadd.f32 %v14097_v24, %v2194_v30  ;;  %v14098_v32 = vld [vmem:[#allocation33_spill] sm:$0xff]  ;;  %v2204_v5 = vadd.f32 %v11171_v22, %v1909_v42  ;;  %v14102_v25 = vld [vmem:[#allocation36_spill] sm:$0xff]  ;;  %v2995_v22 = vld [vmem:[#allocation2 + $0xbc] sm:$0x1] }
 0x1d1   : > { %v11300_v2 = vadd.f32 %v2176_v26, %v11065_v18  ;;  %v2999_v18 = vsel %vm10919_vm6, 0, %v2998_v60  ;;  %v2486_v54 = vadd.f32 %v14098_v32, %v2192_v3  ;;  %v11320_v27 = vsel %vm374_vm0, %v14099_v23, 0  ;;  %v14103_v19 = vld [vmem:[#allocation37_spill] sm:$0xff]  ;;  %v2470_v14 = vpop.f32.mrf.mxu1  ;;  %v14105_v57 = vld [vmem:[#allocation39_spill] sm:$0xff]  ;;  %v14106_v30 = vld [vmem:[#allocation40_spill] sm:$0xff] }
 0x1d2   : > { %v9655_v47 = vpop.f32.mrf.mxu0  ;;  %3000 = vst [vmem:[#allocation2 + $0xc8] sm:$0x1] %v2999_v18  ;;  %v2491_v62 = vadd.f32 %v14100_v7, %v2197_v31  ;;  %v11324_v40 = vadd.f32 %v14101_v10, %v2195_v16  ;;  %v11328_v12 = vadd.f32 %v14103_v19, %v14102_v25  ;;  %v11331_v20 = vadd.f32 %v14104_v15, %v2196_v35  ;;  %v14107_v3 = vld [vmem:[#allocation41_spill] sm:$0xff]  ;;  %v11345_v33 = vld [vmem:[%s13987_s2] ss:$0 sm:$0xff]  ;;  %v14108_v39 = vld [vmem:[#allocation42_spill] sm:$0xff] }
 0x1d3   : > { %v11311_v61 = vadd.f32 %v9655_v47, %v14096_v1  ;;  %v11335_v42 = vadd.f32 %v14105_v57, %v11132_v51  ;;  %v11339_v26 = vadd.f32 %v14107_v3, %v14106_v30  ;;  %v2208_v31 = vadd.f32 %v11192_v46, %v1913_v41  ;;  %v14109_v51 = vld [vmem:[#allocation43_spill] sm:$0xff]  ;;  %v14110_v1 = vld [vmem:[#allocation44_spill] sm:$0xff]  ;;  %v14111_v18 = vld [vmem:[#allocation45_spill] sm:$0xff] }
 0x1d4   : > { %v2179_v59 = vpop.f32.mrf.mxu0  ;;  %v2996_v35 = vsel %vm10919_vm6, 0, %v2995_v22  ;;  %v11351_v47 = vadd.f32 %v14108_v39, %v11142_v28  ;;  %v11354_v60 = vadd.f32 %v14109_v51, %v2200_v44  ;;  %v11358_v24 = vadd.f32 %v14111_v18, %v14110_v1  ;;  %v14112_v32 = vld [vmem:[#allocation46_spill] sm:$0xff]  ;;  %v14113_v23 = vld [vmem:[#allocation47_spill] sm:$0xff]  ;;  %v14114_v10 = vld [vmem:[#allocation48_spill] sm:$0xff] }
 0x1d5   : > { %2997 = vst [vmem:[#allocation2 + $0xbc] sm:$0x1] %v2996_v35  ;;  %v11362_v41 = vadd.f32 %v11164_v36, %v11162_v49  ;;  %v11366_v7 = vadd.f32 %v14113_v23, %v14112_v32  ;;  %v11369_v28 = vadd.f32 %v14114_v10, %v2204_v5  ;;  %v2212_v44 = vadd.f32 %v11223_v52, %v1917_v58  ;;  %v14115_v19 = vld [vmem:[#allocation49_spill] sm:$0xff]  ;;  %v14116_v15 = vld [vmem:[#allocation50_spill] sm:$0xff]  ;;  %v9689_v49 = vpop.f32.mrf.mxu1  ;;  %v14118_v3 = vld [vmem:[#allocation52_spill] sm:$0xff] }
 0x1d6   : > { %v9694_v16 = vpop.f32.mrf.mxu0  ;;  %v11374_v22 = vadd.f32 %v14116_v15, %v14115_v19  ;;  %v14120_v5 = vld [vmem:[#allocation54_spill] sm:$0xff]  ;;  %v11390_v52 = vadd.f32 %v11199_v9, %v11197_v21  ;;  %v2216_v58 = vadd.f32 %v11271_v45, %v1921_v53  ;;  %v11407_v9 = vadd.f32 %v11238_v11, %v11236_v34 }
 0x1d7   : > { %v2781_v46 = vadd.f32 %v9694_v16, %v2487_v13  ;;  %v14117_v13 = vld [vmem:[#allocation51_spill] sm:$0xff]  ;;  %v14119_v16 = vld [vmem:[#allocation53_spill] sm:$0xff]  ;;  %v11386_v39 = vadd.f32 %v14120_v5, %v2208_v31  ;;  %v11400_v31 = vadd.f32 %v11213_v29, %v11211_v6  ;;  %v2220_v21 = vadd.f32 %v2179_v59, %v1925_v50  ;;  %v14122_v29 = vld [vmem:[#allocation16_spill] sm:$0xff] }
 0x1d8   : > { %v2652_v25 = vpop.f32.mrf.mxu0  ;;  %v11378_v57 = vadd.f32 %v14117_v13, %v11183_v38  ;;  %v11383_v35 = vadd.f32 %v14119_v16, %v14118_v3  ;;  %v11395_v38 = vadd.f32 %v11206_v4, %v11204_v63  ;;  %v2473_v63 = vpop.f32.mrf.mxu1  ;;  %v11412_v23 = vadd.f32 %v11250_v17, %v11248_v56  ;;  %v14121_v6 = vld [vmem:[#allocation3_spill] sm:$0xff]  ;;  %v14123_v10 = vld [vmem:[#allocation18_spill] sm:$0xff] }
 0x1d9   : > { %v2820_v36 = vadd.f32 %v11345_v33, %v2781_v46  ;;  %v2779_v30 = vadd.f32 %v2652_v25, %v2485_v37  ;;  %v11403_v46 = vadd.f32 %v11227_v0, %v2212_v44  ;;  %v11416_v0 = vadd.f32 %v14122_v29, %v14121_v6  ;;  %v3436_v29 = vld [vmem:[#allocation2 + $0x20] sm:$0x1] }
 0x1da   : > { %v9695_v51 = vpop.f32.mrf.mxu0  ;;  %v11419_v44 = vadd.f32 %v14123_v10, %v2216_v58  ;;  %v11423_v34 = vadd.f32 %v11302_v55, %v11290_v48  ;;  %v11426_v50 = vadd.f32 %v2470_v14, %v11300_v2  ;;  %v11429_v56 = vadd.f32 %v9689_v49, %v11311_v61  ;;  %v3432_v14 = vld [vmem:[#allocation2 + $0x18] sm:$0xf] }
 0x1db   : > { %v2852_v1 = vmax.f32 %v2820_v36, 0.0  ;;  %v2818_v37 = vadd.f32 %v11345_v33, %v2779_v30  ;;  %v2782_v18 = vadd.f32 %v9695_v51, %v2488_v43  ;;  %v11431_v17 = vadd.f32 %v2473_v63, %v2220_v21 }
 0x1dc   : > { %v2655_v45 = vpop.f32.mrf.mxu0 }
 0x1dd   : > { %v9082_v4 = vpack.c.bf16 %v2852_v1, %v2852_v1  ;;  %v2850_v53 = vmax.f32 %v2818_v37, 0.0  ;;  %v2821_v32 = vadd.f32 %v11345_v33, %v2782_v18  ;;  %v2780_v43 = vadd.f32 %v2655_v45, %v2486_v54  ;;  %v3425_v37 = vld [vmem:[#allocation2 + $0xc] sm:$0xf] }
 0x1de   : > { %v9698_v11 = vpop.f32.mrf.mxu0 }
 0x1df   : > { %v3120_v54 = vshrl.u32 %v9082_v4, 16  ;;  %v9080_v59 = vpack.c.bf16 %v2850_v53, %v2850_v53  ;;  %v2853_v25 = vmax.f32 %v2821_v32, 0.0  ;;  %v2819_v19 = vadd.f32 %v11345_v33, %v2780_v43 }
 0x1e0   : > { %v2785_v15 = vadd.f32 %v9698_v11, %v2491_v62  ;;  %v2668_v13 = vpop.f32.mrf.mxu0  ;;  %v3123_v30 = vshll.u32 %v9082_v4, 16 }
 0x1e1   : > { %v3122_v36 = vrot.slane %v3120_v54, 7  ;;  %v3103_v48 = vshrl.u32 %v9080_v59, 16  ;;  %v9083_v55 = vpack.c.bf16 %v2853_v25, %v2853_v25  ;;  %v3106_v3 = vshll.u32 %v9080_v59, 16 }
 0x1e2   : > { %v2851_v61 = vmax.f32 %v2819_v19, 0.0  ;;  %v2824_v49 = vadd.f32 %v11345_v33, %v2785_v15  ;;  %v2783_v16 = vadd.f32 %v2668_v13, %v11324_v40  ;;  %v9699_v5 = vpop.f32.mrf.mxu0 }
 0x1e3   : > { %v3125_v62 = vor.u32 %v3123_v30, %v3122_v36  ;;  %v3126_v58 = vrot.slane %v3122_v36, 4  ;;  %v3105_v51 = vrot.slane %v3103_v48, 7  ;;  %v3128_v1 = vshrl.u32 %v9083_v55, 16 }
 0x1e4   : > { %v3131_v18 = vshll.u32 %v9083_v55, 16  ;;  %v9081_v21 = vpack.c.bf16 %v2851_v61, %v2851_v61  ;;  %v2856_v45 = vmax.f32 %v2824_v49, 0.0  ;;  %v2822_v63 = vadd.f32 %v11345_v33, %v2783_v16  ;;  %v2671_v4 = vpop.f32.mrf.mxu0 }
 0x1e5   : > { %v3433_v53 = vsel %vm11436_vm12, %v3125_v62, %v3432_v14  ;;  %v3108_v32 = vor.u32 %v3106_v3, %v3105_v51  ;;  %v3109_v43 = vrot.slane %v3105_v51, 4  ;;  %v3130_v6 = vrot.slane %v3128_v1, 7  ;;  %v3429_v62 = vld [vmem:[#allocation2 + $0x14] sm:$0x1] }
 0x1e6   : > { %3434 = vst [vmem:[#allocation2 + $0x18] sm:$0xf] %v3433_v53  ;;  %v3111_v10 = vshrl.u32 %v9081_v21, 16  ;;  %v3114_v11 = vshll.u32 %v9081_v21, 16  ;;  %v9086_v54 = vpack.c.bf16 %v2856_v45, %v2856_v45  ;;  %v2854_v59 = vmax.f32 %v2822_v63, 0.0  ;;  %v9702_v25 = vpop.f32.mrf.mxu0 }
 0x1e7   : > { %v3426_v19 = vsel %vm11436_vm12, %v3108_v32, %v3425_v37  ;;  %v3133_v15 = vor.u32 %v3131_v18, %v3130_v6  ;;  %v3135_v13 = vrot.slane %v3130_v6, 4  ;;  %v2786_v36 = vadd.f32 %v9699_v5, %v11328_v12  ;;  %v3446_v45 = vld [vmem:[#allocation2 + $0x30] sm:$0xf] }
 0x1e8   : > { %3427 = vst [vmem:[#allocation2 + $0xc] sm:$0xf] %v3426_v19  ;;  %v3113_v30 = vrot.slane %v3111_v10, 7  ;;  %v3154_v48 = vshrl.u32 %v9086_v54, 16  ;;  %v3157_v55 = vshll.u32 %v9086_v54, 16  ;;  %v9084_v14 = vpack.c.bf16 %v2854_v59, %v2854_v59  ;;  %v2684_v3 = vpop.f32.mrf.mxu0 }
 0x1e9   : > { %v3134_v61 = vsel %vm11447_vm13, %v3126_v58, %v3133_v15  ;;  %v3437_v16 = vsel %vm10911_vm5, %v3135_v13, %v3436_v29  ;;  %v2825_v51 = vadd.f32 %v11345_v33, %v2786_v36  ;;  %v2784_v1 = vadd.f32 %v2671_v4, %v11331_v20 }
 0x1ea   : > { %3435 = vst.msk [vmem:[#allocation2 + $0x1c] sm:$0xf] %vm2882_vm7, %v3134_v61  ;;  %3438 = vst [vmem:[#allocation2 + $0x20] sm:$0x1] %v3437_v16  ;;  %v3116_v12 = vor.u32 %v3114_v11, %v3113_v30  ;;  %v3118_v5 = vrot.slane %v3113_v30, 4  ;;  %v3156_v37 = vrot.slane %v3154_v48, 7  ;;  %v9703_v21 = vpop.f32.mrf.mxu0  ;;  %v2789_v32 = vadd.f32 %v9702_v25, %v11335_v42 }
 0x1eb   : > { %v3137_v18 = vshrl.u32 %v9084_v14, 16  ;;  %v3140_v63 = vshll.u32 %v9084_v14, 16  ;;  %v2857_v53 = vmax.f32 %v2825_v51, 0.0  ;;  %v2823_v58 = vadd.f32 %v11345_v33, %v2784_v1  ;;  %v3439_v25 = vld [vmem:[#allocation2 + $0x24] sm:$0xf] }
 0x1ec   : > { %v3117_v6 = vsel %vm11447_vm13, %v3109_v43, %v3116_v12  ;;  %v3430_v20 = vsel %vm10911_vm5, %v3118_v5, %v3429_v62  ;;  %v3159_v4 = vor.u32 %v3157_v55, %v3156_v37  ;;  %v3160_v29 = vrot.slane %v3156_v37, 4  ;;  %v2687_v10 = vpop.f32.mrf.mxu0 }
 0x1ed   : > { %3428 = vst.msk [vmem:[#allocation2 + $0x10] sm:$0xf] %vm2882_vm7, %v3117_v6  ;;  %3431 = vst [vmem:[#allocation2 + $0x14] sm:$0x1] %v3430_v20  ;;  %v3139_v11 = vrot.slane %v3137_v18, 7  ;;  %v9087_v54 = vpack.c.bf16 %v2857_v53, %v2857_v53  ;;  %v2855_v59 = vmax.f32 %v2823_v58, 0.0  ;;  %v2828_v19 = vadd.f32 %v11345_v33, %v2789_v32 }
 0x1ee   : > { %v3447_v42 = vsel %vm11436_vm12, %v3159_v4, %v3446_v45  ;;  %v2787_v43 = vadd.f32 %v2684_v3, %v11339_v26  ;;  %v2790_v15 = vadd.f32 %v9703_v21, %v11351_v47  ;;  %v2788_v13 = vadd.f32 %v2687_v10, %v11354_v60  ;;  %v9706_v36 = vpop.f32.mrf.mxu0  ;;  %v3450_v47 = vld [vmem:[#allocation2 + $0x38] sm:$0x1] }
 0x1ef   : > { %3448 = vst [vmem:[#allocation2 + $0x30] sm:$0xf] %v3447_v42  ;;  %v3142_v30 = vor.u32 %v3140_v63, %v3139_v11  ;;  %v3143_v48 = vrot.slane %v3139_v11, 4  ;;  %v3162_v55 = vshrl.u32 %v9087_v54, 16  ;;  %v3165_v14 = vshll.u32 %v9087_v54, 16 }
 0x1f0   : > { %v9085_v61 = vpack.c.bf16 %v2855_v59, %v2855_v59  ;;  %v2860_v16 = vmax.f32 %v2828_v19, 0.0  ;;  %v2826_v62 = vadd.f32 %v11345_v33, %v2787_v43  ;;  %v2829_v51 = vadd.f32 %v11345_v33, %v2790_v15  ;;  %v2700_v1 = vpop.f32.mrf.mxu0  ;;  %v3443_v54 = vld [vmem:[#allocation2 + $0x2c] sm:$0x1]  ;;  %v3460_v15 = vld [vmem:[#allocation2 + $0x48] sm:$0xf] }
 0x1f1   : > { %v3440_v26 = vsel %vm11436_vm12, %v3142_v30, %v3439_v25  ;;  %v3164_v3 = vrot.slane %v3162_v55, 7  ;;  %v2827_v60 = vadd.f32 %v11345_v33, %v2788_v13  ;;  %v2793_v12 = vadd.f32 %v9706_v36, %v11358_v24 }
 0x1f2   : > { %3441 = vst [vmem:[#allocation2 + $0x24] sm:$0xf] %v3440_v26  ;;  %v3145_v5 = vshrl.u32 %v9085_v61, 16  ;;  %v3148_v37 = vshll.u32 %v9085_v61, 16  ;;  %v9090_v18 = vpack.c.bf16 %v2860_v16, %v2860_v16  ;;  %v2858_v21 = vmax.f32 %v2826_v62, 0.0  ;;  %v9707_v45 = vpop.f32.mrf.mxu0 }
 0x1f3   : > { %v3167_v63 = vor.u32 %v3165_v14, %v3164_v3  ;;  %v3169_v53 = vrot.slane %v3164_v3, 4  ;;  %v2861_v58 = vmax.f32 %v2829_v51, 0.0  ;;  %v2859_v32 = vmax.f32 %v2827_v60, 0.0  ;;  %v3453_v26 = vld [vmem:[#allocation2 + $0x3c] sm:$0xf] }
 0x1f4   : > { %v3147_v6 = vrot.slane %v3145_v5, 7  ;;  %v3188_v20 = vshrl.u32 %v9090_v18, 16  ;;  %v3191_v4 = vshll.u32 %v9090_v18, 16  ;;  %v9088_v10 = vpack.c.bf16 %v2858_v21, %v2858_v21  ;;  %v2703_v36 = vpop.f32.mrf.mxu0  ;;  %v8814_v3 = vld [vmem:[%s13988_s3 + $0x6] sm:$0x3] }
 0x1f5   : > { %v3168_v11 = vsel %vm11447_vm13, %v3160_v29, %v3167_v63  ;;  %v3451_v24 = vsel %vm10911_vm5, %v3169_v53, %v3450_v47  ;;  %v9091_v59 = vpack.c.bf16 %v2861_v58, %v2861_v58  ;;  %v9089_v19 = vpack.c.bf16 %v2859_v32, %v2859_v32  ;;  %v3464_v5 = vld [vmem:[#allocation2 + $0x50] sm:$0x1]  ;;  %10042 = vmatprep.subr.msk.bf16.mxu0 %vm374_vm0, %v8814_v3 }
 0x1f6   : > { %3449 = vst.msk [vmem:[#allocation2 + $0x34] sm:$0xf] %vm2882_vm7, %v3168_v11  ;;  %3452 = vst [vmem:[#allocation2 + $0x38] sm:$0x1] %v3451_v24  ;;  %v3150_v42 = vor.u32 %v3148_v37, %v3147_v6  ;;  %v3152_v25 = vrot.slane %v3147_v6, 4  ;;  %v3190_v43 = vrot.slane %v3188_v20, 7  ;;  %v2832_v21 = vadd.f32 %v11345_v33, %v2793_v12  ;;  %v9710_v58 = vpop.f32.mrf.mxu0 }
 0x1f7   : > { %v3171_v13 = vshrl.u32 %v9088_v10, 16  ;;  %v3174_v30 = vshll.u32 %v9088_v10, 16  ;;  %v3196_v55 = vshrl.u32 %v9091_v59, 16  ;;  %v3199_v14 = vshll.u32 %v9091_v59, 16  ;;  %v3457_v10 = vld [vmem:[#allocation2 + $0x44] sm:$0x1] }
 0x1f8   : > { %v3179_v61 = vshrl.u32 %v9089_v19, 16  ;;  %v3151_v29 = vsel %vm11447_vm13, %v3143_v48, %v3150_v42  ;;  %v3444_v16 = vsel %vm10911_vm5, %v3152_v25, %v3443_v54  ;;  %v3193_v62 = vor.u32 %v3191_v4, %v3190_v43 }
 0x1f9   : > { %v3194_v51 = vrot.slane %v3190_v43, 4  ;;  %3442 = vst.msk [vmem:[#allocation2 + $0x28] sm:$0xf] %vm2882_vm7, %v3151_v29  ;;  %3445 = vst [vmem:[#allocation2 + $0x2c] sm:$0x1] %v3444_v16  ;;  %v3173_v47 = vrot.slane %v3171_v13, 7  ;;  %v2791_v63 = vadd.f32 %v2700_v1, %v11362_v41  ;;  %v2794_v53 = vadd.f32 %v9707_v45, %v11366_v7 }
 0x1fa   : > { %v3198_v60 = vrot.slane %v3196_v55, 7  ;;  %v3181_v37 = vrot.slane %v3179_v61, 7  ;;  %v3182_v18 = vshll.u32 %v9089_v19, 16  ;;  %v3461_v48 = vsel %vm11436_vm12, %v3193_v62, %v3460_v15  ;;  %v3539_v19 = vld [vmem:[#allocation2 + $0xc] sm:$0xf]  ;;  %v11512_v15 = vpop.f32.mrf.mxu0 }
 0x1fb   : > { %3462 = vst [vmem:[#allocation2 + $0x48] sm:$0xf] %v3461_v48  ;;  %v3176_v32 = vor.u32 %v3174_v30, %v3173_v47  ;;  %v3177_v6 = vrot.slane %v3173_v47, 4  ;;  %v2864_v54 = vmax.f32 %v2832_v21, 0.0  ;;  %v2830_v59 = vadd.f32 %v11345_v33, %v2791_v63 }
 0x1fc   : > { %v3201_v20 = vor.u32 %v3199_v14, %v3198_v60  ;;  %v3203_v4 = vrot.slane %v3198_v60, 4  ;;  %v3184_v11 = vor.u32 %v3182_v18, %v3181_v37  ;;  %v3186_v24 = vrot.slane %v3181_v37, 4  ;;  %v11519_v60 = vld [vmem:[#allocation2 + $0x10] sm:$0xf]  ;;  %v9711_v48 = vpop.f32.mrf.mxu0 }
 0x1fd   : > { %v3454_v12 = vsel %vm11436_vm12, %v3176_v32, %v3453_v26  ;;  %v2833_v1 = vadd.f32 %v11345_v33, %v2794_v53  ;;  %v9094_v25 = vpack.c.bf16 %v2864_v54, %v2864_v54  ;;  %v2862_v43 = vmax.f32 %v2830_v59, 0.0 }
 0x1fe   : > { %v3202_v41 = vsel %vm11447_vm13, %v3194_v51, %v3201_v20  ;;  %v3465_v7 = vsel %vm10911_vm5, %v3203_v4, %v3464_v5  ;;  %3455 = vst [vmem:[#allocation2 + $0x3c] sm:$0xf] %v3454_v12  ;;  %v3185_v45 = vsel %vm11447_vm13, %v3177_v6, %v3184_v11  ;;  %v3458_v42 = vsel %vm10911_vm5, %v3186_v24, %v3457_v10  ;;  %v3474_v51 = vld [vmem:[#allocation2 + $0x60] sm:$0xf]  ;;  %v3467_v10 = vld [vmem:[#allocation2 + $0x54] sm:$0xf] }
 0x1ff   : > { %3463 = vst.msk [vmem:[#allocation2 + $0x4c] sm:$0xf] %vm2882_vm7, %v3202_v41  ;;  %3466 = vst [vmem:[#allocation2 + $0x50] sm:$0x1] %v3465_v7  ;;  %v2865_v13 = vmax.f32 %v2833_v1, 0.0  ;;  %v2792_v30 = vadd.f32 %v2703_v36, %v11369_v28  ;;  %v2797_v55 = vadd.f32 %v9710_v58, %v11374_v22  ;;  %v3614_v14 = vshrl.u32 %v3539_v19, 16 }
 0x200   : > { %3456 = vst.msk [vmem:[#allocation2 + $0x40] sm:$0xf] %vm2882_vm7, %v3185_v45  ;;  %3459 = vst [vmem:[#allocation2 + $0x44] sm:$0x1] %v3458_v42  ;;  %v3222_v61 = vshrl.u32 %v9094_v25, 16  ;;  %v3225_v29 = vshll.u32 %v9094_v25, 16  ;;  %v9092_v16 = vpack.c.bf16 %v2862_v43, %v2862_v43  ;;  %v8734_v59 = vcombine.low %v3539_v19, %v11519_v60  ;;  %v2719_v42 = vpop.f32.mrf.mxu0 }
 0x201   : > { %v3617_v62 = vshll.u32 %v3539_v19, 16  ;;  %v9095_v26 = vpack.c.bf16 %v2865_v13, %v2865_v13  ;;  %v2831_v3 = vadd.f32 %v11345_v33, %v2792_v30  ;;  %v2836_v47 = vadd.f32 %v11345_v33, %v2797_v55  ;;  %v3541_v22 = vld [vmem:[#allocation2 + $0x18] sm:$0xf]  ;;  %v3478_v1 = vld [vmem:[#allocation2 + $0x68] sm:$0x1] }
 0x202   : > { %v11521_v5 = vrot.slane %v3614_v14, 4  ;;  %v3224_v37 = vrot.slane %v3222_v61, 7  ;;  %v3205_v18 = vshrl.u32 %v9092_v16, 16  ;;  %v3208_v28 = vshll.u32 %v9092_v16, 16  ;;  %9761 = vmatmul.mubr.msk.bf16.vlgmr.msra.gmra.mxu0 %vm325_vm1, %v8734_v59  ;;  %v11530_v55 = vld [vmem:[#allocation2 + $0x1c] sm:$0xf] }
 0x203   : > { %v11523_v36 = vrot.slane %v3617_v62, 5  ;;  %v3230_v21 = vshrl.u32 %v9095_v26, 16  ;;  %v3233_v63 = vshll.u32 %v9095_v26, 16  ;;  %v2863_v53 = vmax.f32 %v2831_v3, 0.0  ;;  %v3471_v14 = vld [vmem:[#allocation2 + $0x5c] sm:$0x1] }
 0x204   : > { %v2868_v58 = vmax.f32 %v2836_v47, 0.0  ;;  %v3227_v32 = vor.u32 %v3225_v29, %v3224_v37  ;;  %v3228_v6 = vrot.slane %v3224_v37, 4  ;;  %v3207_v20 = vrot.slane %v3205_v18, 7  ;;  %v3488_v37 = vld [vmem:[#allocation2 + $0x78] sm:$0xf] }
 0x205   : > { %v3627_v4 = vshrl.u32 %v11519_v60, 16  ;;  %v3232_v11 = vrot.slane %v3230_v21, 7  ;;  %v9093_v24 = vpack.c.bf16 %v2863_v53, %v2863_v53  ;;  %v3638_v45 = vshrl.u32 %v3541_v22, 16  ;;  %v3543_v53 = vld [vmem:[#allocation2 + $0x24] sm:$0xf] }
 0x206   : > { %v9098_v54 = vpack.c.bf16 %v2868_v58, %v2868_v58  ;;  %v3475_v12 = vsel %vm11436_vm12, %v3227_v32, %v3474_v51  ;;  %v3210_v41 = vor.u32 %v3208_v28, %v3207_v20  ;;  %v3211_v7 = vrot.slane %v3207_v20, 4 }
 0x207   : > { %3476 = vst [vmem:[#allocation2 + $0x60] sm:$0xf] %v3475_v12  ;;  %v3235_v25 = vor.u32 %v3233_v63, %v3232_v11  ;;  %v3237_v43 = vrot.slane %v3232_v11, 4  ;;  %v3213_v13 = vshrl.u32 %v9093_v24, 16  ;;  %v3216_v30 = vshll.u32 %v9093_v24, 16  ;;  %v9714_v63 = vpop.f32.mrf.mxu0 }
 0x208   : > { %v3468_v19 = vsel %vm11436_vm12, %v3210_v41, %v3467_v10  ;;  %v3256_v61 = vshrl.u32 %v9098_v54, 16  ;;  %v3259_v29 = vshll.u32 %v9098_v54, 16  ;;  %v11534_v16 = vrot.slane %v3638_v45, 4  ;;  %v11550_v10 = vld [vmem:[#allocation2 + $0x28] sm:$0xf] }
 0x209   : > { %3469 = vst [vmem:[#allocation2 + $0x54] sm:$0xf] %v3468_v19  ;;  %v3236_v62 = vsel %vm11447_vm13, %v3228_v6, %v3235_v25  ;;  %v3479_v51 = vsel %vm10911_vm5, %v3237_v43, %v3478_v1  ;;  %v3215_v26 = vrot.slane %v3213_v13, 7  ;;  %v3641_v3 = vshll.u32 %v3541_v22, 16 }
 0x20a   : > { %3477 = vst.msk [vmem:[#allocation2 + $0x64] sm:$0xf] %vm2882_vm7, %v3236_v62  ;;  %3480 = vst [vmem:[#allocation2 + $0x68] sm:$0x1] %v3479_v51  ;;  %v11541_v47 = vrot.slane %v3256_v61, 7  ;;  %v3651_v18 = vshrl.u32 %v11530_v55, 16  ;;  %v8735_v28 = vcombine.low %v3541_v22, %v11530_v55  ;;  %v2795_v21 = vadd.f32 %v11512_v15, %v11378_v57 }
 0x20b   : > { %v3218_v58 = vor.u32 %v3216_v30, %v3215_v26  ;;  %v3220_v32 = vrot.slane %v3215_v26, 4  ;;  %v11547_v6 = vrot.slane %v3641_v3, 5  ;;  %v2798_v20 = vadd.f32 %v9711_v48, %v11383_v35  ;;  %v11572_v30 = vpop.f32.mrf.mxu0 }
 0x20c   : > { %v3261_v11 = vor.u32 %v3259_v29, %v11541_v47  ;;  %v3262_v24 = vrot.slane %v11541_v47, 4  ;;  %9764 = vmatprep.mubr.msk.bf16.mxu0 %vm325_vm1, %v8735_v28  ;;  %v2834_v22 = vadd.f32 %v11345_v33, %v2795_v21  ;;  %v2796_v57 = vadd.f32 %v2719_v42, %v11386_v39 }
 0x20d   : > { %v3219_v15 = vsel %vm11447_vm13, %v3211_v7, %v3218_v58  ;;  %v3472_v54 = vsel %vm10911_vm5, %v3220_v32, %v3471_v14  ;;  %v2837_v35 = vadd.f32 %v11345_v33, %v2798_v20  ;;  %v2801_v48 = vadd.f32 %v9714_v63, %v11390_v52  ;;  %v3492_v32 = vld [vmem:[#allocation2 + $0x80] sm:$0x1] }
 0x20e   : > { %3470 = vst.msk [vmem:[#allocation2 + $0x58] sm:$0xf] %vm2882_vm7, %v3219_v15  ;;  %3473 = vst [vmem:[#allocation2 + $0x5c] sm:$0x1] %v3472_v54  ;;  %v3489_v59 = vsel %vm11436_vm12, %v3261_v11, %v3488_v37  ;;  %v2866_v12 = vmax.f32 %v2834_v22, 0.0  ;;  %v2835_v41 = vadd.f32 %v11345_v33, %v2796_v57  ;;  %v3662_v39 = vshrl.u32 %v3543_v53, 16  ;;  %v9715_v57 = vpop.f32.mrf.mxu0 }
 0x20f   : > { %3490 = vst [vmem:[#allocation2 + $0x78] sm:$0xf] %v3489_v59  ;;  %v2869_v1 = vmax.f32 %v2837_v35, 0.0  ;;  %v2840_v7 = vadd.f32 %v11345_v33, %v2801_v48  ;;  %v3665_v45 = vshll.u32 %v3543_v53, 16  ;;  %v3675_v42 = vshrl.u32 %v11550_v10, 16 }
 0x210   : > { %v9096_v25 = vpack.c.bf16 %v2866_v12, %v2866_v12  ;;  %v2867_v43 = vmax.f32 %v2835_v41, 0.0  ;;  %v11569_v52 = vrot.slane %v3662_v39, 4  ;;  %v8736_v13 = vcombine.low %v3543_v53, %v11550_v10  ;;  %v3481_v37 = vld [vmem:[#allocation2 + $0x6c] sm:$0xf]  ;;  %v3571_v54 = vld [vmem:[#allocation2 + $0x14] sm:$0x1] }
 0x211   : > { %v9099_v19 = vpack.c.bf16 %v2869_v1, %v2869_v1  ;;  %v2872_v14 = vmax.f32 %v2840_v7, 0.0  ;;  %v11574_v61 = vrot.slane %v3665_v45, 5  ;;  %v3620_v29 = vor.u32 %v11523_v36, %v11521_v5  ;;  %v3485_v41 = vld [vmem:[#allocation2 + $0x74] sm:$0x1]  ;;  %v3502_v39 = vld [vmem:[#allocation2 + $0x90] sm:$0xf] }
 0x212   : > { %v3239_v62 = vshrl.u32 %v9096_v25, 16  ;;  %v3242_v51 = vshll.u32 %v9096_v25, 16  ;;  %v9097_v26 = vpack.c.bf16 %v2867_v43, %v2867_v43  ;;  %9765 = vmatmul.mubr.msk.bf16.gmra.mxu0 %vm325_vm1, %v8736_v13  ;;  %v3623_v3 = vshll.u32 %v11519_v60, 16 }
 0x213   : > { %v3264_v28 = vshrl.u32 %v9099_v19, 16  ;;  %v3267_v21 = vshll.u32 %v9099_v19, 16  ;;  %v9102_v63 = vpack.c.bf16 %v2872_v14, %v2872_v14  ;;  %v3621_v53 = vrot.slane %v3620_v29, 4  ;;  %v3545_v19 = vld [vmem:[#allocation2 + $0x30] sm:$0xf] }
 0x214   : > { %v3241_v58 = vrot.slane %v3239_v62, 7  ;;  %v3247_v20 = vshrl.u32 %v9097_v26, 16  ;;  %v3250_v11 = vshll.u32 %v9097_v26, 16  ;;  %v3625_v22 = vrot.slane %v3623_v3, 5  ;;  %v11588_v62 = vld [vmem:[#allocation2 + $0x34] sm:$0xf] }
 0x215   : > { %v3266_v15 = vrot.slane %v3264_v28, 7  ;;  %v3290_v5 = vshrl.u32 %v9102_v63, 16  ;;  %v3293_v36 = vshll.u32 %v9102_v63, 16  ;;  %v3629_v35 = vrot.slane %v3627_v4, 4 }
 0x216   : > { %v3244_v48 = vor.u32 %v3242_v51, %v3241_v58  ;;  %v3245_v59 = vrot.slane %v3241_v58, 4  ;;  %v3249_v12 = vrot.slane %v3247_v20, 7  ;;  %v3626_v7 = vsel %vm11074_vm10, %v3621_v53, %v3625_v22  ;;  %v2735_v51 = vpop.f32.mrf.mxu0  ;;  %v3572_v58 = vld [vmem:[#allocation2 + $0x20] sm:$0x1] }
 0x217   : > { %v3269_v45 = vor.u32 %v3267_v21, %v3266_v15  ;;  %v3271_v25 = vrot.slane %v3266_v15, 4  ;;  %v11584_v43 = vrot.slane %v3290_v5, 7  ;;  %v3630_v13 = vor.u32 %v3629_v35, %v3625_v22 }
 0x218   : > { %v3482_v14 = vsel %vm11436_vm12, %v3244_v48, %v3481_v37  ;;  %v3252_v29 = vor.u32 %v3250_v11, %v3249_v12  ;;  %v3254_v60 = vrot.slane %v3249_v12, 4  ;;  %v3633_v4 = vshll.u32 %v3571_v54, 16  ;;  %v9718_v54 = vpop.f32.mrf.mxu0 }
 0x219   : > { %3483 = vst [vmem:[#allocation2 + $0x6c] sm:$0xf] %v3482_v14  ;;  %v3270_v26 = vsel %vm11447_vm13, %v3262_v24, %v3269_v45  ;;  %v3493_v3 = vsel %vm10911_vm5, %v3271_v25, %v3492_v32  ;;  %v3295_v28 = vor.u32 %v3293_v36, %v11584_v43  ;;  %v3296_v21 = vrot.slane %v11584_v43, 4 }
 0x21a   : > { %3491 = vst.msk [vmem:[#allocation2 + $0x7c] sm:$0xf] %vm2882_vm7, %v3270_v26  ;;  %3494 = vst [vmem:[#allocation2 + $0x80] sm:$0x1] %v3493_v3  ;;  %v3253_v37 = vsel %vm11447_vm13, %v3245_v59, %v3252_v29  ;;  %v3486_v63 = vsel %vm10911_vm5, %v3254_v60, %v3485_v41  ;;  %v3631_v47 = vrot.slane %v3630_v13, 4  ;;  %v3635_v53 = vrot.slane %v3633_v4, 5 }
 0x21b   : > { %3484 = vst.msk [vmem:[#allocation2 + $0x70] sm:$0xf] %vm2882_vm7, %v3253_v37  ;;  %3487 = vst [vmem:[#allocation2 + $0x74] sm:$0x1] %v3486_v63  ;;  %v3503_v24 = vsel %vm11436_vm12, %v3295_v28, %v3502_v39  ;;  %v3686_v32 = vshrl.u32 %v3545_v19, 16  ;;  %v3689_v20 = vshll.u32 %v3545_v19, 16  ;;  %v8737_v15 = vcombine.low %v3545_v19, %v11588_v62 }
 0x21c   : > { %v3699_v11 = vshrl.u32 %v11588_v62, 16  ;;  %3504 = vst [vmem:[#allocation2 + $0x90] sm:$0xf] %v3503_v24  ;;  %v3636_v22 = vsel %vm11074_vm10, %v3631_v47, %v3635_v53  ;;  %v2799_v5 = vadd.f32 %v11572_v30, %v11395_v38  ;;  %v3644_v36 = vor.u32 %v11547_v6, %v11534_v16  ;;  %v3547_v41 = vld [vmem:[#allocation2 + $0x3c] sm:$0xf]  ;;  %v2748_v24 = vpop.f32.mrf.mxu0 }
 0x21d   : > { %v8702_v35 = vcombine.low %v3626_v7, %v3636_v22  ;;  %v11614_v48 = vrot.slane %v3686_v32, 4  ;;  %v11616_v59 = vrot.slane %v3689_v20, 5  ;;  %v3647_v12 = vshll.u32 %v11530_v55, 16  ;;  %9768 = vmatprep.mubr.msk.bf16.mxu0 %vm325_vm1, %v8737_v15  ;;  %v11626_v16 = vld [vmem:[%s13988_s3 + $0x8] sm:$0x3] }
 0x21e   : > { %v2838_v39 = vadd.f32 %v11345_v33, %v2799_v5  ;;  %v3645_v45 = vrot.slane %v3644_v36, 4  ;;  %v3653_v38 = vrot.slane %v3651_v18, 4  ;;  %v3657_v30 = vshll.u32 %v3572_v58, 16  ;;  %v11633_v18 = vld [vmem:[#allocation2 + $0x40] sm:$0xf] }
 0x21f   : > { %9727 = vmatmul.mubr.msk.bf16.vlgmr.msra.gmra.mxu1 %vm325_vm1, %v8702_v35  ;;  %v3649_v6 = vrot.slane %v3647_v12, 5  ;;  %v2802_v7 = vadd.f32 %v9715_v57, %v11400_v31  ;;  %v2800_v25 = vadd.f32 %v2735_v51, %v11403_v46  ;;  %v2805_v13 = vadd.f32 %v9718_v54, %v11407_v9  ;;  %v3495_v5 = vld [vmem:[#allocation2 + $0x84] sm:$0xf] }
 0x220   : > { %9793 = vmatpush3.bf16.msra.mxu1 %v11320_v27  ;;  %v2870_v19 = vmax.f32 %v2838_v39, 0.0  ;;  %v3659_v55 = vrot.slane %v3657_v30, 5  ;;  %v3710_v14 = vshrl.u32 %v3547_v41, 16  ;;  %v3713_v29 = vshll.u32 %v3547_v41, 16  ;;  %v7630_v1 = vld [vmem:[#allocation2 + $0x6c] sm:$0xe] }
 0x221   : > { %v3650_v60 = vsel %vm11074_vm10, %v3645_v45, %v3649_v6  ;;  %v3654_v4 = vor.u32 %v3653_v38, %v3649_v6  ;;  %v2841_v26 = vadd.f32 %v11345_v33, %v2802_v7  ;;  %v2839_v31 = vadd.f32 %v11345_v33, %v2800_v25  ;;  %10043 = vmatprep.subr.msk.bf16.mxu1 %vm374_vm0, %v11626_v16  ;;  %v11654_v38 = vld [vmem:[#allocation2 + $0x2c] sm:$0x1]  ;;  %v3506_v7 = vld [vmem:[#allocation2 + $0x98] sm:$0x1] }
 0x222   : > { %v9100_v46 = vpack.c.bf16 %v2870_v19, %v2870_v19  ;;  %v2844_v27 = vadd.f32 %v11345_v33, %v2805_v13  ;;  %v11642_v9 = vrot.slane %v3710_v14, 4  ;;  %v11644_v57 = vrot.slane %v3713_v29, 5  ;;  %v9719_v13 = vpop.f32.mrf.mxu0  ;;  %v3516_v14 = vld [vmem:[#allocation2 + $0xa8] sm:$0xf] }
 0x223   : > { %v3655_v51 = vrot.slane %v3654_v4, 4  ;;  %v2873_v3 = vmax.f32 %v2841_v26, 0.0  ;;  %v2871_v28 = vmax.f32 %v2839_v31, 0.0  ;;  %v3723_v37 = vshrl.u32 %v11633_v18, 16 }
 0x224   : > { %v3273_v63 = vshrl.u32 %v9100_v46, 16  ;;  %v3276_v47 = vshll.u32 %v9100_v46, 16  ;;  %v2876_v53 = vmax.f32 %v2844_v27, 0.0  ;;  %v8738_v58 = vcombine.low %v3547_v41, %v11633_v18  ;;  %v3549_v27 = vld [vmem:[#allocation2 + $0x48] sm:$0xf] }
 0x225   : > { %v3660_v32 = vsel %vm11074_vm10, %v3655_v51, %v3659_v55  ;;  %v9103_v20 = vpack.c.bf16 %v2873_v3, %v2873_v3  ;;  %v9101_v33 = vpack.c.bf16 %v2871_v28, %v2871_v28  ;;  %v3668_v22 = vor.u32 %v11574_v61, %v11569_v52  ;;  %v3499_v52 = vld [vmem:[#allocation2 + $0x8c] sm:$0x1] }
 0x226   : > { %v3275_v15 = vrot.slane %v3273_v63, 7  ;;  %v8703_v36 = vcombine.low %v3650_v60, %v3660_v32  ;;  %v9106_v54 = vpack.c.bf16 %v2876_v53, %v2876_v53  ;;  %9769 = vmatmul.mubr.msk.bf16.gmra.mxu0 %vm325_vm1, %v8738_v58  ;;  %v3671_v35 = vshll.u32 %v11550_v10, 16  ;;  %v2751_v10 = vpop.f32.mrf.mxu0 }
 0x227   : > { %v3298_v12 = vshrl.u32 %v9103_v20, 16  ;;  %v3301_v39 = vshll.u32 %v9103_v20, 16  ;;  %v3281_v41 = vshrl.u32 %v9101_v33, 16  ;;  %v3284_v45 = vshll.u32 %v9101_v33, 16  ;;  %v11668_v20 = vld [vmem:[#allocation2 + $0x4c] sm:$0xf] }
 0x228   : > { %v3278_v30 = vor.u32 %v3276_v47, %v3275_v15  ;;  %v3279_v6 = vrot.slane %v3275_v15, 4  ;;  %9730 = vmatprep.mubr.msk.bf16.mxu1 %vm325_vm1, %v8703_v36  ;;  %v3324_v61 = vshrl.u32 %v9106_v54, 16  ;;  %v3327_v25 = vshll.u32 %v9106_v54, 16 }
 0x229   : > { %v3300_v19 = vrot.slane %v3298_v12, 7  ;;  %v3283_v55 = vrot.slane %v3281_v41, 7  ;;  %v3669_v29 = vrot.slane %v3668_v22, 4  ;;  %v3673_v60 = vrot.slane %v3671_v35, 5  ;;  %v11687_v41 = vld [vmem:[#allocation2 + $0x38] sm:$0x1] }
 0x22a   : > { %v3496_v4 = vsel %vm11436_vm12, %v3278_v30, %v3495_v5  ;;  %v11659_v26 = vrot.slane %v3324_v61, 7  ;;  %v3677_v31 = vrot.slane %v3675_v42, 4  ;;  %v3681_v46 = vshll.u32 %v11654_v38, 16  ;;  %v3551_v61 = vld [vmem:[#allocation2 + $0x54] sm:$0xf] }
 0x22b   : > { %3497 = vst [vmem:[#allocation2 + $0x84] sm:$0xf] %v3496_v4  ;;  %v3303_v51 = vor.u32 %v3301_v39, %v3300_v19  ;;  %v3305_v3 = vrot.slane %v3300_v19, 4  ;;  %v3286_v28 = vor.u32 %v3284_v45, %v3283_v55  ;;  %v3288_v63 = vrot.slane %v3283_v55, 4 }
 0x22c   : > { %v3329_v47 = vor.u32 %v3327_v25, %v11659_v26  ;;  %v3330_v53 = vrot.slane %v11659_v26, 4  ;;  %v3674_v58 = vsel %vm11074_vm10, %v3669_v29, %v3673_v60  ;;  %v3678_v32 = vor.u32 %v3677_v31, %v3673_v60 }
 0x22d   : > { %v3304_v42 = vsel %vm11447_vm13, %v3296_v21, %v3303_v51  ;;  %v3507_v33 = vsel %vm10911_vm5, %v3305_v3, %v3506_v7  ;;  %v3287_v22 = vsel %vm11447_vm13, %v3279_v6, %v3286_v28  ;;  %v3500_v15 = vsel %vm10911_vm5, %v3288_v63, %v3499_v52  ;;  %v9722_v52 = vpop.f32.mrf.mxu0 }
 0x22e   : > { %3505 = vst.msk [vmem:[#allocation2 + $0x94] sm:$0xf] %vm2882_vm7, %v3304_v42  ;;  %3508 = vst [vmem:[#allocation2 + $0x98] sm:$0x1] %v3507_v33  ;;  %v3517_v43 = vsel %vm11436_vm12, %v3329_v47, %v3516_v14  ;;  %v3679_v5 = vrot.slane %v3678_v32, 4  ;;  %v3683_v21 = vrot.slane %v3681_v46, 5  ;;  %v8739_v12 = vcombine.low %v3549_v27, %v11668_v20 }
 0x22f   : > { %3498 = vst.msk [vmem:[#allocation2 + $0x88] sm:$0xf] %vm2882_vm7, %v3287_v22  ;;  %3501 = vst [vmem:[#allocation2 + $0x8c] sm:$0x1] %v3500_v15  ;;  %v3734_v36 = vshrl.u32 %v3549_v27, 16  ;;  %v3737_v54 = vshll.u32 %v3549_v27, 16  ;;  %v2803_v39 = vadd.f32 %v2748_v24, %v11412_v23  ;;  %v3692_v6 = vor.u32 %v11616_v59, %v11614_v48 }
 0x230   : > { %3518 = vst [vmem:[#allocation2 + $0xa8] sm:$0xf] %v3517_v43  ;;  %v3747_v35 = vshrl.u32 %v11668_v20, 16  ;;  %v3684_v45 = vsel %vm11074_vm10, %v3679_v5, %v3683_v21  ;;  %v3695_v7 = vshll.u32 %v11588_v62, 16  ;;  %9772 = vmatprep.mubr.msk.bf16.mxu0 %vm325_vm1, %v8739_v12  ;;  %v11702_v23 = vld [vmem:[%s13987_s2] ss:$0 sm:$0xff]  ;;  %v2806_v29 = vadd.f32 %v9719_v13, %v11416_v0 }
 0x231   : > { %v11691_v30 = vrot.slane %v3734_v36, 4  ;;  %v8704_v25 = vcombine.low %v3674_v58, %v3684_v45  ;;  %v11696_v19 = vrot.slane %v3737_v54, 5  ;;  %v2842_v24 = vadd.f32 %v11702_v23, %v2803_v39  ;;  %v11712_v46 = vld [vmem:[#allocation2 + $0x58] sm:$0xf]  ;;  %v3509_v39 = vld [vmem:[#allocation2 + $0x9c] sm:$0xf] }
 0x232   : > { %v3701_v55 = vrot.slane %v3699_v11, 4  ;;  %v3693_v48 = vrot.slane %v3692_v6, 4  ;;  %v3697_v59 = vrot.slane %v3695_v7, 5  ;;  %v3705_v14 = vshll.u32 %v11687_v41, 16 }
 0x233   : > { %9731 = vmatmul.mubr.msk.bf16.gmra.mxu1 %vm325_vm1, %v8704_v25  ;;  %v2874_v60 = vmax.f32 %v2842_v24, 0.0  ;;  %v2804_v4 = vadd.f32 %v2751_v10, %v11419_v44  ;;  %v2809_v31 = vadd.f32 %v9722_v52, %v11423_v34  ;;  %v3758_v27 = vshrl.u32 %v3551_v61, 16 }
 0x234   : > { %v3698_v62 = vsel %vm11074_vm10, %v3693_v48, %v3697_v59  ;;  %v3702_v11 = vor.u32 %v3701_v55, %v3697_v59  ;;  %v3707_v51 = vrot.slane %v3705_v14, 5  ;;  %v2845_v3 = vadd.f32 %v11702_v23, %v2806_v29  ;;  %v11732_v48 = vld [vmem:[#allocation2 + $0x44] sm:$0x1]  ;;  %v2764_v59 = vpop.f32.mrf.mxu0  ;;  %v3520_v29 = vld [vmem:[#allocation2 + $0xb0] sm:$0x1] }
 0x235   : > { %v9104_v28 = vpack.c.bf16 %v2874_v60, %v2874_v60  ;;  %v2843_v0 = vadd.f32 %v11702_v23, %v2804_v4  ;;  %v2848_v13 = vadd.f32 %v11702_v23, %v2809_v31  ;;  %v11719_v63 = vrot.slane %v3758_v27, 4 }
 0x236   : > { %v3703_v44 = vrot.slane %v3702_v11, 4  ;;  %v2877_v47 = vmax.f32 %v2845_v3, 0.0  ;;  %v3761_v34 = vshll.u32 %v3551_v61, 16  ;;  %v3771_v58 = vshrl.u32 %v11712_v46, 16 }
 0x237   : > { %v3307_v32 = vshrl.u32 %v9104_v28, 16  ;;  %v3310_v10 = vshll.u32 %v9104_v28, 16  ;;  %v2875_v42 = vmax.f32 %v2843_v0, 0.0  ;;  %v2880_v33 = vmax.f32 %v2848_v13, 0.0  ;;  %v3530_v0 = vld [vmem:[#allocation2 + $0xc0] sm:$0xf] }
 0x238   : > { %v3708_v22 = vsel %vm11074_vm10, %v3703_v44, %v3707_v51  ;;  %v9107_v15 = vpack.c.bf16 %v2877_v47, %v2877_v47  ;;  %v11724_v43 = vrot.slane %v3761_v34, 5  ;;  %v8740_v5 = vcombine.low %v3551_v61, %v11712_v46 }
 0x239   : > { %v3309_v21 = vrot.slane %v3307_v32, 7  ;;  %v8705_v36 = vcombine.low %v3698_v62, %v3708_v22  ;;  %v9105_v54 = vpack.c.bf16 %v2875_v42, %v2875_v42  ;;  %v9110_v12 = vpack.c.bf16 %v2880_v33, %v2880_v33  ;;  %v11743_v42 = vld [vmem:[#allocation2 + $0x64] sm:$0xf]  ;;  %v9723_v33 = vpop.f32.mrf.mxu0 }
 0x23a   : > { %v3332_v45 = vshrl.u32 %v9107_v15, 16  ;;  %v3335_v6 = vshll.u32 %v9107_v15, 16  ;;  %9773 = vmatmul.mubr.msk.bf16.gmra.mxu0 %vm325_vm1, %v8740_v5  ;;  %v3716_v7 = vor.u32 %v11644_v57, %v11642_v9  ;;  %v3719_v52 = vshll.u32 %v11633_v18, 16  ;;  %v3513_v57 = vld [vmem:[#allocation2 + $0xa4] sm:$0x1] }
 0x23b   : > { %v3312_v25 = vor.u32 %v3310_v10, %v3309_v21  ;;  %v3313_v24 = vrot.slane %v3309_v21, 4  ;;  %9734 = vmatprep.mubr.msk.bf16.mxu1 %vm325_vm1, %v8705_v36  ;;  %v3315_v55 = vshrl.u32 %v9105_v54, 16  ;;  %v3318_v61 = vshll.u32 %v9105_v54, 16  ;;  %v3553_v10 = vld [vmem:[#allocation2 + $0x60] sm:$0xf] }
 0x23c   : > { %v3334_v14 = vrot.slane %v3332_v45, 7  ;;  %v3358_v60 = vshrl.u32 %v9110_v12, 16  ;;  %v3361_v4 = vshll.u32 %v9110_v12, 16  ;;  %v3717_v31 = vrot.slane %v3716_v7, 4  ;;  %v11762_v45 = vld [vmem:[#allocation2 + $0x50] sm:$0x1] }
 0x23d   : > { %v3510_v27 = vsel %vm11436_vm12, %v3312_v25, %v3509_v39  ;;  %v3317_v9 = vrot.slane %v3315_v55, 7  ;;  %v3721_v62 = vrot.slane %v3719_v52, 5  ;;  %v3725_v11 = vrot.slane %v3723_v37, 4  ;;  %v3555_v55 = vld [vmem:[#allocation2 + $0x6c] sm:$0xf] }
 0x23e   : > { %3511 = vst [vmem:[#allocation2 + $0x9c] sm:$0xf] %v3510_v27  ;;  %v3337_v51 = vor.u32 %v3335_v6, %v3334_v14  ;;  %v3339_v3 = vrot.slane %v3334_v14, 4  ;;  %v11738_v28 = vrot.slane %v3358_v60, 7  ;;  %v3729_v13 = vshll.u32 %v11732_v48, 16 }
 0x23f   : > { %v3320_v44 = vor.u32 %v3318_v61, %v3317_v9  ;;  %v3322_v47 = vrot.slane %v3317_v9, 4  ;;  %v3722_v34 = vsel %vm11074_vm10, %v3717_v31, %v3721_v62  ;;  %v3726_v32 = vor.u32 %v3725_v11, %v3721_v62 }
 0x240   : > { %v3338_v18 = vsel %vm11447_vm13, %v3330_v53, %v3337_v51  ;;  %v3521_v37 = vsel %vm10911_vm5, %v3339_v3, %v3520_v29  ;;  %v3363_v22 = vor.u32 %v3361_v4, %v11738_v28  ;;  %v3364_v15 = vrot.slane %v11738_v28, 4  ;;  %v11775_v4 = vld [vmem:[#allocation2 + $0x70] sm:$0xf] }
 0x241   : > { %3519 = vst.msk [vmem:[#allocation2 + $0xac] sm:$0xf] %vm2882_vm7, %v3338_v18  ;;  %3522 = vst [vmem:[#allocation2 + $0xb0] sm:$0x1] %v3521_v37  ;;  %v3321_v5 = vsel %vm11447_vm13, %v3313_v24, %v3320_v44  ;;  %v3514_v21 = vsel %vm10911_vm5, %v3322_v47, %v3513_v57  ;;  %v3727_v26 = vrot.slane %v3726_v32, 4  ;;  %v3731_v36 = vrot.slane %v3729_v13, 5  ;;  %v2767_v24 = vpop.f32.mrf.mxu0 }
 0x242   : > { %3512 = vst.msk [vmem:[#allocation2 + $0xa0] sm:$0xf] %vm2882_vm7, %v3321_v5  ;;  %3515 = vst [vmem:[#allocation2 + $0xa4] sm:$0x1] %v3514_v21  ;;  %v3531_v53 = vsel %vm11436_vm12, %v3363_v22, %v3530_v0  ;;  %v3782_v54 = vshrl.u32 %v3553_v10, 16  ;;  %v3785_v12 = vshll.u32 %v3553_v10, 16  ;;  %v8741_v7 = vcombine.low %v3553_v10, %v11743_v42 }
 0x243   : > { %v3795_v39 = vshrl.u32 %v11743_v42, 16  ;;  %3532 = vst [vmem:[#allocation2 + $0xc0] sm:$0xf] %v3531_v53  ;;  %v3732_v6 = vsel %vm11074_vm10, %v3727_v26, %v3731_v36  ;;  %v2807_v52 = vadd.f32 %v2764_v59, %v11426_v50  ;;  %v3740_v25 = vor.u32 %v11696_v19, %v11691_v30  ;;  %v11795_v32 = vld [vmem:[#allocation2 + $0x5c] sm:$0x1] }
 0x244   : > { %v8706_v61 = vcombine.low %v3722_v34, %v3732_v6  ;;  %v11770_v14 = vrot.slane %v3782_v54, 4  ;;  %v11772_v29 = vrot.slane %v3785_v12, 5  ;;  %v3743_v60 = vshll.u32 %v11668_v20, 16  ;;  %9776 = vmatprep.mubr.msk.bf16.mxu0 %vm325_vm1, %v8741_v7  ;;  %v3523_v26 = vld [vmem:[#allocation2 + $0xb4] sm:$0xf] }
 0x245   : > { %v2846_v31 = vadd.f32 %v11702_v23, %v2807_v52  ;;  %v3741_v27 = vrot.slane %v3740_v25, 4  ;;  %v3749_v50 = vrot.slane %v3747_v35, 4  ;;  %v3753_v30 = vshll.u32 %v11762_v45, 16 }
 0x246   : > { %9735 = vmatmul.mubr.msk.bf16.gmra.mxu1 %vm325_vm1, %v8706_v61  ;;  %v3745_v19 = vrot.slane %v3743_v60, 5  ;;  %v2810_v59 = vadd.f32 %v9723_v33, %v11429_v56  ;;  %v2808_v9 = vadd.f32 %v2767_v24, %v11431_v17  ;;  %v3806_v57 = vshrl.u32 %v3555_v55, 16  ;;  %v11806_v60 = vld [vmem:[#allocation2 + $0x7c] sm:$0xf] }
 0x247   : > { %v2878_v62 = vmax.f32 %v2846_v31, 0.0  ;;  %v3755_v11 = vrot.slane %v3753_v30, 5  ;;  %v3809_v51 = vshll.u32 %v3555_v55, 16  ;;  %v3819_v3 = vshrl.u32 %v11775_v4, 16 }
 0x248   : > { %v3746_v0 = vsel %vm11074_vm10, %v3741_v27, %v3745_v19  ;;  %v3750_v13 = vor.u32 %v3749_v50, %v3745_v19  ;;  %v2849_v35 = vadd.f32 %v11702_v23, %v2810_v59  ;;  %v2847_v44 = vadd.f32 %v11702_v23, %v2808_v9  ;;  %v3534_v19 = vld [vmem:[#allocation2 + $0xc8] sm:$0x1] }
 0x249   : > { %v9108_v47 = vpack.c.bf16 %v2878_v62, %v2878_v62  ;;  %v11790_v34 = vrot.slane %v3806_v57, 4  ;;  %v11792_v56 = vrot.slane %v3809_v51, 5  ;;  %v8742_v17 = vcombine.low %v3555_v55, %v11775_v4 }
 0x24a   : > { %v3751_v10 = vrot.slane %v3750_v13, 4  ;;  %v2881_v33 = vmax.f32 %v2849_v35, 0.0  ;;  %v2879_v18 = vmax.f32 %v2847_v44, 0.0  ;;  %v3764_v37 = vor.u32 %v11724_v43, %v11719_v63  ;;  %v3557_v43 = vld [vmem:[#allocation2 + $0x78] sm:$0xf] }
 0x24b   : > { %v3341_v22 = vshrl.u32 %v9108_v47, 16  ;;  %v3344_v5 = vshll.u32 %v9108_v47, 16  ;;  %9777 = vmatmul.mubr.msk.bf16.gmra.mxu0 %vm325_vm1, %v8742_v17  ;;  %v3767_v23 = vshll.u32 %v11712_v46, 16  ;;  %v3773_v21 = vrot.slane %v3771_v58, 4 }
 0x24c   : > { %v3756_v36 = vsel %vm11074_vm10, %v3751_v10, %v3755_v11  ;;  %v9111_v53 = vpack.c.bf16 %v2881_v33, %v2881_v33  ;;  %v9109_v54 = vpack.c.bf16 %v2879_v18, %v2879_v18  ;;  %v3765_v12 = vrot.slane %v3764_v37, 4  ;;  %v3527_v11 = vld [vmem:[#allocation2 + $0xbc] sm:$0x1]  ;;  %v11814_v10 = vld [vmem:[#allocation2 + $0x68] sm:$0x1] }
 0x24d   : > { %v3343_v6 = vrot.slane %v3341_v22, 7  ;;  %v8707_v7 = vcombine.low %v3746_v0, %v3756_v36  ;;  %v3769_v52 = vrot.slane %v3767_v23, 5  ;;  %v3777_v63 = vshll.u32 %v11795_v32, 16  ;;  %v3559_v33 = vld [vmem:[#allocation2 + $0x84] sm:$0xf] }
 0x24e   : > { %v3366_v25 = vshrl.u32 %v9111_v53, 16  ;;  %v3369_v24 = vshll.u32 %v9111_v53, 16  ;;  %v3349_v55 = vshrl.u32 %v9109_v54, 16  ;;  %v3352_v61 = vshll.u32 %v9109_v54, 16  ;;  %v11839_v54 = vld [vmem:[#allocation2 + $0x74] sm:$0x1] }
 0x24f   : > { %v3346_v58 = vor.u32 %v3344_v5, %v3343_v6  ;;  %v3347_v31 = vrot.slane %v3343_v6, 4  ;;  %9738 = vmatprep.mubr.msk.bf16.mxu1 %vm325_vm1, %v8707_v7  ;;  %v3770_v27 = vsel %vm11074_vm10, %v3765_v12, %v3769_v52  ;;  %v3774_v50 = vor.u32 %v3773_v21, %v3769_v52  ;;  %v11819_v5 = vld [vmem:[#allocation2 + $0x88] sm:$0xf]  ;;  %v3561_v12 = vld [vmem:[#allocation2 + $0x90] sm:$0xf] }
 0x250   : > { %v3368_v30 = vrot.slane %v3366_v25, 7  ;;  %v3351_v59 = vrot.slane %v3349_v55, 7  ;;  %v3779_v9 = vrot.slane %v3777_v63, 5  ;;  %v3830_v57 = vshrl.u32 %v3557_v43, 16 }
 0x251   : > { %v3524_v62 = vsel %vm11436_vm12, %v3346_v58, %v3523_v26  ;;  %v3775_v51 = vrot.slane %v3774_v50, 4  ;;  %v3833_v0 = vshll.u32 %v3557_v43, 16  ;;  %v3843_v13 = vshrl.u32 %v11806_v60, 16  ;;  %v11848_v58 = vld [vmem:[#allocation2 + $0x94] sm:$0xf] }
 0x252   : > { %3525 = vst [vmem:[#allocation2 + $0xb4] sm:$0xf] %v3524_v62  ;;  %v3371_v35 = vor.u32 %v3369_v24, %v3368_v30  ;;  %v3373_v44 = vrot.slane %v3368_v30, 4  ;;  %v3354_v47 = vor.u32 %v3352_v61, %v3351_v59  ;;  %v3356_v17 = vrot.slane %v3351_v59, 4 }
 0x253   : > { %v3780_v18 = vsel %vm11074_vm10, %v3775_v51, %v3779_v9  ;;  %v3832_v37 = vrot.slane %v3830_v57, 4  ;;  %v3835_v22 = vrot.slane %v3833_v0, 5  ;;  %v8743_v2 = vcombine.low %v3557_v43, %v11806_v60 }
 0x254   : > { %v3372_v23 = vsel %vm11447_vm13, %v3364_v15, %v3371_v35  ;;  %v3535_v21 = vsel %vm10911_vm5, %v3373_v44, %v3534_v19  ;;  %v3355_v26 = vsel %vm11447_vm13, %v3347_v31, %v3354_v47  ;;  %v3528_v36 = vsel %vm10911_vm5, %v3356_v17, %v3527_v11  ;;  %v11858_v11 = vld [vmem:[#allocation2 + $0x80] sm:$0x1] }
 0x255   : > { %3533 = vst.msk [vmem:[#allocation2 + $0xc4] sm:$0xf] %vm2882_vm7, %v3372_v23  ;;  %3536 = vst [vmem:[#allocation2 + $0xc8] sm:$0x1] %v3535_v21  ;;  %v8708_v53 = vcombine.low %v3770_v27, %v3780_v18  ;;  %9780 = vmatprep.mubr.msk.bf16.mxu0 %vm325_vm1, %v8743_v2  ;;  %v3788_v28 = vor.u32 %v11772_v29, %v11770_v14  ;;  %v3791_v15 = vshll.u32 %v11743_v42, 16  ;;  %v3797_v40 = vrot.slane %v3795_v39, 4 }
 0x256   : > { %3526 = vst.msk [vmem:[#allocation2 + $0xb8] sm:$0xf] %vm2882_vm7, %v3355_v26  ;;  %3529 = vst [vmem:[#allocation2 + $0xbc] sm:$0x1] %v3528_v36  ;;  %v3801_v6 = vshll.u32 %v11814_v10, 16  ;;  %v3854_v7 = vshrl.u32 %v3559_v33, 16  ;;  %v8744_v14 = vcombine.low %v3559_v33, %v11819_v5  ;;  %v3812_v29 = vor.u32 %v11792_v56, %v11790_v34 }
 0x257   : > { %v3857_v52 = vshll.u32 %v3559_v33, 16  ;;  %v3867_v63 = vshrl.u32 %v11819_v5, 16  ;;  %9739 = vmatmul.mubr.msk.bf16.gmra.mxu1 %vm325_vm1, %v8708_v53  ;;  %v3789_v43 = vrot.slane %v3788_v28, 4  ;;  %v3793_v25 = vrot.slane %v3791_v15, 5  ;;  %v11862_v17 = vld [vmem:[#allocation2 + $0xa0] sm:$0xf] }
 0x258   : > { %v3803_v24 = vrot.slane %v3801_v6, 5  ;;  %v3856_v39 = vrot.slane %v3854_v7, 4  ;;  %v3815_v61 = vshll.u32 %v11775_v4, 16  ;;  %9781 = vmatmul.mubr.msk.bf16.gmra.mxu0 %vm325_vm1, %v8744_v14  ;;  %v3813_v50 = vrot.slane %v3812_v29, 4  ;;  %v11876_v7 = vld [vmem:[#allocation2 + $0x8c] sm:$0x1] }
 0x259   : > { %v3859_v55 = vrot.slane %v3857_v52, 5  ;;  %v3794_v31 = vsel %vm11074_vm10, %v3789_v43, %v3793_v25  ;;  %v3798_v27 = vor.u32 %v3797_v40, %v3793_v25  ;;  %v3821_v30 = vrot.slane %v3819_v3, 4  ;;  %v3563_v3 = vld [vmem:[#allocation2 + $0x9c] sm:$0xf]  ;;  %v3565_v43 = vld [vmem:[#allocation2 + $0xa8] sm:$0xf] }
 0x25a   : > { %v3817_v19 = vrot.slane %v3815_v61, 5  ;;  %v3825_v34 = vshll.u32 %v11839_v54, 16  ;;  %v3878_v56 = vshrl.u32 %v3561_v12, 16  ;;  %v3881_v59 = vshll.u32 %v3561_v12, 16 }
 0x25b   : > { %v3799_v9 = vrot.slane %v3798_v27, 4  ;;  %v3891_v57 = vshrl.u32 %v11848_v58, 16  ;;  %v8745_v62 = vcombine.low %v3561_v12, %v11848_v58  ;;  %v3836_v51 = vor.u32 %v3835_v22, %v3832_v37 }
 0x25c   : > { %v3818_v0 = vsel %vm11074_vm10, %v3813_v50, %v3817_v19  ;;  %v3822_v35 = vor.u32 %v3821_v30, %v3817_v19  ;;  %v3827_v44 = vrot.slane %v3825_v34, 5  ;;  %v3880_v47 = vrot.slane %v3878_v56, 4  ;;  %v11884_v30 = vld [vmem:[#allocation2 + $0x98] sm:$0x1]  ;;  %v3567_v56 = vld [vmem:[#allocation2 + $0xb4] sm:$0xf] }
 0x25d   : > { %v3804_v33 = vsel %vm11074_vm10, %v3799_v9, %v3803_v24  ;;  %v3883_v18 = vrot.slane %v3881_v59, 5  ;;  %9784 = vmatprep.mubr.msk.bf16.mxu0 %vm325_vm1, %v8745_v62  ;;  %v3837_v2 = vrot.slane %v3836_v51, 4  ;;  %v3839_v23 = vshll.u32 %v11806_v60, 16  ;;  %v11880_v24 = vld [vmem:[#allocation2 + $0xac] sm:$0xf] }
 0x25e   : > { %v8709_v21 = vcombine.low %v3794_v31, %v3804_v33  ;;  %v3823_v37 = vrot.slane %v3822_v35, 4  ;;  %v3845_v22 = vrot.slane %v3843_v13, 4  ;;  %v3849_v26 = vshll.u32 %v11858_v11, 16 }
 0x25f   : > { %v3841_v36 = vrot.slane %v3839_v23, 5  ;;  %v3902_v53 = vshrl.u32 %v3563_v3, 16  ;;  %v3905_v28 = vshll.u32 %v3563_v3, 16  ;;  %v3915_v15 = vshrl.u32 %v11862_v17, 16 }
 0x260   : > { %9742 = vmatprep.mubr.msk.bf16.mxu1 %vm325_vm1, %v8709_v21  ;;  %v3828_v40 = vsel %vm11074_vm10, %v3823_v37, %v3827_v44  ;;  %v3851_v12 = vrot.slane %v3849_v26, 5  ;;  %v8746_v6 = vcombine.low %v3563_v3, %v11862_v17  ;;  %v3860_v52 = vor.u32 %v3859_v55, %v3856_v39  ;;  %v11892_v3 = vld [vmem:[#allocation2 + $0xb8] sm:$0xf] }
 0x261   : > { %v8710_v13 = vcombine.low %v3818_v0, %v3828_v40  ;;  %v3842_v25 = vsel %vm11074_vm10, %v3837_v2, %v3841_v36  ;;  %v3846_v14 = vor.u32 %v3845_v22, %v3841_v36  ;;  %v3904_v29 = vrot.slane %v3902_v53, 4 }
 0x262   : > { %v3907_v61 = vrot.slane %v3905_v28, 5  ;;  %9785 = vmatmul.mubr.msk.bf16.gmra.mxu0 %vm325_vm1, %v8746_v6  ;;  %v3861_v31 = vrot.slane %v3860_v52, 4  ;;  %v3863_v27 = vshll.u32 %v11819_v5, 16  ;;  %v3869_v50 = vrot.slane %v3867_v63, 4  ;;  %v11902_v52 = vld [vmem:[#allocation2 + $0xa4] sm:$0x1] }
 0x263   : > { %9743 = vmatmul.mubr.msk.bf16.gmra.mxu1 %vm325_vm1, %v8710_v13  ;;  %v3847_v39 = vrot.slane %v3846_v14, 4  ;;  %v3873_v55 = vshll.u32 %v11876_v7, 16  ;;  %v3926_v19 = vshrl.u32 %v3565_v43, 16  ;;  %v3929_v34 = vshll.u32 %v3565_v43, 16 }
 0x264   : > { %v3865_v59 = vrot.slane %v3863_v27, 5  ;;  %v3939_v9 = vshrl.u32 %v11880_v24, 16  ;;  %v8747_v62 = vcombine.low %v3565_v43, %v11880_v24  ;;  %v3884_v51 = vor.u32 %v3883_v18, %v3880_v47  ;;  %v11908_v27 = vld [vmem:[#allocation2 + $0xb0] sm:$0x1] }
 0x265   : > { %v3852_v0 = vsel %vm11074_vm10, %v3847_v39, %v3851_v12  ;;  %v3875_v63 = vrot.slane %v3873_v55, 5  ;;  %v3928_v35 = vrot.slane %v3926_v19, 4  ;;  %v3931_v44 = vrot.slane %v3929_v34, 5 }
 0x266   : > { %v8711_v33 = vcombine.low %v3842_v25, %v3852_v0  ;;  %v3866_v2 = vsel %vm11074_vm10, %v3861_v31, %v3865_v59  ;;  %v3870_v23 = vor.u32 %v3869_v50, %v3865_v59  ;;  %9788 = vmatprep.mubr.msk.bf16.mxu0 %vm325_vm1, %v8747_v62  ;;  %v3885_v21 = vrot.slane %v3884_v51, 4  ;;  %v10107_v0 = vld [vmem:[%s13988_s3 + $0x6] sm:$0x3] }
 0x267   : > { %v3887_v37 = vshll.u32 %v11848_v58, 16  ;;  %v3893_v22 = vrot.slane %v3891_v57, 4  ;;  %v3897_v47 = vshll.u32 %v11884_v30, 16  ;;  %v3950_v18 = vshrl.u32 %v3567_v56, 16  ;;  %v10074_v57 = vld [vmem:[#allocation2 + $0xc] sm:$0xff]  }
 0x268   : > { %9746 = vmatprep.mubr.msk.bf16.mxu1 %vm325_vm1, %v8711_v33  ;;  %v3871_v26 = vrot.slane %v3870_v23, 4  ;;  %v3953_v36 = vshll.u32 %v3567_v56, 16  ;;  %v3963_v53 = vshrl.u32 %v11892_v3, 16  ;;  %v8748_v28 = vcombine.low %v3567_v56, %v11892_v3  ;;  %v11928_v23 = vld [vmem:[#allocation2 + $0xbc] sm:$0x1] }
 0x269   : > { %v3889_v40 = vrot.slane %v3887_v37, 5  ;;  %v3899_v12 = vrot.slane %v3897_v47, 5  ;;  %v3952_v6 = vrot.slane %v3950_v18, 4  ;;  %v3908_v43 = vor.u32 %v3907_v61, %v3904_v29  ;;  %v4527_v47 = vld [vmem:[#allocation2] sm:$0xe] }
 0x26a   : > { %v3876_v13 = vsel %vm11074_vm10, %v3871_v26, %v3875_v63  ;;  %v3955_v25 = vrot.slane %v3953_v36, 5  ;;  %9789 = vmatmul.mubr.msk.bf16.gmra.mxu0 %vm325_vm1, %v8748_v28  ;;  %v3911_v14 = vshll.u32 %v11862_v17, 16  ;;  %v3917_v31 = vrot.slane %v3915_v15, 4  ;;  %v11918_v15 = vld [vmem:[%s13988_s3 + $0xa] sm:$0x3]  ;;  %v10075_v36 = vld [vmem:[#allocation2 + $0x18] sm:$0xff]  }
 0x26b   : > { %v8712_v50 = vcombine.low %v3866_v2, %v3876_v13  ;;  %v3890_v39 = vsel %vm11074_vm10, %v3885_v21, %v3889_v40  ;;  %v3894_v55 = vor.u32 %v3893_v22, %v3889_v40  ;;  %v3909_v19 = vrot.slane %v3908_v43, 4  ;;  %9828 = vmatprep.mubr.msk.bf16.mxu0 %vm325_vm1, %v10074_v57 }
 0x26c   : > { %v3913_v29 = vrot.slane %v3911_v14, 5  ;;  %v3921_v61 = vshll.u32 %v11902_v52, 16  ;;  %v3932_v34 = vor.u32 %v3931_v44, %v3928_v35  ;;  %v3935_v56 = vshll.u32 %v11880_v24, 16  ;;  %v10076_v14 = vld [vmem:[#allocation2 + $0x24] sm:$0xff]  }
 0x26d   : > { %9747 = vmatmul.mubr.msk.bf16.gmra.mxu1 %vm325_vm1, %v8712_v50  ;;  %v3895_v59 = vrot.slane %v3894_v55, 4  ;;  %v3941_v62 = vrot.slane %v3939_v9, 4  ;;  %v3945_v51 = vshll.u32 %v11908_v27, 16  ;;  %v5147_v63 = vsel %vm374_vm0, %v10107_v0, 0  ;;  %v10108_v50 = vld [vmem:[#allocation2 + $0x4] sm:$0xf] }
 0x26e   : > { %v3914_v35 = vsel %vm11074_vm10, %v3909_v19, %v3913_v29  ;;  %v3918_v44 = vor.u32 %v3917_v31, %v3913_v29  ;;  %v3923_v33 = vrot.slane %v3921_v61, 5  ;;  %v3933_v2 = vrot.slane %v3932_v34, 4  ;;  %9827 = vmatpush3.bf16.msra.mxu0 %v5147_v63  ;;  %v10109_v34 = vld [vmem:[#allocation2 + $0x8] sm:$0x1]  ;;  %v4529_v63 = vld [vmem:[#allocation2 + $0x18] sm:$0xe] }
 0x26f   : > { %v3900_v9 = vsel %vm11074_vm10, %v3895_v59, %v3899_v12  ;;  %v3937_v21 = vrot.slane %v3935_v56, 5  ;;  %v3947_v37 = vrot.slane %v3945_v51, 5  ;;  %v3956_v22 = vor.u32 %v3955_v25, %v3952_v6  ;;  %10044 = vmatprep.subr.msk.bf16.mxu0 %vm374_vm0, %v11918_v15 }
 0x270   : > { %v8713_v18 = vcombine.low %v3890_v39, %v3900_v9  ;;  %v3919_v26 = vrot.slane %v3918_v44, 4  ;;  %v3959_v28 = vshll.u32 %v11892_v3, 16  ;;  %v3965_v40 = vrot.slane %v3963_v53, 4  ;;  %v4528_v53 = vld [vmem:[#allocation2 + $0xc] sm:$0xe] }
 0x271   : > { %v3938_v43 = vsel %vm11074_vm10, %v3933_v2, %v3937_v21  ;;  %v3942_v57 = vor.u32 %v3941_v62, %v3937_v21  ;;  %v3957_v13 = vrot.slane %v3956_v22, 4  ;;  %v3969_v12 = vshll.u32 %v11928_v23, 16  ;;  %v10111_v9 = vld [vmem:[#allocation2 + $0x14] sm:$0x1]  ;;  %v4530_v22 = vld [vmem:[#allocation2 + $0x24] sm:$0xe] }
 0x272   : > { %9750 = vmatprep.mubr.msk.bf16.mxu1 %vm325_vm1, %v8713_v18  ;;  %v3924_v6 = vsel %vm11074_vm10, %v3919_v26, %v3923_v33  ;;  %9829 = vmatmul.mubr.msk.bf16.vlgmr.msra.gmra.mxu0 %vm325_vm1, %v10075_v36  ;;  %v3961_v25 = vrot.slane %v3959_v28, 5  ;;  %v8765_v31 = vrot.slane %v4527_v47, 9  ;;  %v4580_v39 = vrot.slane %v10108_v50, 5  ;;  %v10110_v33 = vld [vmem:[#allocation2 + $0x10] sm:$0xf] }
 0x273   : > { %v8714_v55 = vcombine.low %v3914_v35, %v3924_v6  ;;  %v3943_v19 = vrot.slane %v3942_v57, 4  ;;  %v3971_v29 = vrot.slane %v3969_v12, 5  ;;  %9832 = vmatprep.mubr.msk.bf16.mxu0 %vm325_vm1, %v10076_v14  ;;  %v4583_v56 = vrot.slane %v10109_v34, 5  ;;  %v10077_v12 = vld [vmem:[#allocation2 + $0x30] sm:$0xff]   ;;  %v10112_v14 = vld [vmem:[#allocation2 + $0x1c] sm:$0xf] }
 0x274   : > { %v3962_v59 = vsel %vm11074_vm10, %v3957_v13, %v3961_v25  ;;  %v3966_v62 = vor.u32 %v3965_v40, %v3961_v25  ;;  %v4581_v51 = vsel %vm11945_vm2, %v8765_v31, %v4580_v39  ;;  %v4582_v0 = vrot.slane %v4580_v39, 4  ;;  %v4531_v13 = vld [vmem:[#allocation2 + $0x30] sm:$0xe]  ;;  %v10113_v25 = vld [vmem:[#allocation2 + $0x20] sm:$0x1] }
 0x275   : > { %9751 = vmatmul.mubr.msk.bf16.gmra.mxu1 %vm325_vm1, %v8714_v55  ;;  %v3948_v35 = vsel %vm11074_vm10, %v3943_v19, %v3947_v37  ;;  %v8766_v44 = vrot.slane %v4528_v53, 9  ;;  %v4587_v2 = vrot.slane %v10110_v33, 5  ;;  %v4590_v21 = vrot.slane %v10111_v9, 5  ;;  %v10078_v53 = vld [vmem:[#allocation2 + $0x3c] sm:$0xff]   ;;  %v10114_v55 = vld [vmem:[#allocation2 + $0x28] sm:$0xf] }
 0x276   : > { %v8715_v47 = vcombine.low %v3938_v43, %v3948_v35  ;;  %v3967_v18 = vrot.slane %v3966_v62, 4  ;;  %v4584_v26 = vsel %vm11945_vm2, %v4582_v0, %v4583_v56  ;;  %v11960_v36 = vsel %vm374_vm0, %v11626_v16, 0  ;;  %v4532_v56 = vld [vmem:[#allocation2 + $0x3c] sm:$0xe]  ;;  %v4533_v33 = vld [vmem:[#allocation2 + $0x48] sm:$0xe] }
 0x277   : > { %v8782_v28 = vcombine.low %v4581_v51, %v4584_v26  ;;  %v11964_v40 = vsel %vm11945_vm2, %v8766_v44, %v4587_v2  ;;  %v4589_v37 = vrot.slane %v4587_v2, 4  ;;  %v8767_v57 = vrot.slane %v4529_v63, 9 }
 0x278   : > { %9754 = vmatprep.mubr.msk.bf16.mxu1 %vm325_vm1, %v8715_v47  ;;  %v3972_v43 = vsel %vm11074_vm10, %v3967_v18, %v3971_v29  ;;  %v4594_v6 = vrot.slane %v10112_v14, 5  ;;  %v4597_v31 = vrot.slane %v10113_v25, 5  ;;  %v8768_v16 = vrot.slane %v4530_v22, 9  ;;  %v4534_v18 = vld [vmem:[#allocation2 + $0x54] sm:$0xe] }
 0x279   : > { %v8716_v50 = vcombine.low %v3962_v59, %v3972_v43  ;;  %v11971_v39 = vsel %vm11945_vm2, %v4589_v37, %v4590_v21  ;;  %v4601_v19 = vrot.slane %v10114_v55, 5  ;;  %v4604_v34 = vrot.slane %v11654_v38, 5  ;;  %v10115_v38 = vld [vmem:[#allocation2 + $0x34] sm:$0xf]  ;;  %v10116_v21 = vld [vmem:[#allocation2 + $0x40] sm:$0xf] }
 0x27a   : > { %9833 = vmatmul.mubr.msk.bf16.gmra.mxu0 %vm325_vm1, %v10077_v12  ;;  %v8783_v29 = vcombine.low %v11964_v40, %v11971_v39  ;;  %v11979_v62 = vsel %vm11945_vm2, %v8767_v57, %v4594_v6  ;;  %v4596_v59 = vrot.slane %v4594_v6, 4  ;;  %v8769_v51 = vrot.slane %v4531_v13, 9  ;;  %v4535_v12 = vld [vmem:[#allocation2 + $0x60] sm:$0xe]  ;;  %v4536_v55 = vld [vmem:[#allocation2 + $0x6c] sm:$0xe] }
 0x27b   : > { %9836 = vmatprep.mubr.msk.bf16.mxu0 %vm325_vm1, %v10078_v53  ;;  %v11984_v0 = vsel %vm11945_vm2, %v8768_v16, %v4601_v19  ;;  %v4603_v63 = vrot.slane %v4601_v19, 4  ;;  %v4608_v35 = vrot.slane %v10115_v38, 5  ;;  %v4611_v44 = vrot.slane %v11687_v41, 5  ;;  %v10080_v19 = vld [vmem:[#allocation2 + $0x54] sm:$0xff]  }
 0x27c   : > { %v4598_v2 = vsel %vm11945_vm2, %v4596_v59, %v4597_v31  ;;  %v8770_v9 = vrot.slane %v4532_v56, 9  ;;  %v4615_v22 = vrot.slane %v10116_v21, 5  ;;  %v4618_v47 = vrot.slane %v11732_v48, 5  ;;  %v12054_v21 = vld [vmem:[%s13988_s3 + $0xc] sm:$0x3] }
 0x27d   : > { %9755 = vmatmul.mubr.msk.bf16.gmra.mxu1 %vm325_vm1, %v8716_v50  ;;  %v8784_v26 = vcombine.low %v11979_v62, %v4598_v2  ;;  %v11994_v40 = vsel %vm11945_vm2, %v4603_v63, %v4604_v34  ;;  %v11998_v41 = vsel %vm11945_vm2, %v8769_v51, %v4608_v35  ;;  %v4610_v37 = vrot.slane %v4608_v35, 4  ;;  %v4537_v51 = vld [vmem:[#allocation2 + $0x78] sm:$0xe] }
 0x27e   : > { %9794 = vmatprep.mubr.msk.bf16.mxu1 %vm325_vm1, %v8782_v28  ;;  %v8785_v57 = vcombine.low %v11984_v0, %v11994_v40  ;;  %v12005_v48 = vsel %vm11945_vm2, %v8770_v9, %v4615_v22  ;;  %v4617_v13 = vrot.slane %v4615_v22, 4  ;;  %v8771_v43 = vrot.slane %v4533_v33, 9  ;;  %v10079_v28 = vld [vmem:[#allocation2 + $0x48] sm:$0xff]   ;;  %v4538_v33 = vld [vmem:[#allocation2 + $0x84] sm:$0xe] }
 0x27f   : > { %v12009_v14 = vsel %vm11945_vm2, %v4610_v37, %v4611_v44  ;;  %v4622_v6 = vrot.slane %v11668_v20, 5  ;;  %v4625_v25 = vrot.slane %v11762_v45, 5  ;;  %v8772_v31 = vrot.slane %v4534_v18, 9  ;;  %v4539_v18 = vld [vmem:[#allocation2 + $0x90] sm:$0xe] }
 0x280   : > { %v8786_v16 = vcombine.low %v11998_v41, %v12009_v14  ;;  %v12017_v50 = vsel %vm11945_vm2, %v4617_v13, %v4618_v47  ;;  %v4629_v39 = vrot.slane %v11712_v46, 5  ;;  %v4632_v53 = vrot.slane %v11795_v32, 5 }
 0x281   : > { %v8787_v20 = vcombine.low %v12005_v48, %v12017_v50  ;;  %v12025_v45 = vsel %vm11945_vm2, %v8771_v43, %v4622_v6  ;;  %v4624_v34 = vrot.slane %v4622_v6, 4  ;;  %v8773_v56 = vrot.slane %v4535_v12, 9 }
 0x282   : > { %9837 = vmatmul.mubr.msk.bf16.gmra.mxu0 %vm325_vm1, %v10079_v28  ;;  %v12030_v62 = vsel %vm11945_vm2, %v8772_v31, %v4629_v39  ;;  %v4631_v46 = vrot.slane %v4629_v39, 4  ;;  %v4636_v32 = vrot.slane %v11743_v42, 5  ;;  %v4639_v59 = vrot.slane %v11814_v10, 5  ;;  %v6068_v31 = vld [vmem:[#allocation2 + $0xc] sm:$0xe] }
 0x283   : > { %9840 = vmatprep.mubr.msk.bf16.mxu0 %vm325_vm1, %v10080_v19  ;;  %v12037_v63 = vsel %vm11945_vm2, %v4624_v34, %v4625_v25  ;;  %v8774_v38 = vrot.slane %v4536_v55, 9  ;;  %v4643_v35 = vrot.slane %v11775_v4, 5  ;;  %v4646_v44 = vrot.slane %v11839_v54, 5  ;;  %v4540_v25 = vld [vmem:[#allocation2 + $0x9c] sm:$0xe] }
 0x284   : > { %v8788_v2 = vcombine.low %v12025_v45, %v12037_v63  ;;  %v12045_v42 = vsel %vm11945_vm2, %v4631_v46, %v4632_v53  ;;  %v12049_v10 = vsel %vm11945_vm2, %v8773_v56, %v4636_v32  ;;  %v4638_v9 = vrot.slane %v4636_v32, 4  ;;  %v12087_v55 = vld [vmem:[#allocation2 + $0x10] sm:$0xf]  ;;  %v12095_v46 = vld [vmem:[#allocation2 + $0x14] sm:$0x1] }
 0x285   : > { %9795 = vmatmul.mubr.msk.bf16.vlgmr.msra.gmra.mxu1 %vm325_vm1, %v8783_v29  ;;  %v8789_v4 = vcombine.low %v12030_v62, %v12045_v42  ;;  %v12061_v54 = vsel %vm11945_vm2, %v8774_v38, %v4643_v35  ;;  %v4645_v22 = vrot.slane %v4643_v35, 4  ;;  %v8775_v47 = vrot.slane %v4537_v51, 9  ;;  %v4541_v35 = vld [vmem:[#allocation2 + $0xa8] sm:$0xe]  ;;  %v12224_v45 = vld [vmem:[#allocation2 + $0x38] sm:$0x1] }
 0x286   : > { %9861 = vmatpush3.bf16.msra.mxu1 %v11960_v36  ;;  %9798 = vmatprep.mubr.msk.bf16.mxu1 %vm325_vm1, %v8784_v26  ;;  %v12067_v37 = vsel %vm11945_vm2, %v4638_v9, %v4639_v59  ;;  %v4650_v29 = vrot.slane %v11806_v60, 5  ;;  %v4653_v13 = vrot.slane %v11858_v11, 5  ;;  %v8776_v43 = vrot.slane %v4538_v33, 9  ;;  %v10081_v60 = vld [vmem:[#allocation2 + $0x60] sm:$0xff]   ;;  %v10085_v63 = vld [vmem:[#allocation2 + $0x90] sm:$0xff]  }
 0x287   : > { %v8790_v12 = vcombine.low %v12049_v10, %v12067_v37  ;;  %v12075_v6 = vsel %vm11945_vm2, %v4645_v22, %v4646_v44  ;;  %v4657_v36 = vrot.slane %v11819_v5, 5  ;;  %v4660_v26 = vrot.slane %v11876_v7, 5  ;;  %10045 = vmatprep.subr.msk.bf16.mxu1 %vm374_vm0, %v12054_v21  ;;  %v10082_v5 = vld [vmem:[#allocation2 + $0x6c] sm:$0xff]  }
 0x288   : > { %v8791_v11 = vcombine.low %v12061_v54, %v12075_v6  ;;  %v12085_v28 = vsel %vm11945_vm2, %v8775_v47, %v4650_v29  ;;  %v4652_v39 = vrot.slane %v4650_v29, 4  ;;  %v8777_v53 = vrot.slane %v4539_v18, 9  ;;  %v12121_v47 = vld [vmem:[#allocation2 + $0x1c] sm:$0xf]  ;;  %v6069_v18 = vld [vmem:[#allocation2 + $0x18] sm:$0xe] }
 0x289   : > { %v12091_v7 = vsel %vm11945_vm2, %v8776_v43, %v4657_v36  ;;  %v4659_v19 = vrot.slane %v4657_v36, 4  ;;  %v4664_v34 = vrot.slane %v11848_v58, 5  ;;  %v4667_v56 = vrot.slane %v11884_v30, 5 }
 0x28a   : > { %9841 = vmatmul.mubr.msk.bf16.gmra.mxu0 %vm325_vm1, %v10081_v60  ;;  %v12100_v32 = vsel %vm11945_vm2, %v4652_v39, %v4653_v13  ;;  %v8778_v59 = vrot.slane %v4540_v25, 9  ;;  %v4671_v51 = vrot.slane %v11862_v17, 5  ;;  %v4674_v38 = vrot.slane %v11902_v52, 5  ;;  %v8962_v60 = vld [vmem:[%s13988_s3 + $0xe] sm:$0x3] }
 0x28b   : > { %9844 = vmatprep.mubr.msk.bf16.mxu0 %vm325_vm1, %v10082_v5  ;;  %v8792_v58 = vcombine.low %v12085_v28, %v12100_v32  ;;  %v12109_v30 = vsel %vm11945_vm2, %v4659_v19, %v4660_v26  ;;  %v12113_v44 = vsel %vm11945_vm2, %v8777_v53, %v4664_v34  ;;  %v4666_v33 = vrot.slane %v4664_v34, 4  ;;  %v12133_v26 = vld [vmem:[#allocation2 + $0x20] sm:$0x1]  ;;  %v6070_v53 = vld [vmem:[#allocation2 + $0x24] sm:$0xe] }
 0x28c   : > { %v8793_v17 = vcombine.low %v12091_v7, %v12109_v30  ;;  %v12119_v52 = vsel %vm11945_vm2, %v8778_v59, %v4671_v51  ;;  %v4673_v9 = vrot.slane %v4671_v51, 4  ;;  %v8880_v22 = vrot.slane %v6068_v31, 9  ;;  %v4542_v31 = vld [vmem:[#allocation2 + $0xb4] sm:$0xe]  ;;  %v10084_v59 = vld [vmem:[#allocation2 + $0x84] sm:$0xff]  }
 0x28d   : > { %9799 = vmatmul.mubr.msk.bf16.gmra.mxu1 %vm325_vm1, %v8785_v57  ;;  %v12129_v29 = vsel %vm11945_vm2, %v4666_v33, %v4667_v56  ;;  %v6134_v13 = vrot.slane %v12087_v55, 5  ;;  %v6137_v43 = vrot.slane %v12095_v46, 5  ;;  %v8779_v36 = vrot.slane %v4541_v35, 9  ;;  %v12163_v56 = vld [vmem:[#allocation2 + $0x28] sm:$0xf] }
 0x28e   : > { %9802 = vmatprep.mubr.msk.bf16.mxu1 %vm325_vm1, %v8786_v16  ;;  %v8794_v0 = vcombine.low %v12113_v44, %v12129_v29  ;;  %v12143_v40 = vsel %vm11945_vm2, %v4673_v9, %v4674_v38  ;;  %v4678_v57 = vrot.slane %v11880_v24, 5  ;;  %v4681_v25 = vrot.slane %v11908_v27, 5  ;;  %v10083_v24 = vld [vmem:[#allocation2 + $0x78] sm:$0xff]   ;;  %v12171_v33 = vld [vmem:[#allocation2 + $0x2c] sm:$0x1] }
 0x28f   : > { %v12154_v14 = vsel %vm11945_vm2, %v8880_v22, %v6134_v13  ;;  %v6136_v16 = vrot.slane %v6134_v13, 4  ;;  %v6343_v39 = vsel %vm374_vm0, %v11918_v15, 0  ;;  %v8881_v19 = vrot.slane %v6069_v18, 9  ;;  %v12358_v44 = vld [vmem:[#allocation2 + $0x68] sm:$0x1] }
 0x290   : > { %v12160_v27 = vsel %vm11945_vm2, %v8779_v36, %v4678_v57  ;;  %v4680_v5 = vrot.slane %v4678_v57, 4  ;;  %9895 = vmatpush3.bf16.msra.mxu0 %v6343_v39  ;;  %v6141_v34 = vrot.slane %v12121_v47, 5  ;;  %v6144_v15 = vrot.slane %v12133_v26, 5  ;;  %v5357_v29 = vld [vmem:[#allocation2 + $0x48] sm:$0xf] }
 0x291   : > { %v12167_v51 = vsel %vm11945_vm2, %v6136_v16, %v6137_v43  ;;  %v8780_v38 = vrot.slane %v4542_v31, 9  ;;  %v4685_v35 = vrot.slane %v11892_v3, 5  ;;  %10046 = vmatprep.subr.msk.bf16.mxu0 %vm374_vm0, %v8962_v60  ;;  %v5342_v43 = vld [vmem:[#allocation2 + $0xc] sm:$0xf]  ;;  %v4688_v31 = vrot.slane %v11928_v23, 5 }
 0x292   : > { %9845 = vmatmul.mubr.msk.bf16.gmra.mxu0 %vm325_vm1, %v10083_v24  ;;  %v8897_v9 = vcombine.low %v12154_v14, %v12167_v51  ;;  %v12179_v22 = vsel %vm11945_vm2, %v4680_v5, %v4681_v25  ;;  %v12183_v18 = vsel %vm11945_vm2, %v8881_v19, %v6141_v34  ;;  %v6143_v13 = vrot.slane %v6141_v34, 4  ;;  %v12209_v34 = vld [vmem:[#allocation2 + $0x34] sm:$0xf] }
 0x293   : > { %9848 = vmatprep.mubr.msk.bf16.mxu0 %vm325_vm1, %v10084_v59  ;;  %v12190_v36 = vsel %vm11945_vm2, %v8780_v38, %v4685_v35  ;;  %v4687_v57 = vrot.slane %v4685_v35, 4  ;;  %v8882_v60 = vrot.slane %v6070_v53, 9  ;;  %v6148_v16 = vrot.slane %v12163_v56, 5  ;;  %v6071_v53 = vld [vmem:[#allocation2 + $0x30] sm:$0xe] }
 0x294   : > { %v12195_v25 = vsel %vm11945_vm2, %v6143_v13, %v6144_v15  ;;  %v6151_v39 = vrot.slane %v12171_v33, 5  ;;  %v5391_v5 = vshrl.u32 %v5342_v43, 16  ;;  %v5394_v19 = vshll.u32 %v5342_v43, 16  ;;  %v5345_v15 = vld [vmem:[#allocation2 + $0x18] sm:$0xf] }
 0x295   : > { %9803 = vmatmul.mubr.msk.bf16.gmra.mxu1 %vm325_vm1, %v8787_v20  ;;  %v12207_v23 = vsel %vm11945_vm2, %v4687_v57, %v4688_v31  ;;  %v12219_v50 = vsel %vm11945_vm2, %v8882_v60, %v6148_v16  ;;  %v6150_v20 = vrot.slane %v6148_v16, 4  ;;  %v5400_v59 = vshll.u32 %v12087_v55, 16  ;;  %v10086_v16 = vld [vmem:[#allocation2 + $0x9c] sm:$0xff]  }
 0x296   : > { %9806 = vmatprep.mubr.msk.bf16.mxu1 %vm325_vm1, %v8788_v2  ;;  %v5393_v38 = vrot.slane %v5391_v5, 4  ;;  %v5396_v35 = vrot.slane %v5394_v19, 5  ;;  %v5404_v13 = vshrl.u32 %v12087_v55, 16  ;;  %v5410_v43 = vshll.u32 %v12095_v46, 16 }
 0x297   : > { %v12228_v2 = vsel %vm11945_vm2, %v6150_v20, %v6151_v39  ;;  %v5402_v57 = vrot.slane %v5400_v59, 5  ;;  %v8883_v31 = vrot.slane %v6071_v53, 9  ;;  %v6155_v60 = vrot.slane %v12209_v34, 5  ;;  %v6072_v53 = vld [vmem:[#allocation2 + $0x3c] sm:$0xe] }
 0x298   : > { %v8899_v5 = vcombine.low %v12219_v50, %v12228_v2  ;;  %v5397_v19 = vor.u32 %v5396_v35, %v5393_v38  ;;  %v5406_v48 = vrot.slane %v5404_v13, 4  ;;  %v5412_v55 = vrot.slane %v5410_v43, 5  ;;  %v12241_v35 = vld [vmem:[#allocation2 + $0x40] sm:$0xf] }
 0x299   : > { %v12236_v46 = vsel %vm11945_vm2, %v8883_v31, %v6155_v60  ;;  %v6157_v3 = vrot.slane %v6155_v60, 4  ;;  %v6158_v39 = vrot.slane %v12224_v45, 5  ;;  %v5415_v20 = vshrl.u32 %v5345_v15, 16  ;;  %v12249_v60 = vld [vmem:[#allocation2 + $0x44] sm:$0x1] }
 0x29a   : > { %9849 = vmatmul.mubr.msk.bf16.gmra.mxu0 %vm325_vm1, %v10085_v63  ;;  %v5398_v59 = vrot.slane %v5397_v19, 4  ;;  %v5407_v41 = vor.u32 %v5406_v48, %v5402_v57  ;;  %v5418_v24 = vshll.u32 %v5345_v15, 16  ;;  %v5424_v38 = vshll.u32 %v12121_v47, 16  ;;  %v5348_v19 = vld [vmem:[#allocation2 + $0x24] sm:$0xf] }
 0x29b   : > { %9852 = vmatprep.mubr.msk.bf16.mxu0 %vm325_vm1, %v10086_v16  ;;  %v12245_v13 = vsel %vm11945_vm2, %v6157_v3, %v6158_v39  ;;  %v5417_v43 = vrot.slane %v5415_v20, 4  ;;  %v5428_v63 = vshrl.u32 %v12121_v47, 16  ;;  %v5434_v31 = vshll.u32 %v12133_v26, 16  ;;  %v10087_v20 = vld [vmem:[#allocation2 + $0xa8] sm:$0xff]  }
 0x29c   : > { %v5403_v48 = vsel %vm11074_vm10, %v5398_v59, %v5402_v57  ;;  %v5408_v15 = vrot.slane %v5407_v41, 4  ;;  %v8900_v3 = vcombine.low %v12236_v46, %v12245_v13  ;;  %v5420_v16 = vrot.slane %v5418_v24, 5 }
 0x29d   : > { %9807 = vmatmul.mubr.msk.bf16.gmra.mxu1 %vm325_vm1, %v8789_v4  ;;  %v5426_v47 = vrot.slane %v5424_v38, 5  ;;  %v5430_v26 = vrot.slane %v5428_v63, 4  ;;  %v5436_v39 = vrot.slane %v5434_v31, 5  ;;  %v8884_v62 = vrot.slane %v6072_v53, 9  ;;  %v5351_v63 = vld [vmem:[#allocation2 + $0x30] sm:$0xf] }
 0x29e   : > { %9810 = vmatprep.mubr.msk.bf16.mxu1 %vm325_vm1, %v8790_v12  ;;  %v5413_v42 = vsel %vm11074_vm10, %v5408_v15, %v5412_v55  ;;  %v5421_v4 = vor.u32 %v5420_v16, %v5417_v43  ;;  %v6162_v41 = vrot.slane %v12241_v35, 5  ;;  %v6165_v57 = vrot.slane %v12249_v60, 5  ;;  %v10088_v12 = vld [vmem:[#allocation2 + $0xb4] sm:$0xff]  }
 0x29f   : > { %v12267_v24 = vcombine.low %v5403_v48, %v5413_v42  ;;  %v5431_v59 = vor.u32 %v5430_v26, %v5426_v47  ;;  %v12271_v10 = vsel %vm374_vm0, %v12054_v21, 0  ;;  %v5439_v37 = vshrl.u32 %v5348_v19, 16  ;;  %v6073_v21 = vld [vmem:[#allocation2 + $0x48] sm:$0xe] }
 0x2a0   : > { %v5422_v38 = vrot.slane %v5421_v4, 4  ;;  %v12275_v53 = vsel %vm11945_vm2, %v8884_v62, %v6162_v41  ;;  %v6164_v55 = vrot.slane %v6162_v41, 4  ;;  %v5442_v43 = vshll.u32 %v5348_v19, 16  ;;  %v12288_v4 = vld [vmem:[#allocation2 + $0x4c] sm:$0xf] }
 0x2a1   : > { %v5432_v31 = vrot.slane %v5431_v59, 4  ;;  %v5441_v48 = vrot.slane %v5439_v37, 4  ;;  %v5448_v15 = vshll.u32 %v12163_v56, 16  ;;  %v5452_v16 = vshrl.u32 %v12163_v56, 16  ;;  %v12290_v41 = vld [vmem:[#allocation2 + $0x50] sm:$0x1] }
 0x2a2   : > { %9853 = vmatmul.mubr.msk.bf16.gmra.mxu0 %vm325_vm1, %v10087_v20  ;;  %v5427_v26 = vsel %vm11074_vm10, %v5422_v38, %v5426_v47  ;;  %v12285_v62 = vsel %vm11945_vm2, %v6164_v55, %v6165_v57  ;;  %v5444_v19 = vrot.slane %v5442_v43, 5  ;;  %v5458_v42 = vshll.u32 %v12171_v33, 16 }
 0x2a3   : > { %9856 = vmatprep.mubr.msk.bf16.mxu0 %vm325_vm1, %v10088_v12  ;;  %v5437_v56 = vsel %vm11074_vm10, %v5432_v31, %v5436_v39  ;;  %v8901_v20 = vcombine.low %v12275_v53, %v12285_v62  ;;  %v5450_v59 = vrot.slane %v5448_v15, 5  ;;  %v5454_v37 = vrot.slane %v5452_v16, 4  ;;  %v5354_v15 = vld [vmem:[#allocation2 + $0x3c] sm:$0xf]  ;;  %v10089_v16 = vld [vmem:[#allocation2 + $0xc0] sm:$0xff]  }
 0x2a4   : > { %v12300_v47 = vcombine.low %v5427_v26, %v5437_v56  ;;  %v5445_v33 = vor.u32 %v5444_v19, %v5441_v48  ;;  %v5460_v57 = vrot.slane %v5458_v42, 5  ;;  %v8885_v12 = vrot.slane %v6073_v21, 9  ;;  %v6074_v48 = vld [vmem:[#allocation2 + $0x54] sm:$0xe]  ;;  %v12314_v26 = vld [vmem:[#allocation2 + $0x58] sm:$0xf] }
 0x2a5   : > { %9811 = vmatmul.mubr.msk.bf16.gmra.mxu1 %vm325_vm1, %v8791_v11  ;;  %v5455_v39 = vor.u32 %v5454_v37, %v5450_v59  ;;  %v6169_v38 = vrot.slane %v12288_v4, 5  ;;  %v6172_v55 = vrot.slane %v12290_v41, 5  ;;  %v5463_v43 = vshrl.u32 %v5351_v63, 16  ;;  %v12318_v37 = vld [vmem:[#allocation2 + $0x5c] sm:$0x1] }
 0x2a6   : > { %9814 = vmatprep.mubr.msk.bf16.mxu1 %vm325_vm1, %v8792_v58  ;;  %v5446_v31 = vrot.slane %v5445_v33, 4  ;;  %v5466_v54 = vshll.u32 %v5351_v63, 16  ;;  %v5472_v6 = vshll.u32 %v12209_v34, 16  ;;  %v5476_v11 = vshrl.u32 %v12209_v34, 16 }
 0x2a7   : > { %v5456_v21 = vrot.slane %v5455_v39, 4  ;;  %v12312_v28 = vsel %vm11945_vm2, %v8885_v12, %v6169_v38  ;;  %v6171_v32 = vrot.slane %v6169_v38, 4  ;;  %v5465_v58 = vrot.slane %v5463_v43, 4 }
 0x2a8   : > { %v5451_v19 = vsel %vm11074_vm10, %v5446_v31, %v5450_v59  ;;  %v5468_v63 = vrot.slane %v5466_v54, 5  ;;  %v5474_v42 = vrot.slane %v5472_v6, 5  ;;  %v5478_v56 = vrot.slane %v5476_v11, 4  ;;  %v12343_v11 = vld [vmem:[#allocation2 + $0x64] sm:$0xf] }
 0x2a9   : > { %v5461_v34 = vsel %vm11074_vm10, %v5456_v21, %v5460_v57  ;;  %v12325_v33 = vsel %vm11945_vm2, %v6171_v32, %v6172_v55  ;;  %v5482_v12 = vshll.u32 %v12224_v45, 16  ;;  %v8886_v39 = vrot.slane %v6074_v48, 9 }
 0x2aa   : > { %9857 = vmatmul.mubr.msk.bf16.gmra.mxu0 %vm325_vm1, %v10089_v16  ;;  %v12332_v59 = vcombine.low %v5451_v19, %v5461_v34  ;;  %v8902_v38 = vcombine.low %v12312_v28, %v12325_v33  ;;  %v5469_v43 = vor.u32 %v5468_v63, %v5465_v58  ;;  %v5479_v31 = vor.u32 %v5478_v56, %v5474_v42 }
 0x2ab   : > { %9896 = vmatprep.mubr.msk.bf16.mxu0 %vm325_vm1, %v8897_v9  ;;  %v5484_v57 = vrot.slane %v5482_v12, 5  ;;  %v6176_v54 = vrot.slane %v12314_v26, 5  ;;  %v6179_v55 = vrot.slane %v12318_v37, 5  ;;  %v5487_v6 = vshrl.u32 %v5354_v15, 16 }
 0x2ac   : > { %v5470_v14 = vrot.slane %v5469_v43, 4  ;;  %v5480_v51 = vrot.slane %v5479_v31, 4  ;;  %v5490_v9 = vshll.u32 %v5354_v15, 16  ;;  %v5496_v45 = vshll.u32 %v12241_v35, 16 }
 0x2ad   : > { %9815 = vmatmul.mubr.msk.bf16.gmra.mxu1 %vm325_vm1, %v8793_v17  ;;  %v12351_v48 = vsel %vm11945_vm2, %v8886_v39, %v6176_v54  ;;  %v6178_v16 = vrot.slane %v6176_v54, 4  ;;  %v5489_v7 = vrot.slane %v5487_v6, 4  ;;  %v5500_v30 = vshrl.u32 %v12241_v35, 16  ;;  %v6075_v17 = vld [vmem:[#allocation2 + $0x60] sm:$0xe] }
 0x2ae   : > { %9818 = vmatprep.mubr.msk.bf16.mxu1 %vm325_vm1, %v8794_v0  ;;  %v5475_v15 = vsel %vm11074_vm10, %v5470_v14, %v5474_v42  ;;  %v5485_v21 = vsel %vm11074_vm10, %v5480_v51, %v5484_v57  ;;  %v5492_v32 = vrot.slane %v5490_v9, 5  ;;  %v5498_v58 = vrot.slane %v5496_v45, 5 }
 0x2af   : > { %v12360_v0 = vcombine.low %v5475_v15, %v5485_v21  ;;  %v12364_v19 = vsel %vm11945_vm2, %v6178_v16, %v6179_v55  ;;  %v5502_v63 = vrot.slane %v5500_v30, 4  ;;  %v5506_v35 = vshll.u32 %v12249_v60, 16  ;;  %v6076_v16 = vld [vmem:[#allocation2 + $0x6c] sm:$0xe]  ;;  %v12398_v15 = vld [vmem:[#allocation2 + $0x74] sm:$0x1] }
 0x2b0   : > { %v8903_v42 = vcombine.low %v12351_v48, %v12364_v19  ;;  %v5493_v56 = vor.u32 %v5492_v32, %v5489_v7  ;;  %v8887_v34 = vrot.slane %v6075_v17, 9  ;;  %v6183_v12 = vrot.slane %v12343_v11, 5  ;;  %v12396_v17 = vld [vmem:[#allocation2 + $0x70] sm:$0xf] }
 0x2b1   : > { %v14132_v39 = vcombine.low %v12183_v18, %v12195_v25  ;;  %v5503_v43 = vor.u32 %v5502_v63, %v5498_v58  ;;  %v5508_v31 = vrot.slane %v5506_v35, 5  ;;  %v6186_v57 = vrot.slane %v12358_v44, 5  ;;  %v5360_v18 = vld [vmem:[#allocation2 + $0x54] sm:$0xf] }
 0x2b2   : > { %v5511_v54 = vshrl.u32 %v5357_v29, 16  ;;  %v5494_v60 = vrot.slane %v5493_v56, 4  ;;  %v12381_v55 = vsel %vm11945_vm2, %v8887_v34, %v6183_v12  ;;  %v6185_v6 = vrot.slane %v6183_v12, 4 }
 0x2b3   : > { %9897 = vmatmul.mubr.msk.bf16.vlgmr.msra.gmra.mxu0 %vm325_vm1, %v14132_v39  ;;  %v5514_v14 = vshll.u32 %v5357_v29, 16  ;;  %v5504_v25 = vrot.slane %v5503_v43, 4  ;;  %v5520_v9 = vshll.u32 %v12288_v4, 16  ;;  %v5524_v45 = vshrl.u32 %v12288_v4, 16 }
 0x2b4   : > { %9900 = vmatprep.mubr.msk.bf16.mxu0 %vm325_vm1, %v8899_v5  ;;  %v5513_v51 = vrot.slane %v5511_v54, 4  ;;  %v14133_v50 = vcombine.low %v12119_v52, %v12143_v40  ;;  %v5499_v2 = vsel %vm11074_vm10, %v5494_v60, %v5498_v58  ;;  %v12393_v5 = vsel %vm11945_vm2, %v6185_v6, %v6186_v57  ;;  %v5363_v57 = vld [vmem:[#allocation2 + $0x60] sm:$0xf] }
 0x2b5   : > { %v5516_v7 = vrot.slane %v5514_v14, 5  ;;  %v5530_v30 = vshll.u32 %v12290_v41, 16  ;;  %v14134_v4 = vcombine.low %v12160_v27, %v12179_v22  ;;  %v5509_v52 = vsel %vm11074_vm10, %v5504_v25, %v5508_v31  ;;  %v6077_v31 = vld [vmem:[#allocation2 + $0x78] sm:$0xe]  ;;  %v12422_v25 = vld [vmem:[#allocation2 + $0x7c] sm:$0xf] }
 0x2b6   : > { %9819 = vmatmul.mubr.msk.bf16.gmra.mxu1 %vm325_vm1, %v14133_v50  ;;  %v8904_v40 = vcombine.low %v12381_v55, %v12393_v5  ;;  %v5522_v21 = vrot.slane %v5520_v9, 5  ;;  %v5526_v32 = vrot.slane %v5524_v45, 4  ;;  %v12408_v58 = vcombine.low %v5499_v2, %v5509_v52  ;;  %v6080_v55 = vld [vmem:[#allocation2 + $0x9c] sm:$0xe]  ;;  %v5372_v5 = vld [vmem:[#allocation2 + $0x84] sm:$0xf] }
 0x2b7   : > { %9822 = vmatprep.mubr.msk.bf16.mxu1 %vm325_vm1, %v14134_v4  ;;  %v5517_v41 = vor.u32 %v5516_v7, %v5513_v51  ;;  %v5532_v29 = vrot.slane %v5530_v30, 5  ;;  %v8888_v63 = vrot.slane %v6076_v16, 9  ;;  %v6190_v56 = vrot.slane %v12396_v17, 5 }
 0x2b8   : > { %v5527_v35 = vor.u32 %v5526_v32, %v5522_v21  ;;  %v6193_v27 = vrot.slane %v12398_v15, 5  ;;  %v5535_v22 = vshrl.u32 %v5360_v18, 16  ;;  %v5538_v12 = vshll.u32 %v5360_v18, 16  ;;  %v12430_v18 = vld [vmem:[#allocation2 + $0x80] sm:$0x1] }
 0x2b9   : > { %v5518_v34 = vrot.slane %v5517_v41, 4  ;;  %v5544_v39 = vshll.u32 %v12314_v26, 16  ;;  %v5548_v43 = vshrl.u32 %v12314_v26, 16  ;;  %v12420_v60 = vsel %vm11945_vm2, %v8888_v63, %v6190_v56  ;;  %v6078_v32 = vld [vmem:[#allocation2 + $0x84] sm:$0xe] }
 0x2ba   : > { %v5528_v54 = vrot.slane %v5527_v35, 4  ;;  %v6192_v6 = vrot.slane %v6190_v56, 4  ;;  %v5537_v14 = vrot.slane %v5535_v22, 4  ;;  %v5540_v46 = vrot.slane %v5538_v12, 5  ;;  %v12457_v35 = vld [vmem:[#allocation2 + $0x88] sm:$0xf] }
 0x2bb   : > { %9901 = vmatmul.mubr.msk.bf16.gmra.mxu0 %vm325_vm1, %v8900_v3  ;;  %v5523_v26 = vsel %vm11074_vm10, %v5518_v34, %v5522_v21  ;;  %v5546_v13 = vrot.slane %v5544_v39, 5  ;;  %v5550_v3 = vrot.slane %v5548_v43, 4  ;;  %v5554_v45 = vshll.u32 %v12318_v37, 16  ;;  %v12463_v12 = vld [vmem:[#allocation2 + $0x8c] sm:$0x1] }
 0x2bc   : > { %9904 = vmatprep.mubr.msk.bf16.mxu0 %vm325_vm1, %v8901_v20  ;;  %v5533_v51 = vsel %vm11074_vm10, %v5528_v54, %v5532_v29  ;;  %v12436_v9 = vsel %vm11945_vm2, %v6192_v6, %v6193_v27  ;;  %v8889_v53 = vrot.slane %v6077_v31, 9  ;;  %v14135_v62 = vcombine.low %v12190_v36, %v12207_v23  ;;  %v5366_v39 = vld [vmem:[#allocation2 + $0x6c] sm:$0xf] }
 0x2bd   : > { %v12443_v20 = vcombine.low %v5523_v26, %v5533_v51  ;;  %v8905_v16 = vcombine.low %v12420_v60, %v12436_v9  ;;  %v5541_v50 = vor.u32 %v5540_v46, %v5537_v14  ;;  %v5551_v2 = vor.u32 %v5550_v3, %v5546_v13  ;;  %v6079_v3 = vld [vmem:[#allocation2 + $0x90] sm:$0xe]  ;;  %v12537_v60 = vld [vmem:[#allocation2 + $0xa0] sm:$0xf] }
 0x2be   : > { %9823 = vmatmul.mubr.msk.bf16.gmra.mxu1 %vm325_vm1, %v14135_v62  ;;  %v5556_v7 = vrot.slane %v5554_v45, 5  ;;  %v6197_v30 = vrot.slane %v12422_v25, 5  ;;  %v6200_v37 = vrot.slane %v12430_v18, 5  ;;  %v5559_v4 = vshrl.u32 %v5363_v57, 16 }
 0x2bf   : > { %9862 = vmatprep.mubr.msk.bf16.mxu1 %vm325_vm1, %v12267_v24  ;;  %v5542_v52 = vrot.slane %v5541_v50, 4  ;;  %v5552_v36 = vrot.slane %v5551_v2, 4  ;;  %v5562_v23 = vshll.u32 %v5363_v57, 16  ;;  %v5568_v21 = vshll.u32 %v12343_v11, 16 }
 0x2c0   : > { %v12454_v41 = vsel %vm11945_vm2, %v8889_v53, %v6197_v30  ;;  %v6199_v29 = vrot.slane %v6197_v30, 4  ;;  %v5561_v63 = vrot.slane %v5559_v4, 4  ;;  %v5572_v24 = vshrl.u32 %v12343_v11, 16  ;;  %v12507_v30 = vld [vmem:[#allocation2 + $0x94] sm:$0xf] }
 0x2c1   : > { %v5547_v56 = vsel %vm11074_vm10, %v5542_v52, %v5546_v13  ;;  %v5557_v27 = vsel %vm11074_vm10, %v5552_v36, %v5556_v7  ;;  %v5564_v22 = vrot.slane %v5562_v23, 5  ;;  %v5570_v34 = vrot.slane %v5568_v21, 5 }
 0x2c2   : > { %v12469_v43 = vcombine.low %v5547_v56, %v5557_v27  ;;  %v12473_v11 = vsel %vm11945_vm2, %v6199_v29, %v6200_v37  ;;  %v5574_v31 = vrot.slane %v5572_v24, 4  ;;  %v5578_v57 = vshll.u32 %v12358_v44, 16  ;;  %v12487_v44 = vld [vmem:[%s13988_s3 + $0x10] sm:$0x3] }
 0x2c3   : > { %9905 = vmatmul.mubr.msk.bf16.gmra.mxu0 %vm325_vm1, %v8902_v38  ;;  %v8906_v54 = vcombine.low %v12454_v41, %v12473_v11  ;;  %v5565_v28 = vor.u32 %v5564_v22, %v5561_v63  ;;  %v8890_v33 = vrot.slane %v6078_v32, 9  ;;  %v6204_v38 = vrot.slane %v12457_v35, 5 }
 0x2c4   : > { %9908 = vmatprep.mubr.msk.bf16.mxu0 %vm325_vm1, %v8903_v42  ;;  %v5575_v6 = vor.u32 %v5574_v31, %v5570_v34  ;;  %v5580_v14 = vrot.slane %v5578_v57, 5  ;;  %v6207_v26 = vrot.slane %v12463_v12, 5  ;;  %v5583_v46 = vshrl.u32 %v5366_v39, 16 }
 0x2c5   : > { %v5566_v48 = vrot.slane %v5565_v28, 4  ;;  %v12493_v19 = vsel %vm11945_vm2, %v8890_v33, %v6204_v38  ;;  %v6206_v42 = vrot.slane %v6204_v38, 4  ;;  %v5586_v13 = vshll.u32 %v5366_v39, 16  ;;  %v12543_v38 = vld [vmem:[#allocation2 + $0xa4] sm:$0x1] }
 0x2c6   : > { %9863 = vmatmul.mubr.msk.bf16.vlgmr.msra.gmra.mxu1 %vm325_vm1, %v12300_v47  ;;  %v5576_v51 = vrot.slane %v5575_v6, 4  ;;  %v5585_v45 = vrot.slane %v5583_v46, 4  ;;  %v5592_v53 = vshll.u32 %v12396_v17, 16  ;;  %v5596_v62 = vshrl.u32 %v12396_v17, 16  ;;  %v5369_v47 = vld [vmem:[#allocation2 + $0x78] sm:$0xf] }
 0x2c7   : > { %9929 = vmatpush3.bf16.msra.mxu1 %v12271_v10  ;;  %9866 = vmatprep.mubr.msk.bf16.mxu1 %vm325_vm1, %v12332_v59  ;;  %v5571_v50 = vsel %vm11074_vm10, %v5566_v48, %v5570_v34  ;;  %v12504_v2 = vsel %vm11945_vm2, %v6206_v42, %v6207_v26  ;;  %v5588_v7 = vrot.slane %v5586_v13, 5  ;;  %v5602_v10 = vshll.u32 %v12398_v15, 16  ;;  %v12509_v59 = vld [vmem:[#allocation2 + $0x98] sm:$0x1] }
 0x2c8   : > { %10047 = vmatprep.subr.msk.bf16.mxu1 %vm374_vm0, %v12487_v44  ;;  %v5581_v17 = vsel %vm11074_vm10, %v5576_v51, %v5580_v14  ;;  %v8907_v37 = vcombine.low %v12493_v19, %v12504_v2  ;;  %v5594_v4 = vrot.slane %v5592_v53, 5  ;;  %v5598_v52 = vrot.slane %v5596_v62, 4 }
 0x2c9   : > { %v12517_v36 = vcombine.low %v5571_v50, %v5581_v17  ;;  %v5589_v23 = vor.u32 %v5588_v7, %v5585_v45  ;;  %v5604_v21 = vrot.slane %v5602_v10, 5  ;;  %v8891_v15 = vrot.slane %v6079_v3, 9  ;;  %v6081_v50 = vld [vmem:[#allocation2 + $0xa8] sm:$0xe] }
 0x2ca   : > { %v5599_v32 = vor.u32 %v5598_v52, %v5594_v4  ;;  %v6211_v29 = vrot.slane %v12507_v30, 5  ;;  %v6214_v63 = vrot.slane %v12509_v59, 5  ;;  %v5607_v24 = vshrl.u32 %v5369_v47, 16 }
 0x2cb   : > { %9909 = vmatmul.mubr.msk.bf16.gmra.mxu0 %vm325_vm1, %v8904_v40  ;;  %v5590_v56 = vrot.slane %v5589_v23, 4  ;;  %v5610_v27 = vshll.u32 %v5369_v47, 16  ;;  %v5616_v22 = vshll.u32 %v12422_v25, 16  ;;  %v5620_v34 = vshrl.u32 %v12422_v25, 16  ;;  %v12531_v40 = vpop.f32.mrf.mxu0 }
 0x2cc   : > { %9912 = vmatprep.mubr.msk.bf16.mxu0 %vm325_vm1, %v8905_v16  ;;  %v5600_v39 = vrot.slane %v5599_v32, 4  ;;  %v12535_v31 = vsel %vm11945_vm2, %v8891_v15, %v6211_v29  ;;  %v6213_v57 = vrot.slane %v6211_v29, 4  ;;  %v5609_v28 = vrot.slane %v5607_v24, 4 }
 0x2cd   : > { %v5595_v9 = vsel %vm11074_vm10, %v5590_v56, %v5594_v4  ;;  %v5612_v25 = vrot.slane %v5610_v27, 5  ;;  %v5618_v16 = vrot.slane %v5616_v22, 5  ;;  %v5622_v33 = vrot.slane %v5620_v34, 4  ;;  %v12558_v13 = vpop.f32.mrf.mxu0  ;;  %v12570_v4 = vld [vmem:[#allocation2 + $0xac] sm:$0xf] }
 0x2ce   : > { %9867 = vmatmul.mubr.msk.bf16.gmra.mxu1 %vm325_vm1, %v12360_v0  ;;  %v5605_v6 = vsel %vm11074_vm10, %v5600_v39, %v5604_v21  ;;  %v12551_v14 = vsel %vm11945_vm2, %v6213_v57, %v6214_v63  ;;  %v5626_v0 = vshll.u32 %v12430_v18, 16  ;;  %v8892_v26 = vrot.slane %v6080_v55, 9  ;;  %v5375_v21 = vld [vmem:[#allocation2 + $0x90] sm:$0xf] }
 0x2cf   : > { %9870 = vmatprep.mubr.msk.bf16.mxu1 %vm325_vm1, %v12408_v58  ;;  %v12554_v46 = vcombine.low %v5595_v9, %v5605_v6  ;;  %v8908_v48 = vcombine.low %v12535_v31, %v12551_v14  ;;  %v5613_v19 = vor.u32 %v5612_v25, %v5609_v28  ;;  %v5623_v42 = vor.u32 %v5622_v33, %v5618_v16  ;;  %v12579_v15 = vpop.f32.mrf.mxu0  ;;  %v6082_v33 = vld [vmem:[#allocation2 + $0xb4] sm:$0xe] }
 0x2d0   : > { %v5628_v58 = vrot.slane %v5626_v0, 5  ;;  %v6218_v3 = vrot.slane %v12537_v60, 5  ;;  %v6221_v51 = vrot.slane %v12543_v38, 5  ;;  %v5631_v45 = vshrl.u32 %v5372_v5, 16 }
 0x2d1   : > { %v5614_v53 = vrot.slane %v5613_v19, 4  ;;  %v5624_v62 = vrot.slane %v5623_v42, 4  ;;  %v5634_v47 = vshll.u32 %v5372_v5, 16  ;;  %v5640_v18 = vshll.u32 %v12457_v35, 16  ;;  %v12594_v28 = vpop.f32.mrf.mxu0  ;;  %v12603_v19 = vld [vmem:[#allocation2 + $0xb8] sm:$0xf] }
 0x2d2   : > { %v6219_v2 = vsel %vm11945_vm2, %v8892_v26, %v6218_v3  ;;  %v6220_v7 = vrot.slane %v6218_v3, 4  ;;  %v5633_v10 = vrot.slane %v5631_v45, 4  ;;  %v5644_v17 = vshrl.u32 %v12457_v35, 16  ;;  %v12605_v42 = vld [vmem:[#allocation2 + $0xbc] sm:$0x1] }
 0x2d3   : > { %9913 = vmatmul.mubr.msk.bf16.gmra.mxu0 %vm325_vm1, %v8906_v54  ;;  %v5619_v52 = vsel %vm11074_vm10, %v5614_v53, %v5618_v16  ;;  %v5629_v23 = vsel %vm11074_vm10, %v5624_v62, %v5628_v58  ;;  %v5636_v41 = vrot.slane %v5634_v47, 5  ;;  %v5642_v11 = vrot.slane %v5640_v18, 5  ;;  %v12577_v54 = vld [vmem:[#allocation2 + $0xb0] sm:$0x1]  ;;  %v12611_v18 = vpop.f32.mrf.mxu0 }
 0x2d4   : > { %9916 = vmatprep.mubr.msk.bf16.mxu0 %vm325_vm1, %v8907_v37  ;;  %v12581_v32 = vcombine.low %v5619_v52, %v5629_v23  ;;  %v6222_v35 = vsel %vm11945_vm2, %v6220_v7, %v6221_v51  ;;  %v5646_v29 = vrot.slane %v5644_v17, 4  ;;  %v5650_v37 = vshll.u32 %v12463_v12, 16  ;;  %v6083_v23 = vld [vmem:[#allocation2 + $0xc0] sm:$0xe] }
 0x2d5   : > { %v8909_v63 = vcombine.low %v6219_v2, %v6222_v35  ;;  %v5637_v24 = vor.u32 %v5636_v41, %v5633_v10  ;;  %v8893_v56 = vrot.slane %v6081_v50, 9  ;;  %v6225_v27 = vrot.slane %v12570_v4, 5  ;;  %v5381_v41 = vld [vmem:[#allocation2 + $0xa8] sm:$0xf] }
 0x2d6   : > { %9871 = vmatmul.mubr.msk.bf16.gmra.mxu1 %vm325_vm1, %v12443_v20  ;;  %v5647_v22 = vor.u32 %v5646_v29, %v5642_v11  ;;  %v5652_v34 = vrot.slane %v5650_v37, 5  ;;  %v6228_v55 = vrot.slane %v12577_v54, 5  ;;  %v5655_v5 = vshrl.u32 %v5375_v21, 16  ;;  %v5378_v20 = vld [vmem:[#allocation2 + $0x9c] sm:$0xf] }
 0x2d7   : > { %9874 = vmatprep.mubr.msk.bf16.mxu1 %vm325_vm1, %v12469_v43  ;;  %v5638_v39 = vrot.slane %v5637_v24, 4  ;;  %v6226_v12 = vsel %vm11945_vm2, %v8893_v56, %v6225_v27  ;;  %v6227_v31 = vrot.slane %v6225_v27, 4  ;;  %v5658_v57 = vshll.u32 %v5375_v21, 16  ;;  %v12623_v37 = vld [vmem:[#allocation2 + $0xc4] sm:$0xf]  ;;  %v12629_v27 = vpop.f32.mrf.mxu0 }
 0x2d8   : > { %v5648_v9 = vrot.slane %v5647_v22, 4  ;;  %v5657_v25 = vrot.slane %v5655_v5, 4  ;;  %v5664_v16 = vshll.u32 %v12507_v30, 16  ;;  %v5668_v43 = vshrl.u32 %v12507_v30, 16 }
 0x2d9   : > { %v5643_v6 = vsel %vm11074_vm10, %v5638_v39, %v5642_v11  ;;  %v6229_v14 = vsel %vm11945_vm2, %v6227_v31, %v6228_v55  ;;  %v5660_v0 = vrot.slane %v5658_v57, 5  ;;  %v5674_v26 = vshll.u32 %v12509_v59, 16 }
 0x2da   : > { %v5653_v58 = vsel %vm11074_vm10, %v5648_v9, %v5652_v34  ;;  %v8910_v30 = vcombine.low %v6226_v12, %v6229_v14  ;;  %v5666_v3 = vrot.slane %v5664_v16, 5  ;;  %v5670_v51 = vrot.slane %v5668_v43, 4 }
 0x2db   : > { %9917 = vmatmul.mubr.msk.bf16.gmra.mxu0 %vm325_vm1, %v8908_v48  ;;  %v8858_v45 = vcombine.low %v5643_v6, %v5653_v58  ;;  %v5661_v53 = vor.u32 %v5660_v0, %v5657_v25  ;;  %v5676_v62 = vrot.slane %v5674_v26, 5  ;;  %v8894_v47 = vrot.slane %v6082_v33, 9  ;;  %v12643_v6 = vpop.f32.mrf.mxu0 }
 0x2dc   : > { %9920 = vmatprep.mubr.msk.bf16.mxu0 %vm325_vm1, %v8909_v63  ;;  %v5671_v59 = vor.u32 %v5670_v51, %v5666_v3  ;;  %v6232_v50 = vrot.slane %v12603_v19, 5  ;;  %v6235_v2 = vrot.slane %v12605_v42, 5  ;;  %v5679_v48 = vshrl.u32 %v5378_v20, 16 }
 0x2dd   : > { %v5662_v7 = vrot.slane %v5661_v53, 4  ;;  %v5682_v10 = vshll.u32 %v5378_v20, 16  ;;  %v5688_v17 = vshll.u32 %v12537_v60, 16  ;;  %v5692_v52 = vshrl.u32 %v12537_v60, 16  ;;  %v12627_v60 = vld [vmem:[#allocation2 + $0xc8] sm:$0x1] }
 0x2de   : > { %9875 = vmatmul.mubr.msk.bf16.gmra.mxu1 %vm325_vm1, %v12517_v36  ;;  %v5672_v11 = vrot.slane %v5671_v59, 4  ;;  %v6233_v21 = vsel %vm11945_vm2, %v8894_v47, %v6232_v50  ;;  %v6234_v35 = vrot.slane %v6232_v50, 4  ;;  %v5681_v29 = vrot.slane %v5679_v48, 4  ;;  %v12654_v47 = vld [vmem:[#allocation2 + $0x1c] sm:$0xf] }
 0x2df   : > { %9878 = vmatprep.mubr.msk.bf16.mxu1 %vm325_vm1, %v12554_v46  ;;  %v5667_v36 = vsel %vm11074_vm10, %v5662_v7, %v5666_v3  ;;  %v5684_v63 = vrot.slane %v5682_v10, 5  ;;  %v5690_v24 = vrot.slane %v5688_v17, 5  ;;  %v5694_v56 = vrot.slane %v5692_v52, 4  ;;  %v5384_v52 = vld [vmem:[#allocation2 + $0xb4] sm:$0xf] }
 0x2e0   : > { %v5677_v46 = vsel %vm11074_vm10, %v5672_v11, %v5676_v62  ;;  %v6236_v22 = vsel %vm11945_vm2, %v6234_v35, %v6235_v2  ;;  %v5698_v34 = vshll.u32 %v12543_v38, 16  ;;  %v8895_v55 = vrot.slane %v6083_v23, 9  ;;  %v12662_v23 = vpop.f32.mrf.mxu1 }
 0x2e1   : > { %v12636_v5 = vcombine.low %v5667_v36, %v5677_v46  ;;  %v8911_v39 = vcombine.low %v6233_v21, %v6236_v22  ;;  %v5685_v12 = vor.u32 %v5684_v63, %v5681_v29  ;;  %v5695_v31 = vor.u32 %v5694_v56, %v5690_v24 }
 0x2e2   : > { %v5700_v57 = vrot.slane %v5698_v34, 5  ;;  %v6239_v20 = vrot.slane %v12623_v37, 5  ;;  %v6242_v9 = vrot.slane %v12627_v60, 5  ;;  %v5703_v25 = vshrl.u32 %v5381_v41, 16 }
 0x2e3   : > { %9921 = vmatmul.mubr.msk.bf16.gmra.mxu0 %vm325_vm1, %v8910_v30  ;;  %v5686_v16 = vrot.slane %v5685_v12, 4  ;;  %v5696_v43 = vrot.slane %v5695_v31, 4  ;;  %v5706_v33 = vshll.u32 %v5381_v41, 16  ;;  %v5712_v38 = vshll.u32 %v12570_v4, 16  ;;  %v6897_v30 = vld [vmem:[#allocation2 + $0x18] sm:$0xf]  ;;  %v12664_v41 = vpop.f32.mrf.mxu0  ;;  %v12672_v31 = vpop.f32.mrf.mxu1 }
 0x2e4   : > { %9924 = vmatprep.mubr.msk.bf16.mxu0 %vm325_vm1, %v8911_v39  ;;  %v6240_v14 = vsel %vm11945_vm2, %v8895_v55, %v6239_v20  ;;  %v6241_v0 = vrot.slane %v6239_v20, 4  ;;  %v5705_v26 = vrot.slane %v5703_v25, 4  ;;  %v5716_v58 = vshrl.u32 %v12570_v4, 16 }
 0x2e5   : > { %v5691_v3 = vsel %vm11074_vm10, %v5686_v16, %v5690_v24  ;;  %v5701_v51 = vsel %vm11074_vm10, %v5696_v43, %v5700_v57  ;;  %v5708_v53 = vrot.slane %v5706_v33, 5  ;;  %v5714_v62 = vrot.slane %v5712_v38, 5  ;;  %v6900_v43 = vld [vmem:[#allocation2 + $0x24] sm:$0xf] }
 0x2e6   : > { %9879 = vmatmul.mubr.msk.bf16.gmra.mxu1 %vm325_vm1, %v12581_v32  ;;  %v8860_v59 = vcombine.low %v5691_v3, %v5701_v51  ;;  %v6243_v4 = vsel %vm11945_vm2, %v6241_v0, %v6242_v9  ;;  %v5718_v50 = vrot.slane %v5716_v58, 4  ;;  %v5722_v2 = vshll.u32 %v12577_v54, 16  ;;  %v12660_v32 = vld [vmem:[#allocation2 + $0x20] sm:$0x1]  ;;  %v12674_v57 = vpop.f32.mrf.mxu0  ;;  %v10117_v51 = vld [vmem:[%s13988_s3 + $0xe] sm:$0x3] }
 0x2e7   : > { %9882 = vmatprep.mubr.msk.bf16.mxu1 %vm325_vm1, %v8858_v45  ;;  %v8912_v48 = vcombine.low %v6240_v14, %v6243_v4  ;;  %v5709_v7 = vor.u32 %v5708_v53, %v5705_v26  ;;  %v6946_v10 = vshrl.u32 %v6897_v30, 16  ;;  %v6949_v17 = vshll.u32 %v6897_v30, 16  ;;  %v12682_v26 = vld [vmem:[#allocation2 + $0x28] sm:$0xf] }
 0x2e8   : > { %v5719_v11 = vor.u32 %v5718_v50, %v5714_v62  ;;  %v5724_v45 = vrot.slane %v5722_v2, 5  ;;  %v6955_v21 = vshll.u32 %v12654_v47, 16  ;;  %v6959_v35 = vshrl.u32 %v12654_v47, 16  ;;  %v12696_v2 = vpop.f32.mrf.mxu0 }
 0x2e9   : > { %v5710_v29 = vrot.slane %v5709_v7, 4  ;;  %v6948_v36 = vrot.slane %v6946_v10, 4  ;;  %v6951_v54 = vrot.slane %v6949_v17, 5  ;;  %v6965_v63 = vshll.u32 %v12660_v32, 16  ;;  %v5387_v17 = vld [vmem:[#allocation2 + $0xc0] sm:$0xf] }
 0x2ea   : > { %v5720_v24 = vrot.slane %v5719_v11, 4  ;;  %v6957_v56 = vrot.slane %v6955_v21, 5  ;;  %v6961_v46 = vrot.slane %v6959_v35, 4  ;;  %v5727_v22 = vshrl.u32 %v5384_v52, 16 }
 0x2eb   : > { %9925 = vmatmul.mubr.msk.bf16.gmra.mxu0 %vm325_vm1, %v8912_v48  ;;  %v5715_v34 = vsel %vm11074_vm10, %v5710_v29, %v5714_v62  ;;  %v6952_v55 = vor.u32 %v6951_v54, %v6948_v36  ;;  %v6967_v39 = vrot.slane %v6965_v63, 5  ;;  %v5730_v12 = vshll.u32 %v5384_v52, 16 }
 0x2ec   : > { %v5725_v20 = vsel %vm11074_vm10, %v5720_v24, %v5724_v45  ;;  %v6962_v9 = vor.u32 %v6961_v46, %v6957_v56  ;;  %v5729_v25 = vrot.slane %v5727_v22, 4  ;;  %v5736_v16 = vshll.u32 %v12603_v19, 16 }
 0x2ed   : > { %v8861_v33 = vcombine.low %v5715_v34, %v5725_v20  ;;  %v6953_v38 = vrot.slane %v6952_v55, 4  ;;  %v5732_v14 = vrot.slane %v5730_v12, 5  ;;  %v5740_v0 = vshrl.u32 %v12603_v19, 16  ;;  %v12692_v19 = vld [vmem:[#allocation2 + $0x2c] sm:$0x1]  ;;  %v12708_v34 = vpop.f32.mrf.mxu0 }
 0x2ee   : > { %9883 = vmatmul.mubr.msk.bf16.gmra.mxu1 %vm325_vm1, %v12636_v5  ;;  %v6963_v58 = vrot.slane %v6962_v9, 4  ;;  %v5738_v30 = vrot.slane %v5736_v16, 5  ;;  %v5746_v3 = vshll.u32 %v12605_v42, 16  ;;  %v7428_v53 = vsel %vm374_vm0, %v10117_v51, 0  ;;  %v6903_v9 = vld [vmem:[#allocation2 + $0x30] sm:$0xf] }
 0x2ef   : > { %9886 = vmatprep.mubr.msk.bf16.mxu1 %vm325_vm1, %v8860_v59  ;;  %v6958_v5 = vsel %vm11074_vm10, %v6953_v38, %v6957_v56  ;;  %v5733_v62 = vor.u32 %v5732_v14, %v5729_v25  ;;  %v5742_v4 = vrot.slane %v5740_v0, 4  ;;  %9963 = vmatpush3.bf16.msra.mxu0 %v7428_v53  ;;  %v6970_v50 = vshrl.u32 %v6900_v43, 16  ;;  %v12694_v59 = vpop.f32.mrf.mxu1  ;;  %v12715_v14 = vld [vmem:[#allocation2 + $0x34] sm:$0xf] }
 0x2f0   : > { %v6968_v42 = vsel %vm11074_vm10, %v6963_v58, %v6967_v39  ;;  %v5748_v48 = vrot.slane %v5746_v3, 5  ;;  %v6973_v7 = vshll.u32 %v6900_v43, 16  ;;  %v6979_v10 = vshll.u32 %v12682_v26, 16 }
 0x2f1   : > { %v8963_v52 = vcombine.low %v6958_v5, %v6968_v42  ;;  %v5734_v11 = vrot.slane %v5733_v62, 4  ;;  %v5743_v45 = vor.u32 %v5742_v4, %v5738_v30  ;;  %v6972_v21 = vrot.slane %v6970_v50, 4  ;;  %v12706_v22 = vpop.f32.mrf.mxu1  ;;  %v12725_v42 = vld [vmem:[#allocation2 + $0x38] sm:$0x1] }
 0x2f2   : > { %v6975_v35 = vrot.slane %v6973_v7, 5  ;;  %v6981_v29 = vrot.slane %v6979_v10, 5  ;;  %v6983_v36 = vshrl.u32 %v12682_v26, 16  ;;  %v6989_v54 = vshll.u32 %v12692_v19, 16 }
 0x2f3   : > { %9964 = vmatprep.mubr.msk.bf16.mxu0 %vm325_vm1, %v8963_v52  ;;  %v5739_v63 = vsel %vm11074_vm10, %v5734_v11, %v5738_v30  ;;  %v5744_v24 = vrot.slane %v5743_v45, 4  ;;  %v5751_v56 = vshrl.u32 %v5387_v17, 16  ;;  %v5754_v46 = vshll.u32 %v5387_v17, 16  ;;  %v12718_v4 = vpop.f32.mrf.mxu1  ;;  %v6906_v11 = vld [vmem:[#allocation2 + $0x3c] sm:$0xf] }
 0x2f4   : > { %v6976_v55 = vor.u32 %v6975_v35, %v6972_v21  ;;  %v6985_v39 = vrot.slane %v6983_v36, 4  ;;  %v6991_v12 = vrot.slane %v6989_v54, 5  ;;  %v5760_v20 = vshll.u32 %v12623_v37, 16  ;;  %v12731_v54 = vld [vmem:[#allocation2 + $0x40] sm:$0xf] }
 0x2f5   : > { %v5749_v25 = vsel %vm11074_vm10, %v5744_v24, %v5748_v48  ;;  %v5753_v16 = vrot.slane %v5751_v56, 4  ;;  %v5756_v43 = vrot.slane %v5754_v46, 5  ;;  %v5764_v38 = vshrl.u32 %v12623_v37, 16  ;;  %v12736_v46 = vpop.f32.mrf.mxu1 }
 0x2f6   : > { %9887 = vmatmul.mubr.msk.bf16.gmra.mxu1 %vm325_vm1, %v8861_v33  ;;  %v8862_v0 = vcombine.low %v5739_v63, %v5749_v25  ;;  %v6977_v58 = vrot.slane %v6976_v55, 4  ;;  %v6986_v30 = vor.u32 %v6985_v39, %v6981_v29  ;;  %v5762_v3 = vrot.slane %v5760_v20, 5  ;;  %v12720_v33 = vpop.f32.mrf.mxu0 }
 0x2f7   : > { %v5757_v51 = vor.u32 %v5756_v43, %v5753_v16  ;;  %v5766_v53 = vrot.slane %v5764_v38, 4  ;;  %v5770_v5 = vshll.u32 %v12627_v60, 16  ;;  %v6994_v62 = vshrl.u32 %v6903_v9, 16 }
 0x2f8   : > { %9890 = vmatprep.mubr.msk.bf16.mxu1 %vm325_vm1, %v8862_v0  ;;  %v6982_v37 = vsel %vm11074_vm10, %v6977_v58, %v6981_v29  ;;  %v6987_v50 = vrot.slane %v6986_v30, 4  ;;  %v6997_v48 = vshll.u32 %v6903_v9, 16  ;;  %v7003_v7 = vshll.u32 %v12715_v14, 16  ;;  %v6909_v58 = vld [vmem:[#allocation2 + $0x48] sm:$0xf] }
 0x2f9   : > { %v5758_v10 = vrot.slane %v5757_v51, 4  ;;  %v5767_v17 = vor.u32 %v5766_v53, %v5762_v3  ;;  %v5772_v52 = vrot.slane %v5770_v5, 5  ;;  %v6996_v60 = vrot.slane %v6994_v62, 4  ;;  %v10090_v53 = vld [vmem:[#allocation2 + $0x18] sm:$0xff]  }
 0x2fa   : > { %v6992_v45 = vsel %vm11074_vm10, %v6987_v50, %v6991_v12  ;;  %v6999_v21 = vrot.slane %v6997_v48, 5  ;;  %v7005_v35 = vrot.slane %v7003_v7, 5  ;;  %v7007_v36 = vshrl.u32 %v12715_v14, 16  ;;  %v12738_v55 = vpop.f32.mrf.mxu0  ;;  %v12740_v12 = vld [vmem:[#allocation2 + $0x44] sm:$0x1] }
 0x2fb   : > { %v8964_v29 = vcombine.low %v6982_v37, %v6992_v45  ;;  %v5763_v63 = vsel %vm11074_vm10, %v5758_v10, %v5762_v3  ;;  %v5768_v24 = vrot.slane %v5767_v17, 4  ;;  %v7013_v56 = vshll.u32 %v12725_v42, 16  ;;  %v12748_v7 = vld [vmem:[#allocation2 + $0x4c] sm:$0xf]  ;;  %v12750_v10 = vpop.f32.mrf.mxu1 }
 0x2fc   : > { %v7000_v39 = vor.u32 %v6999_v21, %v6996_v60  ;;  %v7009_v20 = vrot.slane %v7007_v36, 4  ;;  %v7018_v9 = vshrl.u32 %v6906_v11, 16  ;;  %v7021_v25 = vshll.u32 %v6906_v11, 16  ;;  %v12752_v17 = vpop.f32.mrf.mxu0 }
 0x2fd   : > { %9965 = vmatmul.mubr.msk.bf16.vlgmr.msra.gmra.mxu0 %vm325_vm1, %v8964_v29  ;;  %v5773_v16 = vsel %vm11074_vm10, %v5768_v24, %v5772_v52  ;;  %v7015_v43 = vrot.slane %v7013_v56, 5  ;;  %v7027_v38 = vshll.u32 %v12731_v54, 16  ;;  %v7031_v0 = vshrl.u32 %v12731_v54, 16 }
 0x2fe   : > { %v8863_v30 = vcombine.low %v5763_v63, %v5773_v16  ;;  %v7001_v3 = vrot.slane %v7000_v39, 4  ;;  %v7010_v51 = vor.u32 %v7009_v20, %v7005_v35  ;;  %v7020_v5 = vrot.slane %v7018_v9, 4  ;;  %v12762_v63 = vld [vmem:[#allocation2 + $0x50] sm:$0x1]  ;;  %v12768_v16 = vpop.f32.mrf.mxu1 }
 0x2ff   : > { %v7023_v62 = vrot.slane %v7021_v25, 5  ;;  %v7029_v37 = vrot.slane %v7027_v38, 5  ;;  %v7033_v50 = vrot.slane %v7031_v0, 4  ;;  %v7037_v48 = vshll.u32 %v12740_v12, 16  ;;  %v12770_v38 = vpop.f32.mrf.mxu0 }
 0x300   : > { %9891 = vmatmul.mubr.msk.bf16.gmra.mxu1 %vm325_vm1, %v8863_v30  ;;  %v7006_v52 = vsel %vm11074_vm10, %v7001_v3, %v7005_v35  ;;  %v7011_v60 = vrot.slane %v7010_v51, 4  ;;  %v12759_v11 = vadd.f32 %v12531_v40, %v12662_v23  ;;  %v7042_v45 = vshrl.u32 %v6909_v58, 16  ;;  %v6912_v3 = vld [vmem:[#allocation2 + $0x54] sm:$0xf] }
 0x301   : > { %9930 = vmatprep.mubr.msk.bf16.mxu1 %vm325_vm1, %v10090_v53  ;;  %v7024_v21 = vor.u32 %v7023_v62, %v7020_v5  ;;  %v7034_v36 = vor.u32 %v7033_v50, %v7029_v37  ;;  %v7039_v29 = vrot.slane %v7037_v48, 5  ;;  %v7045_v24 = vshll.u32 %v6909_v58, 16  ;;  %v12782_v62 = vld [vmem:[#allocation2 + $0x58] sm:$0xf]  ;;  %v10091_v48 = vld [vmem:[#allocation2 + $0x24] sm:$0xff]  }
 0x302   : > { %v7016_v56 = vsel %vm11074_vm10, %v7011_v60, %v7015_v43  ;;  %v7044_v39 = vrot.slane %v7042_v45, 4  ;;  %v7051_v35 = vshll.u32 %v12748_v7, 16  ;;  %v7055_v20 = vshrl.u32 %v12748_v7, 16 }
 0x303   : > { %v8965_v9 = vcombine.low %v7006_v52, %v7016_v56  ;;  %v7025_v40 = vrot.slane %v7024_v21, 4  ;;  %v7035_v23 = vrot.slane %v7034_v36, 4  ;;  %v7047_v25 = vrot.slane %v7045_v24, 5  ;;  %v10092_v36 = vld [vmem:[#allocation2 + $0x30] sm:$0xff]   ;;  %v12794_v56 = vpop.f32.mrf.mxu0 }
 0x304   : > { %v7053_v0 = vrot.slane %v7051_v35, 5  ;;  %v7057_v30 = vrot.slane %v7055_v20, 4  ;;  %v7061_v58 = vshll.u32 %v12762_v63, 16  ;;  %v12780_v5 = vadd.f32 %v12558_v13, %v12672_v31  ;;  %v6915_v13 = vld [vmem:[#allocation2 + $0x60] sm:$0xf] }
 0x305   : > { %9968 = vmatprep.mubr.msk.bf16.mxu0 %vm325_vm1, %v8965_v9  ;;  %v7030_v43 = vsel %vm11074_vm10, %v7025_v40, %v7029_v37  ;;  %v7040_v51 = vsel %vm11074_vm10, %v7035_v23, %v7039_v29  ;;  %v7048_v53 = vor.u32 %v7047_v25, %v7044_v39  ;;  %v7898_v60 = vsel %vm374_vm0, %v12487_v44, 0  ;;  %v12790_v37 = vld [vmem:[#allocation2 + $0x5c] sm:$0x1]  ;;  %v12800_v35 = vld [vmem:[#allocation2 + $0x64] sm:$0xf] }
 0x306   : > { %v8966_v50 = vcombine.low %v7030_v43, %v7040_v51  ;;  %v7058_v52 = vor.u32 %v7057_v30, %v7053_v0  ;;  %v12788_v45 = vadd.f32 %v12579_v15, %v12694_v59  ;;  %v7066_v29 = vshrl.u32 %v6912_v3, 16  ;;  %v12792_v31 = vpop.f32.mrf.mxu1  ;;  %v12808_v25 = vld [vmem:[#allocation2 + $0x68] sm:$0x1] }
 0x307   : > { %v7049_v21 = vrot.slane %v7048_v53, 4  ;;  %v7069_v24 = vshll.u32 %v6912_v3, 16  ;;  %v7063_v39 = vrot.slane %v7061_v58, 5  ;;  %v7075_v15 = vshll.u32 %v12782_v62, 16  ;;  %14137 = vst [vmem:[#allocation4_spill] sm:$0xff] %v12808_v25 }
 0x308   : > { %9969 = vmatmul.mubr.msk.bf16.gmra.mxu0 %vm325_vm1, %v8966_v50  ;;  %9931 = vmatmul.mubr.msk.bf16.vlgmr.msra.gmra.mxu1 %vm325_vm1, %v10091_v48  ;;  %v7059_v44 = vrot.slane %v7058_v52, 4  ;;  %v7079_v59 = vshrl.u32 %v12782_v62, 16  ;;  %v7068_v20 = vrot.slane %v7066_v29, 4  ;;  %v7085_v40 = vshll.u32 %v12790_v37, 16  ;;  %v12814_v52 = vpop.f32.mrf.mxu1  ;;  %v10093_v29 = vld [vmem:[#allocation2 + $0x3c] sm:$0xff]  }
 0x309   : > { %9997 = vmatpush3.bf16.msra.mxu1 %v7898_v60  ;;  %9934 = vmatprep.mubr.msk.bf16.mxu1 %vm325_vm1, %v10092_v36  ;;  %v7071_v9 = vrot.slane %v7069_v24, 5  ;;  %v12806_v23 = vadd.f32 %v12611_v18, %v12718_v4  ;;  %v7054_v30 = vsel %vm11074_vm10, %v7049_v21, %v7053_v0  ;;  %v7077_v3 = vrot.slane %v7075_v15, 5 }
 0x30a   : > { %v7064_v58 = vsel %vm11074_vm10, %v7059_v44, %v7063_v39  ;;  %v7081_v43 = vrot.slane %v7079_v59, 4  ;;  %v7090_v50 = vshrl.u32 %v6915_v13, 16  ;;  %v7093_v48 = vshll.u32 %v6915_v13, 16  ;;  %v6918_v39 = vld [vmem:[#allocation2 + $0x6c] sm:$0xf] }
 0x30b   : > { %14136 = vst [vmem:[#allocation27_spill] sm:$0xff] %v12806_v23  ;;  %v8967_v51 = vcombine.low %v7054_v30, %v7064_v58  ;;  %v7072_v53 = vor.u32 %v7071_v9, %v7068_v20  ;;  %v12816_v60 = vpop.f32.mrf.mxu0  ;;  %v7099_v4 = vshll.u32 %v12800_v35, 16  ;;  %v7103_v36 = vshrl.u32 %v12800_v35, 16  ;;  %v12828_v58 = vld [vmem:[#allocation2 + $0x70] sm:$0xf] }
 0x30c   : > { %v7082_v18 = vor.u32 %v7081_v43, %v7077_v3  ;;  %v7109_v0 = vshll.u32 %v12808_v25, 16  ;;  %v7092_v24 = vrot.slane %v7090_v50, 4  ;;  %v7095_v44 = vrot.slane %v7093_v48, 5  ;;  %v10094_v50 = vld [vmem:[#allocation2 + $0x48] sm:$0xff]  }
 0x30d   : > { %9972 = vmatprep.mubr.msk.bf16.mxu0 %vm325_vm1, %v8967_v51  ;;  %v7073_v21 = vrot.slane %v7072_v53, 4  ;;  %v12824_v13 = vadd.f32 %v12629_v27, %v12736_v46  ;;  %v12826_v15 = vpop.f32.mrf.mxu0  ;;  %v7087_v20 = vrot.slane %v7085_v40, 5  ;;  %v7101_v9 = vrot.slane %v7099_v4, 5  ;;  %v12836_v27 = vld [vmem:[#allocation2 + $0x74] sm:$0x1]  ;;  %v9737_v46 = vpop.f32.mrf.mxu1 }
 0x30e   : > { %v7083_v59 = vrot.slane %v7082_v18, 4  ;;  %v7105_v30 = vrot.slane %v7103_v36, 4  ;;  %v7096_v51 = vor.u32 %v7095_v44, %v7092_v24  ;;  %v7111_v53 = vrot.slane %v7109_v0, 5  ;;  %14140 = vst [vmem:[#allocation7_spill] sm:$0xff] %v12836_v27 }
 0x30f   : > { %14138 = vst [vmem:[#allocation5_spill] sm:$0xff] %v12824_v13  ;;  %v7078_v43 = vsel %vm11074_vm10, %v7073_v21, %v7077_v3  ;;  %v12834_v48 = vadd.f32 %v12643_v6, %v12750_v10  ;;  %v7114_v4 = vshrl.u32 %v6918_v39, 16  ;;  %v7117_v36 = vshll.u32 %v6918_v39, 16  ;;  %v6921_v10 = vld [vmem:[#allocation2 + $0x78] sm:$0xf]  ;;  %v12844_v21 = vpop.f32.mrf.mxu0 }
 0x310   : > { %v7088_v40 = vsel %vm11074_vm10, %v7083_v59, %v7087_v20  ;;  %9935 = vmatmul.mubr.msk.bf16.gmra.mxu1 %vm325_vm1, %v10093_v29  ;;  %v7106_v18 = vor.u32 %v7105_v30, %v7101_v9  ;;  %v7097_v3 = vrot.slane %v7096_v51, 4  ;;  %v7123_v0 = vshll.u32 %v12828_v58, 16  ;;  %v12847_v29 = vld [vmem:[#allocation2 + $0x7c] sm:$0xf]  ;;  %v12856_v51 = vld [vmem:[#allocation2 + $0x80] sm:$0x1] }
 0x311   : > { %14139 = vst [vmem:[#allocation6_spill] sm:$0xff] %v12834_v48  ;;  %v8968_v13 = vcombine.low %v7078_v43, %v7088_v40  ;;  %9938 = vmatprep.mubr.msk.bf16.mxu1 %vm325_vm1, %v10094_v50  ;;  %v7127_v6 = vshrl.u32 %v12828_v58, 16  ;;  %v7116_v44 = vrot.slane %v7114_v4, 4  ;;  %v7119_v48 = vrot.slane %v7117_v36, 5  ;;  %14141 = vst [vmem:[#allocation20_spill] sm:$0xff] %v12847_v29  ;;  %v4143_v50 = vpop.f32.mrf.mxu1 }
 0x312   : > { %v7107_v24 = vrot.slane %v7106_v18, 4  ;;  %v7133_v59 = vshll.u32 %v12836_v27, 16  ;;  %v7102_v39 = vsel %vm11074_vm10, %v7097_v3, %v7101_v9  ;;  %v7125_v20 = vrot.slane %v7123_v0, 5  ;;  %14143 = vst [vmem:[#allocation8_spill] sm:$0xff] %v12856_v51  ;;  %v10095_v27 = vld [vmem:[#allocation2 + $0x54] sm:$0xff]   ;;  %v12861_v3 = vpop.f32.mrf.mxu0 }
 0x313   : > { %9973 = vmatmul.mubr.msk.bf16.gmra.mxu0 %vm325_vm1, %v8968_v13  ;;  %v7129_v30 = vrot.slane %v7127_v6, 4  ;;  %v12854_v43 = vadd.f32 %v12674_v57, %v12792_v31  ;;  %v7120_v18 = vor.u32 %v7119_v48, %v7116_v44  ;;  %v7138_v36 = vshrl.u32 %v6921_v10, 16  ;;  %v10096_v44 = vld [vmem:[#allocation2 + $0x60] sm:$0xff]  }
 0x314   : > { %v7112_v40 = vsel %vm11074_vm10, %v7107_v24, %v7111_v53  ;;  %v7135_v4 = vrot.slane %v7133_v59, 5  ;;  %v7141_v25 = vshll.u32 %v6921_v10, 16  ;;  %v7147_v9 = vshll.u32 %v12847_v29, 16  ;;  %v12870_v59 = vld [vmem:[#allocation2 + $0x88] sm:$0xf] }
 0x315   : > { %14142 = vst [vmem:[#allocation22_spill] sm:$0xff] %v12854_v43  ;;  %v8969_v23 = vcombine.low %v7102_v39, %v7112_v40  ;;  %v7130_v13 = vor.u32 %v7129_v30, %v7125_v20  ;;  %v7121_v0 = vrot.slane %v7120_v18, 4  ;;  %v7140_v57 = vrot.slane %v7138_v36, 4  ;;  %v6924_v43 = vld [vmem:[#allocation2 + $0x84] sm:$0xf]  ;;  %14145 = vst [vmem:[#allocation10_spill] sm:$0xff] %v12870_v59 }
 0x316   : > { %v7151_v31 = vshrl.u32 %v12847_v29, 16  ;;  %v7157_v6 = vshll.u32 %v12856_v51, 16  ;;  %v7143_v48 = vrot.slane %v7141_v25, 5  ;;  %v7149_v24 = vrot.slane %v7147_v9, 5  ;;  %v12878_v25 = vld [vmem:[#allocation2 + $0x8c] sm:$0x1] }
 0x317   : > { %9976 = vmatprep.mubr.msk.bf16.mxu0 %vm325_vm1, %v8969_v23  ;;  %v7131_v53 = vrot.slane %v7130_v13, 4  ;;  %v12868_v10 = vadd.f32 %v12696_v2, %v12814_v52  ;;  %v9740_v39 = vpop.f32.mrf.mxu1  ;;  %v7126_v30 = vsel %vm11074_vm10, %v7121_v0, %v7125_v20  ;;  %v12876_v23 = vadd.f32 %v12708_v34, %v9737_v46  ;;  %14147 = vst [vmem:[#allocation13_spill] sm:$0xff] %v12878_v25  ;;  %v6927_v46 = vld [vmem:[#allocation2 + $0x90] sm:$0xf] }
 0x318   : > { %9939 = vmatmul.mubr.msk.bf16.gmra.mxu1 %vm325_vm1, %v10095_v27  ;;  %v7153_v40 = vrot.slane %v7151_v31, 4  ;;  %v7159_v18 = vrot.slane %v7157_v6, 5  ;;  %v7144_v2 = vor.u32 %v7143_v48, %v7140_v57  ;;  %v12884_v52 = vadd.f32 %v12720_v33, %v4143_v50  ;;  %v12886_v9 = vpop.f32.mrf.mxu0 }
 0x319   : > { %14144 = vst [vmem:[#allocation9_spill] sm:$0xff] %v12868_v10  ;;  %14146 = vst [vmem:[#allocation12_spill] sm:$0xff] %v12876_v23  ;;  %v7136_v36 = vsel %vm11074_vm10, %v7131_v53, %v7135_v4  ;;  %9942 = vmatprep.mubr.msk.bf16.mxu1 %vm325_vm1, %v10096_v44  ;;  %v7162_v13 = vshrl.u32 %v6924_v43, 16  ;;  %v4156_v20 = vpop.f32.mrf.mxu1  ;;  %v7165_v31 = vshll.u32 %v6924_v43, 16  ;;  %v7171_v34 = vshll.u32 %v12870_v59, 16 }
 0x31a   : > { %14148 = vst [vmem:[#allocation14_spill] sm:$0xff] %v12884_v52  ;;  %v8970_v27 = vcombine.low %v7126_v30, %v7136_v36  ;;  %v7154_v0 = vor.u32 %v7153_v40, %v7149_v24  ;;  %v7145_v6 = vrot.slane %v7144_v2, 4  ;;  %v7175_v4 = vshrl.u32 %v12870_v59, 16  ;;  %v12891_v53 = vld [vmem:[#allocation2 + $0x94] sm:$0xf]  ;;  %v12893_v50 = vpop.f32.mrf.mxu0 }
 0x31b   : > { %v7164_v23 = vrot.slane %v7162_v13, 4  ;;  %v7181_v57 = vshll.u32 %v12878_v25, 16  ;;  %14149 = vst [vmem:[#allocation15_spill] sm:$0xff] %v12891_v53  ;;  %v9741_v33 = vpop.f32.mrf.mxu1  ;;  %v7167_v44 = vrot.slane %v7165_v31, 5  ;;  %v7173_v30 = vrot.slane %v7171_v34, 5 }
 0x31c   : > { %9977 = vmatmul.mubr.msk.bf16.gmra.mxu0 %vm325_vm1, %v8970_v27  ;;  %v7155_v48 = vrot.slane %v7154_v0, 4  ;;  %v12897_v43 = vadd.f32 %v12738_v55, %v9740_v39  ;;  %v7150_v40 = vsel %vm11074_vm10, %v7145_v6, %v7149_v24  ;;  %v7177_v36 = vrot.slane %v7175_v4, 4  ;;  %v12901_v13 = vld [vmem:[#allocation2 + $0x98] sm:$0x1]  ;;  %v12903_v10 = vpop.f32.mrf.mxu0  ;;  %v10097_v0 = vld [vmem:[#allocation2 + $0x6c] sm:$0xff]  }
 0x31d   : > { %v7183_v2 = vrot.slane %v7181_v57, 5  ;;  %14151 = vst [vmem:[#allocation26_spill] sm:$0xff] %v12901_v13  ;;  %v7186_v52 = vshrl.u32 %v6927_v46, 16  ;;  %v7168_v27 = vor.u32 %v7167_v44, %v7164_v23  ;;  %v7189_v31 = vshll.u32 %v6927_v46, 16  ;;  %v10098_v6 = vld [vmem:[#allocation2 + $0x78] sm:$0xff]   ;;  %v4159_v4 = vpop.f32.mrf.mxu1 }
 0x31e   : > { %14150 = vst [vmem:[#allocation24_spill] sm:$0xff] %v12897_v43  ;;  %v7160_v25 = vsel %vm11074_vm10, %v7155_v48, %v7159_v18  ;;  %v7195_v34 = vshll.u32 %v12891_v53, 16  ;;  %v7178_v39 = vor.u32 %v7177_v36, %v7173_v30  ;;  %v7199_v24 = vshrl.u32 %v12891_v53, 16  ;;  %v12909_v57 = vpop.f32.mrf.mxu0  ;;  %v6930_v23 = vld [vmem:[#allocation2 + $0x9c] sm:$0xf] }
 0x31f   : > { %v8971_v55 = vcombine.low %v7150_v40, %v7160_v25  ;;  %v7188_v43 = vrot.slane %v7186_v52, 4  ;;  %v7169_v59 = vrot.slane %v7168_v27, 4  ;;  %v7191_v51 = vrot.slane %v7189_v31, 5  ;;  %v12921_v44 = vld [vmem:[#allocation2 + $0xa0] sm:$0xf] }
 0x320   : > { %9943 = vmatmul.mubr.msk.bf16.gmra.mxu1 %vm325_vm1, %v10097_v0  ;;  %v7197_v29 = vrot.slane %v7195_v34, 5  ;;  %v7205_v18 = vshll.u32 %v12901_v13, 16  ;;  %v7179_v46 = vrot.slane %v7178_v39, 4  ;;  %v7201_v25 = vrot.slane %v7199_v24, 4  ;;  %14154 = vst [vmem:[#allocation21_spill] sm:$0xff] %v12921_v44 }
 0x321   : > { %9980 = vmatprep.mubr.msk.bf16.mxu0 %vm325_vm1, %v8971_v55  ;;  %9946 = vmatprep.mubr.msk.bf16.mxu1 %vm325_vm1, %v10098_v6  ;;  %v12916_v52 = vadd.f32 %v12752_v17, %v4156_v20  ;;  %v12919_v48 = vadd.f32 %v12770_v38, %v9741_v33  ;;  %v7174_v40 = vsel %vm11074_vm10, %v7169_v59, %v7173_v30  ;;  %v12928_v31 = vld [vmem:[#allocation2 + $0xa4] sm:$0x1]  ;;  %v7210_v38 = vshrl.u32 %v6930_v23, 16  ;;  %v6933_v30 = vld [vmem:[#allocation2 + $0xa8] sm:$0xf] }
 0x322   : > { %v7192_v36 = vor.u32 %v7191_v51, %v7188_v43  ;;  %v7207_v27 = vrot.slane %v7205_v18, 5  ;;  %v12926_v0 = vadd.f32 %v12794_v56, %v4159_v4  ;;  %14156 = vst [vmem:[#allocation25_spill] sm:$0xff] %v12928_v31  ;;  %v12930_v34 = vpop.f32.mrf.mxu0  ;;  %v7184_v17 = vsel %vm11074_vm10, %v7179_v46, %v7183_v2 }
 0x323   : > { %14152 = vst [vmem:[#allocation17_spill] sm:$0xff] %v12916_v52  ;;  %14153 = vst [vmem:[#allocation19_spill] sm:$0xff] %v12919_v48  ;;  %v7202_v20 = vor.u32 %v7201_v25, %v7197_v29  ;;  %v7213_v33 = vshll.u32 %v6930_v23, 16  ;;  %v9744_v55 = vpop.f32.mrf.mxu1  ;;  %v8972_v39 = vcombine.low %v7174_v40, %v7184_v17  ;;  %v7219_v59 = vshll.u32 %v12921_v44, 16  ;;  %v12947_v17 = vld [vmem:[#allocation2 + $0xb0] sm:$0x1] }
 0x324   : > { %14155 = vst [vmem:[#allocation23_spill] sm:$0xff] %v12926_v0  ;;  %v7193_v24 = vrot.slane %v7192_v36, 4  ;;  %v7223_v51 = vshrl.u32 %v12921_v44, 16  ;;  %v12936_v56 = vpop.f32.mrf.mxu0  ;;  %v7212_v6 = vrot.slane %v7210_v38, 4  ;;  %v7229_v18 = vshll.u32 %v12928_v31, 16  ;;  %v10099_v36 = vld [vmem:[#allocation2 + $0x84] sm:$0xff]  }
 0x325   : > { %v7203_v43 = vrot.slane %v7202_v20, 4  ;;  %v7215_v4 = vrot.slane %v7213_v33, 5  ;;  %v12939_v0 = vld [vmem:[#allocation2 + $0xac] sm:$0xf]  ;;  %v4172_v2 = vpop.f32.mrf.mxu1  ;;  %9981 = vmatmul.mubr.msk.bf16.gmra.mxu0 %vm325_vm1, %v8972_v39  ;;  %v7221_v46 = vrot.slane %v7219_v59, 5  ;;  %v12945_v40 = vadd.f32 %v12816_v60, %v9744_v55  ;;  %14159 = vst [vmem:[#allocation31_spill] sm:$0xff] %v12947_v17 }
 0x326   : > { %14157 = vst [vmem:[#allocation28_spill] sm:$0xff] %v12939_v0  ;;  %v7198_v23 = vsel %vm11074_vm10, %v7193_v24, %v7197_v29  ;;  %v7225_v25 = vrot.slane %v7223_v51, 4  ;;  %v12949_v20 = vpop.f32.mrf.mxu0  ;;  %v7231_v48 = vrot.slane %v7229_v18, 5  ;;  %v7234_v52 = vshrl.u32 %v6933_v30, 16  ;;  %v10100_v39 = vld [vmem:[#allocation2 + $0x90] sm:$0xff]  }
 0x327   : > { %14158 = vst [vmem:[#allocation29_spill] sm:$0xff] %v12945_v40  ;;  %v7208_v38 = vsel %vm11074_vm10, %v7203_v43, %v7207_v27  ;;  %v7216_v33 = vor.u32 %v7215_v4, %v7212_v6  ;;  %v9745_v31 = vpop.f32.mrf.mxu1  ;;  %v7237_v24 = vshll.u32 %v6933_v30, 16  ;;  %v7243_v60 = vshll.u32 %v12939_v0, 16  ;;  %v6936_v6 = vld [vmem:[#allocation2 + $0xb4] sm:$0xf] }
 0x328   : > { %v8973_v44 = vcombine.low %v7198_v23, %v7208_v38  ;;  %v7226_v29 = vor.u32 %v7225_v25, %v7221_v46  ;;  %9947 = vmatmul.mubr.msk.bf16.gmra.mxu1 %vm325_vm1, %v10099_v36  ;;  %v12955_v55 = vpop.f32.mrf.mxu0  ;;  %v7236_v51 = vrot.slane %v7234_v52, 4  ;;  %v7247_v40 = vshrl.u32 %v12939_v0, 16  ;;  %v12964_v25 = vld [vmem:[#allocation2 + $0xb8] sm:$0xf] }
 0x329   : > { %v7217_v59 = vrot.slane %v7216_v33, 4  ;;  %v7253_v27 = vshll.u32 %v12947_v17, 16  ;;  %9950 = vmatprep.mubr.msk.bf16.mxu1 %vm325_vm1, %v10100_v39  ;;  %v4175_v43 = vpop.f32.mrf.mxu1  ;;  %v7239_v18 = vrot.slane %v7237_v24, 5  ;;  %v7245_v23 = vrot.slane %v7243_v60, 5  ;;  %14161 = vst [vmem:[#allocation32_spill] sm:$0xff] %v12964_v25 }
 0x32a   : > { %9984 = vmatprep.mubr.msk.bf16.mxu0 %vm325_vm1, %v8973_v44  ;;  %v7227_v4 = vrot.slane %v7226_v29, 4  ;;  %v12962_v30 = vadd.f32 %v12826_v15, %v4172_v2  ;;  %v12966_v36 = vpop.f32.mrf.mxu0  ;;  %v7249_v38 = vrot.slane %v7247_v40, 4  ;;  %v12971_v39 = vadd.f32 %v12844_v21, %v9745_v31  ;;  %v12973_v17 = vld [vmem:[#allocation2 + $0xbc] sm:$0x1]  ;;  %v6939_v31 = vld [vmem:[#allocation2 + $0xc0] sm:$0xf] }
 0x32b   : > { %v7222_v52 = vsel %vm11074_vm10, %v7217_v59, %v7221_v46  ;;  %v7255_v33 = vrot.slane %v7253_v27, 5  ;;  %14163 = vst [vmem:[#allocation35_spill] sm:$0xff] %v12973_v17  ;;  %v7240_v29 = vor.u32 %v7239_v18, %v7236_v51  ;;  %v12978_v15 = vadd.f32 %v12861_v3, %v4175_v43  ;;  %v10101_v21 = vld [vmem:[#allocation2 + $0x9c] sm:$0xff]   ;;  %v12985_v51 = vld [vmem:[#allocation2 + $0xc4] sm:$0xf] }
 0x32c   : > { %14160 = vst [vmem:[#allocation33_spill] sm:$0xff] %v12962_v30  ;;  %14162 = vst [vmem:[#allocation34_spill] sm:$0xff] %v12971_v39  ;;  %v7232_v44 = vsel %vm11074_vm10, %v7227_v4, %v7231_v48  ;;  %v7258_v2 = vshrl.u32 %v6936_v6, 16  ;;  %v12980_v24 = vpop.f32.mrf.mxu0  ;;  %v7250_v30 = vor.u32 %v7249_v38, %v7245_v23  ;;  %v7261_v46 = vshll.u32 %v6936_v6, 16 }
 0x32d   : > { %14164 = vst [vmem:[#allocation36_spill] sm:$0xff] %v12978_v15  ;;  %v8974_v60 = vcombine.low %v7222_v52, %v7232_v44  ;;  %v7267_v40 = vshll.u32 %v12964_v25, 16  ;;  %v9748_v59 = vpop.f32.mrf.mxu1  ;;  %v7241_v27 = vrot.slane %v7240_v29, 4  ;;  %v7271_v0 = vshrl.u32 %v12964_v25, 16  ;;  %v10102_v52 = vld [vmem:[#allocation2 + $0xa8] sm:$0xff]  }
 0x32e   : > { %v7260_v39 = vrot.slane %v7258_v2, 4  ;;  %v7277_v48 = vshll.u32 %v12973_v17, 16  ;;  %v12987_v3 = vpop.f32.mrf.mxu0  ;;  %v7251_v43 = vrot.slane %v7250_v30, 4  ;;  %v7263_v4 = vrot.slane %v7261_v46, 5  ;;  %v12996_v15 = vld [vmem:[#allocation2 + $0xc8] sm:$0x1] }
 0x32f   : > { %9985 = vmatmul.mubr.msk.bf16.gmra.mxu0 %vm325_vm1, %v8974_v60  ;;  %v7269_v6 = vrot.slane %v7267_v40, 5  ;;  %v12991_v18 = vadd.f32 %v12886_v9, %v9748_v59  ;;  %v4188_v38 = vpop.f32.mrf.mxu1  ;;  %v7246_v44 = vsel %vm11074_vm10, %v7241_v27, %v7245_v23  ;;  %v7273_v29 = vrot.slane %v7271_v0, 4 }
 0x330   : > { %v7279_v2 = vrot.slane %v7277_v48, 5  ;;  %9951 = vmatmul.mubr.msk.bf16.gmra.mxu1 %vm325_vm1, %v10101_v21  ;;  %v7282_v17 = vshrl.u32 %v6939_v31, 16  ;;  %v12998_v25 = vpop.f32.mrf.mxu0  ;;  %v7256_v30 = vsel %vm11074_vm10, %v7251_v43, %v7255_v33  ;;  %v7264_v60 = vor.u32 %v7263_v4, %v7260_v39  ;;  %v2945_v39 = vld [vmem:[#allocation2 + $0xcc] sm:$0x1] }
 0x331   : > { %14165 = vst [vmem:[#allocation37_spill] sm:$0xff] %v12991_v18  ;;  %v7285_v9 = vshll.u32 %v6939_v31, 16  ;;  %v7291_v46 = vshll.u32 %v12985_v51, 16  ;;  %9954 = vmatprep.mubr.msk.bf16.mxu1 %vm325_vm1, %v10102_v52  ;;  %v9749_v40 = vpop.f32.mrf.mxu1  ;;  %v8975_v23 = vcombine.low %v7246_v44, %v7256_v30  ;;  %v7274_v0 = vor.u32 %v7273_v29, %v7269_v6 }
 0x332   : > { %v7284_v59 = vrot.slane %v7282_v17, 4  ;;  %v7295_v21 = vshrl.u32 %v12985_v51, 16  ;;  %v13005_v27 = vpop.f32.mrf.mxu0  ;;  %v7265_v48 = vrot.slane %v7264_v60, 4  ;;  %v7301_v53 = vshll.u32 %v12996_v15, 16 }
 0x333   : > { %v7287_v18 = vrot.slane %v7285_v9, 5  ;;  %v7293_v13 = vrot.slane %v7291_v46, 5  ;;  %v4191_v33 = vpop.f32.mrf.mxu1  ;;  %9988 = vmatprep.mubr.msk.bf16.mxu0 %vm325_vm1, %v8975_v23  ;;  %v7275_v31 = vrot.slane %v7274_v0, 4  ;;  %v13010_v4 = vadd.f32 %v12893_v50, %v4188_v38  ;;  %v3001_v9 = vld [vmem:[#allocation2 + $0xd4] sm:$0x1] }
 0x334   : > { %v7297_v43 = vrot.slane %v7295_v21, 4  ;;  %v13013_v17 = vadd.f32 %v12903_v10, %v9749_v40  ;;  %v13015_v52 = vpop.f32.mrf.mxu0  ;;  %v7270_v44 = vsel %vm11074_vm10, %v7265_v48, %v7269_v6  ;;  %v13020_v30 = vadd.f32 %v12909_v57, %v4191_v33  ;;  %v10103_v10 = vld [vmem:[#allocation2 + $0xb4] sm:$0xff]   ;;  %v13029_v0 = vld [vmem:[#allocation2 + $0xd0] sm:$0xf] }
 0x335   : > { %v7288_v29 = vor.u32 %v7287_v18, %v7284_v59  ;;  %v9752_v60 = vpop.f32.mrf.mxu1  ;;  %v7280_v46 = vsel %vm11074_vm10, %v7275_v31, %v7279_v2  ;;  %v2946_v38 = vsel %vm10911_vm5, 0, %v2945_v39  ;;  %v7623_v40 = vld [vmem:[#allocation2 + $0x18] sm:$0xe]  ;;  %v13035_v57 = vadd.f32 %v12594_v28, %v12706_v22  ;;  %v10104_v2 = vld [vmem:[#allocation2 + $0xc0] sm:$0xff]  }
 0x336   : > { %v7298_v23 = vor.u32 %v7297_v43, %v7293_v13  ;;  %v13025_v50 = vadd.f32 %v12930_v34, %v9752_v60  ;;  %v13031_v6 = vpop.f32.mrf.mxu0  ;;  %v8976_v18 = vcombine.low %v7270_v44, %v7280_v46  ;;  %2947 = vst [vmem:[#allocation2 + $0xcc] sm:$0x1] %v2946_v38  ;;  %v7689_v34 = vrot.slane %v12654_v47, 5  ;;  %v7625_v38 = vld [vmem:[#allocation2 + $0x30] sm:$0xe] }
 0x337   : > { %v7289_v59 = vrot.slane %v7288_v29, 4  ;;  %v4204_v21 = vpop.f32.mrf.mxu1  ;;  %v7303_v33 = vrot.slane %v7301_v53, 5  ;;  %v3002_v39 = vsel %vm10919_vm6, 0, %v3001_v9  ;;  %v8995_v22 = vrot.slane %v7623_v40, 9  ;;  %v7624_v9 = vld [vmem:[#allocation2 + $0x24] sm:$0xe] }
 0x338   : > { %v7299_v48 = vrot.slane %v7298_v23, 4  ;;  %9955 = vmatmul.mubr.msk.bf16.gmra.mxu1 %vm325_vm1, %v10103_v10  ;;  %v13040_v49 = vadd.f32 %v12936_v56, %v4204_v21  ;;  %v13044_v31 = vpop.f32.mrf.mxu0  ;;  %9989 = vmatmul.mubr.msk.bf16.gmra.mxu0 %vm325_vm1, %v8976_v18  ;;  %v7691_v43 = vrot.slane %v7689_v34, 4  ;;  %v7692_v47 = vrot.slane %v12660_v32, 5  ;;  %3003 = vst [vmem:[#allocation2 + $0xd4] sm:$0x1] %v3002_v39 }
 0x339   : > { %9958 = vmatprep.mubr.msk.bf16.mxu1 %vm325_vm1, %v10104_v2  ;;  %v9753_v28 = vpop.f32.mrf.mxu1  ;;  %v7315_v53 = vshll.u32 %v13029_v0, 16  ;;  %v7294_v56 = vsel %vm11074_vm10, %v7289_v59, %v7293_v13  ;;  %v7319_v29 = vshrl.u32 %v13029_v0, 16  ;;  %v7696_v13 = vrot.slane %v12682_v26, 5 }
 0x33a   : > { %14166 = vst [vmem:[#allocation38_spill] sm:$0xff] %v13040_v49  ;;  %v7304_v8 = vsel %vm11074_vm10, %v7299_v48, %v7303_v33  ;;  %v13055_v44 = vadd.f32 %v12949_v20, %v9753_v28  ;;  %v13058_v60 = vpop.f32.mrf.mxu0  ;;  %v7693_v32 = vsel %vm11945_vm2, %v7691_v43, %v7692_v47  ;;  %v13067_v40 = vadd.f32 %v12664_v41, %v12768_v16 }
 0x33b   : > { %v8977_v46 = vcombine.low %v7294_v56, %v7304_v8  ;;  %v4207_v23 = vpop.f32.mrf.mxu1  ;;  %v13062_v10 = vrot.slane %v7315_v53, 5  ;;  %v7690_v18 = vsel %vm11945_vm2, %v8995_v22, %v7689_v34  ;;  %v7321_v59 = vrot.slane %v7319_v29, 4 }
 0x33c   : > { %14167 = vst [vmem:[#allocation39_spill] sm:$0xff] %v13055_v44  ;;  %v13070_v20 = vadd.f32 %v12955_v55, %v4207_v23  ;;  %v13074_v2 = vpop.f32.mrf.mxu0  ;;  %v8996_v48 = vrot.slane %v7624_v9, 9  ;;  %v7698_v33 = vrot.slane %v7696_v13, 4  ;;  %v7699_v26 = vrot.slane %v12692_v19, 5 }
 0x33d   : > { %9992 = vmatprep.mubr.msk.bf16.mxu0 %vm325_vm1, %v8977_v46  ;;  %v9756_v21 = vpop.f32.mrf.mxu1  ;;  %v7703_v39 = vrot.slane %v12715_v14, 5  ;;  %v10105_v16 = vld [vmem:[#allocation2 + $0xcc] sm:$0xff]   ;;  %v9012_v55 = vcombine.low %v7690_v18, %v7693_v32  ;;  %v7322_v34 = vor.u32 %v7321_v59, %v13062_v10  ;;  %v8997_v22 = vrot.slane %v7625_v38, 9  ;;  %v7626_v32 = vld [vmem:[#allocation2 + $0x3c] sm:$0xe] }
 0x33e   : > { %14168 = vst [vmem:[#allocation40_spill] sm:$0xff] %v13070_v20  ;;  %v13080_v41 = vadd.f32 %v12966_v36, %v9756_v21  ;;  %v6942_v28 = vld [vmem:[#allocation2 + $0xcc] sm:$0xf]  ;;  %v13083_v43 = vpop.f32.mrf.mxu0  ;;  %v7697_v8 = vsel %vm11945_vm2, %v8996_v48, %v7696_v13  ;;  %v7700_v19 = vsel %vm11945_vm2, %v7698_v33, %v7699_v26  ;;  %v7706_v46 = vrot.slane %v12725_v42, 5 }
 0x33f   : > { %v4220_v47 = vpop.f32.mrf.mxu1  ;;  %v7306_v53 = vshrl.u32 %v6942_v28, 16  ;;  %v7309_v56 = vshll.u32 %v6942_v28, 16  ;;  %v13093_v36 = vld [vmem:[#allocation2 + $0xd4] sm:$0x1]  ;;  %v7704_v29 = vsel %vm11945_vm2, %v8997_v22, %v7703_v39  ;;  %v7705_v9 = vrot.slane %v7703_v39, 4 }
 0x340   : > { %14169 = vst [vmem:[#allocation41_spill] sm:$0xff] %v13080_v41  ;;  %9959 = vmatmul.mubr.msk.bf16.gmra.mxu1 %vm325_vm1, %v10105_v16  ;;  %v13091_v14 = vadd.f32 %v12980_v24, %v4220_v47  ;;  %v13098_v23 = vpop.f32.mrf.mxu0  ;;  %v7323_v18 = vrot.slane %v7322_v34, 4  ;;  %v7325_v59 = vshll.u32 %v13093_v36, 16  ;;  %v9013_v48 = vcombine.low %v7697_v8, %v7700_v19  ;;  %v7627_v39 = vld [vmem:[#allocation2 + $0x48] sm:$0xe]  ;;  %v14187_v41 = vld [vmem:[#allocation32_spill] sm:$0xff] }
 0x341   : > { %9998 = vmatprep.mubr.msk.bf16.mxu1 %vm325_vm1, %v9012_v55  ;;  %v7308_v13 = vrot.slane %v7306_v53, 4  ;;  %v7311_v38 = vrot.slane %v7309_v56, 5  ;;  %v9757_v24 = vpop.f32.mrf.mxu1  ;;  %v7707_v33 = vsel %vm11945_vm2, %v7705_v9, %v7706_v46  ;;  %v7710_v42 = vrot.slane %v12731_v54, 5  ;;  %v7628_v19 = vld [vmem:[#allocation2 + $0x54] sm:$0xe] }
 0x342   : > { %14170 = vst [vmem:[#allocation42_spill] sm:$0xff] %v13091_v14  ;;  %v13103_v21 = vadd.f32 %v12987_v3, %v9757_v24  ;;  %v13107_v26 = vpop.f32.mrf.mxu0  ;;  %v7327_v55 = vrot.slane %v7325_v59, 5  ;;  %v8998_v22 = vrot.slane %v7626_v32, 9  ;;  %v7713_v34 = vrot.slane %v12740_v12, 5  ;;  %v7629_v59 = vld [vmem:[#allocation2 + $0x60] sm:$0xe] }
 0x343   : > { %v7312_v16 = vor.u32 %v7311_v38, %v7308_v13  ;;  %v4223_v28 = vpop.f32.mrf.mxu1  ;;  %v9014_v3 = vcombine.low %v7704_v29, %v7707_v33  ;;  %v7712_v53 = vrot.slane %v7710_v42, 4  ;;  %v7717_v8 = vrot.slane %v12748_v7, 5 }
 0x344   : > { %14171 = vst [vmem:[#allocation43_spill] sm:$0xff] %v13103_v21  ;;  %v13112_v47 = vadd.f32 %v12998_v25, %v4223_v28  ;;  %v13114_v56 = vpop.f32.mrf.mxu0  ;;  %v7328_v54 = vsel %vm11074_vm10, %v7323_v18, %v7327_v55  ;;  %v7711_v32 = vsel %vm11945_vm2, %v8998_v22, %v7710_v42  ;;  %v8999_v13 = vrot.slane %v7627_v39, 9  ;;  %v14186_v21 = vld [vmem:[#allocation22_spill] sm:$0xff] }
 0x345   : > { %v7313_v9 = vrot.slane %v7312_v16, 4  ;;  %v9796_v46 = vpop.f32.mrf.mxu1  ;;  %v7714_v25 = vsel %vm11945_vm2, %v7712_v53, %v7713_v34  ;;  %v7719_v29 = vrot.slane %v7717_v8, 4  ;;  %v7720_v38 = vrot.slane %v12762_v63, 5 }
 0x346   : > { %14172 = vst [vmem:[#allocation44_spill] sm:$0xff] %v13112_v47  ;;  %v13122_v12 = vadd.f32 %v9796_v46, %v12759_v11  ;;  %v13127_v7 = vpop.f32.mrf.mxu0  ;;  %v7718_v33 = vsel %vm11945_vm2, %v8999_v13, %v7717_v8  ;;  %v9000_v42 = vrot.slane %v7628_v19, 9  ;;  %v7724_v11 = vrot.slane %v12782_v62, 5 }
 0x347   : > { %v7318_v18 = vsel %vm11074_vm10, %v7313_v9, %v13062_v10  ;;  %v4825_v24 = vpop.f32.mrf.mxu1  ;;  %v9015_v63 = vcombine.low %v7711_v32, %v7714_v25  ;;  %v7721_v55 = vsel %vm11945_vm2, %v7719_v29, %v7720_v38  ;;  %v7727_v34 = vrot.slane %v12790_v37, 5 }
 0x348   : > { %v8978_v39 = vcombine.low %v7318_v18, %v7328_v54  ;;  %9999 = vmatmul.mubr.msk.bf16.vlgmr.msra.gmra.mxu1 %vm325_vm1, %v9013_v48  ;;  %v13137_v16 = vadd.f32 %v4825_v24, %v12780_v5  ;;  %v13141_v28 = vpop.f32.mrf.mxu0  ;;  %v7726_v22 = vrot.slane %v7724_v11, 4  ;;  %v9001_v62 = vrot.slane %v7629_v59, 9  ;;  %v14173_v54 = vld [vmem:[#allocation4_spill] sm:$0xff] }
 0x349   : > { %10002 = vmatprep.mubr.msk.bf16.mxu1 %vm325_vm1, %v9014_v3  ;;  %v9797_v10 = vpop.f32.mrf.mxu1  ;;  %v7731_v53 = vrot.slane %v12800_v35, 5  ;;  %v9016_v48 = vcombine.low %v7718_v33, %v7721_v55  ;;  %v13154_v19 = vsel %vm11945_vm2, %v9000_v42, %v7724_v11  ;;  %v7738_v3 = vrot.slane %v12828_v58, 5  ;;  %v14174_v58 = vld [vmem:[#allocation7_spill] sm:$0xff]  ;;  %v14175_v42 = vld [vmem:[#allocation20_spill] sm:$0xff] }
 0x34a   : > { %9993 = vmatmul.mubr.msk.bf16.gmra.mxu0 %vm325_vm1, %v8978_v39  ;;  %v13148_v5 = vadd.f32 %v9797_v10, %v12788_v45  ;;  %v13150_v8 = vpop.f32.mrf.mxu0  ;;  %v13159_v37 = vsel %vm11945_vm2, %v7726_v22, %v7727_v34  ;;  %v7734_v46 = vrot.slane %v14173_v54, 5  ;;  %v9002_v32 = vrot.slane %v7630_v1, 9  ;;  %v7631_v45 = vld [vmem:[#allocation2 + $0x78] sm:$0xe]  ;;  %v7632_v39 = vld [vmem:[#allocation2 + $0x84] sm:$0xe] }
 0x34b   : > { %v4828_v9 = vpop.f32.mrf.mxu1  ;;  %v7733_v35 = vrot.slane %v7731_v53, 4  ;;  %v9017_v25 = vcombine.low %v13154_v19, %v13159_v37  ;;  %v7740_v38 = vrot.slane %v7738_v3, 4  ;;  %v7741_v59 = vrot.slane %v14174_v58, 5  ;;  %v14176_v55 = vld [vmem:[#allocation27_spill] sm:$0xff]  ;;  %v14177_v37 = vld [vmem:[#allocation8_spill] sm:$0xff]  ;;  %v14178_v54 = vld [vmem:[#allocation10_spill] sm:$0xff] }
 0x34c   : > { %v13163_v13 = vadd.f32 %v4828_v9, %v13035_v57  ;;  %v13167_v29 = vpop.f32.mrf.mxu0  ;;  %v13172_v24 = vsel %vm11945_vm2, %v9001_v62, %v7731_v53  ;;  %v13178_v57 = vsel %vm11945_vm2, %v9002_v32, %v7738_v3  ;;  %v7745_v11 = vrot.slane %v14175_v42, 5  ;;  %v7633_v53 = vld [vmem:[#allocation2 + $0x90] sm:$0xe]  ;;  %v14179_v32 = vld [vmem:[#allocation5_spill] sm:$0xff] }
 0x34d   : > { %v9800_v18 = vpop.f32.mrf.mxu1  ;;  %v7735_v33 = vsel %vm11945_vm2, %v7733_v35, %v7734_v46  ;;  %v13189_v34 = vsel %vm11945_vm2, %v7740_v38, %v7741_v59  ;;  %v9003_v62 = vrot.slane %v7631_v45, 9  ;;  %v7748_v35 = vrot.slane %v14177_v37, 5  ;;  %v14180_v59 = vld [vmem:[#allocation15_spill] sm:$0xff] }
 0x34e   : > { %v13182_v1 = vadd.f32 %v9800_v18, %v14176_v55  ;;  %v9018_v10 = vcombine.low %v13172_v24, %v7735_v33  ;;  %v13185_v22 = vpop.f32.mrf.mxu0  ;;  %v7747_v9 = vrot.slane %v7745_v11, 4  ;;  %v7752_v46 = vrot.slane %v14178_v54, 5  ;;  %v14181_v55 = vld [vmem:[#allocation13_spill] sm:$0xff]  ;;  %v14182_v54 = vld [vmem:[#allocation6_spill] sm:$0xff] }
 0x34f   : > { %v4841_v19 = vpop.f32.mrf.mxu1  ;;  %v13203_v45 = vsel %vm11945_vm2, %v9003_v62, %v7745_v11  ;;  %v9004_v38 = vrot.slane %v7632_v39, 9  ;;  %v7759_v24 = vrot.slane %v14180_v59, 5  ;;  %v9005_v37 = vrot.slane %v7633_v53, 9  ;;  %v14183_v62 = vld [vmem:[#allocation26_spill] sm:$0xff]  ;;  %v14184_v53 = vld [vmem:[#allocation21_spill] sm:$0xff] }
 0x350   : > { %10003 = vmatmul.mubr.msk.bf16.gmra.mxu1 %vm325_vm1, %v9015_v63  ;;  %v13197_v58 = vadd.f32 %v4841_v19, %v14179_v32  ;;  %v13199_v18 = vpop.f32.mrf.mxu0  ;;  %v13209_v42 = vsel %vm11945_vm2, %v7747_v9, %v7748_v35  ;;  %v7754_v63 = vrot.slane %v7752_v46, 4  ;;  %v7755_v19 = vrot.slane %v14181_v55, 5 }
 0x351   : > { %10006 = vmatprep.mubr.msk.bf16.mxu1 %vm325_vm1, %v9016_v48  ;;  %v9801_v33 = vpop.f32.mrf.mxu1  ;;  %v9020_v11 = vcombine.low %v13203_v45, %v13209_v42  ;;  %v7761_v39 = vrot.slane %v7759_v24, 4  ;;  %v7762_v59 = vrot.slane %v14183_v62, 5  ;;  %v7634_v48 = vld [vmem:[#allocation2 + $0x9c] sm:$0xe]  ;;  %v13220_v9 = vsel %vm11945_vm2, %v9004_v38, %v7752_v46  ;;  %v7636_v38 = vld [vmem:[#allocation2 + $0xb4] sm:$0xe] }
 0x352   : > { %v4959_v32 = vadd.f32 %v9801_v33, %v14182_v54  ;;  %v13213_v3 = vpop.f32.mrf.mxu0  ;;  %v13224_v35 = vsel %vm11945_vm2, %v7754_v63, %v7755_v19  ;;  %v7766_v33 = vrot.slane %v14184_v53, 5  ;;  %v13234_v42 = vsel %vm11945_vm2, %v9005_v37, %v7759_v24 }
 0x353   : > { %v4844_v47 = vpop.f32.mrf.mxu1  ;;  %v13238_v46 = vsel %vm11945_vm2, %v7761_v39, %v7762_v59  ;;  %v9006_v62 = vrot.slane %v7634_v48, 9  ;;  %v7780_v24 = vrot.slane %v14187_v41, 5  ;;  %v9008_v19 = vrot.slane %v7636_v38, 9  ;;  %v14188_v48 = vld [vmem:[#allocation9_spill] sm:$0xff] }
 0x354   : > { %v4957_v55 = vadd.f32 %v4844_v47, %v13067_v40  ;;  %v13228_v54 = vpop.f32.mrf.mxu0  ;;  %v7768_v40 = vrot.slane %v7766_v33, 4  ;;  %v14185_v47 = vld [vmem:[#allocation25_spill] sm:$0xff] }
 0x355   : > { %v9804_v63 = vpop.f32.mrf.mxu1  ;;  %v7769_v53 = vrot.slane %v14185_v47, 5  ;;  %v13249_v39 = vsel %vm11945_vm2, %v9006_v62, %v7766_v33  ;;  %v7782_v41 = vrot.slane %v7780_v24, 4  ;;  %v14190_v62 = vld [vmem:[#allocation12_spill] sm:$0xff] }
 0x356   : > { %v4962_v14 = vadd.f32 %v9804_v63, %v14186_v21  ;;  %v13244_v45 = vpop.f32.mrf.mxu0  ;;  %v14189_v63 = vld [vmem:[#allocation35_spill] sm:$0xff] }
 0x357   : > { %v4857_v37 = vpop.f32.mrf.mxu1  ;;  %v13253_v59 = vsel %vm11945_vm2, %v7768_v40, %v7769_v53  ;;  %v7783_v44 = vrot.slane %v14189_v63, 5 }
 0x358   : > { %10007 = vmatmul.mubr.msk.bf16.gmra.mxu1 %vm325_vm1, %v9017_v25  ;;  %v4960_v47 = vadd.f32 %v4857_v37, %v14188_v48  ;;  %v13257_v20 = vpop.f32.mrf.mxu0  ;;  %v9023_v21 = vcombine.low %v13249_v39, %v13253_v59  ;;  %v13268_v25 = vsel %vm11945_vm2, %v9008_v19, %v7780_v24  ;;  %v14191_v48 = vld [vmem:[#allocation14_spill] sm:$0xff]  ;;  %v13285_v19 = vadd.f32 %v13015_v52, %v13137_v16 }
 0x359   : > { %10010 = vmatprep.mubr.msk.bf16.mxu1 %vm325_vm1, %v9018_v10  ;;  %v9805_v33 = vpop.f32.mrf.mxu1  ;;  %v13272_v38 = vsel %vm11945_vm2, %v7782_v41, %v7783_v44  ;;  %v13289_v44 = vadd.f32 %v13031_v6, %v13148_v5  ;;  %v14192_v41 = vld [vmem:[#allocation24_spill] sm:$0xff]  ;;  %v13304_v52 = vadd.f32 %v13074_v2, %v13197_v58  ;;  %v13307_v6 = vadd.f32 %v13083_v43, %v4959_v32  ;;  %v14195_v58 = vld [vmem:[#allocation19_spill] sm:$0xff] }
 0x35a   : > { %v4963_v49 = vadd.f32 %v9805_v33, %v14190_v62  ;;  %v13264_v40 = vpop.f32.mrf.mxu0  ;;  %v13281_v33 = vadd.f32 %v13005_v27, %v13122_v12  ;;  %v13300_v27 = vadd.f32 %v13058_v60, %v13182_v1  ;;  %v13310_v16 = vadd.f32 %v13098_v23, %v4957_v55 }
 0x35b   : > { %v4860_v53 = vpop.f32.mrf.mxu1  ;;  %v14193_v5 = vcombine.low %v13178_v57, %v13189_v34  ;;  %v13320_v1 = vadd.f32 %v13107_v26, %v4962_v14  ;;  %v13323_v2 = vadd.f32 %v13114_v56, %v4960_v47  ;;  %v14196_v56 = vld [vmem:[#allocation23_spill] sm:$0xff]  ;;  %v7790_v39 = vrot.slane %v12996_v15, 5 }
 0x35c   : > { %v4961_v63 = vadd.f32 %v4860_v53, %v14191_v48  ;;  %v13277_v10 = vpop.f32.mrf.mxu0  ;;  %v13296_v53 = vadd.f32 %v13044_v31, %v13163_v13  ;;  %v14194_v31 = vld [vmem:[#allocation17_spill] sm:$0xff]  ;;  %v13327_v23 = vadd.f32 %v13127_v7, %v4963_v49  ;;  %v14197_v49 = vld [vmem:[#allocation28_spill] sm:$0xff] }
 0x35d   : > { %v9808_v24 = vpop.f32.mrf.mxu1  ;;  %v7773_v7 = vrot.slane %v14197_v49, 5 }
 0x35e   : > { %v4966_v62 = vadd.f32 %v9808_v24, %v14192_v41  ;;  %v13292_v37 = vpop.f32.mrf.mxu0  ;;  %v13330_v57 = vadd.f32 %v13141_v28, %v4961_v63 }
 0x35f   : > { %v4873_v12 = vpop.f32.mrf.mxu1 }
 0x360   : > { %10011 = vmatmul.mubr.msk.bf16.gmra.mxu1 %vm325_vm1, %v14193_v5  ;;  %v4964_v13 = vadd.f32 %v4873_v12, %v14194_v31  ;;  %v13317_v60 = vpop.f32.mrf.mxu0  ;;  %v13333_v34 = vadd.f32 %v13150_v8, %v4966_v62  ;;  %v14198_v8 = vld [vmem:[#allocation29_spill] sm:$0xff]  ;;  %v14199_v62 = vcombine.low %v13220_v9, %v13224_v35  ;;  %v14203_v9 = vld [vmem:[#allocation31_spill] sm:$0xff] }
 0x361   : > { %10014 = vmatprep.mubr.msk.bf16.mxu1 %vm325_vm1, %v9020_v11  ;;  %v9809_v43 = vpop.f32.mrf.mxu1  ;;  %v14200_v12 = vld [vmem:[#allocation33_spill] sm:$0xff]  ;;  %v7776_v35 = vrot.slane %v14203_v9, 5  ;;  %v7794_v9 = vrot.slane %v13029_v0, 5 }
 0x362   : > { %v4967_v32 = vadd.f32 %v9809_v43, %v14195_v58  ;;  %v13336_v55 = vpop.f32.mrf.mxu0  ;;  %v13339_v14 = vadd.f32 %v13167_v29, %v4964_v13  ;;  %v7635_v31 = vld [vmem:[#allocation2 + $0xa8] sm:$0xe]  ;;  %v7775_v13 = vrot.slane %v7773_v7, 4  ;;  %v14201_v58 = vcombine.low %v13234_v42, %v13238_v46 }
 0x363   : > { %v4876_v26 = vpop.f32.mrf.mxu1  ;;  %v7787_v46 = vrot.slane %v12985_v51, 5 }
 0x364   : > { %v4965_v11 = vadd.f32 %v4876_v26, %v14196_v56  ;;  %v13342_v47 = vpop.f32.mrf.mxu0  ;;  %v13346_v28 = vadd.f32 %v13185_v22, %v4967_v32  ;;  %v14202_v32 = vld [vmem:[#allocation34_spill] sm:$0xff] }
 0x365   : > { %v9812_v48 = vpop.f32.mrf.mxu1 }
 0x366   : > { %v4970_v63 = vadd.f32 %v9812_v48, %v14198_v8  ;;  %v13349_v24 = vpop.f32.mrf.mxu0  ;;  %v13352_v41 = vadd.f32 %v13199_v18, %v4965_v11  ;;  %v9007_v48 = vrot.slane %v7635_v31, 9  ;;  %v14204_v8 = vld [vmem:[#allocation36_spill] sm:$0xff] }
 0x367   : > { %v4889_v29 = vpop.f32.mrf.mxu1 }
 0x368   : > { %10015 = vmatmul.mubr.msk.bf16.gmra.mxu1 %vm325_vm1, %v14199_v62  ;;  %v4968_v5 = vadd.f32 %v4889_v29, %v14200_v12  ;;  %v13359_v22 = vpop.f32.mrf.mxu0  ;;  %v13362_v43 = vadd.f32 %v13213_v3, %v4970_v63  ;;  %v7777_v63 = vsel %vm11945_vm2, %v7775_v13, %v7776_v35  ;;  %v14205_v12 = vld [vmem:[#allocation37_spill] sm:$0xff] }
 0x369   : > { %10018 = vmatprep.mubr.msk.bf16.mxu1 %vm325_vm1, %v14201_v58  ;;  %v9813_v18 = vpop.f32.mrf.mxu1 }
 0x36a   : > { %v4971_v26 = vadd.f32 %v9813_v18, %v14202_v32  ;;  %v13370_v56 = vpop.f32.mrf.mxu0  ;;  %v13373_v11 = vadd.f32 %v13228_v54, %v4968_v5  ;;  %v7774_v54 = vsel %vm11945_vm2, %v9007_v48, %v7773_v7 }
 0x36b   : > { %v4892_v49 = vpop.f32.mrf.mxu1  ;;  %v9024_v18 = vcombine.low %v7774_v54, %v7777_v63  ;;  %v7796_v63 = vrot.slane %v7794_v9, 4 }
 0x36c   : > { %v4969_v3 = vadd.f32 %v4892_v49, %v14204_v8  ;;  %v13378_v42 = vpop.f32.mrf.mxu0  ;;  %v13382_v29 = vadd.f32 %v13244_v45, %v4971_v26  ;;  %v7789_v45 = vrot.slane %v7787_v46, 4 }
 0x36d   : > { %v9816_v62 = vpop.f32.mrf.mxu1 }
 0x36e   : > { %v4974_v58 = vadd.f32 %v9816_v62, %v14205_v12  ;;  %v13387_v5 = vpop.f32.mrf.mxu0  ;;  %v13390_v31 = vadd.f32 %v13257_v20, %v4969_v3  ;;  %v7637_v20 = vld [vmem:[#allocation2 + $0xc0] sm:$0xe]  ;;  %v7791_v8 = vsel %vm11945_vm2, %v7789_v45, %v7790_v39  ;;  %v7797_v62 = vrot.slane %v13093_v36, 5 }
 0x36f   : > { %v4905_v13 = vpop.f32.mrf.mxu1  ;;  %v9009_v48 = vrot.slane %v7637_v20, 9  ;;  %v14209_v39 = vld [vmem:[#allocation40_spill] sm:$0xff] }
 0x370   : > { %10019 = vmatmul.mubr.msk.bf16.gmra.mxu1 %vm325_vm1, %v9023_v21  ;;  %v4972_v51 = vadd.f32 %v4905_v13, %v13010_v4  ;;  %v13397_v32 = vpop.f32.mrf.mxu0  ;;  %v13400_v26 = vadd.f32 %v13264_v40, %v4974_v58  ;;  %v7638_v21 = vld [vmem:[#allocation2 + $0xcc] sm:$0xe]  ;;  %v14207_v13 = vld [vmem:[#allocation38_spill] sm:$0xff]  ;;  %v7798_v45 = vsel %vm11945_vm2, %v7796_v63, %v7797_v62 }
 0x371   : > { %10022 = vmatprep.mubr.msk.bf16.mxu1 %vm325_vm1, %v9024_v18  ;;  %v9817_v7 = vpop.f32.mrf.mxu1  ;;  %v9010_v15 = vrot.slane %v7638_v21, 9  ;;  %v7788_v12 = vsel %vm11945_vm2, %v9009_v48, %v7787_v46  ;;  %v14210_v48 = vld [vmem:[#allocation41_spill] sm:$0xff] }
 0x372   : > { %v4975_v35 = vadd.f32 %v9817_v7, %v13013_v17  ;;  %v13409_v4 = vadd.f32 %v13277_v10, %v4972_v51  ;;  %v9026_v54 = vcombine.low %v7788_v12, %v7791_v8  ;;  %v14208_v7 = vld [vmem:[#allocation39_spill] sm:$0xff] }
 0x373   : > { %v13406_v59 = vpop.f32.mrf.mxu0  ;;  %v4908_v49 = vpop.f32.mrf.mxu1  ;;  %v14212_v12 = vld [vmem:[#allocation43_spill] sm:$0xff] }
 0x374   : > { %v4973_v40 = vadd.f32 %v4908_v49, %v13020_v30  ;;  %v13417_v0 = vadd.f32 %v13292_v37, %v4975_v35  ;;  %v14206_v37 = vcombine.low %v13268_v25, %v13272_v38 }
 0x375   : > { %v13414_v3 = vpop.f32.mrf.mxu0 }
 0x376   : > { %v9820_v17 = vpop.f32.mrf.mxu1  ;;  %v13426_v58 = vadd.f32 %v13317_v60, %v4973_v40  ;;  %v7795_v60 = vsel %vm11945_vm2, %v9010_v15, %v7794_v9 }
 0x377   : > { %v4978_v10 = vadd.f32 %v9820_v17, %v13025_v50  ;;  %v13423_v30 = vpop.f32.mrf.mxu0  ;;  %v9027_v21 = vcombine.low %v7795_v60, %v7798_v45 }
 0x378   : > { %v4921_v18 = vpop.f32.mrf.mxu1  ;;  %10023 = vmatmul.mubr.msk.bf16.gmra.mxu1 %vm325_vm1, %v14206_v37 }
 0x379   : > { %v4976_v51 = vadd.f32 %v4921_v18, %v14207_v13  ;;  %v13433_v36 = vpop.f32.mrf.mxu0  ;;  %v13436_v50 = vadd.f32 %v13336_v55, %v4978_v10  ;;  %10026 = vmatprep.mubr.msk.bf16.mxu1 %vm325_vm1, %v9026_v54  ;;  %v14213_v13 = vld [vmem:[#allocation44_spill] sm:$0xff] }
 0x37a   : > { %v9821_v46 = vpop.f32.mrf.mxu1 }
 0x37b   : > { %v4979_v25 = vadd.f32 %v9821_v46, %v14208_v7  ;;  %v13444_v38 = vpop.f32.mrf.mxu0  ;;  %v13447_v20 = vadd.f32 %v13342_v47, %v4976_v51  ;;  %v14211_v47 = vld [vmem:[#allocation42_spill] sm:$0xff] }
 0x37c   : > { %v4924_v35 = vpop.f32.mrf.mxu1 }
 0x37d   : > { %v4977_v55 = vadd.f32 %v4924_v35, %v14209_v39  ;;  %v13450_v49 = vpop.f32.mrf.mxu0  ;;  %v13453_v40 = vadd.f32 %v13349_v24, %v4979_v25 }
 0x37e   : > { %v9824_v9 = vpop.f32.mrf.mxu1 }
 0x37f   : > { %v4982_v61 = vadd.f32 %v9824_v9, %v14210_v48  ;;  %v13456_v8 = vpop.f32.mrf.mxu0  ;;  %v13459_v17 = vadd.f32 %v13359_v22, %v4977_v55 }
 0x380   : > { %v4937_v15 = vpop.f32.mrf.mxu1  ;;  %10027 = vmatmul.mubr.msk.bf16.gmra.mxu1 %vm325_vm1, %v9027_v21 }
 0x381   : > { %v4980_v63 = vadd.f32 %v4937_v15, %v14211_v47  ;;  %v13463_v62 = vpop.f32.mrf.mxu0  ;;  %v13466_v10 = vadd.f32 %v13370_v56, %v4982_v61 }
 0x382   : > { %v9825_v24 = vpop.f32.mrf.mxu1 }
 0x383   : > { %v4983_v54 = vadd.f32 %v9825_v24, %v14212_v12  ;;  %v13469_v18 = vpop.f32.mrf.mxu0  ;;  %v13472_v37 = vadd.f32 %v13378_v42, %v4980_v63 }
 0x384   : > { %v4940_v22 = vpop.f32.mrf.mxu1 }
 0x385   : > { %v4981_v51 = vadd.f32 %v4940_v22, %v14213_v13  ;;  %v13475_v46 = vpop.f32.mrf.mxu0  ;;  %v13478_v60 = vadd.f32 %v13387_v5, %v4983_v54 }
 0x386   : > { %v9864_v45 = vpop.f32.mrf.mxu1 }
 0x387   : > { %v13481_v56 = vadd.f32 %v9864_v45, %v13281_v33  ;;  %v13483_v7 = vpop.f32.mrf.mxu0  ;;  %v13486_v25 = vadd.f32 %v13397_v32, %v4981_v51 }
 0x388   : > { %v5909_v35 = vpop.f32.mrf.mxu1 }
 0x389   : > { %v13489_v42 = vadd.f32 %v5909_v35, %v13285_v19  ;;  %v13491_v39 = vpop.f32.mrf.mxu0 }
 0x38a   : > { %v9865_v55 = vpop.f32.mrf.mxu1 }
 0x38b   : > { %v13494_v21 = vadd.f32 %v9865_v55, %v13289_v44  ;;  %v13496_v5 = vpop.f32.mrf.mxu0 }
 0x38c   : > { %v5912_v9 = vpop.f32.mrf.mxu1 }
 0x38d   : > { %v13499_v33 = vadd.f32 %v5912_v9, %v13296_v53  ;;  %v13501_v48 = vpop.f32.mrf.mxu0 }
 0x38e   : > { %v9868_v32 = vpop.f32.mrf.mxu1 }
 0x38f   : > { %v13504_v61 = vadd.f32 %v9868_v32, %v13300_v27  ;;  %v13506_v19 = vpop.f32.mrf.mxu0 }
 0x390   : > { %14214 = vst [vmem:[#allocation45_spill] sm:$0xff] %v13506_v19  ;;  %v5925_v15 = vpop.f32.mrf.mxu1 }
 0x391   : > { %v13509_v47 = vadd.f32 %v5925_v15, %v13304_v52  ;;  %v13511_v44 = vpop.f32.mrf.mxu0 }
 0x392   : > { %14215 = vst [vmem:[#allocation46_spill] sm:$0xff] %v13511_v44  ;;  %v9869_v63 = vpop.f32.mrf.mxu1 }
 0x393   : > { %v13514_v24 = vadd.f32 %v9869_v63, %v13307_v6  ;;  %v13516_v53 = vpop.f32.mrf.mxu0 }
 0x394   : > { %14216 = vst [vmem:[#allocation47_spill] sm:$0xff] %v13516_v53  ;;  %v5928_v12 = vpop.f32.mrf.mxu1 }
 0x395   : > { %v13519_v54 = vadd.f32 %v5928_v12, %v13310_v16  ;;  %v13521_v27 = vpop.f32.mrf.mxu0 }
 0x396   : > { %14217 = vst [vmem:[#allocation48_spill] sm:$0xff] %v13521_v27  ;;  %v9872_v22 = vpop.f32.mrf.mxu1 }
 0x397   : > { %v13524_v13 = vadd.f32 %v9872_v22, %v13320_v1  ;;  %v13526_v52 = vpop.f32.mrf.mxu0 }
 0x398   : > { %14218 = vst [vmem:[#allocation49_spill] sm:$0xff] %v13526_v52  ;;  %v5941_v51 = vpop.f32.mrf.mxu1 }
 0x399   : > { %v13529_v45 = vadd.f32 %v5941_v51, %v13323_v2  ;;  %v13531_v6 = vpop.f32.mrf.mxu0 }
 0x39a   : > { %14219 = vst [vmem:[#allocation50_spill] sm:$0xff] %v13531_v6  ;;  %v9873_v35 = vpop.f32.mrf.mxu1 }
 0x39b   : > { %v13534_v55 = vadd.f32 %v9873_v35, %v13327_v23  ;;  %v13536_v16 = vpop.f32.mrf.mxu0 }
 0x39c   : > { %14220 = vst [vmem:[#allocation51_spill] sm:$0xff] %v13536_v16  ;;  %v5944_v9 = vpop.f32.mrf.mxu1 }
 0x39d   : > { %v13539_v32 = vadd.f32 %v5944_v9, %v13330_v57  ;;  %v13541_v1 = vpop.f32.mrf.mxu0 }
 0x39e   : > { %14221 = vst [vmem:[#allocation52_spill] sm:$0xff] %v13541_v1  ;;  %v9876_v15 = vpop.f32.mrf.mxu1 }
 0x39f   : > { %v13544_v63 = vadd.f32 %v9876_v15, %v13333_v34  ;;  %v13546_v12 = vpop.f32.mrf.mxu0 }
 0x3a0   : > { %v5957_v2 = vpop.f32.mrf.mxu1  ;;  %14222 = vst [vmem:[#allocation53_spill] sm:$0xff] %v13546_v12 }
 0x3a1   : > { %v13549_v22 = vadd.f32 %v5957_v2, %v13339_v14  ;;  %v13554_v16 = vpop.f32.mrf.mxu0 }
 0x3a2   : > { %v9877_v23 = vpop.f32.mrf.mxu1  ;;  %14224 = vst [vmem:[#allocation3_spill] sm:$0xff] %v13554_v16 }
 0x3a3   : > { %v13552_v51 = vadd.f32 %v9877_v23, %v13346_v28  ;;  %v13562_v1 = vpop.f32.mrf.mxu0 }
 0x3a4   : > { %v5960_v35 = vpop.f32.mrf.mxu1  ;;  %14227 = vst [vmem:[#allocation11_spill] sm:$0xff] %v13562_v1 }
 0x3a5   : > { %14223 = vst [vmem:[#allocation54_spill] sm:$0xff] %v13552_v51  ;;  %v13557_v57 = vadd.f32 %v5960_v35, %v13352_v41  ;;  %v13570_v12 = vpop.f32.mrf.mxu0 }
 0x3a6   : > { %v9880_v9 = vpop.f32.mrf.mxu1  ;;  %14230 = vst [vmem:[#allocation7_spill] sm:$0xff] %v13570_v12 }
 0x3a7   : > { %14225 = vst [vmem:[#allocation16_spill] sm:$0xff] %v13557_v57  ;;  %v13560_v34 = vadd.f32 %v9880_v9, %v13362_v43  ;;  %v13578_v16 = vpop.f32.mrf.mxu0 }
 0x3a8   : > { %v5973_v15 = vpop.f32.mrf.mxu1  ;;  %14233 = vst [vmem:[#allocation8_spill] sm:$0xff] %v13578_v16 }
 0x3a9   : > { %14226 = vst [vmem:[#allocation18_spill] sm:$0xff] %v13560_v34  ;;  %v13565_v14 = vadd.f32 %v5973_v15, %v13373_v11 }
 0x3aa   : > { %v9881_v2 = vpop.f32.mrf.mxu1 }
 0x3ab   : > { %14228 = vst [vmem:[#allocation30_spill] sm:$0xff] %v13565_v14  ;;  %v13568_v28 = vadd.f32 %v9881_v2, %v13382_v29  ;;  %v13586_v2 = vpop.f32.mrf.mxu0 }
 0x3ac   : > { %v5976_v23 = vpop.f32.mrf.mxu1  ;;  %14236 = vst [vmem:[#allocation15_spill] sm:$0xff] %v13586_v2 }
 0x3ad   : > { %14229 = vst [vmem:[#allocation4_spill] sm:$0xff] %v13568_v28  ;;  %v13573_v41 = vadd.f32 %v5976_v23, %v13390_v31 }
 0x3ae   : > { %v9884_v35 = vpop.f32.mrf.mxu1 }
 0x3af   : > { %14231 = vst [vmem:[#allocation20_spill] sm:$0xff] %v13573_v41  ;;  %v13576_v43 = vadd.f32 %v9884_v35, %v13400_v26  ;;  %v13594_v35 = vpop.f32.mrf.mxu0 }
 0x3b0   : > { %v5989_v9 = vpop.f32.mrf.mxu1  ;;  %14239 = vst [vmem:[#allocation26_spill] sm:$0xff] %v13594_v35 }
 0x3b1   : > { %14232 = vst [vmem:[#allocation27_spill] sm:$0xff] %v13576_v43  ;;  %v13581_v11 = vadd.f32 %v5989_v9, %v13409_v4 }
 0x3b2   : > { %v9885_v15 = vpop.f32.mrf.mxu1 }
 0x3b3   : > { %14234 = vst [vmem:[#allocation10_spill] sm:$0xff] %v13581_v11  ;;  %v13584_v29 = vadd.f32 %v9885_v15, %v13417_v0  ;;  %v13602_v15 = vpop.f32.mrf.mxu0 }
 0x3b4   : > { %v5992_v12 = vpop.f32.mrf.mxu1  ;;  %14242 = vst [vmem:[#allocation22_spill] sm:$0xff] %v13602_v15 }
 0x3b5   : > { %14235 = vst [vmem:[#allocation5_spill] sm:$0xff] %v13584_v29  ;;  %v13589_v31 = vadd.f32 %v5992_v12, %v13426_v58  ;;  %v13607_v12 = vpop.f32.mrf.mxu0 }
 0x3b6   : > { %v9888_v23 = vpop.f32.mrf.mxu1  ;;  %14244 = vst [vmem:[#allocation9_spill] sm:$0xff] %v13607_v12 }
 0x3b7   : > { %14237 = vst [vmem:[#allocation13_spill] sm:$0xff] %v13589_v31  ;;  %v13592_v26 = vadd.f32 %v9888_v23, %v13436_v50  ;;  %v13612_v1 = vpop.f32.mrf.mxu0 }
 0x3b8   : > { %v6005_v16 = vpop.f32.mrf.mxu1  ;;  %14246 = vst [vmem:[#allocation12_spill] sm:$0xff] %v13612_v1 }
 0x3b9   : > { %14238 = vst [vmem:[#allocation6_spill] sm:$0xff] %v13592_v26  ;;  %v13597_v4 = vadd.f32 %v6005_v16, %v13447_v20 }
 0x3ba   : > { %v9889_v9 = vpop.f32.mrf.mxu1 }
 0x3bb   : > { %14240 = vst [vmem:[#allocation21_spill] sm:$0xff] %v13597_v4  ;;  %v13600_v0 = vadd.f32 %v9889_v9, %v13453_v40 }
 0x3bc   : > { %v6008_v2 = vpop.f32.mrf.mxu1 }
 0x3bd   : > { %14241 = vst [vmem:[#allocation25_spill] sm:$0xff] %v13600_v0  ;;  %v13605_v58 = vadd.f32 %v6008_v2, %v13459_v17  ;;  %v9966_v15 = vpop.f32.mrf.mxu0 }
 0x3bf   : > { %14243 = vst [vmem:[#allocation32_spill] sm:$0xff] %v13605_v58  ;;  %v7464_v58 = vpop.f32.mrf.mxu0 }
 0x3c0   : > { %v9892_v50 = vpop.f32.mrf.mxu1 }
 0x3c1   : > { %v13610_v23 = vadd.f32 %v9892_v50, %v13466_v10 }
 0x3c2   : > { %v6021_v35 = vpop.f32.mrf.mxu1 }
 0x3c3   : > { %14245 = vst [vmem:[#allocation35_spill] sm:$0xff] %v13610_v23  ;;  %v13615_v20 = vadd.f32 %v6021_v35, %v13472_v37  ;;  %v13623_v23 = vpop.f32.mrf.mxu0 }
 0x3c4   : > { %v9893_v40 = vpop.f32.mrf.mxu1 }
 0x3c5   : > { %14247 = vst [vmem:[#allocation14_spill] sm:$0xff] %v13615_v20  ;;  %v13618_v16 = vadd.f32 %v9893_v40, %v13478_v60  ;;  %v13627_v37 = vpop.f32.mrf.mxu0 }
 0x3c6   : > { %v6024_v9 = vpop.f32.mrf.mxu1 }
 0x3c7   : > { %14248 = vst [vmem:[#allocation24_spill] sm:$0xff] %v13618_v16  ;;  %v13621_v17 = vadd.f32 %v6024_v9, %v13486_v25 }
 0x3c8   : > { %v9932_v2 = vpop.f32.mrf.mxu1  ;;  %v13633_v40 = vpop.f32.mrf.mxu0 }
 0x3c9   : > { %14249 = vst [vmem:[#allocation17_spill] sm:$0xff] %v13621_v17 }
 0x3ca   : > { %v6738_v12 = vpop.f32.mrf.mxu1  ;;  %v13639_v17 = vpop.f32.mrf.mxu0 }
 0x3cc   : > { %v9933_v10 = vpop.f32.mrf.mxu1  ;;  %v13645_v4 = vpop.f32.mrf.mxu0 }
 0x3ce   : > { %v6741_v50 = vpop.f32.mrf.mxu1  ;;  %v13651_v29 = vpop.f32.mrf.mxu0 }
 0x3d0   : > { %v9936_v1 = vpop.f32.mrf.mxu1 }
 0x3d2   : > { %v13625_v0 = vpop.f32.mrf.mxu1 }
 0x3d3   : > { %v13657_v6 = vpop.f32.mrf.mxu0 }
 0x3d4   : > { %v13629_v35 = vpop.f32.mrf.mxu1 }
 0x3d5   : > { %v13663_v28 = vpop.f32.mrf.mxu0 }
 0x3d6   : > { %v13631_v60 = vpop.f32.mrf.mxu1 }
 0x3d7   : > { %v13669_v53 = vpop.f32.mrf.mxu0 }
 0x3d8   : > { %v13635_v25 = vpop.f32.mrf.mxu1 }
 0x3d9   : > { %v13675_v57 = vpop.f32.mrf.mxu0 }
 0x3da   : > { %v13637_v9 = vpop.f32.mrf.mxu1 }
 0x3dc   : > { %v13641_v16 = vpop.f32.mrf.mxu1 }
 0x3de   : > { %v13643_v20 = vpop.f32.mrf.mxu1 }
 0x3e0   : > { %v13647_v26 = vpop.f32.mrf.mxu1 }
 0x3e2   : > { %v13649_v31 = vpop.f32.mrf.mxu1 }
 0x3e4   : > { %v13653_v11 = vpop.f32.mrf.mxu1 }
 0x3e5   : > { %14250 = vst [vmem:[#allocation19_spill] sm:$0xff] %v13653_v11 }
 0x3e6   : > { %v13655_v43 = vpop.f32.mrf.mxu1 }
 0x3e7   : > { %14251 = vst [vmem:[#allocation23_spill] sm:$0xff] %v13655_v43 }
 0x3e8   : > { %v13659_v41 = vpop.f32.mrf.mxu1 }
 0x3e9   : > { %14252 = vst [vmem:[#allocation28_spill] sm:$0xff] %v13659_v41  ;;  %v13681_v41 = vpop.f32.mrf.mxu0 }
 0x3ea   : > { %v13661_v52 = vpop.f32.mrf.mxu1  ;;  %14260 = vst [vmem:[#allocation39_spill] sm:$0xff] %v13681_v41 }
 0x3eb   : > { %14253 = vst [vmem:[#allocation29_spill] sm:$0xff] %v13661_v52 }
 0x3ec   : > { %v13665_v27 = vpop.f32.mrf.mxu1 }
 0x3ed   : > { %14254 = vst [vmem:[#allocation33_spill] sm:$0xff] %v13665_v27  ;;  %v13687_v27 = vpop.f32.mrf.mxu0 }
 0x3ee   : > { %v13667_v14 = vpop.f32.mrf.mxu1  ;;  %14263 = vst [vmem:[#allocation42_spill] sm:$0xff] %v13687_v27 }
 0x3ef   : > { %14255 = vst [vmem:[#allocation34_spill] sm:$0xff] %v13667_v14 }
 0x3f0   : > { %v13671_v34 = vpop.f32.mrf.mxu1 }
 0x3f1   : > { %14256 = vst [vmem:[#allocation31_spill] sm:$0xff] %v13671_v34  ;;  %v13693_v34 = vpop.f32.mrf.mxu0 }
 0x3f2   : > { %v13673_v44 = vpop.f32.mrf.mxu1  ;;  %14266 = vst [vmem:[#allocation55_spill] sm:$0xff] %v13693_v34 }
 0x3f3   : > { %14257 = vst [vmem:[#allocation36_spill] sm:$0xff] %v13673_v44 }
 0x3f4   : > { %v13677_v43 = vpop.f32.mrf.mxu1 }
 0x3f5   : > { %14258 = vst [vmem:[#allocation37_spill] sm:$0xff] %v13677_v43  ;;  %v6508_v43 = vadd.f32 %v13406_v59, %v13481_v56 }
 0x3f6   : > { %v13679_v11 = vpop.f32.mrf.mxu1 }
 0x3f7   : > { %14259 = vst [vmem:[#allocation38_spill] sm:$0xff] %v13679_v11  ;;  %v6867_v41 = vadd.f32 %v9932_v2, %v6508_v43  ;;  %v6507_v43 = vadd.f32 %v13433_v36, %v13499_v33 }
 0x3f8   : > { %v13683_v52 = vpop.f32.mrf.mxu1 }
 0x3f9   : > { %14261 = vst [vmem:[#allocation40_spill] sm:$0xff] %v13683_v52  ;;  %v6506_v52 = vadd.f32 %v13414_v3, %v13489_v42  ;;  %v7593_v56 = vadd.f32 %v9966_v15, %v6867_v41  ;;  %v6512_v3 = vadd.f32 %v13444_v38, %v13504_v61  ;;  %v6510_v41 = vadd.f32 %v13450_v49, %v13509_v47  ;;  %v9046_v15 = vld [vmem:[%s10189_s6 + $0x31] sm:$0xff] }
 0x3fa   : > { %v13685_v19 = vpop.f32.mrf.mxu1 }
 0x3fb   : > { %14262 = vst [vmem:[#allocation41_spill] sm:$0xff] %v13685_v19  ;;  %v13703_v19 = vpop.f32.mrf.mxu0 }
 0x3fc   : > { %v13689_v14 = vpop.f32.mrf.mxu1 }
 0x3fd   : > { %14264 = vst [vmem:[#allocation43_spill] sm:$0xff] %v13689_v14  ;;  %v6865_v14 = vadd.f32 %v6738_v12, %v6506_v52  ;;  %v13711_v59 = vpop.f32.mrf.mxu0  ;;  %v13720_v52 = vld [vmem:[%s13989_s4] ss:$0 sm:$0xff]  ;;  %v6866_v12 = vadd.f32 %v6741_v50, %v6507_v43  ;;  %v6511_v50 = vadd.f32 %v13463_v62, %v13519_v54 }
 0x3fe   : > { %v13691_v51 = vpop.f32.mrf.mxu1 }
 0x3ff   : > { %14265 = vst [vmem:[#allocation44_spill] sm:$0xff] %v13691_v51  ;;  %v6509_v51 = vadd.f32 %v13423_v30, %v13494_v21  ;;  %v7591_v21 = vadd.f32 %v7464_v58, %v6865_v14  ;;  %v13725_v33 = vpop.f32.mrf.mxu0 }
 0x400   : > { %v13695_v44 = vpop.f32.mrf.mxu1 }
 0x401   : > { %14267 = vst [vmem:[#allocation56_spill] sm:$0xff] %v13695_v44  ;;  %v6868_v44 = vadd.f32 %v9933_v10, %v6509_v51  ;;  %v6871_v51 = vadd.f32 %v9936_v1, %v6512_v3  ;;  %v6869_v10 = vadd.f32 %v13625_v0, %v6510_v41  ;;  %v6513_v1 = vadd.f32 %v13456_v8, %v13514_v24  ;;  %v13746_v43 = vpop.f32.mrf.mxu0 }
 0x402   : > { %v13699_v11 = vpop.f32.mrf.mxu1  ;;  %v7592_v0 = vadd.f32 %v13627_v37, %v6866_v12  ;;  %v6870_v12 = vadd.f32 %v13631_v60, %v6511_v50 }
 0x403   : > { %v7594_v2 = vadd.f32 %v13623_v23, %v6868_v44  ;;  %v9047_v44 = vld [vmem:[%s10189_s6 + $0x39] sm:$0xff]  ;;  %v7597_v8 = vadd.f32 %v13633_v40, %v6871_v51  ;;  %v6872_v24 = vadd.f32 %v13629_v35, %v6513_v1  ;;  %v7595_v37 = vadd.f32 %v13639_v17, %v6869_v10  ;;  %v9045_v51 = vld [vmem:[%s10189_s6 + $0x21] sm:$0xff]  ;;  %v13761_v17 = vpop.f32.mrf.mxu0 }
 0x404   : > { %v13705_v27 = vpop.f32.mrf.mxu1 }
 0x405   : > { %v7598_v10 = vadd.f32 %v13645_v4, %v6872_v24 }
 0x406   : > { %v13709_v34 = vpop.f32.mrf.mxu1 }
 0x408   : > { %v10000_v42 = vpop.f32.mrf.mxu1 }
 0x409   : > { %v8063_v30 = vadd.f32 %v10000_v42, %v7593_v56  ;;  %v9044_v56 = vld [vmem:[%s10189_s6 + $0x19] sm:$0xff]  ;;  %v6516_v42 = vadd.f32 %v13469_v18, %v13524_v13  ;;  %v6514_v18 = vadd.f32 %v13475_v46, %v13529_v45  ;;  %v6517_v46 = vadd.f32 %v13483_v7, %v13534_v55  ;;  %v9051_v55 = vld [vmem:[%s10189_s6 + $0x69] sm:$0xff] }
 0x40a   : > { %v7934_v36 = vpop.f32.mrf.mxu1 }
 0x40b   : > { %v8134_v38 = vadd.f32 %v13720_v52, %v8063_v30  ;;  %v8061_v61 = vadd.f32 %v7934_v36, %v7591_v21  ;;  %v9050_v36 = vld [vmem:[%s10189_s6 + $0x61] sm:$0xff]  ;;  %v6876_v4 = vadd.f32 %v13641_v16, %v6517_v46  ;;  %v6520_v16 = vadd.f32 %v13496_v5, %v13544_v63  ;;  %v9054_v63 = vld [vmem:[%s10189_s6 + $0x91] sm:$0xff]  ;;  %v9055_v46 = vld [vmem:[%s10189_s6 + $0x99] sm:$0xff] }
 0x40c   : > { %v10001_v14 = vpop.f32.mrf.mxu1  ;;  %v6518_v5 = vadd.f32 %v13501_v48, %v13549_v22  ;;  %v9052_v22 = vld [vmem:[%s10189_s6 + $0x79] sm:$0xff] }
 0x40d   : > { %v8166_v58 = vadd.f32 %v9046_v15, %v8134_v38  ;;  %v8132_v49 = vadd.f32 %v13720_v52, %v8061_v61  ;;  %v8064_v47 = vadd.f32 %v10001_v14, %v7594_v2  ;;  %v6875_v15 = vadd.f32 %v13635_v25, %v6516_v42 }
 0x40e   : > { %v7937_v23 = vpop.f32.mrf.mxu1  ;;  %v6873_v25 = vadd.f32 %v13637_v9, %v6514_v18  ;;  %v6515_v9 = vadd.f32 %v13491_v39, %v13539_v32  ;;  %v9049_v39 = vld [vmem:[%s10189_s6 + $0x51] sm:$0xff] }
 0x40f   : > { %v8198_v3 = vmax.f32 %v8166_v58, 0.0  ;;  %v8164_v62 = vadd.f32 %v9044_v56, %v8132_v49  ;;  %v8135_v54 = vadd.f32 %v13720_v52, %v8064_v47  ;;  %v8062_v30 = vadd.f32 %v7937_v23, %v7592_v0  ;;  %v9048_v56 = vld [vmem:[%s10189_s6 + $0x49] sm:$0xff]  ;;  %v13780_v0 = vpop.f32.mrf.mxu0 }
 0x410   : > { %v10004_v21 = vpop.f32.mrf.mxu1  ;;  %v7596_v47 = vadd.f32 %v13651_v29, %v6870_v12  ;;  %v6874_v29 = vadd.f32 %v13643_v20, %v6515_v9  ;;  %v6879_v20 = vadd.f32 %v13647_v26, %v6520_v16  ;;  %v6877_v26 = vadd.f32 %v13649_v31, %v6518_v5  ;;  %v14272_v31 = vld [vmem:[#allocation46_spill] sm:$0xff]  ;;  %v14281_v5 = vld [vmem:[#allocation55_spill] sm:$0xff] }
 0x411   : > { %8230 = vst.msk [vmem:[%s13740_s27 + $0x10] sm:$0xff] %vm325_vm1, %v8198_v3  ;;  %v8196_v35 = vmax.f32 %v8164_v62, 0.0  ;;  %v8167_v40 = vadd.f32 %v9047_v44, %v8135_v54  ;;  %v8067_v41 = vadd.f32 %v10004_v21, %v7597_v8  ;;  %v8133_v13 = vadd.f32 %v13720_v52, %v8062_v30  ;;  %v13798_v12 = vpop.f32.mrf.mxu0 }
 0x412   : > { %v7950_v38 = vpop.f32.mrf.mxu1  ;;  %v7601_v44 = vadd.f32 %v13657_v6, %v6875_v15  ;;  %v7599_v6 = vadd.f32 %v13663_v28, %v6873_v25  ;;  %v14269_v15 = vld [vmem:[#allocation45_spill] sm:$0xff] }
 0x413   : > { %8228 = vst.msk [vmem:[%s13740_s27] sm:$0xff] %vm325_vm1, %v8196_v35  ;;  %v8199_v60 = vmax.f32 %v8167_v40, 0.0  ;;  %v8138_v61 = vadd.f32 %v13720_v52, %v8067_v41  ;;  %v8065_v2 = vadd.f32 %v7950_v38, %v7595_v37  ;;  %v8165_v45 = vadd.f32 %v9045_v51, %v8133_v13  ;;  %v14268_v41 = vld [vmem:[#allocation54_spill] sm:$0xff] }
 0x414   : > { %v10005_v14 = vpop.f32.mrf.mxu1  ;;  %v7602_v37 = vadd.f32 %v13669_v53, %v6876_v4  ;;  %v6521_v48 = vadd.f32 %v14269_v15, %v14268_v41  ;;  %v7600_v53 = vadd.f32 %v13675_v57, %v6874_v29  ;;  %v14274_v4 = vld [vmem:[#allocation23_spill] sm:$0xff]  ;;  %v14283_v41 = vld [vmem:[#allocation4_spill] sm:$0xff]  ;;  %v14284_v15 = vld [vmem:[#allocation49_spill] sm:$0xff] }
 0x415   : > { %8231 = vst.msk [vmem:[%s13740_s27 + $0x18] sm:$0xff] %vm325_vm1, %v8199_v60  ;;  %v8170_v1 = vadd.f32 %v9050_v36, %v8138_v61  ;;  %v8136_v58 = vadd.f32 %v13720_v52, %v8065_v2  ;;  %v8068_v49 = vadd.f32 %v10005_v14, %v7598_v10  ;;  %v8197_v7 = vmax.f32 %v8165_v45, 0.0  ;;  %v14270_v61 = vld [vmem:[#allocation19_spill] sm:$0xff]  ;;  %v14271_v10 = vld [vmem:[#allocation16_spill] sm:$0xff] }
 0x416   : > { %v7953_v50 = vpop.f32.mrf.mxu1  ;;  %v6880_v2 = vadd.f32 %v14270_v61, %v6521_v48  ;;  %v6519_v25 = vadd.f32 %v14272_v31, %v14271_v10  ;;  %v6525_v48 = vadd.f32 %v14284_v15, %v14283_v41  ;;  %v14285_v61 = vld [vmem:[#allocation33_spill] sm:$0xff]  ;;  %v14286_v10 = vld [vmem:[#allocation20_spill] sm:$0xff]  ;;  %v14287_v31 = vld [vmem:[#allocation50_spill] sm:$0xff] }
 0x417   : > { %v8202_v23 = vmax.f32 %v8170_v1, 0.0  ;;  %v8168_v8 = vadd.f32 %v9048_v56, %v8136_v58  ;;  %v8139_v24 = vadd.f32 %v13720_v52, %v8068_v49  ;;  %v8066_v3 = vadd.f32 %v7953_v50, %v7596_v47  ;;  %8229 = vst.msk [vmem:[%s13740_s27 + $0x8] sm:$0xff] %vm325_vm1, %v8197_v7  ;;  %v14273_v56 = vld [vmem:[#allocation39_spill] sm:$0xff]  ;;  %v13816_v1 = vpop.f32.mrf.mxu0  ;;  %v14275_v7 = vld [vmem:[#allocation18_spill] sm:$0xff] }
 0x418   : > { %v10008_v32 = vpop.f32.mrf.mxu1  ;;  %v7605_v14 = vadd.f32 %v14273_v56, %v6879_v20  ;;  %v6878_v9 = vadd.f32 %v14274_v4, %v6519_v25  ;;  %v6523_v25 = vadd.f32 %v14287_v31, %v14286_v10 }
 0x419   : > { %8234 = vst.msk [vmem:[%s13740_s27 + $0x30] sm:$0xff] %vm325_vm1, %v8202_v23  ;;  %v8200_v62 = vmax.f32 %v8168_v8, 0.0  ;;  %v8171_v54 = vadd.f32 %v9051_v55, %v8139_v24  ;;  %v8137_v42 = vadd.f32 %v13720_v52, %v8066_v3  ;;  %v8071_v30 = vadd.f32 %v10008_v32, %v7601_v44  ;;  %v14276_v55 = vld [vmem:[#allocation47_spill] sm:$0xff]  ;;  %v9053_v44 = vld [vmem:[%s10189_s6 + $0x81] sm:$0xff]  ;;  %v14277_v8 = vld [vmem:[#allocation42_spill] sm:$0xff] }
 0x41a   : > { %v7966_v21 = vpop.f32.mrf.mxu1  ;;  %v6524_v50 = vadd.f32 %v14276_v55, %v14275_v7  ;;  %v7603_v24 = vadd.f32 %v14277_v8, %v6877_v26  ;;  %v14278_v32 = vld [vmem:[#allocation28_spill] sm:$0xff]  ;;  %v14290_v7 = vld [vmem:[#allocation51_spill] sm:$0xff] }
 0x41b   : > { %8232 = vst.msk [vmem:[%s13740_s27 + $0x20] sm:$0xff] %vm325_vm1, %v8200_v62  ;;  %v8203_v28 = vmax.f32 %v8171_v54, 0.0  ;;  %v8169_v35 = vadd.f32 %v9049_v39, %v8137_v42  ;;  %v8142_v40 = vadd.f32 %v13720_v52, %v8071_v30  ;;  %v8069_v51 = vadd.f32 %v7966_v21, %v7599_v6  ;;  %v14279_v62 = vld [vmem:[#allocation30_spill] sm:$0xff]  ;;  %v14280_v54 = vld [vmem:[#allocation48_spill] sm:$0xff]  ;;  %v13834_v21 = vpop.f32.mrf.mxu0 }
 0x41c   : > { %v10009_v18 = vpop.f32.mrf.mxu1  ;;  %v6883_v6 = vadd.f32 %v14278_v32, %v6524_v50  ;;  %v6522_v42 = vadd.f32 %v14280_v54, %v14279_v62  ;;  %v9058_v30 = vld [vmem:[%s10189_s6 + $0xc1] sm:$0xff]  ;;  %v9057_v50 = vld [vmem:[%s10189_s6 + $0xb1] sm:$0xff] }
 0x41d   : > { %8235 = vst.msk [vmem:[%s13740_s27 + $0x38] sm:$0xff] %vm325_vm1, %v8203_v28  ;;  %v8201_v13 = vmax.f32 %v8169_v35, 0.0  ;;  %v8174_v36 = vadd.f32 %v9054_v63, %v8142_v40  ;;  %v8140_v38 = vadd.f32 %v13720_v52, %v8069_v51  ;;  %v8072_v60 = vadd.f32 %v10009_v18, %v7602_v37  ;;  %v14282_v51 = vld [vmem:[#allocation29_spill] sm:$0xff]  ;;  %v14293_v32 = vld [vmem:[#allocation52_spill] sm:$0xff]  ;;  %v9062_v62 = vld [vmem:[%s10189_s6 + $0xf1] sm:$0xff] }
 0x41e   : > { %v7969_v45 = vpop.f32.mrf.mxu1  ;;  %v7606_v63 = vadd.f32 %v14281_v5, %v6880_v2  ;;  %v6881_v26 = vadd.f32 %v14282_v51, %v6522_v42  ;;  %v6884_v2 = vadd.f32 %v14285_v61, %v6525_v48  ;;  %v7609_v56 = vadd.f32 %v13711_v59, %v6883_v6  ;;  %v9063_v61 = vld [vmem:[%s10189_s6 + $0xf9] sm:$0xff] }
 0x41f   : > { %8233 = vst.msk [vmem:[%s13740_s27 + $0x28] sm:$0xff] %vm325_vm1, %v8201_v13  ;;  %v8206_v57 = vmax.f32 %v8174_v36, 0.0  ;;  %v8172_v58 = vadd.f32 %v9052_v22, %v8140_v38  ;;  %v8143_v49 = vadd.f32 %v13720_v52, %v8072_v60  ;;  %v8070_v47 = vadd.f32 %v7969_v45, %v7600_v53  ;;  %v9056_v22 = vld [vmem:[%s10189_s6 + $0xa9] sm:$0xff] }
 0x420   : > { %v10012_v23 = vpop.f32.mrf.mxu1  ;;  %v7604_v53 = vadd.f32 %v13703_v19, %v6878_v9  ;;  %v14289_v9 = vld [vmem:[#allocation27_spill] sm:$0xff]  ;;  %v7607_v59 = vadd.f32 %v13725_v33, %v6881_v26  ;;  %v7610_v42 = vadd.f32 %v13746_v43, %v6884_v2 }
 0x421   : > { %8238 = vst.msk [vmem:[%s13740_s27 + $0x50] sm:$0xff] %vm325_vm1, %v8206_v57  ;;  %v8204_v3 = vmax.f32 %v8172_v58, 0.0  ;;  %v8175_v29 = vadd.f32 %v9055_v46, %v8143_v49  ;;  %v8141_v16 = vadd.f32 %v13720_v52, %v8070_v47  ;;  %v8075_v39 = vadd.f32 %v10012_v23, %v7605_v14  ;;  %v9059_v46 = vld [vmem:[%s10189_s6 + $0xc9] sm:$0xff]  ;;  %v13852_v14 = vpop.f32.mrf.mxu0  ;;  %v9060_v26 = vld [vmem:[%s10189_s6 + $0xd9] sm:$0xff] }
 0x422   : > { %v7982_v20 = vpop.f32.mrf.mxu1  ;;  %v14288_v47 = vld [vmem:[#allocation34_spill] sm:$0xff]  ;;  %v6528_v55 = vadd.f32 %v14290_v7, %v14289_v9 }
 0x423   : > { %8236 = vst.msk [vmem:[%s13740_s27 + $0x40] sm:$0xff] %vm325_vm1, %v8204_v3  ;;  %v8207_v37 = vmax.f32 %v8175_v29, 0.0  ;;  %v8173_v28 = vadd.f32 %v9053_v44, %v8141_v16  ;;  %v8146_v35 = vadd.f32 %v13720_v52, %v8075_v39  ;;  %v8073_v40 = vadd.f32 %v7982_v20, %v7603_v24  ;;  %v14291_v29 = vld [vmem:[#allocation31_spill] sm:$0xff]  ;;  %v14292_v39 = vld [vmem:[#allocation10_spill] sm:$0xff] }
 0x424   : > { %v10013_v18 = vpop.f32.mrf.mxu1  ;;  %v6882_v4 = vadd.f32 %v14288_v47, %v6523_v25  ;;  %v6887_v16 = vadd.f32 %v14291_v29, %v6528_v55  ;;  %v6526_v6 = vadd.f32 %v14293_v32, %v14292_v39  ;;  %v9061_v47 = vld [vmem:[%s10189_s6 + $0xe1] sm:$0xff] }
 0x425   : > { %8239 = vst.msk [vmem:[%s13740_s27 + $0x58] sm:$0xff] %vm325_vm1, %v8207_v37  ;;  %v8205_v13 = vmax.f32 %v8173_v28, 0.0  ;;  %v8178_v36 = vadd.f32 %v9058_v30, %v8146_v35  ;;  %v8144_v38 = vadd.f32 %v13720_v52, %v8073_v40  ;;  %v8076_v60 = vadd.f32 %v10013_v18, %v7606_v63  ;;  %v13870_v30 = vpop.f32.mrf.mxu0  ;;  %v14294_v37 = vld [vmem:[#allocation36_spill] sm:$0xff]  ;;  %v14295_v35 = vld [vmem:[#allocation5_spill] sm:$0xff] }
 0x426   : > { %v7985_v45 = vpop.f32.mrf.mxu1  ;;  %v6885_v28 = vadd.f32 %v14294_v37, %v6526_v6  ;;  %v14296_v40 = vld [vmem:[#allocation53_spill] sm:$0xff]  ;;  %v7608_v43 = vadd.f32 %v13761_v17, %v6882_v4  ;;  %v7613_v10 = vadd.f32 %v13780_v0, %v6887_v16 }
 0x427   : > { %8237 = vst.msk [vmem:[%s13740_s27 + $0x48] sm:$0xff] %vm325_vm1, %v8205_v13  ;;  %v8210_v19 = vmax.f32 %v8178_v36, 0.0  ;;  %v8176_v57 = vadd.f32 %v9056_v22, %v8144_v38  ;;  %v8147_v58 = vadd.f32 %v13720_v52, %v8076_v60  ;;  %v8074_v49 = vadd.f32 %v7985_v45, %v7604_v53  ;;  %v14297_v53 = vld [vmem:[#allocation37_spill] sm:$0xff]  ;;  %v14299_v38 = vld [vmem:[#allocation3_spill] sm:$0xff]  ;;  %v13888_v31 = vpop.f32.mrf.mxu0 }
 0x428   : > { %v10016_v44 = vpop.f32.mrf.mxu1  ;;  %v6529_v51 = vadd.f32 %v14296_v40, %v14295_v35  ;;  %v14298_v36 = vld [vmem:[#allocation13_spill] sm:$0xff]  ;;  %v7611_v0 = vadd.f32 %v13798_v12, %v6885_v28 }
 0x429   : > { %8242 = vst.msk [vmem:[%s13740_s27 + $0x70] sm:$0xff] %vm325_vm1, %v8210_v19  ;;  %v8208_v23 = vmax.f32 %v8176_v57, 0.0  ;;  %v8179_v8 = vadd.f32 %v9059_v46, %v8147_v58  ;;  %v8145_v24 = vadd.f32 %v13720_v52, %v8074_v49  ;;  %v8079_v3 = vadd.f32 %v10016_v44, %v7609_v56  ;;  %v14300_v56 = vld [vmem:[#allocation38_spill] sm:$0xff]  ;;  %v14302_v58 = vld [vmem:[#allocation11_spill] sm:$0xff]  ;;  %v14303_v44 = vld [vmem:[#allocation40_spill] sm:$0xff]  ;;  %v7563_v39 = vpop.f32.mrf.mxu0 }
 0x42a   : > { %v7998_v54 = vpop.f32.mrf.mxu1  ;;  %v6888_v13 = vadd.f32 %v14297_v53, %v6529_v51  ;;  %v6527_v60 = vadd.f32 %v14299_v38, %v14298_v36  ;;  %v14301_v57 = vld [vmem:[#allocation6_spill] sm:$0xff] }
 0x42b   : > { %8240 = vst.msk [vmem:[%s13740_s27 + $0x60] sm:$0xff] %vm325_vm1, %v8208_v23  ;;  %v8211_v33 = vmax.f32 %v8179_v8, 0.0  ;;  %v8177_v20 = vadd.f32 %v9057_v50, %v8145_v24  ;;  %v8150_v5 = vadd.f32 %v13720_v52, %v8079_v3  ;;  %v8077_v63 = vadd.f32 %v7998_v54, %v7607_v59  ;;  %v14304_v23 = vld [vmem:[#allocation21_spill] sm:$0xff]  ;;  %v14305_v8 = vld [vmem:[#allocation7_spill] sm:$0xff] }
 0x42c   : > { %v10017_v41 = vpop.f32.mrf.mxu1  ;;  %v6886_v19 = vadd.f32 %v14300_v56, %v6527_v60  ;;  %v6532_v49 = vadd.f32 %v14302_v58, %v14301_v57  ;;  %v6530_v24 = vadd.f32 %v14305_v8, %v14304_v23  ;;  %v9066_v3 = vld [vmem:[%s10189_s6 + $0x121] sm:$0xff]  ;;  %v7614_v16 = vadd.f32 %v13816_v1, %v6888_v13  ;;  %v9994_v1 = vpop.f32.mrf.mxu0 }
 0x42d   : > { %8243 = vst.msk [vmem:[%s13740_s27 + $0x78] sm:$0xff] %vm325_vm1, %v8211_v33  ;;  %v8209_v15 = vmax.f32 %v8177_v20, 0.0  ;;  %v8182_v48 = vadd.f32 %v9062_v62, %v8150_v5  ;;  %v8148_v22 = vadd.f32 %v13720_v52, %v8077_v63  ;;  %v8080_v18 = vadd.f32 %v10017_v41, %v7610_v42  ;;  %v14306_v54 = vld [vmem:[#allocation41_spill] sm:$0xff]  ;;  %v14308_v20 = vld [vmem:[#allocation8_spill] sm:$0xff]  ;;  %v14309_v41 = vld [vmem:[#allocation43_spill] sm:$0xff] }
 0x42e   : > { %v8001_v2 = vpop.f32.mrf.mxu1  ;;  %v6891_v59 = vadd.f32 %v14303_v44, %v6532_v49  ;;  %v6889_v42 = vadd.f32 %v14306_v54, %v6530_v24  ;;  %v14307_v33 = vld [vmem:[#allocation25_spill] sm:$0xff]  ;;  %v7612_v28 = vadd.f32 %v13834_v21, %v6886_v19  ;;  %v7576_v19 = vpop.f32.mrf.mxu0 }
 0x42f   : > { %8241 = vst.msk [vmem:[%s13740_s27 + $0x68] sm:$0xff] %vm325_vm1, %v8209_v15  ;;  %v8214_v17 = vmax.f32 %v8182_v48, 0.0  ;;  %v8180_v25 = vadd.f32 %v9060_v26, %v8148_v22  ;;  %v8151_v46 = vadd.f32 %v13720_v52, %v8080_v18  ;;  %v8078_v45 = vadd.f32 %v8001_v2, %v7608_v43  ;;  %v9064_v63 = vld [vmem:[%s10189_s6 + $0x109] sm:$0xff]  ;;  %v14310_v15 = vld [vmem:[#allocation32_spill] sm:$0xff]  ;;  %v14311_v48 = vld [vmem:[#allocation15_spill] sm:$0xff] }
 0x430   : > { %v10020_v4 = vpop.f32.mrf.mxu1  ;;  %v6533_v5 = vadd.f32 %v14308_v20, %v14307_v33  ;;  %v6531_v22 = vadd.f32 %v14311_v48, %v14310_v15  ;;  %v9067_v18 = vld [vmem:[%s10189_s6 + $0x129] sm:$0xff]  ;;  %v7617_v13 = vadd.f32 %v13852_v14, %v6891_v59  ;;  %v7615_v56 = vadd.f32 %v13870_v30, %v6889_v42 }
 0x431   : > { %8246 = vst.msk [vmem:[%s13740_s27 + $0x90] sm:$0xff] %vm325_vm1, %v8214_v17  ;;  %v8212_v9 = vmax.f32 %v8180_v25, 0.0  ;;  %v8183_v7 = vadd.f32 %v9063_v61, %v8151_v46  ;;  %v8149_v55 = vadd.f32 %v13720_v52, %v8078_v45  ;;  %v8083_v50 = vadd.f32 %v10020_v4, %v7613_v10  ;;  %v14312_v61 = vld [vmem:[#allocation44_spill] sm:$0xff]  ;;  %v14313_v10 = vld [vmem:[#allocation35_spill] sm:$0xff]  ;;  %v14314_v17 = vld [vmem:[#allocation26_spill] sm:$0xff] }
 0x432   : > { %v8014_v29 = vpop.f32.mrf.mxu1  ;;  %v6892_v43 = vadd.f32 %v14309_v41, %v6533_v5  ;;  %v6890_v2 = vadd.f32 %v14312_v61, %v6531_v22  ;;  %v6536_v25 = vadd.f32 %v14314_v17, %v14313_v10  ;;  %v9065_v46 = vld [vmem:[%s10189_s6 + $0x111] sm:$0xff]  ;;  %v14320_v5 = vld [vmem:[#allocation17_spill] sm:$0xff] }
 0x433   : > { %8244 = vst.msk [vmem:[%s13740_s27 + $0x80] sm:$0xff] %vm325_vm1, %v8212_v9  ;;  %v8215_v12 = vmax.f32 %v8183_v7, 0.0  ;;  %v8181_v32 = vadd.f32 %v9061_v47, %v8149_v55  ;;  %v8154_v6 = vadd.f32 %v13720_v52, %v8083_v50  ;;  %v8081_v62 = vadd.f32 %v8014_v29, %v7611_v0  ;;  %v14315_v47 = vld [vmem:[#allocation56_spill] sm:$0xff]  ;;  %v14316_v0 = vld [vmem:[#allocation14_spill] sm:$0xff]  ;;  %v14319_v29 = vld [vmem:[#allocation9_spill] sm:$0xff] }
 0x434   : > { %v10021_v37 = vpop.f32.mrf.mxu1  ;;  %v6895_v4 = vadd.f32 %v14315_v47, %v6536_v25  ;;  %v14317_v9 = vld [vmem:[#allocation22_spill] sm:$0xff]  ;;  %v7618_v44 = vadd.f32 %v13888_v31, %v6892_v43 }
 0x435   : > { %8247 = vst.msk [vmem:[%s13740_s27 + $0x98] sm:$0xff] %vm325_vm1, %v8215_v12  ;;  %v8213_v35 = vmax.f32 %v8181_v32, 0.0  ;;  %v8186_v40 = vadd.f32 %v9066_v3, %v8154_v6  ;;  %v8152_v51 = vadd.f32 %v13720_v52, %v8081_v62  ;;  %v8084_v26 = vadd.f32 %v10021_v37, %v7614_v16  ;;  %v9070_v55 = vld [vmem:[%s10189_s6 + $0x151] sm:$0xff]  ;;  %v14318_v3 = vld [vmem:[#allocation24_spill] sm:$0xff]  ;;  %v9995_v62 = vpop.f32.mrf.mxu0  ;;  %v9072_v10 = vld [vmem:[%s10189_s6 + $0x169] sm:$0xff] }
 0x436   : > { %v8017_v53 = vpop.f32.mrf.mxu1  ;;  %v6534_v7 = vadd.f32 %v14317_v9, %v14316_v0  ;;  %v6537_v16 = vadd.f32 %v14319_v29, %v14318_v3  ;;  %v9068_v12 = vld [vmem:[%s10189_s6 + $0x139] sm:$0xff]  ;;  %v7616_v6 = vadd.f32 %v7563_v39, %v6890_v2  ;;  %v7621_v20 = vadd.f32 %v9994_v1, %v6895_v4  ;;  %v9069_v1 = vld [vmem:[%s10189_s6 + $0x141] sm:$0xff]  ;;  %v9073_v4 = vld [vmem:[%s10189_s6 + $0x171] sm:$0xff] }
 0x437   : > { %8245 = vst.msk [vmem:[%s13740_s27 + $0x88] sm:$0xff] %vm325_vm1, %v8213_v35  ;;  %v8218_v21 = vmax.f32 %v8186_v40, 0.0  ;;  %v8184_v36 = vadd.f32 %v9064_v63, %v8152_v51  ;;  %v8155_v38 = vadd.f32 %v13720_v52, %v8084_v26  ;;  %v8082_v60 = vadd.f32 %v8017_v53, %v7612_v28  ;;  %v14321_v63 = vld [vmem:[#allocation12_spill] sm:$0xff] }
 0x438   : > { %v10024_v45 = vpop.f32.mrf.mxu1  ;;  %v6893_v24 = vadd.f32 %v13699_v11, %v6534_v7  ;;  %v6896_v11 = vadd.f32 %v13705_v27, %v6537_v16  ;;  %v6535_v37 = vadd.f32 %v14321_v63, %v14320_v5  ;;  %v9071_v28 = vld [vmem:[%s10189_s6 + $0x159] sm:$0xff]  ;;  %v7579_v27 = vpop.f32.mrf.mxu0 }
 0x439   : > { %8250 = vst.msk [vmem:[%s13740_s27 + $0xb0] sm:$0xff] %vm325_vm1, %v8218_v21  ;;  %v8216_v14 = vmax.f32 %v8184_v36, 0.0  ;;  %v8187_v57 = vadd.f32 %v9067_v18, %v8155_v38  ;;  %v8153_v58 = vadd.f32 %v13720_v52, %v8082_v60  ;;  %v8087_v49 = vadd.f32 %v10024_v45, %v7617_v13  ;;  %v9074_v21 = vld [vmem:[%s10189_s6 + $0x181] sm:$0xff] }
 0x43a   : > { %v8030_v50 = vpop.f32.mrf.mxu1  ;;  %v7619_v41 = vadd.f32 %v7576_v19, %v6893_v24  ;;  %v6894_v43 = vadd.f32 %v13709_v34, %v6535_v37  ;;  %v7622_v13 = vadd.f32 %v9995_v62, %v6896_v11  ;;  %v9075_v19 = vld [vmem:[%s10189_s6 + $0x189] sm:$0xff] }
 0x43b   : > { %8248 = vst.msk [vmem:[%s13740_s27 + $0xa0] sm:$0xff] %vm325_vm1, %v8216_v14  ;;  %v8219_v30 = vmax.f32 %v8187_v57, 0.0  ;;  %v8185_v59 = vadd.f32 %v9065_v46, %v8153_v58  ;;  %v8158_v23 = vadd.f32 %v13720_v52, %v8087_v49  ;;  %v8085_v8 = vadd.f32 %v8030_v50, %v7615_v56 }
 0x43c   : > { %v10025_v32 = vpop.f32.mrf.mxu1  ;;  %v7620_v2 = vadd.f32 %v7579_v27, %v6894_v43 }
 0x43d   : > { %8251 = vst.msk [vmem:[%s13740_s27 + $0xb8] sm:$0xff] %vm325_vm1, %v8219_v30  ;;  %v8217_v31 = vmax.f32 %v8185_v59, 0.0  ;;  %v8190_v54 = vadd.f32 %v9070_v55, %v8158_v23  ;;  %v8156_v42 = vadd.f32 %v13720_v52, %v8085_v8  ;;  %v8088_v33 = vadd.f32 %v10025_v32, %v7618_v44 }
 0x43e   : > { %v8033_v35 = vpop.f32.mrf.mxu1 }
 0x43f   : > { %8249 = vst.msk [vmem:[%s13740_s27 + $0xa8] sm:$0xff] %vm325_vm1, %v8217_v31  ;;  %v8222_v39 = vmax.f32 %v8190_v54, 0.0  ;;  %v8188_v40 = vadd.f32 %v9068_v12, %v8156_v42  ;;  %v8159_v51 = vadd.f32 %v13720_v52, %v8088_v33  ;;  %v8086_v26 = vadd.f32 %v8033_v35, %v7616_v6 }
 0x440   : > { %v10028_v15 = vpop.f32.mrf.mxu1 }
 0x441   : > { %8254 = vst.msk [vmem:[%s13740_s27 + $0xd0] sm:$0xff] %vm325_vm1, %v8222_v39  ;;  %v8220_v48 = vmax.f32 %v8188_v40, 0.0  ;;  %v8191_v22 = vadd.f32 %v9071_v28, %v8159_v51  ;;  %v8157_v18 = vadd.f32 %v13720_v52, %v8086_v26  ;;  %v8091_v53 = vadd.f32 %v10028_v15, %v7621_v20 }
 0x442   : > { %v8046_v36 = vpop.f32.mrf.mxu1 }
 0x443   : > { %8252 = vst.msk [vmem:[%s13740_s27 + $0xc0] sm:$0xff] %vm325_vm1, %v8220_v48  ;;  %v8223_v34 = vmax.f32 %v8191_v22, 0.0  ;;  %v8189_v38 = vadd.f32 %v9069_v1, %v8157_v18  ;;  %v8162_v60 = vadd.f32 %v13720_v52, %v8091_v53  ;;  %v8089_v61 = vadd.f32 %v8046_v36, %v7619_v41 }
 0x444   : > { %v10029_v17 = vpop.f32.mrf.mxu1 }
 0x445   : > { %8255 = vst.msk [vmem:[%s13740_s27 + $0xd8] sm:$0xff] %vm325_vm1, %v8223_v34  ;;  %v8221_v25 = vmax.f32 %v8189_v38, 0.0  ;;  %v8194_v46 = vadd.f32 %v9074_v21, %v8162_v60  ;;  %v8160_v45 = vadd.f32 %v13720_v52, %v8089_v61  ;;  %v8092_v56 = vadd.f32 %v10029_v17, %v7622_v13 }
 0x446   : > { %v8049_v14 = vpop.f32.mrf.mxu1 }
 0x447   : > { %8253 = vst.msk [vmem:[%s13740_s27 + $0xc8] sm:$0xff] %vm325_vm1, %v8221_v25  ;;  %v8226_v57 = vmax.f32 %v8194_v46, 0.0  ;;  %v8192_v58 = vadd.f32 %v9072_v10, %v8160_v45  ;;  %v8163_v49 = vadd.f32 %v13720_v52, %v8092_v56  ;;  %v8090_v47 = vadd.f32 %v8049_v14, %v7620_v2 }
 0x449   : > { %8258 = vst.msk [vmem:[%s13740_s27 + $0xf0] sm:$0xff] %vm325_vm1, %v8226_v57  ;;  %v8224_v0 = vmax.f32 %v8192_v58, 0.0  ;;  %v8195_v9 = vadd.f32 %v9075_v19, %v8163_v49  ;;  %v8161_v7 = vadd.f32 %v13720_v52, %v8090_v47 }
 0x44b   : > { %8256 = vst.msk [vmem:[%s13740_s27 + $0xe0] sm:$0xff] %vm325_vm1, %v8224_v0  ;;  %v8227_v55 = vmax.f32 %v8195_v9, 0.0  ;;  %v8193_v50 = vadd.f32 %v9073_v4, %v8161_v7 }
 0x44d   : > { %8259 = vst.msk [vmem:[%s13740_s27 + $0xf8] sm:$0xff] %vm325_vm1, %v8227_v55  ;;  %v8225_v44 = vmax.f32 %v8193_v50, 0.0 }
 0x44f   : > { %8257 = vst.msk [vmem:[%s13740_s27 + $0xe8] sm:$0xff] %vm325_vm1, %v8225_v44 }
 0x450 PF: > { %s15_s18 = sadd.s32 1, %s10124_s18  }
 0x451   : > { %p12_p4 = scmp.ge.s32.totalorder %s15_s18, 4  }
 0x453   :  { %14 = sbr.rel (!%p12_p4) target bundleno = 1 (0x1), region = 91 }

</bundles_post_ra>
